<compile_context>
chip_gen: v6e
topology: v6e:2x2x1
jax: 0.10.0
libtpu: 0.0.40
codegen_flags: <defaults>
</compile_context>

<pallas_src>
import functools

import jax
import jax.numpy as jnp
from jax.experimental import pallas as pl
from jax.experimental.pallas import tpu as pltpu

Z_DIM = 10
_VMEM_LIMIT = 32 * 1024 * 1024


def _round_up(x, m):
    return ((x + m - 1) // m) * m


@functools.lru_cache(maxsize=1)
def _multi_tensorcore():
    # Only v7x (2 TensorCores per chip device) benefits from splitting M; on
    # single-TC v5e / v6e a split is pure grid-step overhead.
    try:
        kind = jax.devices()[0].device_kind.lower()
    except Exception:
        return False
    return "v7" in kind


# ----------------------------------------------------------------------------
# Pallas kernel: grouped matmul + bias + optional ReLU
# ----------------------------------------------------------------------------
def _mm_bias_act_kernel(x_ref, w_ref, b_ref, o_ref, *, relu, n_out):
    # x: (tm, Kp) bf16, w: (Kp, Np) bf16, b: (1, Np) f32 -> o: (tm, n_out)
    acc = jnp.dot(x_ref[...], w_ref[...], preferred_element_type=jnp.float32)
    acc = acc + b_ref[...]
    if relu:
        acc = jnp.maximum(acc, 0.0)
    o_ref[...] = acc[:, :n_out].astype(o_ref.dtype)


def grouped_matmul(x, w, b, n_out, relu, out_dtype):
    """out[g] = act(x[g] @ w[g] + b)[:, :n_out].

    x: (G, M, K) bf16 patches; w: (G, Kp, Np) bf16 (pre-packed at init);
    b: (1, Np) f32.  Returns (G, M, n_out) in out_dtype (no padded writeback).
    """
    G, M, K = x.shape
    Kp, Np = w.shape[-2:]
    if K != Kp:                                   # never triggers for this model
        x = jnp.pad(x, ((0, 0), (0, 0), (0, Kp - K)))

    # Single full-M block unless the split can actually shard across two TCs.
    if _multi_tensorcore() and G == 1 and M >= 2048 and M % 1024 == 0:
        tm = 1024
    else:
        tm = M

    out = pl.pallas_call(
        functools.partial(_mm_bias_act_kernel, relu=relu, n_out=n_out),
        out_shape=jax.ShapeDtypeStruct((G, M, n_out), out_dtype),
        grid=(G, M // tm),
        in_specs=[
            pl.BlockSpec((None, tm, Kp), lambda g, i: (g, i, 0)),
            pl.BlockSpec((None, Kp, Np), lambda g, i: (g, 0, 0)),
            pl.BlockSpec((1, Np), lambda g, i: (0, 0)),
        ],
        out_specs=pl.BlockSpec((None, tm, n_out), lambda g, i: (g, i, 0)),
        compiler_params=pltpu.CompilerParams(
            dimension_semantics=("parallel", "parallel"),
            vmem_limit_bytes=_VMEM_LIMIT),
    )(x, w, b)
    return out


# ----------------------------------------------------------------------------
# Fused bottleneck kernel: enc conv5 + stats head + reparam + dec1 + dec convT1
# ----------------------------------------------------------------------------
def _bottleneck_kernel(p_ref, eps_ref, w5_ref, b5_ref, w6_ref, b6_ref,
                       wd1_ref, bd1_ref, wd2_ref, bd2_ref,
                       stats_ref, z_ref, h_ref):
    # encoder conv5 (4x4, s1, p0 on a 4x4 map) == one matmul over the flat input
    h5 = jnp.dot(p_ref[...], w5_ref[...], preferred_element_type=jnp.float32)
    h5 = jnp.maximum(h5 + b5_ref[...], 0.0)                       # (B, 128) f32
    # encoder stats head (1x1 conv) kept in f32
    statsp = jnp.dot(h5, w6_ref[...], preferred_element_type=jnp.float32)
    stats = statsp[:, :2 * Z_DIM] + b6_ref[...]                   # (B, 20) f32
    stats_ref[...] = stats
    mu = stats[:, :Z_DIM]
    logvar = stats[:, Z_DIM:]
    # reparametrize (in-kernel, f32)
    z = mu + eps_ref[...] * jnp.exp(0.5 * logvar)                 # (B, 10) f32
    z_ref[...] = z
    # decoder 1x1 conv z -> 128 in f32 (K=10: unrolled VPU mul-adds, no tiny-K dot)
    wd1 = wd1_ref[...]                                            # (10, 128) f32
    h1 = bd1_ref[...] + sum(z[:, k:k + 1] * wd1[k:k + 1, :] for k in range(Z_DIM))
    h1 = jnp.maximum(h1, 0.0)                                     # (B, 128) f32
    # decoder ConvTranspose2d(128->64, k=4, s=1, p=0) from a 1x1 map: one matmul
    # onto the flattened (y, x, c_out) output.
    h2 = jnp.dot(h1.astype(jnp.bfloat16), wd2_ref[...],
                 preferred_element_type=jnp.float32)
    h2 = jnp.maximum(h2 + bd2_ref[...], 0.0)                      # (B, 1024) f32
    h_ref[...] = h2.astype(h_ref.dtype)


def _bottleneck(p5, eps, mid):
    B = p5.shape[0]
    return pl.pallas_call(
        _bottleneck_kernel,
        out_shape=(jax.ShapeDtypeStruct((B, 2 * Z_DIM), jnp.float32),
                   jax.ShapeDtypeStruct((B, Z_DIM), jnp.float32),
                   jax.ShapeDtypeStruct((B, 4 * 4 * 64), jnp.bfloat16)),
        compiler_params=pltpu.CompilerParams(vmem_limit_bytes=_VMEM_LIMIT),
    )(p5, eps, mid["w5"], mid["b5"], mid["w6"], mid["b6"],
      mid["wd1"], mid["bd1"], mid["wd2"], mid["bd2"])


# ----------------------------------------------------------------------------
# Conv glue (NHWC im2col in XLA, matmul in Pallas); weights are pre-packed
# ----------------------------------------------------------------------------
def conv2d_im2col(x, w, b, *, n_out, k, s, p, relu, out_dtype):
    B, H, W, C = x.shape
    Ho = (H + 2 * p - k) // s + 1
    Wo = (W + 2 * p - k) // s + 1
    xp = jnp.pad(x, ((0, 0), (p, p), (p, p), (0, 0)))
    cols = [xp[:, i:i + s * Ho:s, j:j + s * Wo:s, :]
            for i in range(k) for j in range(k)]
    patches = jnp.concatenate(cols, axis=-1).reshape(1, B * Ho * Wo, k * k * C)
    out = grouped_matmul(patches, w, b, n_out, relu, out_dtype)
    return out.reshape(B, Ho, Wo, n_out)


def _subpixel_meta(k, s, p):
    assert k % s == 0 and k == s + 2 * p, \
        "sub-pixel convT path assumes k % s == 0 and H_out == s * H"
    ks = k // s
    metas = []
    for r in range(s):
        d = (r + p) // s - (ks - 1)                  # input offset of window start
        taps = [(r + p) % s + (ks - 1 - u) * s for u in range(ks)]
        metas.append((d, taps))
    pad_lo = max(max(0, -d) for d, _ in metas)
    pad_hi = max(max(0, d + ks - 1) for d, _ in metas)
    return ks, metas, pad_lo, pad_hi


def conv_transpose2d_subpixel(x, w, b, *, n_out, k, s, p, relu, out_dtype):
    """Stride-s ConvTranspose2d as s*s stride-1 phase convs batched on G."""
    B, H, W, C = x.shape
    ks, metas, pad_lo, pad_hi = _subpixel_meta(k, s, p)
    xp = jnp.pad(x, ((0, 0), (pad_lo, pad_hi), (pad_lo, pad_hi), (0, 0)))
    M, K = B * H * W, ks * ks * C
    groups = []
    for ry in range(s):
        sy = metas[ry][0] + pad_lo
        for rx in range(s):
            sx = metas[rx][0] + pad_lo
            cols = [xp[:, sy + uy:sy + uy + H, sx + ux:sx + ux + W, :]
                    for uy in range(ks) for ux in range(ks)]
            groups.append(jnp.concatenate(cols, axis=-1).reshape(M, K))
    xg = jnp.stack(groups, axis=0)                    # (s*s, M, K) bf16
    out = grouped_matmul(xg, w, b, n_out, relu, out_dtype)   # (s*s, M, n_out)
    out = out.reshape(s, s, B, H, W, n_out).transpose(2, 3, 0, 4, 1, 5)
    return out.reshape(B, H * s, W * s, n_out)


# ----------------------------------------------------------------------------
# Parameters (normal_init: weights ~ N(0, 0.02), biases = 0) + packing
# ----------------------------------------------------------------------------
ENC_CFG = [  # (C_in, C_out, k, stride, pad)
    (1, 32, 4, 2, 1), (32, 32, 4, 2, 1), (32, 64, 4, 2, 1),
    (64, 64, 4, 2, 1), (64, 128, 4, 1, 0), (128, 2 * Z_DIM, 1, 1, 0),
]
DEC_CFG = [  # (kind, C_in, C_out, k, stride, pad)
    ("conv", Z_DIM, 128, 1, 1, 0),
    ("convT", 128, 64, 4, 1, 0),
    ("convT", 64, 64, 4, 2, 1),
    ("convT", 64, 32, 4, 2, 1),
    ("convT", 32, 32, 4, 2, 1),
    ("convT", 32, 1, 4, 2, 1),
]
ENC_S2 = ENC_CFG[:4]          # the four stride-2 convs
DEC_S2 = DEC_CFG[2:]          # the four stride-2 transposed convs


def init_params(key):
    params = {"enc": [], "dec": []}
    for cin, cout, k, _, _ in ENC_CFG:
        key, wk = jax.random.split(key)
        w = 0.02 * jax.random.normal(wk, (cout, cin, k, k), jnp.float32)
        params["enc"].append((w, jnp.zeros((cout,), jnp.float32)))
    for kind, cin, cout, k, _, _ in DEC_CFG:
        key, wk = jax.random.split(key)
        shape = (cout, cin, k, k) if kind == "conv" else (cin, cout, k, k)
        w = 0.02 * jax.random.normal(wk, shape, jnp.float32)
        params["dec"].append((w, jnp.zeros((cout,), jnp.float32)))
    return params


def _pack_w_b(w_mat, b):
    """(K, N) weight + (N,) bias -> ((1, Kp, Np) bf16, (1, Np) f32)."""
    K, N = w_mat.shape
    Kp = _round_up(max(K, 16), 16)            # bf16 packs 16 sublanes per vreg
    Np = _round_up(N, 128)                    # lane-dense MXU operand
    wp = jnp.pad(w_mat, ((0, Kp - K), (0, Np - N))).astype(jnp.bfloat16)
    bp = jnp.pad(b, (0, Np - N)).reshape(1, Np).astype(jnp.float32)
    return wp[None], bp


def _pack_grouped_w_b(w_g, b):
    G, K, N = w_g.shape
    Kp = _round_up(max(K, 16), 16)
    Np = _round_up(N, 128)
    wp = jnp.pad(w_g, ((0, 0), (0, Kp - K), (0, Np - N))).astype(jnp.bfloat16)
    bp = jnp.pad(b, (0, Np - N)).reshape(1, Np).astype(jnp.float32)
    return wp, bp


def pack_params(raw):
    """Hoist ALL weight preprocessing out of the jitted forward (done once)."""
    packed = {"enc": [], "dec": []}
    # encoder stride-2 convs (layers 0..3): K-order (i, j, c_in)
    for idx in range(4):
        w, b = raw["enc"][idx]
        cout, cin, k, _ = w.shape
        w_mat = w.transpose(2, 3, 1, 0).reshape(k * k * cin, cout)
        packed["enc"].append(_pack_w_b(w_mat, b))
    # fused bottleneck block: enc conv5/conv6 + dec conv1/convT1
    (w5, b5), (w6, b6) = raw["enc"][4], raw["enc"][5]
    (wd1, bd1), (wd2, bd2) = raw["dec"][0], raw["dec"][1]
    packed["mid"] = {
        "w5": w5.transpose(2, 3, 1, 0).reshape(4 * 4 * 64, 128).astype(jnp.bfloat16),
        "b5": b5.reshape(1, 128).astype(jnp.float32),
        # stats head kept f32; N padded to 128 so the in-kernel dot is lane-dense
        "w6": jnp.pad(w6.reshape(2 * Z_DIM, 128).T,
                      ((0, 0), (0, 128 - 2 * Z_DIM))).astype(jnp.float32),
        "b6": b6.reshape(1, 2 * Z_DIM).astype(jnp.float32),
        "wd1": wd1.reshape(128, Z_DIM).T.astype(jnp.float32),        # (10, 128)
        "bd1": bd1.reshape(1, 128).astype(jnp.float32),
        # ConvTranspose2d(128, 64, 4) from a 1x1 map: rows=c_in, cols=(y, x, c_out)
        "wd2": wd2.transpose(0, 2, 3, 1).reshape(128, 4 * 4 * 64).astype(jnp.bfloat16),
        "bd2": jnp.tile(bd2, 16).reshape(1, 4 * 4 * 64).astype(jnp.float32),
    }
    # decoder stride-2 transposed convs (layers 2..5): sub-pixel tap gathers
    for idx in range(2, 6):
        w, b = raw["dec"][idx]                        # (C_in, C_out, k, k)
        cin, cout, k, _ = w.shape
        s, p = 2, 1
        ks, metas, _, _ = _subpixel_meta(k, s, p)
        groups = []
        for ry in range(s):
            iy = metas[ry][1]
            for rx in range(s):
                ix = metas[rx][1]
                wsub = w[:, :, iy, :][:, :, :, ix]    # (cin, cout, ks, ks)
                groups.append(wsub.transpose(2, 3, 0, 1).reshape(ks * ks * cin, cout))
        packed["dec"].append(_pack_grouped_w_b(jnp.stack(groups, 0), b))
    return packed


# ----------------------------------------------------------------------------
# Forward pass (matches FactorVAE1.forward with no_dec=False)
# ----------------------------------------------------------------------------
def factorvae1_forward(x, packed, eps):
    B = x.shape[0]
    h = x.transpose(0, 2, 3, 1).astype(jnp.bfloat16)      # NCHW -> NHWC, bf16

    # ---- encoder: four stride-2 convs (one Pallas matmul each, bf16 out) ----
    for (cin, cout, k, s, p), (w, b) in zip(ENC_S2, packed["enc"]):
        h = conv2d_im2col(h, w, b, n_out=cout, k=k, s=s, p=p,
                          relu=True, out_dtype=jnp.bfloat16)

    # ---- fused bottleneck: conv5 + stats head + reparam + dec1 + dec convT1 ----
    p5 = h.reshape(B, 4 * 4 * 64)        # conv5 (k=4, p=0) patches == flat activation
    stats, z, hd = _bottleneck(p5, eps.astype(jnp.float32), packed["mid"])
    h = hd.reshape(B, 4, 4, 64)

    # ---- decoder: four stride-2 transposed convs ----
    n_dec = len(DEC_S2)
    for idx, ((kind, cin, cout, k, s, p), (w, b)) in enumerate(zip(DEC_S2, packed["dec"])):
        last = idx == n_dec - 1
        h = conv_transpose2d_subpixel(
            h, w, b, n_out=cout, k=k, s=s, p=p, relu=not last,
            out_dtype=jnp.float32 if last else jnp.bfloat16)

    x_recon = h.transpose(0, 3, 1, 2).reshape(x.shape)
    mu = stats[:, :Z_DIM].reshape(B, Z_DIM, 1, 1)
    logvar = stats[:, Z_DIM:].reshape(B, Z_DIM, 1, 1)
    return x_recon, mu, logvar, z


# ----------------------------------------------------------------------------
# Plain-JAX f32 reference (for correctness check)
# ----------------------------------------------------------------------------
def reference_forward(x, params, eps):
    hi = jax.lax.Precision.HIGHEST
    h = x
    n_enc = len(ENC_CFG)
    for idx, ((_, _, _, s, p), (w, b)) in enumerate(zip(ENC_CFG, params["enc"])):
        h = jax.lax.conv_general_dilated(
            h, w, (s, s), [(p, p), (p, p)],
            dimension_numbers=("NCHW", "OIHW", "NCHW"),
            precision=hi) + b.reshape(1, -1, 1, 1)
        if idx < n_enc - 1:
            h = jnp.maximum(h, 0.0)
    B = x.shape[0]
    mu = h[:, :Z_DIM]
    logvar = h[:, Z_DIM:]
    z = mu.reshape(B, Z_DIM) + eps * jnp.exp(0.5 * logvar.reshape(B, Z_DIM))
    h = z.reshape(B, Z_DIM, 1, 1)
    n_dec = len(DEC_CFG)
    for idx, ((kind, _, _, k, s, p), (w, b)) in enumerate(zip(DEC_CFG, params["dec"])):
        if kind == "conv":
            h = jax.lax.conv_general_dilated(
                h, w, (s, s), [(p, p), (p, p)],
                dimension_numbers=("NCHW", "OIHW", "NCHW"),
                precision=hi) + b.reshape(1, -1, 1, 1)
        else:
            w_conv = jnp.flip(w, axis=(2, 3)).transpose(1, 0, 2, 3)
            h = jax.lax.conv_general_dilated(
                h, w_conv, (1, 1), [(k - 1 - p, k - 1 - p)] * 2,
                lhs_dilation=(s, s),
                dimension_numbers=("NCHW", "OIHW", "NCHW"),
                precision=hi) + b.reshape(1, -1, 1, 1)
        if idx < n_dec - 1:
            h = jnp.maximum(h, 0.0)
    return h.reshape(x.shape), mu, logvar, z


if __name__ == "__main__":
    key = jax.random.PRNGKey(0)
    kx, keps, kparams = jax.random.split(key, 3)

    # 2D Shapes (dSprites) images: the conv stack requires 64x64 spatial input.
    x = jax.random.normal(kx, (2, 1, 64, 64), jnp.float32)
    eps = jax.random.normal(keps, (2, Z_DIM), jnp.float32)
    raw_params = init_params(kparams)
    packed = pack_params(raw_params)          # weight prep hoisted out of jit

    fwd = jax.jit(factorvae1_forward)
    x_recon, mu, logvar, z = jax.block_until_ready(fwd(x, packed, eps))

    assert x_recon.shape == x.shape
    assert mu.shape == (2, Z_DIM, 1, 1)
    assert logvar.shape == (2, Z_DIM, 1, 1)
    assert z.shape == (2, Z_DIM)

    # Numerical check vs plain-JAX f32 reference (loose tol: bf16 MXU inputs).
    rx, rmu, rlogvar, rz = reference_forward(x, raw_params, eps)
    for name, a, r in (("x_recon", x_recon, rx), ("mu", mu, rmu),
                       ("logvar", logvar, rlogvar), ("z", z, rz)):
        err = float(jnp.max(jnp.abs(a - r)))
        tol = 0.1 * float(jnp.max(jnp.abs(r))) + 1e-6
        assert err <= tol, f"{name}: max_err={err} tol={tol}"

    print("KERNEL_OK")
</pallas_src>

<mosaic_0001>
module attributes {stable_mosaic.version = 11 : i64} {
  func.func @_mm_bias_act_kernel(%arg0: i32, %arg1: i32, %arg2: memref<1x2048x16xbf16, #tpu.memory_space<vmem>>, %arg3: memref<1x16x128xbf16, #tpu.memory_space<vmem>>, %arg4: memref<1x128xf32, #tpu.memory_space<vmem>>, %arg5: memref<1x2048x32xbf16, #tpu.memory_space<vmem>>) attributes {dimension_semantics = [#tpu.dimension_semantics<parallel>, #tpu.dimension_semantics<parallel>], iteration_bounds = array<i64: 1, 1>, scalar_prefetch = 0 : i64, scratch_operands = 0 : i64, tpu.core_type = #tpu.core_type<tc>, window_params = [{transform_indices = @transform_0, window_bounds = array<i64: 1, 2048, 16>}, {transform_indices = @transform_1, window_bounds = array<i64: 1, 16, 128>}, {pipeline_mode = #tpu.pipeline_mode<synchronous>, transform_indices = @transform_2, window_bounds = array<i64: 1, 128>}, {transform_indices = @transform_3, window_bounds = array<i64: 1, 2048, 32>}]} {
    %c0 = arith.constant 0 : index
    %c0_0 = arith.constant 0 : index
    %c0_1 = arith.constant 0 : index
    %0 = vector.load %arg2[%c0, %c0_0, %c0_1] : memref<1x2048x16xbf16, #tpu.memory_space<vmem>>, vector<1x2048x16xbf16>
    %1 = vector.shape_cast %0 : vector<1x2048x16xbf16> to vector<2048x16xbf16>
    %c0_2 = arith.constant 0 : index
    %c0_3 = arith.constant 0 : index
    %c0_4 = arith.constant 0 : index
    %2 = vector.load %arg3[%c0_2, %c0_3, %c0_4] : memref<1x16x128xbf16, #tpu.memory_space<vmem>>, vector<1x16x128xbf16>
    %3 = vector.shape_cast %2 : vector<1x16x128xbf16> to vector<16x128xbf16>
    %cst = arith.constant dense<0.000000e+00> : vector<2048x128xf32>
    %4 = tpu.matmul %1, %3, %cst {dimension_numbers = #tpu.dot_dimension_numbers<[1], [0], [0], [1], [0, 0, 1, 1], [], []>} : vector<2048x16xbf16>, vector<16x128xbf16>, vector<2048x128xf32> -> vector<2048x128xf32>
    %c0_5 = arith.constant 0 : index
    %c0_6 = arith.constant 0 : index
    %5 = vector.load %arg4[%c0_5, %c0_6] : memref<1x128xf32, #tpu.memory_space<vmem>>, vector<1x128xf32>
    %6 = vector.broadcast %5 : vector<1x128xf32> to vector<2048x128xf32>
    %7 = arith.addf %4, %6 : vector<2048x128xf32>
    %cst_7 = arith.constant 0.000000e+00 : f32
    %8 = vector.broadcast %cst_7 : f32 to vector<2048x128xf32>
    %9 = arith.maximumf %7, %8 : vector<2048x128xf32>
    %10 = vector.extract_strided_slice %9 {offsets = [0, 0], sizes = [2048, 32], strides = [1, 1]} : vector<2048x128xf32> to vector<2048x32xf32>
    %11 = arith.truncf %10 : vector<2048x32xf32> to vector<2048x32xbf16>
    %c0_8 = arith.constant 0 : index
    %c0_9 = arith.constant 0 : index
    %c0_10 = arith.constant 0 : index
    %12 = vector.load %arg5[%c0_8, %c0_9, %c0_10] : memref<1x2048x32xbf16, #tpu.memory_space<vmem>>, vector<1x2048x32xbf16>
    %13 = vector.shape_cast %12 : vector<1x2048x32xbf16> to vector<2048x32xbf16>
    %14 = vector.shape_cast %11 : vector<2048x32xbf16> to vector<1x2048x32xbf16>
    tpu.vector_store %arg5[%c0_8, %c0_9, %c0_10], %14 {strides = array<i32>} : memref<1x2048x32xbf16, #tpu.memory_space<vmem>>, vector<1x2048x32xbf16>,
    return
  }
  func.func @transform_0(%arg0: i32, %arg1: i32) -> (i32, i32, i32) {
    %c0_i32 = arith.constant 0 : i32
    %c0_i32_0 = arith.constant 0 : i32
    return %arg0, %arg1, %c0_i32 : i32, i32, i32
  }
  func.func @transform_1(%arg0: i32, %arg1: i32) -> (i32, i32, i32) {
    %c0_i32 = arith.constant 0 : i32
    %c0_i32_0 = arith.constant 0 : i32
    %c0_i32_1 = arith.constant 0 : i32
    return %arg0, %c0_i32, %c0_i32_0 : i32, i32, i32
  }
  func.func @transform_2(%arg0: i32, %arg1: i32) -> (i32, i32) {
    %c0_i32 = arith.constant 0 : i32
    %c0_i32_0 = arith.constant 0 : i32
    %c0_i32_1 = arith.constant 0 : i32
    return %c0_i32, %c0_i32_0 : i32, i32
  }
  func.func @transform_3(%arg0: i32, %arg1: i32) -> (i32, i32, i32) {
    %c0_i32 = arith.constant 0 : i32
    %c0_i32_0 = arith.constant 0 : i32
    return %arg0, %arg1, %c0_i32 : i32, i32, i32
  }
}

module attributes {stable_mosaic.version = 11 : i64} {
  func.func @_mm_bias_act_kernel(%arg0: i32, %arg1: i32, %arg2: memref<1x512x512xbf16, #tpu.memory_space<vmem>>, %arg3: memref<1x512x128xbf16, #tpu.memory_space<vmem>>, %arg4: memref<1x128xf32, #tpu.memory_space<vmem>>, %arg5: memref<1x512x32xbf16, #tpu.memory_space<vmem>>) attributes {dimension_semantics = [#tpu.dimension_semantics<parallel>, #tpu.dimension_semantics<parallel>], iteration_bounds = array<i64: 1, 1>, scalar_prefetch = 0 : i64, scratch_operands = 0 : i64, tpu.core_type = #tpu.core_type<tc>, window_params = [{transform_indices = @transform_0, window_bounds = array<i64: 1, 512, 512>}, {transform_indices = @transform_1, window_bounds = array<i64: 1, 512, 128>}, {pipeline_mode = #tpu.pipeline_mode<synchronous>, transform_indices = @transform_2, window_bounds = array<i64: 1, 128>}, {transform_indices = @transform_3, window_bounds = array<i64: 1, 512, 32>}]} {
    %c0 = arith.constant 0 : index
    %c0_0 = arith.constant 0 : index
    %c0_1 = arith.constant 0 : index
    %0 = vector.load %arg2[%c0, %c0_0, %c0_1] : memref<1x512x512xbf16, #tpu.memory_space<vmem>>, vector<1x512x512xbf16>
    %1 = vector.shape_cast %0 : vector<1x512x512xbf16> to vector<512x512xbf16>
    %c0_2 = arith.constant 0 : index
    %c0_3 = arith.constant 0 : index
    %c0_4 = arith.constant 0 : index
    %2 = vector.load %arg3[%c0_2, %c0_3, %c0_4] : memref<1x512x128xbf16, #tpu.memory_space<vmem>>, vector<1x512x128xbf16>
    %3 = vector.shape_cast %2 : vector<1x512x128xbf16> to vector<512x128xbf16>
    %cst = arith.constant dense<0.000000e+00> : vector<512x128xf32>
    %4 = tpu.matmul %1, %3, %cst {dimension_numbers = #tpu.dot_dimension_numbers<[1], [0], [0], [1], [0, 0, 1, 1], [], []>} : vector<512x512xbf16>, vector<512x128xbf16>, vector<512x128xf32> -> vector<512x128xf32>
    %c0_5 = arith.constant 0 : index
    %c0_6 = arith.constant 0 : index
    %5 = vector.load %arg4[%c0_5, %c0_6] : memref<1x128xf32, #tpu.memory_space<vmem>>, vector<1x128xf32>
    %6 = vector.broadcast %5 : vector<1x128xf32> to vector<512x128xf32>
    %7 = arith.addf %4, %6 : vector<512x128xf32>
    %cst_7 = arith.constant 0.000000e+00 : f32
    %8 = vector.broadcast %cst_7 : f32 to vector<512x128xf32>
    %9 = arith.maximumf %7, %8 : vector<512x128xf32>
    %10 = vector.extract_strided_slice %9 {offsets = [0, 0], sizes = [512, 32], strides = [1, 1]} : vector<512x128xf32> to vector<512x32xf32>
    %11 = arith.truncf %10 : vector<512x32xf32> to vector<512x32xbf16>
    %c0_8 = arith.constant 0 : index
    %c0_9 = arith.constant 0 : index
    %c0_10 = arith.constant 0 : index
    %12 = vector.load %arg5[%c0_8, %c0_9, %c0_10] : memref<1x512x32xbf16, #tpu.memory_space<vmem>>, vector<1x512x32xbf16>
    %13 = vector.shape_cast %12 : vector<1x512x32xbf16> to vector<512x32xbf16>
    %14 = vector.shape_cast %11 : vector<512x32xbf16> to vector<1x512x32xbf16>
    tpu.vector_store %arg5[%c0_8, %c0_9, %c0_10], %14 {strides = array<i32>} : memref<1x512x32xbf16, #tpu.memory_space<vmem>>, vector<1x512x32xbf16>,
    return
  }
  func.func @transform_0(%arg0: i32, %arg1: i32) -> (i32, i32, i32) {
    %c0_i32 = arith.constant 0 : i32
    %c0_i32_0 = arith.constant 0 : i32
    return %arg0, %arg1, %c0_i32 : i32, i32, i32
  }
  func.func @transform_1(%arg0: i32, %arg1: i32) -> (i32, i32, i32) {
    %c0_i32 = arith.constant 0 : i32
    %c0_i32_0 = arith.constant 0 : i32
    %c0_i32_1 = arith.constant 0 : i32
    return %arg0, %c0_i32, %c0_i32_0 : i32, i32, i32
  }
  func.func @transform_2(%arg0: i32, %arg1: i32) -> (i32, i32) {
    %c0_i32 = arith.constant 0 : i32
    %c0_i32_0 = arith.constant 0 : i32
    %c0_i32_1 = arith.constant 0 : i32
    return %c0_i32, %c0_i32_0 : i32, i32
  }
  func.func @transform_3(%arg0: i32, %arg1: i32) -> (i32, i32, i32) {
    %c0_i32 = arith.constant 0 : i32
    %c0_i32_0 = arith.constant 0 : i32
    return %arg0, %arg1, %c0_i32 : i32, i32, i32
  }
}

module attributes {stable_mosaic.version = 11 : i64} {
  func.func @_mm_bias_act_kernel(%arg0: i32, %arg1: i32, %arg2: memref<1x128x512xbf16, #tpu.memory_space<vmem>>, %arg3: memref<1x512x128xbf16, #tpu.memory_space<vmem>>, %arg4: memref<1x128xf32, #tpu.memory_space<vmem>>, %arg5: memref<1x128x64xbf16, #tpu.memory_space<vmem>>) attributes {dimension_semantics = [#tpu.dimension_semantics<parallel>, #tpu.dimension_semantics<parallel>], iteration_bounds = array<i64: 1, 1>, scalar_prefetch = 0 : i64, scratch_operands = 0 : i64, tpu.core_type = #tpu.core_type<tc>, window_params = [{transform_indices = @transform_0, window_bounds = array<i64: 1, 128, 512>}, {transform_indices = @transform_1, window_bounds = array<i64: 1, 512, 128>}, {pipeline_mode = #tpu.pipeline_mode<synchronous>, transform_indices = @transform_2, window_bounds = array<i64: 1, 128>}, {transform_indices = @transform_3, window_bounds = array<i64: 1, 128, 64>}]} {
    %c0 = arith.constant 0 : index
    %c0_0 = arith.constant 0 : index
    %c0_1 = arith.constant 0 : index
    %0 = vector.load %arg2[%c0, %c0_0, %c0_1] : memref<1x128x512xbf16, #tpu.memory_space<vmem>>, vector<1x128x512xbf16>
    %1 = vector.shape_cast %0 : vector<1x128x512xbf16> to vector<128x512xbf16>
    %c0_2 = arith.constant 0 : index
    %c0_3 = arith.constant 0 : index
    %c0_4 = arith.constant 0 : index
    %2 = vector.load %arg3[%c0_2, %c0_3, %c0_4] : memref<1x512x128xbf16, #tpu.memory_space<vmem>>, vector<1x512x128xbf16>
    %3 = vector.shape_cast %2 : vector<1x512x128xbf16> to vector<512x128xbf16>
    %cst = arith.constant dense<0.000000e+00> : vector<128x128xf32>
    %4 = tpu.matmul %1, %3, %cst {dimension_numbers = #tpu.dot_dimension_numbers<[1], [0], [0], [1], [0, 0, 1, 1], [], []>} : vector<128x512xbf16>, vector<512x128xbf16>, vector<128x128xf32> -> vector<128x128xf32>
    %c0_5 = arith.constant 0 : index
    %c0_6 = arith.constant 0 : index
    %5 = vector.load %arg4[%c0_5, %c0_6] : memref<1x128xf32, #tpu.memory_space<vmem>>, vector<1x128xf32>
    %6 = vector.broadcast %5 : vector<1x128xf32> to vector<128x128xf32>
    %7 = arith.addf %4, %6 : vector<128x128xf32>
    %cst_7 = arith.constant 0.000000e+00 : f32
    %8 = vector.broadcast %cst_7 : f32 to vector<128x128xf32>
    %9 = arith.maximumf %7, %8 : vector<128x128xf32>
    %10 = vector.extract_strided_slice %9 {offsets = [0, 0], sizes = [128, 64], strides = [1, 1]} : vector<128x128xf32> to vector<128x64xf32>
    %11 = arith.truncf %10 : vector<128x64xf32> to vector<128x64xbf16>
    %c0_8 = arith.constant 0 : index
    %c0_9 = arith.constant 0 : index
    %c0_10 = arith.constant 0 : index
    %12 = vector.load %arg5[%c0_8, %c0_9, %c0_10] : memref<1x128x64xbf16, #tpu.memory_space<vmem>>, vector<1x128x64xbf16>
    %13 = vector.shape_cast %12 : vector<1x128x64xbf16> to vector<128x64xbf16>
    %14 = vector.shape_cast %11 : vector<128x64xbf16> to vector<1x128x64xbf16>
    tpu.vector_store %arg5[%c0_8, %c0_9, %c0_10], %14 {strides = array<i32>} : memref<1x128x64xbf16, #tpu.memory_space<vmem>>, vector<1x128x64xbf16>,
    return
  }
  func.func @transform_0(%arg0: i32, %arg1: i32) -> (i32, i32, i32) {
    %c0_i32 = arith.constant 0 : i32
    %c0_i32_0 = arith.constant 0 : i32
    return %arg0, %arg1, %c0_i32 : i32, i32, i32
  }
  func.func @transform_1(%arg0: i32, %arg1: i32) -> (i32, i32, i32) {
    %c0_i32 = arith.constant 0 : i32
    %c0_i32_0 = arith.constant 0 : i32
    %c0_i32_1 = arith.constant 0 : i32
    return %arg0, %c0_i32, %c0_i32_0 : i32, i32, i32
  }
  func.func @transform_2(%arg0: i32, %arg1: i32) -> (i32, i32) {
    %c0_i32 = arith.constant 0 : i32
    %c0_i32_0 = arith.constant 0 : i32
    %c0_i32_1 = arith.constant 0 : i32
    return %c0_i32, %c0_i32_0 : i32, i32
  }
  func.func @transform_3(%arg0: i32, %arg1: i32) -> (i32, i32, i32) {
    %c0_i32 = arith.constant 0 : i32
    %c0_i32_0 = arith.constant 0 : i32
    return %arg0, %arg1, %c0_i32 : i32, i32, i32
  }
}

module attributes {stable_mosaic.version = 11 : i64} {
  func.func @_mm_bias_act_kernel(%arg0: i32, %arg1: i32, %arg2: memref<1x32x1024xbf16, #tpu.memory_space<vmem>>, %arg3: memref<1x1024x128xbf16, #tpu.memory_space<vmem>>, %arg4: memref<1x128xf32, #tpu.memory_space<vmem>>, %arg5: memref<1x32x64xbf16, #tpu.memory_space<vmem>>) attributes {dimension_semantics = [#tpu.dimension_semantics<parallel>, #tpu.dimension_semantics<parallel>], iteration_bounds = array<i64: 1, 1>, scalar_prefetch = 0 : i64, scratch_operands = 0 : i64, tpu.core_type = #tpu.core_type<tc>, window_params = [{transform_indices = @transform_0, window_bounds = array<i64: 1, 32, 1024>}, {transform_indices = @transform_1, window_bounds = array<i64: 1, 1024, 128>}, {pipeline_mode = #tpu.pipeline_mode<synchronous>, transform_indices = @transform_2, window_bounds = array<i64: 1, 128>}, {transform_indices = @transform_3, window_bounds = array<i64: 1, 32, 64>}]} {
    %c0 = arith.constant 0 : index
    %c0_0 = arith.constant 0 : index
    %c0_1 = arith.constant 0 : index
    %0 = vector.load %arg2[%c0, %c0_0, %c0_1] : memref<1x32x1024xbf16, #tpu.memory_space<vmem>>, vector<1x32x1024xbf16>
    %1 = vector.shape_cast %0 : vector<1x32x1024xbf16> to vector<32x1024xbf16>
    %c0_2 = arith.constant 0 : index
    %c0_3 = arith.constant 0 : index
    %c0_4 = arith.constant 0 : index
    %2 = vector.load %arg3[%c0_2, %c0_3, %c0_4] : memref<1x1024x128xbf16, #tpu.memory_space<vmem>>, vector<1x1024x128xbf16>
    %3 = vector.shape_cast %2 : vector<1x1024x128xbf16> to vector<1024x128xbf16>
    %cst = arith.constant dense<0.000000e+00> : vector<32x128xf32>
    %4 = tpu.matmul %1, %3, %cst {dimension_numbers = #tpu.dot_dimension_numbers<[1], [0], [0], [1], [0, 0, 1, 1], [], []>} : vector<32x1024xbf16>, vector<1024x128xbf16>, vector<32x128xf32> -> vector<32x128xf32>
    %c0_5 = arith.constant 0 : index
    %c0_6 = arith.constant 0 : index
    %5 = vector.load %arg4[%c0_5, %c0_6] : memref<1x128xf32, #tpu.memory_space<vmem>>, vector<1x128xf32>
    %6 = vector.broadcast %5 : vector<1x128xf32> to vector<32x128xf32>
    %7 = arith.addf %4, %6 : vector<32x128xf32>
    %cst_7 = arith.constant 0.000000e+00 : f32
    %8 = vector.broadcast %cst_7 : f32 to vector<32x128xf32>
    %9 = arith.maximumf %7, %8 : vector<32x128xf32>
    %10 = vector.extract_strided_slice %9 {offsets = [0, 0], sizes = [32, 64], strides = [1, 1]} : vector<32x128xf32> to vector<32x64xf32>
    %11 = arith.truncf %10 : vector<32x64xf32> to vector<32x64xbf16>
    %c0_8 = arith.constant 0 : index
    %c0_9 = arith.constant 0 : index
    %c0_10 = arith.constant 0 : index
    %12 = vector.load %arg5[%c0_8, %c0_9, %c0_10] : memref<1x32x64xbf16, #tpu.memory_space<vmem>>, vector<1x32x64xbf16>
    %13 = vector.shape_cast %12 : vector<1x32x64xbf16> to vector<32x64xbf16>
    %14 = vector.shape_cast %11 : vector<32x64xbf16> to vector<1x32x64xbf16>
    tpu.vector_store %arg5[%c0_8, %c0_9, %c0_10], %14 {strides = array<i32>} : memref<1x32x64xbf16, #tpu.memory_space<vmem>>, vector<1x32x64xbf16>,
    return
  }
  func.func @transform_0(%arg0: i32, %arg1: i32) -> (i32, i32, i32) {
    %c0_i32 = arith.constant 0 : i32
    %c0_i32_0 = arith.constant 0 : i32
    return %arg0, %arg1, %c0_i32 : i32, i32, i32
  }
  func.func @transform_1(%arg0: i32, %arg1: i32) -> (i32, i32, i32) {
    %c0_i32 = arith.constant 0 : i32
    %c0_i32_0 = arith.constant 0 : i32
    %c0_i32_1 = arith.constant 0 : i32
    return %arg0, %c0_i32, %c0_i32_0 : i32, i32, i32
  }
  func.func @transform_2(%arg0: i32, %arg1: i32) -> (i32, i32) {
    %c0_i32 = arith.constant 0 : i32
    %c0_i32_0 = arith.constant 0 : i32
    %c0_i32_1 = arith.constant 0 : i32
    return %c0_i32, %c0_i32_0 : i32, i32
  }
  func.func @transform_3(%arg0: i32, %arg1: i32) -> (i32, i32, i32) {
    %c0_i32 = arith.constant 0 : i32
    %c0_i32_0 = arith.constant 0 : i32
    return %arg0, %arg1, %c0_i32 : i32, i32, i32
  }
}

module attributes {stable_mosaic.version = 11 : i64} {
  func.func @_bottleneck_kernel(%arg0: memref<2x1024xbf16, #tpu.memory_space<vmem>>, %arg1: memref<2x10xf32, #tpu.memory_space<vmem>>, %arg2: memref<1024x128xbf16, #tpu.memory_space<vmem>>, %arg3: memref<1x128xf32, #tpu.memory_space<vmem>>, %arg4: memref<128x128xf32, #tpu.memory_space<vmem>>, %arg5: memref<1x20xf32, #tpu.memory_space<vmem>>, %arg6: memref<10x128xf32, #tpu.memory_space<vmem>>, %arg7: memref<1x128xf32, #tpu.memory_space<vmem>>, %arg8: memref<128x1024xbf16, #tpu.memory_space<vmem>>, %arg9: memref<1x1024xf32, #tpu.memory_space<vmem>>, %arg10: memref<2x20xf32, #tpu.memory_space<vmem>>, %arg11: memref<2x10xf32, #tpu.memory_space<vmem>>, %arg12: memref<2x1024xbf16, #tpu.memory_space<vmem>>) attributes {dimension_semantics = [], scalar_prefetch = 0 : i64, scratch_operands = 0 : i64, tpu.core_type = #tpu.core_type<tc>} {
    %c0 = arith.constant 0 : index
    %c0_0 = arith.constant 0 : index
    %0 = vector.load %arg0[%c0, %c0_0] : memref<2x1024xbf16, #tpu.memory_space<vmem>>, vector<2x1024xbf16>
    %c0_1 = arith.constant 0 : index
    %c0_2 = arith.constant 0 : index
    %1 = vector.load %arg2[%c0_1, %c0_2] : memref<1024x128xbf16, #tpu.memory_space<vmem>>, vector<1024x128xbf16>
    %cst = arith.constant dense<0.000000e+00> : vector<2x128xf32>
    %2 = tpu.matmul %0, %1, %cst {dimension_numbers = #tpu.dot_dimension_numbers<[1], [0], [0], [1], [0, 0, 1, 1], [], []>} : vector<2x1024xbf16>, vector<1024x128xbf16>, vector<2x128xf32> -> vector<2x128xf32>
    %c0_3 = arith.constant 0 : index
    %c0_4 = arith.constant 0 : index
    %3 = vector.load %arg3[%c0_3, %c0_4] : memref<1x128xf32, #tpu.memory_space<vmem>>, vector<1x128xf32>
    %4 = vector.broadcast %3 : vector<1x128xf32> to vector<2x128xf32>
    %5 = arith.addf %2, %4 : vector<2x128xf32>
    %cst_5 = arith.constant 0.000000e+00 : f32
    %6 = vector.broadcast %cst_5 : f32 to vector<2x128xf32>
    %7 = arith.maximumf %5, %6 : vector<2x128xf32>
    %c0_6 = arith.constant 0 : index
    %c0_7 = arith.constant 0 : index
    %8 = vector.load %arg4[%c0_6, %c0_7] : memref<128x128xf32, #tpu.memory_space<vmem>>, vector<128x128xf32>
    %cst_8 = arith.constant dense<0.000000e+00> : vector<2x128xf32>
    %9 = tpu.matmul %7, %8, %cst_8 {dimension_numbers = #tpu.dot_dimension_numbers<[1], [0], [0], [1], [0, 0, 1, 1], [], []>} : vector<2x128xf32>, vector<128x128xf32>, vector<2x128xf32> -> vector<2x128xf32>
    %10 = vector.extract_strided_slice %9 {offsets = [0, 0], sizes = [2, 20], strides = [1, 1]} : vector<2x128xf32> to vector<2x20xf32>
    %c0_9 = arith.constant 0 : index
    %c0_10 = arith.constant 0 : index
    %11 = vector.load %arg5[%c0_9, %c0_10] : memref<1x20xf32, #tpu.memory_space<vmem>>, vector<1x20xf32>
    %12 = vector.broadcast %11 : vector<1x20xf32> to vector<2x20xf32>
    %13 = arith.addf %10, %12 : vector<2x20xf32>
    %c0_11 = arith.constant 0 : index
    %c0_12 = arith.constant 0 : index
    %14 = vector.load %arg10[%c0_11, %c0_12] : memref<2x20xf32, #tpu.memory_space<vmem>>, vector<2x20xf32>
    tpu.vector_store %arg10[%c0_11, %c0_12], %13 {strides = array<i32>} : memref<2x20xf32, #tpu.memory_space<vmem>>, vector<2x20xf32>,
    %15 = vector.extract_strided_slice %13 {offsets = [0, 0], sizes = [2, 10], strides = [1, 1]} : vector<2x20xf32> to vector<2x10xf32>
    %16 = vector.extract_strided_slice %13 {offsets = [0, 10], sizes = [2, 10], strides = [1, 1]} : vector<2x20xf32> to vector<2x10xf32>
    %c0_13 = arith.constant 0 : index
    %c0_14 = arith.constant 0 : index
    %17 = vector.load %arg1[%c0_13, %c0_14] : memref<2x10xf32, #tpu.memory_space<vmem>>, vector<2x10xf32>
    %cst_15 = arith.constant 5.000000e-01 : f32
    %18 = vector.broadcast %cst_15 : f32 to vector<2x10xf32>
    %19 = arith.mulf %18, %16 : vector<2x10xf32>
    %20 = math.exp %19 : vector<2x10xf32>
    %21 = arith.mulf %17, %20 : vector<2x10xf32>
    %22 = arith.addf %15, %21 : vector<2x10xf32>
    %c0_16 = arith.constant 0 : index
    %c0_17 = arith.constant 0 : index
    %23 = vector.load %arg11[%c0_16, %c0_17] : memref<2x10xf32, #tpu.memory_space<vmem>>, vector<2x10xf32>
    tpu.vector_store %arg11[%c0_16, %c0_17], %22 {strides = array<i32>} : memref<2x10xf32, #tpu.memory_space<vmem>>, vector<2x10xf32>,
    %c0_18 = arith.constant 0 : index
    %c0_19 = arith.constant 0 : index
    %24 = vector.load %arg6[%c0_18, %c0_19] : memref<10x128xf32, #tpu.memory_space<vmem>>, vector<10x128xf32>
    %c0_20 = arith.constant 0 : index
    %c0_21 = arith.constant 0 : index
    %25 = vector.load %arg7[%c0_20, %c0_21] : memref<1x128xf32, #tpu.memory_space<vmem>>, vector<1x128xf32>
    %26 = vector.extract_strided_slice %22 {offsets = [0, 0], sizes = [2, 1], strides = [1, 1]} : vector<2x10xf32> to vector<2x1xf32>
    %27 = vector.extract_strided_slice %24 {offsets = [0, 0], sizes = [1, 128], strides = [1, 1]} : vector<10x128xf32> to vector<1x128xf32>
    %28 = vector.broadcast %26 : vector<2x1xf32> to vector<2x128xf32>
    %29 = vector.broadcast %27 : vector<1x128xf32> to vector<2x128xf32>
    %30 = arith.mulf %28, %29 : vector<2x128xf32>
    %cst_22 = arith.constant 0.000000e+00 : f32
    %31 = vector.broadcast %cst_22 : f32 to vector<2x128xf32>
    %32 = arith.addf %31, %30 : vector<2x128xf32>
    %33 = vector.extract_strided_slice %22 {offsets = [0, 1], sizes = [2, 1], strides = [1, 1]} : vector<2x10xf32> to vector<2x1xf32>
    %34 = vector.extract_strided_slice %24 {offsets = [1, 0], sizes = [1, 128], strides = [1, 1]} : vector<10x128xf32> to vector<1x128xf32>
    %35 = vector.broadcast %33 : vector<2x1xf32> to vector<2x128xf32>
    %36 = vector.broadcast %34 : vector<1x128xf32> to vector<2x128xf32>
    %37 = arith.mulf %35, %36 : vector<2x128xf32>
    %38 = arith.addf %32, %37 : vector<2x128xf32>
    %39 = vector.extract_strided_slice %22 {offsets = [0, 2], sizes = [2, 1], strides = [1, 1]} : vector<2x10xf32> to vector<2x1xf32>
    %40 = vector.extract_strided_slice %24 {offsets = [2, 0], sizes = [1, 128], strides = [1, 1]} : vector<10x128xf32> to vector<1x128xf32>
    %41 = vector.broadcast %39 : vector<2x1xf32> to vector<2x128xf32>
    %42 = vector.broadcast %40 : vector<1x128xf32> to vector<2x128xf32>
    %43 = arith.mulf %41, %42 : vector<2x128xf32>
    %44 = arith.addf %38, %43 : vector<2x128xf32>
    %45 = vector.extract_strided_slice %22 {offsets = [0, 3], sizes = [2, 1], strides = [1, 1]} : vector<2x10xf32> to vector<2x1xf32>
    %46 = vector.extract_strided_slice %24 {offsets = [3, 0], sizes = [1, 128], strides = [1, 1]} : vector<10x128xf32> to vector<1x128xf32>
    %47 = vector.broadcast %45 : vector<2x1xf32> to vector<2x128xf32>
    %48 = vector.broadcast %46 : vector<1x128xf32> to vector<2x128xf32>
    %49 = arith.mulf %47, %48 : vector<2x128xf32>
    %50 = arith.addf %44, %49 : vector<2x128xf32>
    %51 = vector.extract_strided_slice %22 {offsets = [0, 4], sizes = [2, 1], strides = [1, 1]} : vector<2x10xf32> to vector<2x1xf32>
    %52 = vector.extract_strided_slice %24 {offsets = [4, 0], sizes = [1, 128], strides = [1, 1]} : vector<10x128xf32> to vector<1x128xf32>
    %53 = vector.broadcast %51 : vector<2x1xf32> to vector<2x128xf32>
    %54 = vector.broadcast %52 : vector<1x128xf32> to vector<2x128xf32>
    %55 = arith.mulf %53, %54 : vector<2x128xf32>
    %56 = arith.addf %50, %55 : vector<2x128xf32>
    %57 = vector.extract_strided_slice %22 {offsets = [0, 5], sizes = [2, 1], strides = [1, 1]} : vector<2x10xf32> to vector<2x1xf32>
    %58 = vector.extract_strided_slice %24 {offsets = [5, 0], sizes = [1, 128], strides = [1, 1]} : vector<10x128xf32> to vector<1x128xf32>
    %59 = vector.broadcast %57 : vector<2x1xf32> to vector<2x128xf32>
    %60 = vector.broadcast %58 : vector<1x128xf32> to vector<2x128xf32>
    %61 = arith.mulf %59, %60 : vector<2x128xf32>
    %62 = arith.addf %56, %61 : vector<2x128xf32>
    %63 = vector.extract_strided_slice %22 {offsets = [0, 6], sizes = [2, 1], strides = [1, 1]} : vector<2x10xf32> to vector<2x1xf32>
    %64 = vector.extract_strided_slice %24 {offsets = [6, 0], sizes = [1, 128], strides = [1, 1]} : vector<10x128xf32> to vector<1x128xf32>
    %65 = vector.broadcast %63 : vector<2x1xf32> to vector<2x128xf32>
    %66 = vector.broadcast %64 : vector<1x128xf32> to vector<2x128xf32>
    %67 = arith.mulf %65, %66 : vector<2x128xf32>
    %68 = arith.addf %62, %67 : vector<2x128xf32>
    %69 = vector.extract_strided_slice %22 {offsets = [0, 7], sizes = [2, 1], strides = [1, 1]} : vector<2x10xf32> to vector<2x1xf32>
    %70 = vector.extract_strided_slice %24 {offsets = [7, 0], sizes = [1, 128], strides = [1, 1]} : vector<10x128xf32> to vector<1x128xf32>
    %71 = vector.broadcast %69 : vector<2x1xf32> to vector<2x128xf32>
    %72 = vector.broadcast %70 : vector<1x128xf32> to vector<2x128xf32>
    %73 = arith.mulf %71, %72 : vector<2x128xf32>
    %74 = arith.addf %68, %73 : vector<2x128xf32>
    %75 = vector.extract_strided_slice %22 {offsets = [0, 8], sizes = [2, 1], strides = [1, 1]} : vector<2x10xf32> to vector<2x1xf32>
    %76 = vector.extract_strided_slice %24 {offsets = [8, 0], sizes = [1, 128], strides = [1, 1]} : vector<10x128xf32> to vector<1x128xf32>
    %77 = vector.broadcast %75 : vector<2x1xf32> to vector<2x128xf32>
    %78 = vector.broadcast %76 : vector<1x128xf32> to vector<2x128xf32>
    %79 = arith.mulf %77, %78 : vector<2x128xf32>
    %80 = arith.addf %74, %79 : vector<2x128xf32>
    %81 = vector.extract_strided_slice %22 {offsets = [0, 9], sizes = [2, 1], strides = [1, 1]} : vector<2x10xf32> to vector<2x1xf32>
    %82 = vector.extract_strided_slice %24 {offsets = [9, 0], sizes = [1, 128], strides = [1, 1]} : vector<10x128xf32> to vector<1x128xf32>
    %83 = vector.broadcast %81 : vector<2x1xf32> to vector<2x128xf32>
    %84 = vector.broadcast %82 : vector<1x128xf32> to vector<2x128xf32>
    %85 = arith.mulf %83, %84 : vector<2x128xf32>
    %86 = arith.addf %80, %85 : vector<2x128xf32>
    %87 = vector.broadcast %25 : vector<1x128xf32> to vector<2x128xf32>
    %88 = arith.addf %87, %86 : vector<2x128xf32>
    %cst_23 = arith.constant 0.000000e+00 : f32
    %89 = vector.broadcast %cst_23 : f32 to vector<2x128xf32>
    %90 = arith.maximumf %88, %89 : vector<2x128xf32>
    %91 = arith.truncf %90 : vector<2x128xf32> to vector<2x128xbf16>
    %c0_24 = arith.constant 0 : index
    %c0_25 = arith.constant 0 : index
    %92 = vector.load %arg8[%c0_24, %c0_25] : memref<128x1024xbf16, #tpu.memory_space<vmem>>, vector<128x1024xbf16>
    %cst_26 = arith.constant dense<0.000000e+00> : vector<2x1024xf32>
    %93 = tpu.matmul %91, %92, %cst_26 {dimension_numbers = #tpu.dot_dimension_numbers<[1], [0], [0], [1], [0, 0, 1, 1], [], []>} : vector<2x128xbf16>, vector<128x1024xbf16>, vector<2x1024xf32> -> vector<2x1024xf32>
    %c0_27 = arith.constant 0 : index
    %c0_28 = arith.constant 0 : index
    %94 = vector.load %arg9[%c0_27, %c0_28] : memref<1x1024xf32, #tpu.memory_space<vmem>>, vector<1x1024xf32>
    %95 = vector.broadcast %94 : vector<1x1024xf32> to vector<2x1024xf32>
    %96 = arith.addf %93, %95 : vector<2x1024xf32>
    %cst_29 = arith.constant 0.000000e+00 : f32
    %97 = vector.broadcast %cst_29 : f32 to vector<2x1024xf32>
    %98 = arith.maximumf %96, %97 : vector<2x1024xf32>
    %99 = arith.truncf %98 : vector<2x1024xf32> to vector<2x1024xbf16>
    %c0_30 = arith.constant 0 : index
    %c0_31 = arith.constant 0 : index
    %100 = vector.load %arg12[%c0_30, %c0_31] : memref<2x1024xbf16, #tpu.memory_space<vmem>>, vector<2x1024xbf16>
    tpu.vector_store %arg12[%c0_30, %c0_31], %99 {strides = array<i32>} : memref<2x1024xbf16, #tpu.memory_space<vmem>>, vector<2x1024xbf16>,
    return
  }
}

module attributes {stable_mosaic.version = 11 : i64} {
  func.func @_mm_bias_act_kernel(%arg0: i32, %arg1: i32, %arg2: memref<1x32x256xbf16, #tpu.memory_space<vmem>>, %arg3: memref<1x256x128xbf16, #tpu.memory_space<vmem>>, %arg4: memref<1x128xf32, #tpu.memory_space<vmem>>, %arg5: memref<1x32x64xbf16, #tpu.memory_space<vmem>>) attributes {dimension_semantics = [#tpu.dimension_semantics<parallel>, #tpu.dimension_semantics<parallel>], iteration_bounds = array<i64: 4, 1>, scalar_prefetch = 0 : i64, scratch_operands = 0 : i64, tpu.core_type = #tpu.core_type<tc>, window_params = [{transform_indices = @transform_0, window_bounds = array<i64: 1, 32, 256>}, {transform_indices = @transform_1, window_bounds = array<i64: 1, 256, 128>}, {pipeline_mode = #tpu.pipeline_mode<synchronous>, transform_indices = @transform_2, window_bounds = array<i64: 1, 128>}, {transform_indices = @transform_3, window_bounds = array<i64: 1, 32, 64>}]} {
    %c0 = arith.constant 0 : index
    %c0_0 = arith.constant 0 : index
    %c0_1 = arith.constant 0 : index
    %0 = vector.load %arg2[%c0, %c0_0, %c0_1] : memref<1x32x256xbf16, #tpu.memory_space<vmem>>, vector<1x32x256xbf16>
    %1 = vector.shape_cast %0 : vector<1x32x256xbf16> to vector<32x256xbf16>
    %c0_2 = arith.constant 0 : index
    %c0_3 = arith.constant 0 : index
    %c0_4 = arith.constant 0 : index
    %2 = vector.load %arg3[%c0_2, %c0_3, %c0_4] : memref<1x256x128xbf16, #tpu.memory_space<vmem>>, vector<1x256x128xbf16>
    %3 = vector.shape_cast %2 : vector<1x256x128xbf16> to vector<256x128xbf16>
    %cst = arith.constant dense<0.000000e+00> : vector<32x128xf32>
    %4 = tpu.matmul %1, %3, %cst {dimension_numbers = #tpu.dot_dimension_numbers<[1], [0], [0], [1], [0, 0, 1, 1], [], []>} : vector<32x256xbf16>, vector<256x128xbf16>, vector<32x128xf32> -> vector<32x128xf32>
    %c0_5 = arith.constant 0 : index
    %c0_6 = arith.constant 0 : index
    %5 = vector.load %arg4[%c0_5, %c0_6] : memref<1x128xf32, #tpu.memory_space<vmem>>, vector<1x128xf32>
    %6 = vector.broadcast %5 : vector<1x128xf32> to vector<32x128xf32>
    %7 = arith.addf %4, %6 : vector<32x128xf32>
    %cst_7 = arith.constant 0.000000e+00 : f32
    %8 = vector.broadcast %cst_7 : f32 to vector<32x128xf32>
    %9 = arith.maximumf %7, %8 : vector<32x128xf32>
    %10 = vector.extract_strided_slice %9 {offsets = [0, 0], sizes = [32, 64], strides = [1, 1]} : vector<32x128xf32> to vector<32x64xf32>
    %11 = arith.truncf %10 : vector<32x64xf32> to vector<32x64xbf16>
    %c0_8 = arith.constant 0 : index
    %c0_9 = arith.constant 0 : index
    %c0_10 = arith.constant 0 : index
    %12 = vector.load %arg5[%c0_8, %c0_9, %c0_10] : memref<1x32x64xbf16, #tpu.memory_space<vmem>>, vector<1x32x64xbf16>
    %13 = vector.shape_cast %12 : vector<1x32x64xbf16> to vector<32x64xbf16>
    %14 = vector.shape_cast %11 : vector<32x64xbf16> to vector<1x32x64xbf16>
    tpu.vector_store %arg5[%c0_8, %c0_9, %c0_10], %14 {strides = array<i32>} : memref<1x32x64xbf16, #tpu.memory_space<vmem>>, vector<1x32x64xbf16>,
    return
  }
  func.func @transform_0(%arg0: i32, %arg1: i32) -> (i32, i32, i32) {
    %c0_i32 = arith.constant 0 : i32
    %c0_i32_0 = arith.constant 0 : i32
    return %arg0, %arg1, %c0_i32 : i32, i32, i32
  }
  func.func @transform_1(%arg0: i32, %arg1: i32) -> (i32, i32, i32) {
    %c0_i32 = arith.constant 0 : i32
    %c0_i32_0 = arith.constant 0 : i32
    %c0_i32_1 = arith.constant 0 : i32
    return %arg0, %c0_i32, %c0_i32_0 : i32, i32, i32
  }
  func.func @transform_2(%arg0: i32, %arg1: i32) -> (i32, i32) {
    %c0_i32 = arith.constant 0 : i32
    %c0_i32_0 = arith.constant 0 : i32
    %c0_i32_1 = arith.constant 0 : i32
    return %c0_i32, %c0_i32_0 : i32, i32
  }
  func.func @transform_3(%arg0: i32, %arg1: i32) -> (i32, i32, i32) {
    %c0_i32 = arith.constant 0 : i32
    %c0_i32_0 = arith.constant 0 : i32
    return %arg0, %arg1, %c0_i32 : i32, i32, i32
  }
}

module attributes {stable_mosaic.version = 11 : i64} {
  func.func @_mm_bias_act_kernel(%arg0: i32, %arg1: i32, %arg2: memref<1x128x256xbf16, #tpu.memory_space<vmem>>, %arg3: memref<1x256x128xbf16, #tpu.memory_space<vmem>>, %arg4: memref<1x128xf32, #tpu.memory_space<vmem>>, %arg5: memref<1x128x32xbf16, #tpu.memory_space<vmem>>) attributes {dimension_semantics = [#tpu.dimension_semantics<parallel>, #tpu.dimension_semantics<parallel>], iteration_bounds = array<i64: 4, 1>, scalar_prefetch = 0 : i64, scratch_operands = 0 : i64, tpu.core_type = #tpu.core_type<tc>, window_params = [{transform_indices = @transform_0, window_bounds = array<i64: 1, 128, 256>}, {transform_indices = @transform_1, window_bounds = array<i64: 1, 256, 128>}, {pipeline_mode = #tpu.pipeline_mode<synchronous>, transform_indices = @transform_2, window_bounds = array<i64: 1, 128>}, {transform_indices = @transform_3, window_bounds = array<i64: 1, 128, 32>}]} {
    %c0 = arith.constant 0 : index
    %c0_0 = arith.constant 0 : index
    %c0_1 = arith.constant 0 : index
    %0 = vector.load %arg2[%c0, %c0_0, %c0_1] : memref<1x128x256xbf16, #tpu.memory_space<vmem>>, vector<1x128x256xbf16>
    %1 = vector.shape_cast %0 : vector<1x128x256xbf16> to vector<128x256xbf16>
    %c0_2 = arith.constant 0 : index
    %c0_3 = arith.constant 0 : index
    %c0_4 = arith.constant 0 : index
    %2 = vector.load %arg3[%c0_2, %c0_3, %c0_4] : memref<1x256x128xbf16, #tpu.memory_space<vmem>>, vector<1x256x128xbf16>
    %3 = vector.shape_cast %2 : vector<1x256x128xbf16> to vector<256x128xbf16>
    %cst = arith.constant dense<0.000000e+00> : vector<128x128xf32>
    %4 = tpu.matmul %1, %3, %cst {dimension_numbers = #tpu.dot_dimension_numbers<[1], [0], [0], [1], [0, 0, 1, 1], [], []>} : vector<128x256xbf16>, vector<256x128xbf16>, vector<128x128xf32> -> vector<128x128xf32>
    %c0_5 = arith.constant 0 : index
    %c0_6 = arith.constant 0 : index
    %5 = vector.load %arg4[%c0_5, %c0_6] : memref<1x128xf32, #tpu.memory_space<vmem>>, vector<1x128xf32>
    %6 = vector.broadcast %5 : vector<1x128xf32> to vector<128x128xf32>
    %7 = arith.addf %4, %6 : vector<128x128xf32>
    %cst_7 = arith.constant 0.000000e+00 : f32
    %8 = vector.broadcast %cst_7 : f32 to vector<128x128xf32>
    %9 = arith.maximumf %7, %8 : vector<128x128xf32>
    %10 = vector.extract_strided_slice %9 {offsets = [0, 0], sizes = [128, 32], strides = [1, 1]} : vector<128x128xf32> to vector<128x32xf32>
    %11 = arith.truncf %10 : vector<128x32xf32> to vector<128x32xbf16>
    %c0_8 = arith.constant 0 : index
    %c0_9 = arith.constant 0 : index
    %c0_10 = arith.constant 0 : index
    %12 = vector.load %arg5[%c0_8, %c0_9, %c0_10] : memref<1x128x32xbf16, #tpu.memory_space<vmem>>, vector<1x128x32xbf16>
    %13 = vector.shape_cast %12 : vector<1x128x32xbf16> to vector<128x32xbf16>
    %14 = vector.shape_cast %11 : vector<128x32xbf16> to vector<1x128x32xbf16>
    tpu.vector_store %arg5[%c0_8, %c0_9, %c0_10], %14 {strides = array<i32>} : memref<1x128x32xbf16, #tpu.memory_space<vmem>>, vector<1x128x32xbf16>,
    return
  }
  func.func @transform_0(%arg0: i32, %arg1: i32) -> (i32, i32, i32) {
    %c0_i32 = arith.constant 0 : i32
    %c0_i32_0 = arith.constant 0 : i32
    return %arg0, %arg1, %c0_i32 : i32, i32, i32
  }
  func.func @transform_1(%arg0: i32, %arg1: i32) -> (i32, i32, i32) {
    %c0_i32 = arith.constant 0 : i32
    %c0_i32_0 = arith.constant 0 : i32
    %c0_i32_1 = arith.constant 0 : i32
    return %arg0, %c0_i32, %c0_i32_0 : i32, i32, i32
  }
  func.func @transform_2(%arg0: i32, %arg1: i32) -> (i32, i32) {
    %c0_i32 = arith.constant 0 : i32
    %c0_i32_0 = arith.constant 0 : i32
    %c0_i32_1 = arith.constant 0 : i32
    return %c0_i32, %c0_i32_0 : i32, i32
  }
  func.func @transform_3(%arg0: i32, %arg1: i32) -> (i32, i32, i32) {
    %c0_i32 = arith.constant 0 : i32
    %c0_i32_0 = arith.constant 0 : i32
    return %arg0, %arg1, %c0_i32 : i32, i32, i32
  }
}

module attributes {stable_mosaic.version = 11 : i64} {
  func.func @_mm_bias_act_kernel(%arg0: i32, %arg1: i32, %arg2: memref<1x512x128xbf16, #tpu.memory_space<vmem>>, %arg3: memref<1x128x128xbf16, #tpu.memory_space<vmem>>, %arg4: memref<1x128xf32, #tpu.memory_space<vmem>>, %arg5: memref<1x512x32xbf16, #tpu.memory_space<vmem>>) attributes {dimension_semantics = [#tpu.dimension_semantics<parallel>, #tpu.dimension_semantics<parallel>], iteration_bounds = array<i64: 4, 1>, scalar_prefetch = 0 : i64, scratch_operands = 0 : i64, tpu.core_type = #tpu.core_type<tc>, window_params = [{transform_indices = @transform_0, window_bounds = array<i64: 1, 512, 128>}, {transform_indices = @transform_1, window_bounds = array<i64: 1, 128, 128>}, {pipeline_mode = #tpu.pipeline_mode<synchronous>, transform_indices = @transform_2, window_bounds = array<i64: 1, 128>}, {transform_indices = @transform_3, window_bounds = array<i64: 1, 512, 32>}]} {
    %c0 = arith.constant 0 : index
    %c0_0 = arith.constant 0 : index
    %c0_1 = arith.constant 0 : index
    %0 = vector.load %arg2[%c0, %c0_0, %c0_1] : memref<1x512x128xbf16, #tpu.memory_space<vmem>>, vector<1x512x128xbf16>
    %1 = vector.shape_cast %0 : vector<1x512x128xbf16> to vector<512x128xbf16>
    %c0_2 = arith.constant 0 : index
    %c0_3 = arith.constant 0 : index
    %c0_4 = arith.constant 0 : index
    %2 = vector.load %arg3[%c0_2, %c0_3, %c0_4] : memref<1x128x128xbf16, #tpu.memory_space<vmem>>, vector<1x128x128xbf16>
    %3 = vector.shape_cast %2 : vector<1x128x128xbf16> to vector<128x128xbf16>
    %cst = arith.constant dense<0.000000e+00> : vector<512x128xf32>
    %4 = tpu.matmul %1, %3, %cst {dimension_numbers = #tpu.dot_dimension_numbers<[1], [0], [0], [1], [0, 0, 1, 1], [], []>} : vector<512x128xbf16>, vector<128x128xbf16>, vector<512x128xf32> -> vector<512x128xf32>
    %c0_5 = arith.constant 0 : index
    %c0_6 = arith.constant 0 : index
    %5 = vector.load %arg4[%c0_5, %c0_6] : memref<1x128xf32, #tpu.memory_space<vmem>>, vector<1x128xf32>
    %6 = vector.broadcast %5 : vector<1x128xf32> to vector<512x128xf32>
    %7 = arith.addf %4, %6 : vector<512x128xf32>
    %cst_7 = arith.constant 0.000000e+00 : f32
    %8 = vector.broadcast %cst_7 : f32 to vector<512x128xf32>
    %9 = arith.maximumf %7, %8 : vector<512x128xf32>
    %10 = vector.extract_strided_slice %9 {offsets = [0, 0], sizes = [512, 32], strides = [1, 1]} : vector<512x128xf32> to vector<512x32xf32>
    %11 = arith.truncf %10 : vector<512x32xf32> to vector<512x32xbf16>
    %c0_8 = arith.constant 0 : index
    %c0_9 = arith.constant 0 : index
    %c0_10 = arith.constant 0 : index
    %12 = vector.load %arg5[%c0_8, %c0_9, %c0_10] : memref<1x512x32xbf16, #tpu.memory_space<vmem>>, vector<1x512x32xbf16>
    %13 = vector.shape_cast %12 : vector<1x512x32xbf16> to vector<512x32xbf16>
    %14 = vector.shape_cast %11 : vector<512x32xbf16> to vector<1x512x32xbf16>
    tpu.vector_store %arg5[%c0_8, %c0_9, %c0_10], %14 {strides = array<i32>} : memref<1x512x32xbf16, #tpu.memory_space<vmem>>, vector<1x512x32xbf16>,
    return
  }
  func.func @transform_0(%arg0: i32, %arg1: i32) -> (i32, i32, i32) {
    %c0_i32 = arith.constant 0 : i32
    %c0_i32_0 = arith.constant 0 : i32
    return %arg0, %arg1, %c0_i32 : i32, i32, i32
  }
  func.func @transform_1(%arg0: i32, %arg1: i32) -> (i32, i32, i32) {
    %c0_i32 = arith.constant 0 : i32
    %c0_i32_0 = arith.constant 0 : i32
    %c0_i32_1 = arith.constant 0 : i32
    return %arg0, %c0_i32, %c0_i32_0 : i32, i32, i32
  }
  func.func @transform_2(%arg0: i32, %arg1: i32) -> (i32, i32) {
    %c0_i32 = arith.constant 0 : i32
    %c0_i32_0 = arith.constant 0 : i32
    %c0_i32_1 = arith.constant 0 : i32
    return %c0_i32, %c0_i32_0 : i32, i32
  }
  func.func @transform_3(%arg0: i32, %arg1: i32) -> (i32, i32, i32) {
    %c0_i32 = arith.constant 0 : i32
    %c0_i32_0 = arith.constant 0 : i32
    return %arg0, %arg1, %c0_i32 : i32, i32, i32
  }
}

module attributes {stable_mosaic.version = 11 : i64} {
  func.func @_mm_bias_act_kernel(%arg0: i32, %arg1: i32, %arg2: memref<1x2048x128xbf16, #tpu.memory_space<vmem>>, %arg3: memref<1x128x128xbf16, #tpu.memory_space<vmem>>, %arg4: memref<1x128xf32, #tpu.memory_space<vmem>>, %arg5: memref<1x2048x1xf32, #tpu.memory_space<vmem>>) attributes {dimension_semantics = [#tpu.dimension_semantics<parallel>, #tpu.dimension_semantics<parallel>], iteration_bounds = array<i64: 4, 1>, scalar_prefetch = 0 : i64, scratch_operands = 0 : i64, tpu.core_type = #tpu.core_type<tc>, window_params = [{transform_indices = @transform_0, window_bounds = array<i64: 1, 2048, 128>}, {transform_indices = @transform_1, window_bounds = array<i64: 1, 128, 128>}, {pipeline_mode = #tpu.pipeline_mode<synchronous>, transform_indices = @transform_2, window_bounds = array<i64: 1, 128>}, {transform_indices = @transform_3, window_bounds = array<i64: 1, 2048, 1>}]} {
    %c0 = arith.constant 0 : index
    %c0_0 = arith.constant 0 : index
    %c0_1 = arith.constant 0 : index
    %0 = vector.load %arg2[%c0, %c0_0, %c0_1] : memref<1x2048x128xbf16, #tpu.memory_space<vmem>>, vector<1x2048x128xbf16>
    %1 = vector.shape_cast %0 : vector<1x2048x128xbf16> to vector<2048x128xbf16>
    %c0_2 = arith.constant 0 : index
    %c0_3 = arith.constant 0 : index
    %c0_4 = arith.constant 0 : index
    %2 = vector.load %arg3[%c0_2, %c0_3, %c0_4] : memref<1x128x128xbf16, #tpu.memory_space<vmem>>, vector<1x128x128xbf16>
    %3 = vector.shape_cast %2 : vector<1x128x128xbf16> to vector<128x128xbf16>
    %cst = arith.constant dense<0.000000e+00> : vector<2048x128xf32>
    %4 = tpu.matmul %1, %3, %cst {dimension_numbers = #tpu.dot_dimension_numbers<[1], [0], [0], [1], [0, 0, 1, 1], [], []>} : vector<2048x128xbf16>, vector<128x128xbf16>, vector<2048x128xf32> -> vector<2048x128xf32>
    %c0_5 = arith.constant 0 : index
    %c0_6 = arith.constant 0 : index
    %5 = vector.load %arg4[%c0_5, %c0_6] : memref<1x128xf32, #tpu.memory_space<vmem>>, vector<1x128xf32>
    %6 = vector.broadcast %5 : vector<1x128xf32> to vector<2048x128xf32>
    %7 = arith.addf %4, %6 : vector<2048x128xf32>
    %8 = vector.extract_strided_slice %7 {offsets = [0, 0], sizes = [2048, 1], strides = [1, 1]} : vector<2048x128xf32> to vector<2048x1xf32>
    %c0_7 = arith.constant 0 : index
    %c0_8 = arith.constant 0 : index
    %c0_9 = arith.constant 0 : index
    %9 = vector.load %arg5[%c0_7, %c0_8, %c0_9] : memref<1x2048x1xf32, #tpu.memory_space<vmem>>, vector<1x2048x1xf32>
    %10 = vector.shape_cast %9 : vector<1x2048x1xf32> to vector<2048x1xf32>
    %11 = vector.shape_cast %8 : vector<2048x1xf32> to vector<1x2048x1xf32>
    tpu.vector_store %arg5[%c0_7, %c0_8, %c0_9], %11 {strides = array<i32>} : memref<1x2048x1xf32, #tpu.memory_space<vmem>>, vector<1x2048x1xf32>,
    return
  }
  func.func @transform_0(%arg0: i32, %arg1: i32) -> (i32, i32, i32) {
    %c0_i32 = arith.constant 0 : i32
    %c0_i32_0 = arith.constant 0 : i32
    return %arg0, %arg1, %c0_i32 : i32, i32, i32
  }
  func.func @transform_1(%arg0: i32, %arg1: i32) -> (i32, i32, i32) {
    %c0_i32 = arith.constant 0 : i32
    %c0_i32_0 = arith.constant 0 : i32
    %c0_i32_1 = arith.constant 0 : i32
    return %arg0, %c0_i32, %c0_i32_0 : i32, i32, i32
  }
  func.func @transform_2(%arg0: i32, %arg1: i32) -> (i32, i32) {
    %c0_i32 = arith.constant 0 : i32
    %c0_i32_0 = arith.constant 0 : i32
    %c0_i32_1 = arith.constant 0 : i32
    return %c0_i32, %c0_i32_0 : i32, i32
  }
  func.func @transform_3(%arg0: i32, %arg1: i32) -> (i32, i32, i32) {
    %c0_i32 = arith.constant 0 : i32
    %c0_i32_0 = arith.constant 0 : i32
    return %arg0, %arg1, %c0_i32 : i32, i32, i32
  }
}

</mosaic_0001>

<bundles_post_ra>
// kernel: factorvae1_forward.9
= control target key start
LH: loop header
LB: loop body
LE: loop exit
PB: predicated region body
PF: predicated region fallthrough
CT: control target
= control target key end

     0   :  { %8 = vsyncpa [#allocation3], 0  ;;  %s7103_s0 = inlined_call_operand.vmem [shape: bf16[1,2048,16], index: 0, kind: input, shape index: {}]   ;;  %s7104_s1 = inlined_call_operand.hbm [shape: bf16[1,16,128], index: 1, kind: input, shape index: {}]   ;;  %s7105_s2 = inlined_call_operand.hbm [shape: f32[1,128], index: 2, kind: input, shape index: {}]   ;;  %s7106_s3 = inlined_call_operand.vmem [shape: bf16[1,2048,32], index: 3, kind: output, shape index: {}]  }
   0x1   :  { %9 = vsyncpa [#allocation5], 0  ;;  %s5275_s12 = smov [#allocation2]  }
   0x2   :  { %s17_s13 = sshll.u32 %s5275_s12, 4  ;;  %s18_s13 = int_to_ptr.vmem [resolvable:$true] %s17_s13 }
   0x3   :  { %s5239_s14 = scalar_lea.vmem %s18_s13, 128  ;;  %p5244_p1 = scmp.lt.s32.totalorder %s18_s13, %s18_s13 }
   0x4   :  { %p5240_p0 = scmp.ne.s32.totalorder %s18_s13, %s5239_s14  ;;  %p5245_p2 = scmp.lt.s32.totalorder %s5239_s14, %s5239_s14 }
   0x6   :  { %p5246_p3 = por %p5245_p2, %p5244_p1 }
   0x8   :  { %p5247_p4 = pnand %p5246_p3, %p5240_p0 }
   0xa   :  { %5250 = shalt.err (!%p5247_p4)
}
   0xb   :  { %s5276_s15 = smov 64   ;;  %s5277_s16 = smov 4  }
   0xc   :  { %23 = dma.hbm_to_vmem [thread:$0]  %s7104_s1, 128, %s18_s13, [#allocation3], %s5276_s15, %s5276_s15, %s5277_s16  }
   0xd   :  { %s5278_s19 = smov [#allocation4]  }
   0xe   :  { %s30_s20 = sshll.u32 %s5278_s19, 4  ;;  %s31_s20 = int_to_ptr.vmem [resolvable:$true] %s30_s20 }
   0xf   :  { %s5259_s21 = scalar_lea.vmem %s31_s20, 16  ;;  %s5263_s22 = scalar_lea.vmem %s31_s20, 32 }
  0x10   :  { %p5260_p5 = scmp.ne.s32.totalorder %s31_s20, %s5259_s21  ;;  %p5264_p6 = scmp.lt.s32.totalorder %s31_s20, %s31_s20 }
  0x11   :  { %p5265_p7 = scmp.lt.s32.totalorder %s5263_s22, %s5259_s21 }
  0x13   :  { %p5266_p8 = por %p5265_p7, %p5264_p6 }
  0x15   :  { %p5267_p9 = pnand %p5266_p8, %p5260_p5 }
  0x17   :  { %5270 = shalt.err (!%p5267_p9)
}
  0x18   :  { %33 = dma.hbm_to_vmem [thread:$0]  %s7105_s2, 16, %s31_s20, [#allocation5]  }
  0x19   :  { %5271 = dma.done.wait [#allocation3], 128  }
  0x1a   :  { %5272 = vsyncadd [#allocation3], 4294967168 }
  0x1b   :  { %5273 = dma.done.wait [#allocation5], 16  }
  0x1c   :  { %5274 = vsyncadd [#allocation5], 4294967280  ;;  %v5100_v0 = vld [vmem:[#allocation2] sm:$0xff]   ;;  %vm952_vm0 = vcmask 130048   ;;  %v5103_v3 = vld [vmem:[%s7103_s0 + $0x8] sm:$0xff]   ;;  %vm3674_vm1 = vcmask 257024  }
  0x1d   :  { %v5101_v1 = vld [vmem:[%s7103_s0] sm:$0xff]   ;;  %4836 = vmatprep.subr.bf16.mxu0 %v5100_v0  ;;  %5094 = vmatprep.subr.bf16.mxu1 %v5100_v0  ;;  %v5104_v4 = vld [vmem:[%s7103_s0 + $0x208] sm:$0xff]   ;;  %v5105_v5 = vld [vmem:[%s7103_s0 + $0x10] sm:$0xff]  }
  0x1e   :  { %v5102_v2 = vld [vmem:[%s7103_s0 + $0x200] sm:$0xff]   ;;  %4837 = vmatpush3.bf16.msra.mxu0 %v5100_v0  ;;  %5095 = vmatpush3.bf16.msra.mxu1 %v5100_v0  ;;  %v5106_v6 = vld [vmem:[%s7103_s0 + $0x210] sm:$0xff]   ;;  %v5107_v7 = vld [vmem:[%s7103_s0 + $0x18] sm:$0xff]  }
  0x1f   :  { %4838 = vmatprep.mubr.msk.bf16.mxu0 %vm952_vm0, %v5101_v1  ;;  %4966 = vmatprep.mubr.msk.bf16.mxu1 %vm952_vm0, %v5102_v2  ;;  %v5108_v8 = vld [vmem:[%s7103_s0 + $0x218] sm:$0xff]   ;;  %v5109_v9 = vld [vmem:[%s7103_s0 + $0x20] sm:$0xff]   ;;  %v5111_v11 = vld [vmem:[%s7103_s0 + $0x28] sm:$0xff]  }
  0x20   :  { %v5110_v10 = vld [vmem:[%s7103_s0 + $0x220] sm:$0xff]   ;;  %v5112_v12 = vld [vmem:[%s7103_s0 + $0x228] sm:$0xff]   ;;  %v5113_v13 = vld [vmem:[%s7103_s0 + $0x30] sm:$0xff]  }
  0x21   :  { %4839 = vmatmul.mubr.msk.bf16.vlgmr.msra.gmra.mxu0 %vm952_vm0, %v5103_v3  ;;  %4967 = vmatmul.mubr.msk.bf16.vlgmr.msra.gmra.mxu1 %vm952_vm0, %v5104_v4  ;;  %v5114_v14 = vld [vmem:[%s7103_s0 + $0x230] sm:$0xff]   ;;  %v5115_v15 = vld [vmem:[%s7103_s0 + $0x38] sm:$0xff]   ;;  %v5117_v17 = vld [vmem:[%s7103_s0 + $0x40] sm:$0xff]  }
  0x22   :  { %4842 = vmatprep.mubr.msk.bf16.mxu0 %vm952_vm0, %v5105_v5  ;;  %4970 = vmatprep.mubr.msk.bf16.mxu1 %vm952_vm0, %v5106_v6  ;;  %v5116_v16 = vld [vmem:[%s7103_s0 + $0x238] sm:$0xff]   ;;  %v5118_v18 = vld [vmem:[%s7103_s0 + $0x240] sm:$0xff]   ;;  %v5119_v19 = vld [vmem:[%s7103_s0 + $0x48] sm:$0xff]  }
  0x23   :  { %v5120_v20 = vld [vmem:[%s7103_s0 + $0x248] sm:$0xff]   ;;  %v5121_v21 = vld [vmem:[%s7103_s0 + $0x50] sm:$0xff]   ;;  %v5123_v23 = vld [vmem:[%s7103_s0 + $0x58] sm:$0xff]  }
  0x24   :  { %v5122_v22 = vld [vmem:[%s7103_s0 + $0x250] sm:$0xff]   ;;  %v5124_v24 = vld [vmem:[%s7103_s0 + $0x258] sm:$0xff]   ;;  %v5125_v25 = vld [vmem:[%s7103_s0 + $0x60] sm:$0xff]  }
  0x25   :  { %v5126_v26 = vld [vmem:[%s7103_s0 + $0x260] sm:$0xff]   ;;  %v5127_v27 = vld [vmem:[%s7103_s0 + $0x68] sm:$0xff]   ;;  %v5129_v29 = vld [vmem:[%s7103_s0 + $0x70] sm:$0xff]  }
  0x26   :  { %v5128_v28 = vld [vmem:[%s7103_s0 + $0x268] sm:$0xff]   ;;  %v5130_v30 = vld [vmem:[%s7103_s0 + $0x270] sm:$0xff]   ;;  %v5131_v31 = vld [vmem:[%s7103_s0 + $0x78] sm:$0xff]  }
  0x27   :  { %v5132_v32 = vld [vmem:[%s7103_s0 + $0x278] sm:$0xff]   ;;  %v5133_v33 = vld [vmem:[%s7103_s0 + $0x80] sm:$0xff]   ;;  %v5135_v35 = vld [vmem:[%s7103_s0 + $0x88] sm:$0xff]  }
  0x28   :  { %v5134_v34 = vld [vmem:[%s7103_s0 + $0x280] sm:$0xff]   ;;  %v5136_v36 = vld [vmem:[%s7103_s0 + $0x288] sm:$0xff]   ;;  %v5137_v37 = vld [vmem:[%s7103_s0 + $0x90] sm:$0xff]  }
  0x29   :  { %4843 = vmatmul.mubr.msk.bf16.gmra.mxu0 %vm952_vm0, %v5107_v7  ;;  %4971 = vmatmul.mubr.msk.bf16.gmra.mxu1 %vm952_vm0, %v5108_v8  ;;  %v5138_v38 = vld [vmem:[%s7103_s0 + $0x290] sm:$0xff]   ;;  %v5139_v39 = vld [vmem:[%s7103_s0 + $0x98] sm:$0xff]   ;;  %v5141_v41 = vld [vmem:[%s7103_s0 + $0xa0] sm:$0xff]  }
  0x2a   :  { %4846 = vmatprep.mubr.msk.bf16.mxu0 %vm952_vm0, %v5109_v9  ;;  %4974 = vmatprep.mubr.msk.bf16.mxu1 %vm952_vm0, %v5110_v10  ;;  %v5140_v40 = vld [vmem:[%s7103_s0 + $0x298] sm:$0xff]   ;;  %v5142_v42 = vld [vmem:[%s7103_s0 + $0x2a0] sm:$0xff]   ;;  %v5143_v43 = vld [vmem:[%s7103_s0 + $0xa8] sm:$0xff]  }
  0x2b   :  { %v5144_v44 = vld [vmem:[%s7103_s0 + $0x2a8] sm:$0xff]   ;;  %v5145_v45 = vld [vmem:[%s7103_s0 + $0xb0] sm:$0xff]   ;;  %v5147_v47 = vld [vmem:[%s7103_s0 + $0xb8] sm:$0xff]  }
  0x2c   :  { %v5146_v46 = vld [vmem:[%s7103_s0 + $0x2b0] sm:$0xff]   ;;  %v5148_v48 = vld [vmem:[%s7103_s0 + $0x2b8] sm:$0xff]   ;;  %v5149_v49 = vld [vmem:[%s7103_s0 + $0xc0] sm:$0xff]  }
  0x2d   :  { %v5150_v50 = vld [vmem:[%s7103_s0 + $0x2c0] sm:$0xff]   ;;  %v5151_v51 = vld [vmem:[%s7103_s0 + $0xc8] sm:$0xff]   ;;  %v5153_v53 = vld [vmem:[%s7103_s0 + $0xd0] sm:$0xff]  }
  0x2e   :  { %v5152_v52 = vld [vmem:[%s7103_s0 + $0x2c8] sm:$0xff]   ;;  %v5154_v54 = vld [vmem:[%s7103_s0 + $0x2d0] sm:$0xff]   ;;  %v5155_v55 = vld [vmem:[%s7103_s0 + $0xd8] sm:$0xff]  }
  0x2f   :  { %v5156_v56 = vld [vmem:[%s7103_s0 + $0x2d8] sm:$0xff]   ;;  %v5157_v57 = vld [vmem:[%s7103_s0 + $0xe0] sm:$0xff]   ;;  %v5159_v59 = vld [vmem:[%s7103_s0 + $0xe8] sm:$0xff]  }
  0x30   :  { %v5158_v58 = vld [vmem:[%s7103_s0 + $0x2e0] sm:$0xff]   ;;  %v5160_v60 = vld [vmem:[%s7103_s0 + $0x2e8] sm:$0xff]   ;;  %v5161_v61 = vld [vmem:[%s7103_s0 + $0xf0] sm:$0xff]  }
  0x31   :  { %4847 = vmatmul.mubr.msk.bf16.gmra.mxu0 %vm952_vm0, %v5111_v11  ;;  %4975 = vmatmul.mubr.msk.bf16.gmra.mxu1 %vm952_vm0, %v5112_v12  ;;  %v5162_v62 = vld [vmem:[%s7103_s0 + $0x2f0] sm:$0xff]   ;;  %v5163_v63 = vld [vmem:[%s7103_s0 + $0xf8] sm:$0xff]   ;;  %v5165_v1 = vld [vmem:[%s7103_s0 + $0x100] sm:$0xff]  }
  0x32   :  { %4850 = vmatprep.mubr.msk.bf16.mxu0 %vm952_vm0, %v5113_v13  ;;  %4978 = vmatprep.mubr.msk.bf16.mxu1 %vm952_vm0, %v5114_v14  ;;  %v5164_v0 = vld [vmem:[%s7103_s0 + $0x2f8] sm:$0xff]   ;;  %v5166_v2 = vld [vmem:[%s7103_s0 + $0x300] sm:$0xff]   ;;  %v5167_v3 = vld [vmem:[%s7103_s0 + $0x108] sm:$0xff]  }
  0x33   :  { %v5168_v4 = vld [vmem:[%s7103_s0 + $0x308] sm:$0xff]   ;;  %v5169_v5 = vld [vmem:[%s7103_s0 + $0x110] sm:$0xff]   ;;  %v5171_v7 = vld [vmem:[%s7103_s0 + $0x118] sm:$0xff]  }
  0x34   :  { %v5170_v6 = vld [vmem:[%s7103_s0 + $0x310] sm:$0xff]   ;;  %v5172_v8 = vld [vmem:[%s7103_s0 + $0x318] sm:$0xff]   ;;  %v5173_v9 = vld [vmem:[%s7103_s0 + $0x120] sm:$0xff]  }
  0x35   :  { %v5174_v10 = vld [vmem:[%s7103_s0 + $0x320] sm:$0xff]   ;;  %v5175_v11 = vld [vmem:[%s7103_s0 + $0x128] sm:$0xff]   ;;  %v5177_v13 = vld [vmem:[%s7103_s0 + $0x130] sm:$0xff]  }
  0x36   :  { %v5176_v12 = vld [vmem:[%s7103_s0 + $0x328] sm:$0xff]   ;;  %v5178_v14 = vld [vmem:[%s7103_s0 + $0x330] sm:$0xff]  }
  0x39   :  { %4851 = vmatmul.mubr.msk.bf16.gmra.mxu0 %vm952_vm0, %v5115_v15  ;;  %4979 = vmatmul.mubr.msk.bf16.gmra.mxu1 %vm952_vm0, %v5116_v16  ;;  %v5179_v15 = vld [vmem:[%s7103_s0 + $0x138] sm:$0xff]  }
  0x3a   :  { %4854 = vmatprep.mubr.msk.bf16.mxu0 %vm952_vm0, %v5117_v17  ;;  %4982 = vmatprep.mubr.msk.bf16.mxu1 %vm952_vm0, %v5118_v18  ;;  %v5180_v16 = vld [vmem:[%s7103_s0 + $0x338] sm:$0xff]   ;;  %v5181_v17 = vld [vmem:[%s7103_s0 + $0x140] sm:$0xff]  }
  0x3b   :  { %v5182_v18 = vld [vmem:[%s7103_s0 + $0x340] sm:$0xff]  }
  0x41   :  { %4855 = vmatmul.mubr.msk.bf16.gmra.mxu0 %vm952_vm0, %v5119_v19  ;;  %4983 = vmatmul.mubr.msk.bf16.gmra.mxu1 %vm952_vm0, %v5120_v20  ;;  %v5183_v19 = vld [vmem:[%s7103_s0 + $0x148] sm:$0xff]  }
  0x42   :  { %4858 = vmatprep.mubr.msk.bf16.mxu0 %vm952_vm0, %v5121_v21  ;;  %4986 = vmatprep.mubr.msk.bf16.mxu1 %vm952_vm0, %v5122_v22  ;;  %v5184_v20 = vld [vmem:[%s7103_s0 + $0x348] sm:$0xff]   ;;  %v5185_v21 = vld [vmem:[%s7103_s0 + $0x150] sm:$0xff]  }
  0x43   :  { %v5186_v22 = vld [vmem:[%s7103_s0 + $0x350] sm:$0xff]  }
  0x49   :  { %4859 = vmatmul.mubr.msk.bf16.gmra.mxu0 %vm952_vm0, %v5123_v23  ;;  %4987 = vmatmul.mubr.msk.bf16.gmra.mxu1 %vm952_vm0, %v5124_v24  ;;  %v5187_v23 = vld [vmem:[%s7103_s0 + $0x158] sm:$0xff]  }
  0x4a   :  { %4862 = vmatprep.mubr.msk.bf16.mxu0 %vm952_vm0, %v5125_v25  ;;  %4990 = vmatprep.mubr.msk.bf16.mxu1 %vm952_vm0, %v5126_v26  ;;  %v5188_v24 = vld [vmem:[%s7103_s0 + $0x358] sm:$0xff]   ;;  %v5189_v25 = vld [vmem:[%s7103_s0 + $0x160] sm:$0xff]  }
  0x4b   :  { %v5190_v26 = vld [vmem:[%s7103_s0 + $0x360] sm:$0xff]  }
  0x51   :  { %4863 = vmatmul.mubr.msk.bf16.gmra.mxu0 %vm952_vm0, %v5127_v27  ;;  %4991 = vmatmul.mubr.msk.bf16.gmra.mxu1 %vm952_vm0, %v5128_v28  ;;  %v5191_v27 = vld [vmem:[%s7103_s0 + $0x168] sm:$0xff]  }
  0x52   :  { %4866 = vmatprep.mubr.msk.bf16.mxu0 %vm952_vm0, %v5129_v29  ;;  %4994 = vmatprep.mubr.msk.bf16.mxu1 %vm952_vm0, %v5130_v30  ;;  %v5192_v28 = vld [vmem:[%s7103_s0 + $0x368] sm:$0xff]   ;;  %v5193_v29 = vld [vmem:[%s7103_s0 + $0x170] sm:$0xff]  }
  0x53   :  { %v5194_v30 = vld [vmem:[%s7103_s0 + $0x370] sm:$0xff]  }
  0x59   :  { %4867 = vmatmul.mubr.msk.bf16.gmra.mxu0 %vm952_vm0, %v5131_v31  ;;  %4995 = vmatmul.mubr.msk.bf16.gmra.mxu1 %vm952_vm0, %v5132_v32  ;;  %v5195_v31 = vld [vmem:[%s7103_s0 + $0x178] sm:$0xff]  }
  0x5a   :  { %4870 = vmatprep.mubr.msk.bf16.mxu0 %vm952_vm0, %v5133_v33  ;;  %4998 = vmatprep.mubr.msk.bf16.mxu1 %vm952_vm0, %v5134_v34  ;;  %v5196_v32 = vld [vmem:[%s7103_s0 + $0x378] sm:$0xff]   ;;  %v5197_v33 = vld [vmem:[%s7103_s0 + $0x180] sm:$0xff]  }
  0x5b   :  { %v5198_v34 = vld [vmem:[%s7103_s0 + $0x380] sm:$0xff]  }
  0x61   :  { %4871 = vmatmul.mubr.msk.bf16.gmra.mxu0 %vm952_vm0, %v5135_v35  ;;  %4999 = vmatmul.mubr.msk.bf16.gmra.mxu1 %vm952_vm0, %v5136_v36  ;;  %v5199_v35 = vld [vmem:[%s7103_s0 + $0x188] sm:$0xff]  }
  0x62   :  { %4874 = vmatprep.mubr.msk.bf16.mxu0 %vm952_vm0, %v5137_v37  ;;  %5002 = vmatprep.mubr.msk.bf16.mxu1 %vm952_vm0, %v5138_v38  ;;  %v5200_v36 = vld [vmem:[%s7103_s0 + $0x388] sm:$0xff]   ;;  %v5201_v37 = vld [vmem:[%s7103_s0 + $0x190] sm:$0xff]  }
  0x63   :  { %v5202_v38 = vld [vmem:[%s7103_s0 + $0x390] sm:$0xff]  }
  0x69   :  { %4875 = vmatmul.mubr.msk.bf16.gmra.mxu0 %vm952_vm0, %v5139_v39  ;;  %5003 = vmatmul.mubr.msk.bf16.gmra.mxu1 %vm952_vm0, %v5140_v40  ;;  %v5709_v39 = vld [vmem:[#allocation4] ss:$0 sm:$0xff] }
  0x6a   :  { %4878 = vmatprep.mubr.msk.bf16.mxu0 %vm952_vm0, %v5141_v41  ;;  %5006 = vmatprep.mubr.msk.bf16.mxu1 %vm952_vm0, %v5142_v42 }
  0x71   :  { %4879 = vmatmul.mubr.msk.bf16.gmra.mxu0 %vm952_vm0, %v5143_v43  ;;  %5007 = vmatmul.mubr.msk.bf16.gmra.mxu1 %vm952_vm0, %v5144_v44 }
  0x72   :  { %4882 = vmatprep.mubr.msk.bf16.mxu0 %vm952_vm0, %v5145_v45  ;;  %5010 = vmatprep.mubr.msk.bf16.mxu1 %vm952_vm0, %v5146_v46 }
  0x79   :  { %4883 = vmatmul.mubr.msk.bf16.gmra.mxu0 %vm952_vm0, %v5147_v47  ;;  %5011 = vmatmul.mubr.msk.bf16.gmra.mxu1 %vm952_vm0, %v5148_v48 }
  0x7a   :  { %4886 = vmatprep.mubr.msk.bf16.mxu0 %vm952_vm0, %v5149_v49  ;;  %5014 = vmatprep.mubr.msk.bf16.mxu1 %vm952_vm0, %v5150_v50 }
  0x81   :  { %4887 = vmatmul.mubr.msk.bf16.gmra.mxu0 %vm952_vm0, %v5151_v51  ;;  %5015 = vmatmul.mubr.msk.bf16.gmra.mxu1 %vm952_vm0, %v5152_v52  ;;  %v5203_v52 = vld [vmem:[%s7103_s0 + $0x198] sm:$0xff]  }
  0x82   :  { %4890 = vmatprep.mubr.msk.bf16.mxu0 %vm952_vm0, %v5153_v53  ;;  %5018 = vmatprep.mubr.msk.bf16.mxu1 %vm952_vm0, %v5154_v54  ;;  %v5204_v53 = vld [vmem:[%s7103_s0 + $0x398] sm:$0xff]  }
  0x89   :  { %4891 = vmatmul.mubr.msk.bf16.gmra.mxu0 %vm952_vm0, %v5155_v55  ;;  %5019 = vmatmul.mubr.msk.bf16.gmra.mxu1 %vm952_vm0, %v5156_v56 }
  0x8a   :  { %4894 = vmatprep.mubr.msk.bf16.mxu0 %vm952_vm0, %v5157_v57  ;;  %5022 = vmatprep.mubr.msk.bf16.mxu1 %vm952_vm0, %v5158_v58  ;;  %v5205_v58 = vld [vmem:[%s7103_s0 + $0x1a0] sm:$0xff]  }
  0x91   :  { %4895 = vmatmul.mubr.msk.bf16.gmra.mxu0 %vm952_vm0, %v5159_v59  ;;  %5023 = vmatmul.mubr.msk.bf16.gmra.mxu1 %vm952_vm0, %v5160_v60  ;;  %v5206_v59 = vld [vmem:[%s7103_s0 + $0x3a0] sm:$0xff]  }
  0x92   :  { %4898 = vmatprep.mubr.msk.bf16.mxu0 %vm952_vm0, %v5161_v61  ;;  %5026 = vmatprep.mubr.msk.bf16.mxu1 %vm952_vm0, %v5162_v62 }
  0x99   :  { %4899 = vmatmul.mubr.msk.bf16.gmra.mxu0 %vm952_vm0, %v5163_v63  ;;  %5027 = vmatmul.mubr.msk.bf16.gmra.mxu1 %vm952_vm0, %v5164_v0 }
  0x9a   :  { %4902 = vmatprep.mubr.msk.bf16.mxu0 %vm952_vm0, %v5165_v1  ;;  %5030 = vmatprep.mubr.msk.bf16.mxu1 %vm952_vm0, %v5166_v2 }
  0xa1   :  { %4903 = vmatmul.mubr.msk.bf16.gmra.mxu0 %vm952_vm0, %v5167_v3  ;;  %5031 = vmatmul.mubr.msk.bf16.gmra.mxu1 %vm952_vm0, %v5168_v4 }
  0xa2   :  { %4906 = vmatprep.mubr.msk.bf16.mxu0 %vm952_vm0, %v5169_v5  ;;  %5034 = vmatprep.mubr.msk.bf16.mxu1 %vm952_vm0, %v5170_v6 }
  0xa9   :  { %4907 = vmatmul.mubr.msk.bf16.gmra.mxu0 %vm952_vm0, %v5171_v7  ;;  %5035 = vmatmul.mubr.msk.bf16.gmra.mxu1 %vm952_vm0, %v5172_v8 }
  0xaa   :  { %4910 = vmatprep.mubr.msk.bf16.mxu0 %vm952_vm0, %v5173_v9  ;;  %5038 = vmatprep.mubr.msk.bf16.mxu1 %vm952_vm0, %v5174_v10 }
  0xb1   :  { %4911 = vmatmul.mubr.msk.bf16.gmra.mxu0 %vm952_vm0, %v5175_v11  ;;  %5039 = vmatmul.mubr.msk.bf16.gmra.mxu1 %vm952_vm0, %v5176_v12 }
  0xb2   :  { %4914 = vmatprep.mubr.msk.bf16.mxu0 %vm952_vm0, %v5177_v13  ;;  %5042 = vmatprep.mubr.msk.bf16.mxu1 %vm952_vm0, %v5178_v14 }
  0xb9   :  { %4915 = vmatmul.mubr.msk.bf16.gmra.mxu0 %vm952_vm0, %v5179_v15  ;;  %5043 = vmatmul.mubr.msk.bf16.gmra.mxu1 %vm952_vm0, %v5180_v16 }
  0xba   :  { %4918 = vmatprep.mubr.msk.bf16.mxu0 %vm952_vm0, %v5181_v17  ;;  %5046 = vmatprep.mubr.msk.bf16.mxu1 %vm952_vm0, %v5182_v18 }
  0xc1   :  { %4919 = vmatmul.mubr.msk.bf16.gmra.mxu0 %vm952_vm0, %v5183_v19  ;;  %5047 = vmatmul.mubr.msk.bf16.gmra.mxu1 %vm952_vm0, %v5184_v20 }
  0xc2   :  { %4922 = vmatprep.mubr.msk.bf16.mxu0 %vm952_vm0, %v5185_v21  ;;  %5050 = vmatprep.mubr.msk.bf16.mxu1 %vm952_vm0, %v5186_v22 }
  0xc9   :  { %4923 = vmatmul.mubr.msk.bf16.gmra.mxu0 %vm952_vm0, %v5187_v23  ;;  %5051 = vmatmul.mubr.msk.bf16.gmra.mxu1 %vm952_vm0, %v5188_v24  ;;  %v5207_v24 = vld [vmem:[%s7103_s0 + $0x1a8] sm:$0xff]  }
  0xca   :  { %4926 = vmatprep.mubr.msk.bf16.mxu0 %vm952_vm0, %v5189_v25  ;;  %5054 = vmatprep.mubr.msk.bf16.mxu1 %vm952_vm0, %v5190_v26  ;;  %v5208_v25 = vld [vmem:[%s7103_s0 + $0x3a8] sm:$0xff]  }
  0xd1   :  { %4927 = vmatmul.mubr.msk.bf16.gmra.mxu0 %vm952_vm0, %v5191_v27  ;;  %5055 = vmatmul.mubr.msk.bf16.gmra.mxu1 %vm952_vm0, %v5192_v28 }
  0xd2   :  { %4930 = vmatprep.mubr.msk.bf16.mxu0 %vm952_vm0, %v5193_v29  ;;  %5058 = vmatprep.mubr.msk.bf16.mxu1 %vm952_vm0, %v5194_v30  ;;  %v5209_v30 = vld [vmem:[%s7103_s0 + $0x1b0] sm:$0xff]  }
  0xd9   :  { %4931 = vmatmul.mubr.msk.bf16.gmra.mxu0 %vm952_vm0, %v5195_v31  ;;  %5059 = vmatmul.mubr.msk.bf16.gmra.mxu1 %vm952_vm0, %v5196_v32  ;;  %v5210_v31 = vld [vmem:[%s7103_s0 + $0x3b0] sm:$0xff]  }
  0xda   :  { %4934 = vmatprep.mubr.msk.bf16.mxu0 %vm952_vm0, %v5197_v33  ;;  %5062 = vmatprep.mubr.msk.bf16.mxu1 %vm952_vm0, %v5198_v34 }
  0xe1   :  { %v4840_v40 = vpop.f32.mrf.mxu0  ;;  %4935 = vmatmul.mubr.msk.bf16.gmra.mxu0 %vm952_vm0, %v5199_v35  ;;  %v4968_v41 = vpop.f32.mrf.mxu1  ;;  %5063 = vmatmul.mubr.msk.bf16.gmra.mxu1 %vm952_vm0, %v5200_v36 }
  0xe2   :  { %v1380_v42 = vadd.f32 %v4840_v40, %v5709_v39  ;;  %v1892_v43 = vadd.f32 %v4968_v41, %v5709_v39  ;;  %4938 = vmatprep.mubr.msk.bf16.mxu0 %vm952_vm0, %v5201_v37  ;;  %5066 = vmatprep.mubr.msk.bf16.mxu1 %vm952_vm0, %v5202_v38 }
  0xe3   :  { %v1371_v44 = vpop.f32.mrf.mxu0  ;;  %v1883_v45 = vpop.f32.mrf.mxu1 }
  0xe4   :  { %v2396_v46 = vmax.f32 %v1380_v42, 0.0  ;;  %v2524_v47 = vmax.f32 %v1892_v43, 0.0  ;;  %v1372_v48 = vadd.f32 %v5709_v39, %v1371_v44  ;;  %v1884_v49 = vadd.f32 %v5709_v39, %v1883_v45 }
  0xe5   :  { %v4841_v50 = vpop.f32.mrf.mxu0  ;;  %v4969_v51 = vpop.f32.mrf.mxu1 }
  0xe6   :  { %v4453_v54 = vpack.c.bf16 %v2396_v46, %v2396_v46  ;;  %v4581_v55 = vpack.c.bf16 %v2524_v47, %v2524_v47  ;;  %v2394_v56 = vmax.f32 %v1372_v48, 0.0  ;;  %v2522_v57 = vmax.f32 %v1884_v49, 0.0 }
  0xe7   :  { %v1383_v60 = vadd.f32 %v4841_v50, %v5709_v39  ;;  %v1895_v61 = vadd.f32 %v4969_v51, %v5709_v39  ;;  %v1374_v62 = vpop.f32.mrf.mxu0  ;;  %v1886_v63 = vpop.f32.mrf.mxu1 }
  0xe8   :  { %3677 = vst.msk [vmem:[%s7106_s3 + $0x8] sm:$0xf] %vm3674_vm1, %v4453_v54  ;;  %3805 = vst.msk [vmem:[%s7106_s3 + $0x208] sm:$0xf] %vm3674_vm1, %v4581_v55  ;;  %v4451_v0 = vpack.c.bf16 %v2394_v56, %v2394_v56  ;;  %v4579_v1 = vpack.c.bf16 %v2522_v57, %v2522_v57  ;;  %v1375_v2 = vadd.f32 %v5709_v39, %v1374_v62  ;;  %v5212_v62 = vld [vmem:[%s7103_s0 + $0x3b8] sm:$0xff]  }
  0xe9   :  { %v1887_v3 = vadd.f32 %v5709_v39, %v1886_v63  ;;  %v2397_v4 = vmax.f32 %v1383_v60, 0.0  ;;  %v2525_v5 = vmax.f32 %v1895_v61, 0.0  ;;  %v4844_v6 = vpop.f32.mrf.mxu0  ;;  %4939 = vmatmul.mubr.msk.bf16.gmra.mxu0 %vm952_vm0, %v5203_v52  ;;  %v4972_v7 = vpop.f32.mrf.mxu1  ;;  %5067 = vmatmul.mubr.msk.bf16.gmra.mxu1 %vm952_vm0, %v5204_v53  ;;  %v5211_v61 = vld [vmem:[%s7103_s0 + $0x1b8] sm:$0xff]  }
  0xea   :  { %3675 = vst.msk [vmem:[%s7106_s3] sm:$0xf] %vm3674_vm1, %v4451_v0  ;;  %3803 = vst.msk [vmem:[%s7106_s3 + $0x200] sm:$0xf] %vm3674_vm1, %v4579_v1  ;;  %v2395_v8 = vmax.f32 %v1375_v2, 0.0  ;;  %v1396_v10 = vadd.f32 %v4844_v6, %v5709_v39  ;;  %v1908_v11 = vadd.f32 %v4972_v7, %v5709_v39  ;;  %4942 = vmatprep.mubr.msk.bf16.mxu0 %vm952_vm0, %v5205_v58  ;;  %5070 = vmatprep.mubr.msk.bf16.mxu1 %vm952_vm0, %v5206_v59 }
  0xeb   :  { %v2523_v9 = vmax.f32 %v1887_v3, 0.0  ;;  %v4454_v12 = vpack.c.bf16 %v2397_v4, %v2397_v4  ;;  %v4582_v13 = vpack.c.bf16 %v2525_v5, %v2525_v5  ;;  %v1387_v14 = vpop.f32.mrf.mxu0  ;;  %v1899_v15 = vpop.f32.mrf.mxu1  ;;  %v5213_v3 = vld [vmem:[%s7103_s0 + $0x1c0] sm:$0xff]  }
  0xec   :  { %v4452_v16 = vpack.c.bf16 %v2395_v8, %v2395_v8  ;;  %v2400_v18 = vmax.f32 %v1396_v10, 0.0  ;;  %v2528_v19 = vmax.f32 %v1908_v11, 0.0  ;;  %v1388_v20 = vadd.f32 %v5709_v39, %v1387_v14  ;;  %v5214_v8 = vld [vmem:[%s7103_s0 + $0x3c0] sm:$0xff]  }
  0xed   :  { %v4580_v17 = vpack.c.bf16 %v2523_v9, %v2523_v9  ;;  %3678 = vst.msk [vmem:[%s7106_s3 + $0xc] sm:$0xf] %vm3674_vm1, %v4454_v12  ;;  %3806 = vst.msk [vmem:[%s7106_s3 + $0x20c] sm:$0xf] %vm3674_vm1, %v4582_v13  ;;  %v1900_v21 = vadd.f32 %v5709_v39, %v1899_v15  ;;  %v4845_v22 = vpop.f32.mrf.mxu0  ;;  %v4973_v23 = vpop.f32.mrf.mxu1 }
  0xee   :  { %3676 = vst.msk [vmem:[%s7106_s3 + $0x4] sm:$0xf] %vm3674_vm1, %v4452_v16  ;;  %v4457_v26 = vpack.c.bf16 %v2400_v18, %v2400_v18  ;;  %v4585_v27 = vpack.c.bf16 %v2528_v19, %v2528_v19  ;;  %v1399_v28 = vadd.f32 %v4845_v22, %v5709_v39  ;;  %v1911_v29 = vadd.f32 %v4973_v23, %v5709_v39 }
  0xef   :  { %3804 = vst.msk [vmem:[%s7106_s3 + $0x204] sm:$0xf] %vm3674_vm1, %v4580_v17  ;;  %v2398_v32 = vmax.f32 %v1388_v20, 0.0  ;;  %v2526_v33 = vmax.f32 %v1900_v21, 0.0  ;;  %v1390_v34 = vpop.f32.mrf.mxu0  ;;  %v1902_v35 = vpop.f32.mrf.mxu1 }
  0xf0   :  { %3681 = vst.msk [vmem:[%s7106_s3 + $0x18] sm:$0xf] %vm3674_vm1, %v4457_v26  ;;  %3809 = vst.msk [vmem:[%s7106_s3 + $0x218] sm:$0xf] %vm3674_vm1, %v4585_v27  ;;  %v2401_v36 = vmax.f32 %v1399_v28, 0.0  ;;  %v2529_v37 = vmax.f32 %v1911_v29, 0.0  ;;  %v1391_v38 = vadd.f32 %v5709_v39, %v1390_v34  ;;  %v1903_v40 = vadd.f32 %v5709_v39, %v1902_v35 }
  0xf1   :  { %v4455_v41 = vpack.c.bf16 %v2398_v32, %v2398_v32  ;;  %v4583_v42 = vpack.c.bf16 %v2526_v33, %v2526_v33  ;;  %v4848_v43 = vpop.f32.mrf.mxu0  ;;  %4943 = vmatmul.mubr.msk.bf16.gmra.mxu0 %vm952_vm0, %v5207_v24  ;;  %v4976_v44 = vpop.f32.mrf.mxu1  ;;  %5071 = vmatmul.mubr.msk.bf16.gmra.mxu1 %vm952_vm0, %v5208_v25  ;;  %v5215_v33 = vld [vmem:[%s7103_s0 + $0x1c8] sm:$0xff]  }
  0xf2   :  { %v4458_v45 = vpack.c.bf16 %v2401_v36, %v2401_v36  ;;  %v4586_v46 = vpack.c.bf16 %v2529_v37, %v2529_v37  ;;  %v2399_v47 = vmax.f32 %v1391_v38, 0.0  ;;  %v2527_v48 = vmax.f32 %v1903_v40, 0.0  ;;  %4946 = vmatprep.mubr.msk.bf16.mxu0 %vm952_vm0, %v5209_v30  ;;  %5074 = vmatprep.mubr.msk.bf16.mxu1 %vm952_vm0, %v5210_v31  ;;  %v5216_v34 = vld [vmem:[%s7103_s0 + $0x3c8] sm:$0xff]   ;;  %v5217_v40 = vld [vmem:[%s7103_s0 + $0x1d0] sm:$0xff]  }
  0xf3   :  { %3679 = vst.msk [vmem:[%s7106_s3 + $0x10] sm:$0xf] %vm3674_vm1, %v4455_v41  ;;  %3807 = vst.msk [vmem:[%s7106_s3 + $0x210] sm:$0xf] %vm3674_vm1, %v4583_v42  ;;  %v1412_v49 = vadd.f32 %v4848_v43, %v5709_v39  ;;  %v1924_v50 = vadd.f32 %v4976_v44, %v5709_v39  ;;  %v1403_v51 = vpop.f32.mrf.mxu0  ;;  %v1915_v52 = vpop.f32.mrf.mxu1  ;;  %v5218_v41 = vld [vmem:[%s7103_s0 + $0x3d0] sm:$0xff]  }
  0xf4   :  { %3682 = vst.msk [vmem:[%s7106_s3 + $0x1c] sm:$0xf] %vm3674_vm1, %v4458_v45  ;;  %3810 = vst.msk [vmem:[%s7106_s3 + $0x21c] sm:$0xf] %vm3674_vm1, %v4586_v46  ;;  %v4456_v53 = vpack.c.bf16 %v2399_v47, %v2399_v47  ;;  %v4584_v54 = vpack.c.bf16 %v2527_v48, %v2527_v48  ;;  %v1404_v55 = vadd.f32 %v5709_v39, %v1403_v51 }
  0xf5   :  { %v1916_v56 = vadd.f32 %v5709_v39, %v1915_v52  ;;  %v2404_v57 = vmax.f32 %v1412_v49, 0.0  ;;  %v2532_v58 = vmax.f32 %v1924_v50, 0.0  ;;  %v4849_v59 = vpop.f32.mrf.mxu0  ;;  %v4977_v60 = vpop.f32.mrf.mxu1 }
  0xf6   :  { %3680 = vst.msk [vmem:[%s7106_s3 + $0x14] sm:$0xf] %vm3674_vm1, %v4456_v53  ;;  %3808 = vst.msk [vmem:[%s7106_s3 + $0x214] sm:$0xf] %vm3674_vm1, %v4584_v54  ;;  %v2402_v63 = vmax.f32 %v1404_v55, 0.0  ;;  %v1415_v1 = vadd.f32 %v4849_v59, %v5709_v39  ;;  %v1927_v2 = vadd.f32 %v4977_v60, %v5709_v39 }
  0xf7   :  { %v2530_v0 = vmax.f32 %v1916_v56, 0.0  ;;  %v4461_v4 = vpack.c.bf16 %v2404_v57, %v2404_v57  ;;  %v4589_v5 = vpack.c.bf16 %v2532_v58, %v2532_v58  ;;  %v1406_v6 = vpop.f32.mrf.mxu0  ;;  %v1918_v7 = vpop.f32.mrf.mxu1 }
  0xf8   :  { %v4459_v9 = vpack.c.bf16 %v2402_v63, %v2402_v63  ;;  %v2405_v11 = vmax.f32 %v1415_v1, 0.0  ;;  %v2533_v12 = vmax.f32 %v1927_v2, 0.0  ;;  %v1407_v13 = vadd.f32 %v5709_v39, %v1406_v6  ;;  %v5219_v6 = vld [vmem:[%s7103_s0 + $0x1d8] sm:$0xff]  }
  0xf9   :  { %v4587_v10 = vpack.c.bf16 %v2530_v0, %v2530_v0  ;;  %3685 = vst.msk [vmem:[%s7106_s3 + $0x28] sm:$0xf] %vm3674_vm1, %v4461_v4  ;;  %3813 = vst.msk [vmem:[%s7106_s3 + $0x228] sm:$0xf] %vm3674_vm1, %v4589_v5  ;;  %v1919_v14 = vadd.f32 %v5709_v39, %v1918_v7  ;;  %v4852_v15 = vpop.f32.mrf.mxu0  ;;  %4947 = vmatmul.mubr.msk.bf16.gmra.mxu0 %vm952_vm0, %v5211_v61  ;;  %v4980_v16 = vpop.f32.mrf.mxu1  ;;  %5075 = vmatmul.mubr.msk.bf16.gmra.mxu1 %vm952_vm0, %v5212_v62  ;;  %v5220_v7 = vld [vmem:[%s7103_s0 + $0x3d8] sm:$0xff]  }
  0xfa   :  { %3683 = vst.msk [vmem:[%s7106_s3 + $0x20] sm:$0xf] %vm3674_vm1, %v4459_v9  ;;  %v4462_v17 = vpack.c.bf16 %v2405_v11, %v2405_v11  ;;  %v4590_v18 = vpack.c.bf16 %v2533_v12, %v2533_v12  ;;  %v1428_v19 = vadd.f32 %v4852_v15, %v5709_v39  ;;  %v1940_v20 = vadd.f32 %v4980_v16, %v5709_v39  ;;  %v5221_v12 = vld [vmem:[%s7103_s0 + $0x1e0] sm:$0xff]  }
  0xfb   :  { %3811 = vst.msk [vmem:[%s7106_s3 + $0x220] sm:$0xf] %vm3674_vm1, %v4587_v10  ;;  %4950 = vmatprep.mubr.msk.bf16.mxu0 %vm952_vm0, %v5213_v3  ;;  %v2403_v21 = vmax.f32 %v1407_v13, 0.0  ;;  %v2531_v22 = vmax.f32 %v1919_v14, 0.0  ;;  %v1419_v23 = vpop.f32.mrf.mxu0  ;;  %v1931_v24 = vpop.f32.mrf.mxu1  ;;  %5078 = vmatprep.mubr.msk.bf16.mxu1 %vm952_vm0, %v5214_v8  ;;  %v5222_v13 = vld [vmem:[%s7103_s0 + $0x3e0] sm:$0xff]  }
  0xfc   :  { %3686 = vst.msk [vmem:[%s7106_s3 + $0x2c] sm:$0xf] %vm3674_vm1, %v4462_v17  ;;  %3814 = vst.msk [vmem:[%s7106_s3 + $0x22c] sm:$0xf] %vm3674_vm1, %v4590_v18  ;;  %v2408_v25 = vmax.f32 %v1428_v19, 0.0  ;;  %v2536_v26 = vmax.f32 %v1940_v20, 0.0  ;;  %v1420_v27 = vadd.f32 %v5709_v39, %v1419_v23  ;;  %v1932_v28 = vadd.f32 %v5709_v39, %v1931_v24 }
  0xfd   :  { %v4460_v29 = vpack.c.bf16 %v2403_v21, %v2403_v21  ;;  %v4588_v30 = vpack.c.bf16 %v2531_v22, %v2531_v22  ;;  %v4853_v31 = vpop.f32.mrf.mxu0  ;;  %v4981_v32 = vpop.f32.mrf.mxu1 }
  0xfe   :  { %v4465_v35 = vpack.c.bf16 %v2408_v25, %v2408_v25  ;;  %v4593_v36 = vpack.c.bf16 %v2536_v26, %v2536_v26  ;;  %v2406_v37 = vmax.f32 %v1420_v27, 0.0  ;;  %v2534_v38 = vmax.f32 %v1932_v28, 0.0 }
  0xff   :  { %3684 = vst.msk [vmem:[%s7106_s3 + $0x24] sm:$0xf] %vm3674_vm1, %v4460_v29  ;;  %3812 = vst.msk [vmem:[%s7106_s3 + $0x224] sm:$0xf] %vm3674_vm1, %v4588_v30  ;;  %v1431_v42 = vadd.f32 %v4853_v31, %v5709_v39  ;;  %v1943_v43 = vadd.f32 %v4981_v32, %v5709_v39  ;;  %v1422_v44 = vpop.f32.mrf.mxu0  ;;  %v1934_v45 = vpop.f32.mrf.mxu1 }
 0x100   :  { %3689 = vst.msk [vmem:[%s7106_s3 + $0x38] sm:$0xf] %vm3674_vm1, %v4465_v35  ;;  %3817 = vst.msk [vmem:[%s7106_s3 + $0x238] sm:$0xf] %vm3674_vm1, %v4593_v36  ;;  %v4463_v46 = vpack.c.bf16 %v2406_v37, %v2406_v37  ;;  %v4591_v47 = vpack.c.bf16 %v2534_v38, %v2534_v38  ;;  %v1423_v48 = vadd.f32 %v5709_v39, %v1422_v44  ;;  %v5224_v44 = vld [vmem:[%s7103_s0 + $0x3e8] sm:$0xff]  }
 0x101   :  { %v1935_v49 = vadd.f32 %v5709_v39, %v1934_v45  ;;  %v2409_v50 = vmax.f32 %v1431_v42, 0.0  ;;  %v2537_v51 = vmax.f32 %v1943_v43, 0.0  ;;  %v4856_v52 = vpop.f32.mrf.mxu0  ;;  %4951 = vmatmul.mubr.msk.bf16.gmra.mxu0 %vm952_vm0, %v5215_v33  ;;  %v4984_v53 = vpop.f32.mrf.mxu1  ;;  %5079 = vmatmul.mubr.msk.bf16.gmra.mxu1 %vm952_vm0, %v5216_v34  ;;  %v5223_v43 = vld [vmem:[%s7103_s0 + $0x1e8] sm:$0xff]  }
 0x102   :  { %3687 = vst.msk [vmem:[%s7106_s3 + $0x30] sm:$0xf] %vm3674_vm1, %v4463_v46  ;;  %3815 = vst.msk [vmem:[%s7106_s3 + $0x230] sm:$0xf] %vm3674_vm1, %v4591_v47  ;;  %v2407_v54 = vmax.f32 %v1423_v48, 0.0  ;;  %v1444_v56 = vadd.f32 %v4856_v52, %v5709_v39  ;;  %v1956_v57 = vadd.f32 %v4984_v53, %v5709_v39  ;;  %4954 = vmatprep.mubr.msk.bf16.mxu0 %vm952_vm0, %v5217_v40  ;;  %5082 = vmatprep.mubr.msk.bf16.mxu1 %vm952_vm0, %v5218_v41 }
 0x103   :  { %v2535_v55 = vmax.f32 %v1935_v49, 0.0  ;;  %v4466_v58 = vpack.c.bf16 %v2409_v50, %v2409_v50  ;;  %v4594_v59 = vpack.c.bf16 %v2537_v51, %v2537_v51  ;;  %v1435_v60 = vpop.f32.mrf.mxu0  ;;  %v1947_v61 = vpop.f32.mrf.mxu1  ;;  %v5225_v49 = vld [vmem:[%s7103_s0 + $0x1f0] sm:$0xff]  }
 0x104   :  { %v4464_v62 = vpack.c.bf16 %v2407_v54, %v2407_v54  ;;  %v2412_v0 = vmax.f32 %v1444_v56, 0.0  ;;  %v2540_v1 = vmax.f32 %v1956_v57, 0.0  ;;  %v1436_v2 = vadd.f32 %v5709_v39, %v1435_v60  ;;  %v5226_v54 = vld [vmem:[%s7103_s0 + $0x3f0] sm:$0xff]  }
 0x105   :  { %v4592_v63 = vpack.c.bf16 %v2535_v55, %v2535_v55  ;;  %3690 = vst.msk [vmem:[%s7106_s3 + $0x3c] sm:$0xf] %vm3674_vm1, %v4466_v58  ;;  %3818 = vst.msk [vmem:[%s7106_s3 + $0x23c] sm:$0xf] %vm3674_vm1, %v4594_v59  ;;  %v1948_v3 = vadd.f32 %v5709_v39, %v1947_v61  ;;  %v4857_v4 = vpop.f32.mrf.mxu0  ;;  %v4985_v5 = vpop.f32.mrf.mxu1 }
 0x106   :  { %3688 = vst.msk [vmem:[%s7106_s3 + $0x34] sm:$0xf] %vm3674_vm1, %v4464_v62  ;;  %v4469_v8 = vpack.c.bf16 %v2412_v0, %v2412_v0  ;;  %v4597_v9 = vpack.c.bf16 %v2540_v1, %v2540_v1  ;;  %v1447_v10 = vadd.f32 %v4857_v4, %v5709_v39  ;;  %v1959_v11 = vadd.f32 %v4985_v5, %v5709_v39 }
 0x107   :  { %3816 = vst.msk [vmem:[%s7106_s3 + $0x234] sm:$0xf] %vm3674_vm1, %v4592_v63  ;;  %v2410_v14 = vmax.f32 %v1436_v2, 0.0  ;;  %v2538_v15 = vmax.f32 %v1948_v3, 0.0  ;;  %v1438_v16 = vpop.f32.mrf.mxu0  ;;  %v1950_v17 = vpop.f32.mrf.mxu1 }
 0x108   :  { %3693 = vst.msk [vmem:[%s7106_s3 + $0x48] sm:$0xf] %vm3674_vm1, %v4469_v8  ;;  %3821 = vst.msk [vmem:[%s7106_s3 + $0x248] sm:$0xf] %vm3674_vm1, %v4597_v9  ;;  %v2413_v18 = vmax.f32 %v1447_v10, 0.0  ;;  %v2541_v19 = vmax.f32 %v1959_v11, 0.0  ;;  %v1439_v20 = vadd.f32 %v5709_v39, %v1438_v16  ;;  %v1951_v21 = vadd.f32 %v5709_v39, %v1950_v17 }
 0x109   :  { %v4467_v22 = vpack.c.bf16 %v2410_v14, %v2410_v14  ;;  %v4595_v23 = vpack.c.bf16 %v2538_v15, %v2538_v15  ;;  %v4860_v24 = vpop.f32.mrf.mxu0  ;;  %4955 = vmatmul.mubr.msk.bf16.gmra.mxu0 %vm952_vm0, %v5219_v6  ;;  %v4988_v25 = vpop.f32.mrf.mxu1  ;;  %5083 = vmatmul.mubr.msk.bf16.gmra.mxu1 %vm952_vm0, %v5220_v7  ;;  %v5227_v15 = vld [vmem:[%s7103_s0 + $0x1f8] sm:$0xff]  }
 0x10a   :  { %v4470_v26 = vpack.c.bf16 %v2413_v18, %v2413_v18  ;;  %v4598_v27 = vpack.c.bf16 %v2541_v19, %v2541_v19  ;;  %v2411_v28 = vmax.f32 %v1439_v20, 0.0  ;;  %v2539_v29 = vmax.f32 %v1951_v21, 0.0  ;;  %4958 = vmatprep.mubr.msk.bf16.mxu0 %vm952_vm0, %v5221_v12  ;;  %5086 = vmatprep.mubr.msk.bf16.mxu1 %vm952_vm0, %v5222_v13  ;;  %v5228_v16 = vld [vmem:[%s7103_s0 + $0x3f8] sm:$0xff]  }
 0x10b   :  { %3691 = vst.msk [vmem:[%s7106_s3 + $0x40] sm:$0xf] %vm3674_vm1, %v4467_v22  ;;  %3819 = vst.msk [vmem:[%s7106_s3 + $0x240] sm:$0xf] %vm3674_vm1, %v4595_v23  ;;  %v1460_v30 = vadd.f32 %v4860_v24, %v5709_v39  ;;  %v1972_v31 = vadd.f32 %v4988_v25, %v5709_v39  ;;  %v1451_v32 = vpop.f32.mrf.mxu0  ;;  %v1963_v33 = vpop.f32.mrf.mxu1 }
 0x10c   :  { %3694 = vst.msk [vmem:[%s7106_s3 + $0x4c] sm:$0xf] %vm3674_vm1, %v4470_v26  ;;  %3822 = vst.msk [vmem:[%s7106_s3 + $0x24c] sm:$0xf] %vm3674_vm1, %v4598_v27  ;;  %v4468_v34 = vpack.c.bf16 %v2411_v28, %v2411_v28  ;;  %v4596_v35 = vpack.c.bf16 %v2539_v29, %v2539_v29  ;;  %v1452_v36 = vadd.f32 %v5709_v39, %v1451_v32 }
 0x10d   :  { %v1964_v37 = vadd.f32 %v5709_v39, %v1963_v33  ;;  %v2416_v38 = vmax.f32 %v1460_v30, 0.0  ;;  %v2544_v40 = vmax.f32 %v1972_v31, 0.0  ;;  %v4861_v41 = vpop.f32.mrf.mxu0  ;;  %v4989_v42 = vpop.f32.mrf.mxu1 }
 0x10e   :  { %3692 = vst.msk [vmem:[%s7106_s3 + $0x44] sm:$0xf] %vm3674_vm1, %v4468_v34  ;;  %3820 = vst.msk [vmem:[%s7106_s3 + $0x244] sm:$0xf] %vm3674_vm1, %v4596_v35  ;;  %v2414_v45 = vmax.f32 %v1452_v36, 0.0  ;;  %v1463_v47 = vadd.f32 %v4861_v41, %v5709_v39  ;;  %v1975_v48 = vadd.f32 %v4989_v42, %v5709_v39 }
 0x10f   :  { %v2542_v46 = vmax.f32 %v1964_v37, 0.0  ;;  %v4473_v50 = vpack.c.bf16 %v2416_v38, %v2416_v38  ;;  %v4601_v51 = vpack.c.bf16 %v2544_v40, %v2544_v40  ;;  %v1454_v52 = vpop.f32.mrf.mxu0  ;;  %v1966_v53 = vpop.f32.mrf.mxu1 }
 0x110   :  { %v4471_v55 = vpack.c.bf16 %v2414_v45, %v2414_v45  ;;  %v2417_v57 = vmax.f32 %v1463_v47, 0.0  ;;  %v2545_v58 = vmax.f32 %v1975_v48, 0.0  ;;  %v1455_v59 = vadd.f32 %v5709_v39, %v1454_v52 }
 0x111   :  { %v4599_v56 = vpack.c.bf16 %v2542_v46, %v2542_v46  ;;  %3697 = vst.msk [vmem:[%s7106_s3 + $0x58] sm:$0xf] %vm3674_vm1, %v4473_v50  ;;  %3825 = vst.msk [vmem:[%s7106_s3 + $0x258] sm:$0xf] %vm3674_vm1, %v4601_v51  ;;  %v1967_v60 = vadd.f32 %v5709_v39, %v1966_v53  ;;  %v4864_v61 = vpop.f32.mrf.mxu0  ;;  %4959 = vmatmul.mubr.msk.bf16.gmra.mxu0 %vm952_vm0, %v5223_v43  ;;  %v4992_v62 = vpop.f32.mrf.mxu1  ;;  %5087 = vmatmul.mubr.msk.bf16.gmra.mxu1 %vm952_vm0, %v5224_v44 }
 0x112   :  { %3695 = vst.msk [vmem:[%s7106_s3 + $0x50] sm:$0xf] %vm3674_vm1, %v4471_v55  ;;  %v4474_v63 = vpack.c.bf16 %v2417_v57, %v2417_v57  ;;  %v4602_v0 = vpack.c.bf16 %v2545_v58, %v2545_v58  ;;  %v1476_v1 = vadd.f32 %v4864_v61, %v5709_v39  ;;  %v1988_v2 = vadd.f32 %v4992_v62, %v5709_v39 }
 0x113   :  { %3823 = vst.msk [vmem:[%s7106_s3 + $0x250] sm:$0xf] %vm3674_vm1, %v4599_v56  ;;  %4962 = vmatprep.mubr.msk.bf16.mxu0 %vm952_vm0, %v5225_v49  ;;  %v2415_v3 = vmax.f32 %v1455_v59, 0.0  ;;  %v2543_v4 = vmax.f32 %v1967_v60, 0.0  ;;  %v1467_v5 = vpop.f32.mrf.mxu0  ;;  %v1979_v6 = vpop.f32.mrf.mxu1  ;;  %5090 = vmatprep.mubr.msk.bf16.mxu1 %vm952_vm0, %v5226_v54 }
 0x114   :  { %3698 = vst.msk [vmem:[%s7106_s3 + $0x5c] sm:$0xf] %vm3674_vm1, %v4474_v63  ;;  %3826 = vst.msk [vmem:[%s7106_s3 + $0x25c] sm:$0xf] %vm3674_vm1, %v4602_v0  ;;  %v2420_v7 = vmax.f32 %v1476_v1, 0.0  ;;  %v2548_v8 = vmax.f32 %v1988_v2, 0.0  ;;  %v1468_v9 = vadd.f32 %v5709_v39, %v1467_v5  ;;  %v1980_v10 = vadd.f32 %v5709_v39, %v1979_v6 }
 0x115   :  { %v4472_v11 = vpack.c.bf16 %v2415_v3, %v2415_v3  ;;  %v4600_v12 = vpack.c.bf16 %v2543_v4, %v2543_v4  ;;  %v4865_v13 = vpop.f32.mrf.mxu0  ;;  %v4993_v14 = vpop.f32.mrf.mxu1 }
 0x116   :  { %v4477_v17 = vpack.c.bf16 %v2420_v7, %v2420_v7  ;;  %v4605_v18 = vpack.c.bf16 %v2548_v8, %v2548_v8  ;;  %v2418_v19 = vmax.f32 %v1468_v9, 0.0  ;;  %v2546_v20 = vmax.f32 %v1980_v10, 0.0 }
 0x117   :  { %3696 = vst.msk [vmem:[%s7106_s3 + $0x54] sm:$0xf] %vm3674_vm1, %v4472_v11  ;;  %3824 = vst.msk [vmem:[%s7106_s3 + $0x254] sm:$0xf] %vm3674_vm1, %v4600_v12  ;;  %v1479_v21 = vadd.f32 %v4865_v13, %v5709_v39  ;;  %v1991_v22 = vadd.f32 %v4993_v14, %v5709_v39  ;;  %v1470_v23 = vpop.f32.mrf.mxu0  ;;  %v1982_v24 = vpop.f32.mrf.mxu1 }
 0x118   :  { %3701 = vst.msk [vmem:[%s7106_s3 + $0x68] sm:$0xf] %vm3674_vm1, %v4477_v17  ;;  %3829 = vst.msk [vmem:[%s7106_s3 + $0x268] sm:$0xf] %vm3674_vm1, %v4605_v18  ;;  %v4475_v25 = vpack.c.bf16 %v2418_v19, %v2418_v19  ;;  %v4603_v26 = vpack.c.bf16 %v2546_v20, %v2546_v20  ;;  %v1471_v27 = vadd.f32 %v5709_v39, %v1470_v23 }
 0x119   :  { %v1983_v28 = vadd.f32 %v5709_v39, %v1982_v24  ;;  %v2421_v29 = vmax.f32 %v1479_v21, 0.0  ;;  %v2549_v30 = vmax.f32 %v1991_v22, 0.0  ;;  %v4868_v31 = vpop.f32.mrf.mxu0  ;;  %4963 = vmatmul.mubr.msk.bf16.gmra.mxu0 %vm952_vm0, %v5227_v15  ;;  %v4996_v32 = vpop.f32.mrf.mxu1  ;;  %5091 = vmatmul.mubr.msk.bf16.gmra.mxu1 %vm952_vm0, %v5228_v16 }
 0x11a   :  { %3699 = vst.msk [vmem:[%s7106_s3 + $0x60] sm:$0xf] %vm3674_vm1, %v4475_v25  ;;  %3827 = vst.msk [vmem:[%s7106_s3 + $0x260] sm:$0xf] %vm3674_vm1, %v4603_v26  ;;  %v2419_v33 = vmax.f32 %v1471_v27, 0.0  ;;  %v1492_v35 = vadd.f32 %v4868_v31, %v5709_v39  ;;  %v2004_v36 = vadd.f32 %v4996_v32, %v5709_v39 }
 0x11b   :  { %v2547_v34 = vmax.f32 %v1983_v28, 0.0  ;;  %v4478_v37 = vpack.c.bf16 %v2421_v29, %v2421_v29  ;;  %v4606_v38 = vpack.c.bf16 %v2549_v30, %v2549_v30  ;;  %v1483_v40 = vpop.f32.mrf.mxu0  ;;  %v1995_v41 = vpop.f32.mrf.mxu1 }
 0x11c   :  { %v4476_v42 = vpack.c.bf16 %v2419_v33, %v2419_v33  ;;  %v2424_v44 = vmax.f32 %v1492_v35, 0.0  ;;  %v2552_v45 = vmax.f32 %v2004_v36, 0.0  ;;  %v1484_v46 = vadd.f32 %v5709_v39, %v1483_v40 }
 0x11d   :  { %v4604_v43 = vpack.c.bf16 %v2547_v34, %v2547_v34  ;;  %3702 = vst.msk [vmem:[%s7106_s3 + $0x6c] sm:$0xf] %vm3674_vm1, %v4478_v37  ;;  %3830 = vst.msk [vmem:[%s7106_s3 + $0x26c] sm:$0xf] %vm3674_vm1, %v4606_v38  ;;  %v1996_v47 = vadd.f32 %v5709_v39, %v1995_v41  ;;  %v4869_v48 = vpop.f32.mrf.mxu0  ;;  %v4997_v49 = vpop.f32.mrf.mxu1 }
 0x11e   :  { %3700 = vst.msk [vmem:[%s7106_s3 + $0x64] sm:$0xf] %vm3674_vm1, %v4476_v42  ;;  %v4481_v50 = vpack.c.bf16 %v2424_v44, %v2424_v44  ;;  %v4609_v51 = vpack.c.bf16 %v2552_v45, %v2552_v45  ;;  %v1495_v52 = vadd.f32 %v4869_v48, %v5709_v39  ;;  %v2007_v53 = vadd.f32 %v4997_v49, %v5709_v39 }
 0x11f   :  { %3828 = vst.msk [vmem:[%s7106_s3 + $0x264] sm:$0xf] %vm3674_vm1, %v4604_v43  ;;  %v2422_v54 = vmax.f32 %v1484_v46, 0.0  ;;  %v2550_v55 = vmax.f32 %v1996_v47, 0.0  ;;  %v1486_v56 = vpop.f32.mrf.mxu0  ;;  %v1998_v57 = vpop.f32.mrf.mxu1 }
 0x120   :  { %3705 = vst.msk [vmem:[%s7106_s3 + $0x78] sm:$0xf] %vm3674_vm1, %v4481_v50  ;;  %3833 = vst.msk [vmem:[%s7106_s3 + $0x278] sm:$0xf] %vm3674_vm1, %v4609_v51  ;;  %v2425_v58 = vmax.f32 %v1495_v52, 0.0  ;;  %v2553_v59 = vmax.f32 %v2007_v53, 0.0  ;;  %v1487_v60 = vadd.f32 %v5709_v39, %v1486_v56  ;;  %v1999_v61 = vadd.f32 %v5709_v39, %v1998_v57 }
 0x121   :  { %v4479_v62 = vpack.c.bf16 %v2422_v54, %v2422_v54  ;;  %v4607_v63 = vpack.c.bf16 %v2550_v55, %v2550_v55  ;;  %v4872_v0 = vpop.f32.mrf.mxu0  ;;  %v5000_v1 = vpop.f32.mrf.mxu1 }
 0x122   :  { %v4482_v2 = vpack.c.bf16 %v2425_v58, %v2425_v58  ;;  %v4610_v3 = vpack.c.bf16 %v2553_v59, %v2553_v59  ;;  %v2423_v4 = vmax.f32 %v1487_v60, 0.0  ;;  %v2551_v5 = vmax.f32 %v1999_v61, 0.0 }
 0x123   :  { %3703 = vst.msk [vmem:[%s7106_s3 + $0x70] sm:$0xf] %vm3674_vm1, %v4479_v62  ;;  %3831 = vst.msk [vmem:[%s7106_s3 + $0x270] sm:$0xf] %vm3674_vm1, %v4607_v63  ;;  %v1508_v6 = vadd.f32 %v4872_v0, %v5709_v39  ;;  %v2020_v7 = vadd.f32 %v5000_v1, %v5709_v39  ;;  %v1499_v8 = vpop.f32.mrf.mxu0  ;;  %v2011_v9 = vpop.f32.mrf.mxu1 }
 0x124   :  { %3706 = vst.msk [vmem:[%s7106_s3 + $0x7c] sm:$0xf] %vm3674_vm1, %v4482_v2  ;;  %3834 = vst.msk [vmem:[%s7106_s3 + $0x27c] sm:$0xf] %vm3674_vm1, %v4610_v3  ;;  %v4480_v10 = vpack.c.bf16 %v2423_v4, %v2423_v4  ;;  %v4608_v11 = vpack.c.bf16 %v2551_v5, %v2551_v5  ;;  %v1500_v12 = vadd.f32 %v5709_v39, %v1499_v8 }
 0x125   :  { %v2012_v13 = vadd.f32 %v5709_v39, %v2011_v9  ;;  %v2428_v14 = vmax.f32 %v1508_v6, 0.0  ;;  %v2556_v15 = vmax.f32 %v2020_v7, 0.0  ;;  %v4873_v16 = vpop.f32.mrf.mxu0  ;;  %v5001_v17 = vpop.f32.mrf.mxu1 }
 0x126   :  { %3704 = vst.msk [vmem:[%s7106_s3 + $0x74] sm:$0xf] %vm3674_vm1, %v4480_v10  ;;  %3832 = vst.msk [vmem:[%s7106_s3 + $0x274] sm:$0xf] %vm3674_vm1, %v4608_v11  ;;  %v2426_v18 = vmax.f32 %v1500_v12, 0.0  ;;  %v1511_v20 = vadd.f32 %v4873_v16, %v5709_v39  ;;  %v2023_v21 = vadd.f32 %v5001_v17, %v5709_v39 }
 0x127   :  { %v2554_v19 = vmax.f32 %v2012_v13, 0.0  ;;  %v4485_v22 = vpack.c.bf16 %v2428_v14, %v2428_v14  ;;  %v4613_v23 = vpack.c.bf16 %v2556_v15, %v2556_v15  ;;  %v1502_v24 = vpop.f32.mrf.mxu0  ;;  %v2014_v25 = vpop.f32.mrf.mxu1 }
 0x128   :  { %v4483_v26 = vpack.c.bf16 %v2426_v18, %v2426_v18  ;;  %v2429_v28 = vmax.f32 %v1511_v20, 0.0  ;;  %v2557_v29 = vmax.f32 %v2023_v21, 0.0  ;;  %v1503_v30 = vadd.f32 %v5709_v39, %v1502_v24 }
 0x129   :  { %v4611_v27 = vpack.c.bf16 %v2554_v19, %v2554_v19  ;;  %3709 = vst.msk [vmem:[%s7106_s3 + $0x88] sm:$0xf] %vm3674_vm1, %v4485_v22  ;;  %3837 = vst.msk [vmem:[%s7106_s3 + $0x288] sm:$0xf] %vm3674_vm1, %v4613_v23  ;;  %v2015_v31 = vadd.f32 %v5709_v39, %v2014_v25  ;;  %v4876_v32 = vpop.f32.mrf.mxu0  ;;  %v5004_v33 = vpop.f32.mrf.mxu1 }
 0x12a   :  { %3707 = vst.msk [vmem:[%s7106_s3 + $0x80] sm:$0xf] %vm3674_vm1, %v4483_v26  ;;  %v4486_v34 = vpack.c.bf16 %v2429_v28, %v2429_v28  ;;  %v4614_v35 = vpack.c.bf16 %v2557_v29, %v2557_v29  ;;  %v1524_v36 = vadd.f32 %v4876_v32, %v5709_v39  ;;  %v2036_v37 = vadd.f32 %v5004_v33, %v5709_v39 }
 0x12b   :  { %3835 = vst.msk [vmem:[%s7106_s3 + $0x280] sm:$0xf] %vm3674_vm1, %v4611_v27  ;;  %v2427_v38 = vmax.f32 %v1503_v30, 0.0  ;;  %v2555_v40 = vmax.f32 %v2015_v31, 0.0  ;;  %v1515_v41 = vpop.f32.mrf.mxu0  ;;  %v2027_v42 = vpop.f32.mrf.mxu1 }
 0x12c   :  { %3710 = vst.msk [vmem:[%s7106_s3 + $0x8c] sm:$0xf] %vm3674_vm1, %v4486_v34  ;;  %3838 = vst.msk [vmem:[%s7106_s3 + $0x28c] sm:$0xf] %vm3674_vm1, %v4614_v35  ;;  %v2432_v43 = vmax.f32 %v1524_v36, 0.0  ;;  %v2560_v44 = vmax.f32 %v2036_v37, 0.0  ;;  %v1516_v45 = vadd.f32 %v5709_v39, %v1515_v41  ;;  %v2028_v46 = vadd.f32 %v5709_v39, %v2027_v42 }
 0x12d   :  { %v4484_v47 = vpack.c.bf16 %v2427_v38, %v2427_v38  ;;  %v4612_v48 = vpack.c.bf16 %v2555_v40, %v2555_v40  ;;  %v4877_v49 = vpop.f32.mrf.mxu0  ;;  %v5005_v50 = vpop.f32.mrf.mxu1 }
 0x12e   :  { %v4489_v51 = vpack.c.bf16 %v2432_v43, %v2432_v43  ;;  %v4617_v52 = vpack.c.bf16 %v2560_v44, %v2560_v44  ;;  %v2430_v53 = vmax.f32 %v1516_v45, 0.0  ;;  %v2558_v54 = vmax.f32 %v2028_v46, 0.0 }
 0x12f   :  { %3708 = vst.msk [vmem:[%s7106_s3 + $0x84] sm:$0xf] %vm3674_vm1, %v4484_v47  ;;  %3836 = vst.msk [vmem:[%s7106_s3 + $0x284] sm:$0xf] %vm3674_vm1, %v4612_v48  ;;  %v1527_v55 = vadd.f32 %v4877_v49, %v5709_v39  ;;  %v2039_v56 = vadd.f32 %v5005_v50, %v5709_v39  ;;  %v1518_v57 = vpop.f32.mrf.mxu0  ;;  %v2030_v58 = vpop.f32.mrf.mxu1 }
 0x130   :  { %3713 = vst.msk [vmem:[%s7106_s3 + $0x98] sm:$0xf] %vm3674_vm1, %v4489_v51  ;;  %3841 = vst.msk [vmem:[%s7106_s3 + $0x298] sm:$0xf] %vm3674_vm1, %v4617_v52  ;;  %v4487_v59 = vpack.c.bf16 %v2430_v53, %v2430_v53  ;;  %v4615_v60 = vpack.c.bf16 %v2558_v54, %v2558_v54  ;;  %v1519_v61 = vadd.f32 %v5709_v39, %v1518_v57  ;;  %v6263_v54 = vld [vmem:[#allocation4] ss:$0 sm:$0xff] }
 0x131   :  { %v2031_v62 = vadd.f32 %v5709_v39, %v2030_v58  ;;  %v2433_v63 = vmax.f32 %v1527_v55, 0.0  ;;  %v2561_v0 = vmax.f32 %v2039_v56, 0.0  ;;  %v4880_v1 = vpop.f32.mrf.mxu0  ;;  %v5008_v2 = vpop.f32.mrf.mxu1 }
 0x132   :  { %3711 = vst.msk [vmem:[%s7106_s3 + $0x90] sm:$0xf] %vm3674_vm1, %v4487_v59  ;;  %3839 = vst.msk [vmem:[%s7106_s3 + $0x290] sm:$0xf] %vm3674_vm1, %v4615_v60  ;;  %v2431_v3 = vmax.f32 %v1519_v61, 0.0  ;;  %v1540_v5 = vadd.f32 %v4880_v1, %v5709_v39  ;;  %v2052_v6 = vadd.f32 %v5008_v2, %v5709_v39 }
 0x133   :  { %v2559_v4 = vmax.f32 %v2031_v62, 0.0  ;;  %v4490_v7 = vpack.c.bf16 %v2433_v63, %v2433_v63  ;;  %v4618_v8 = vpack.c.bf16 %v2561_v0, %v2561_v0  ;;  %v1531_v9 = vpop.f32.mrf.mxu0  ;;  %v2043_v10 = vpop.f32.mrf.mxu1 }
 0x134   :  { %v4488_v11 = vpack.c.bf16 %v2431_v3, %v2431_v3  ;;  %v2436_v13 = vmax.f32 %v1540_v5, 0.0  ;;  %v2564_v14 = vmax.f32 %v2052_v6, 0.0  ;;  %v1532_v15 = vadd.f32 %v5709_v39, %v1531_v9 }
 0x135   :  { %v4616_v12 = vpack.c.bf16 %v2559_v4, %v2559_v4  ;;  %3714 = vst.msk [vmem:[%s7106_s3 + $0x9c] sm:$0xf] %vm3674_vm1, %v4490_v7  ;;  %3842 = vst.msk [vmem:[%s7106_s3 + $0x29c] sm:$0xf] %vm3674_vm1, %v4618_v8  ;;  %v2044_v16 = vadd.f32 %v5709_v39, %v2043_v10  ;;  %v4881_v17 = vpop.f32.mrf.mxu0  ;;  %v5009_v18 = vpop.f32.mrf.mxu1 }
 0x136   :  { %3712 = vst.msk [vmem:[%s7106_s3 + $0x94] sm:$0xf] %vm3674_vm1, %v4488_v11  ;;  %v4493_v19 = vpack.c.bf16 %v2436_v13, %v2436_v13  ;;  %v4621_v20 = vpack.c.bf16 %v2564_v14, %v2564_v14  ;;  %v1543_v21 = vadd.f32 %v4881_v17, %v5709_v39  ;;  %v2055_v22 = vadd.f32 %v5009_v18, %v5709_v39 }
 0x137   :  { %3840 = vst.msk [vmem:[%s7106_s3 + $0x294] sm:$0xf] %vm3674_vm1, %v4616_v12  ;;  %v2434_v23 = vmax.f32 %v1532_v15, 0.0  ;;  %v2562_v24 = vmax.f32 %v2044_v16, 0.0  ;;  %v1534_v25 = vpop.f32.mrf.mxu0  ;;  %v2046_v26 = vpop.f32.mrf.mxu1 }
 0x138   :  { %3717 = vst.msk [vmem:[%s7106_s3 + $0xa8] sm:$0xf] %vm3674_vm1, %v4493_v19  ;;  %3845 = vst.msk [vmem:[%s7106_s3 + $0x2a8] sm:$0xf] %vm3674_vm1, %v4621_v20  ;;  %v2437_v27 = vmax.f32 %v1543_v21, 0.0  ;;  %v2565_v28 = vmax.f32 %v2055_v22, 0.0  ;;  %v1535_v29 = vadd.f32 %v5709_v39, %v1534_v25  ;;  %v2047_v30 = vadd.f32 %v5709_v39, %v2046_v26 }
 0x139   :  { %v4491_v31 = vpack.c.bf16 %v2434_v23, %v2434_v23  ;;  %v4619_v32 = vpack.c.bf16 %v2562_v24, %v2562_v24  ;;  %v4884_v33 = vpop.f32.mrf.mxu0  ;;  %v5012_v34 = vpop.f32.mrf.mxu1 }
 0x13a   :  { %v4494_v35 = vpack.c.bf16 %v2437_v27, %v2437_v27  ;;  %v4622_v36 = vpack.c.bf16 %v2565_v28, %v2565_v28  ;;  %v2435_v37 = vmax.f32 %v1535_v29, 0.0  ;;  %v2563_v38 = vmax.f32 %v2047_v30, 0.0 }
 0x13b   :  { %3715 = vst.msk [vmem:[%s7106_s3 + $0xa0] sm:$0xf] %vm3674_vm1, %v4491_v31  ;;  %3843 = vst.msk [vmem:[%s7106_s3 + $0x2a0] sm:$0xf] %vm3674_vm1, %v4619_v32  ;;  %v1556_v40 = vadd.f32 %v4884_v33, %v5709_v39  ;;  %v2068_v41 = vadd.f32 %v5012_v34, %v5709_v39  ;;  %v1547_v42 = vpop.f32.mrf.mxu0  ;;  %v2059_v43 = vpop.f32.mrf.mxu1 }
 0x13c   :  { %3718 = vst.msk [vmem:[%s7106_s3 + $0xac] sm:$0xf] %vm3674_vm1, %v4494_v35  ;;  %3846 = vst.msk [vmem:[%s7106_s3 + $0x2ac] sm:$0xf] %vm3674_vm1, %v4622_v36  ;;  %v4492_v44 = vpack.c.bf16 %v2435_v37, %v2435_v37  ;;  %v4620_v45 = vpack.c.bf16 %v2563_v38, %v2563_v38  ;;  %v1548_v46 = vadd.f32 %v5709_v39, %v1547_v42 }
 0x13d   :  { %v2060_v47 = vadd.f32 %v5709_v39, %v2059_v43  ;;  %v2440_v48 = vmax.f32 %v1556_v40, 0.0  ;;  %v2568_v49 = vmax.f32 %v2068_v41, 0.0  ;;  %v4885_v50 = vpop.f32.mrf.mxu0  ;;  %v5013_v51 = vpop.f32.mrf.mxu1 }
 0x13e   :  { %3716 = vst.msk [vmem:[%s7106_s3 + $0xa4] sm:$0xf] %vm3674_vm1, %v4492_v44  ;;  %3844 = vst.msk [vmem:[%s7106_s3 + $0x2a4] sm:$0xf] %vm3674_vm1, %v4620_v45  ;;  %v2438_v52 = vmax.f32 %v1548_v46, 0.0  ;;  %v1559_v39 = vadd.f32 %v6263_v54, %v4885_v50  ;;  %v2071_v55 = vadd.f32 %v6263_v54, %v5013_v51 }
 0x13f   :  { %v2566_v53 = vmax.f32 %v2060_v47, 0.0  ;;  %v4497_v56 = vpack.c.bf16 %v2440_v48, %v2440_v48  ;;  %v4625_v57 = vpack.c.bf16 %v2568_v49, %v2568_v49  ;;  %v1550_v58 = vpop.f32.mrf.mxu0  ;;  %v2062_v59 = vpop.f32.mrf.mxu1 }
 0x140   :  { %v4495_v60 = vpack.c.bf16 %v2438_v52, %v2438_v52  ;;  %v2441_v62 = vmax.f32 %v1559_v39, 0.0  ;;  %v2569_v63 = vmax.f32 %v2071_v55, 0.0  ;;  %v1551_v0 = vadd.f32 %v6263_v54, %v1550_v58 }
 0x141   :  { %v4623_v61 = vpack.c.bf16 %v2566_v53, %v2566_v53  ;;  %3721 = vst.msk [vmem:[%s7106_s3 + $0xb8] sm:$0xf] %vm3674_vm1, %v4497_v56  ;;  %3849 = vst.msk [vmem:[%s7106_s3 + $0x2b8] sm:$0xf] %vm3674_vm1, %v4625_v57  ;;  %v2063_v1 = vadd.f32 %v6263_v54, %v2062_v59  ;;  %v4888_v2 = vpop.f32.mrf.mxu0  ;;  %v5016_v3 = vpop.f32.mrf.mxu1 }
 0x142   :  { %3719 = vst.msk [vmem:[%s7106_s3 + $0xb0] sm:$0xf] %vm3674_vm1, %v4495_v60  ;;  %v4498_v4 = vpack.c.bf16 %v2441_v62, %v2441_v62  ;;  %v4626_v5 = vpack.c.bf16 %v2569_v63, %v2569_v63  ;;  %v1572_v6 = vadd.f32 %v6263_v54, %v4888_v2  ;;  %v2084_v7 = vadd.f32 %v6263_v54, %v5016_v3 }
 0x143   :  { %3847 = vst.msk [vmem:[%s7106_s3 + $0x2b0] sm:$0xf] %vm3674_vm1, %v4623_v61  ;;  %v2439_v8 = vmax.f32 %v1551_v0, 0.0  ;;  %v2567_v9 = vmax.f32 %v2063_v1, 0.0  ;;  %v1563_v10 = vpop.f32.mrf.mxu0  ;;  %v2075_v11 = vpop.f32.mrf.mxu1 }
 0x144   :  { %3722 = vst.msk [vmem:[%s7106_s3 + $0xbc] sm:$0xf] %vm3674_vm1, %v4498_v4  ;;  %3850 = vst.msk [vmem:[%s7106_s3 + $0x2bc] sm:$0xf] %vm3674_vm1, %v4626_v5  ;;  %v2444_v12 = vmax.f32 %v1572_v6, 0.0  ;;  %v2572_v13 = vmax.f32 %v2084_v7, 0.0  ;;  %v1564_v14 = vadd.f32 %v6263_v54, %v1563_v10  ;;  %v2076_v15 = vadd.f32 %v6263_v54, %v2075_v11 }
 0x145   :  { %v4496_v16 = vpack.c.bf16 %v2439_v8, %v2439_v8  ;;  %v4624_v17 = vpack.c.bf16 %v2567_v9, %v2567_v9  ;;  %v4889_v18 = vpop.f32.mrf.mxu0  ;;  %v5017_v19 = vpop.f32.mrf.mxu1 }
 0x146   :  { %v4501_v20 = vpack.c.bf16 %v2444_v12, %v2444_v12  ;;  %v4629_v21 = vpack.c.bf16 %v2572_v13, %v2572_v13  ;;  %v2442_v22 = vmax.f32 %v1564_v14, 0.0  ;;  %v2570_v23 = vmax.f32 %v2076_v15, 0.0 }
 0x147   :  { %3720 = vst.msk [vmem:[%s7106_s3 + $0xb4] sm:$0xf] %vm3674_vm1, %v4496_v16  ;;  %3848 = vst.msk [vmem:[%s7106_s3 + $0x2b4] sm:$0xf] %vm3674_vm1, %v4624_v17  ;;  %v1575_v24 = vadd.f32 %v6263_v54, %v4889_v18  ;;  %v2087_v25 = vadd.f32 %v6263_v54, %v5017_v19  ;;  %v1566_v26 = vpop.f32.mrf.mxu0  ;;  %v2078_v27 = vpop.f32.mrf.mxu1 }
 0x148   :  { %3725 = vst.msk [vmem:[%s7106_s3 + $0xc8] sm:$0xf] %vm3674_vm1, %v4501_v20  ;;  %3853 = vst.msk [vmem:[%s7106_s3 + $0x2c8] sm:$0xf] %vm3674_vm1, %v4629_v21  ;;  %v4499_v28 = vpack.c.bf16 %v2442_v22, %v2442_v22  ;;  %v4627_v29 = vpack.c.bf16 %v2570_v23, %v2570_v23  ;;  %v1567_v30 = vadd.f32 %v6263_v54, %v1566_v26 }
 0x149   :  { %v2079_v31 = vadd.f32 %v6263_v54, %v2078_v27  ;;  %v2445_v32 = vmax.f32 %v1575_v24, 0.0  ;;  %v2573_v33 = vmax.f32 %v2087_v25, 0.0  ;;  %v4892_v34 = vpop.f32.mrf.mxu0  ;;  %v5020_v35 = vpop.f32.mrf.mxu1 }
 0x14a   :  { %3723 = vst.msk [vmem:[%s7106_s3 + $0xc0] sm:$0xf] %vm3674_vm1, %v4499_v28  ;;  %3851 = vst.msk [vmem:[%s7106_s3 + $0x2c0] sm:$0xf] %vm3674_vm1, %v4627_v29  ;;  %v2443_v36 = vmax.f32 %v1567_v30, 0.0  ;;  %v1588_v38 = vadd.f32 %v6263_v54, %v4892_v34  ;;  %v2100_v40 = vadd.f32 %v6263_v54, %v5020_v35 }
 0x14b   :  { %v2571_v37 = vmax.f32 %v2079_v31, 0.0  ;;  %v4502_v41 = vpack.c.bf16 %v2445_v32, %v2445_v32  ;;  %v4630_v42 = vpack.c.bf16 %v2573_v33, %v2573_v33  ;;  %v1579_v43 = vpop.f32.mrf.mxu0  ;;  %v2091_v44 = vpop.f32.mrf.mxu1 }
 0x14c   :  { %v4500_v45 = vpack.c.bf16 %v2443_v36, %v2443_v36  ;;  %v2448_v47 = vmax.f32 %v1588_v38, 0.0  ;;  %v2576_v48 = vmax.f32 %v2100_v40, 0.0  ;;  %v1580_v49 = vadd.f32 %v6263_v54, %v1579_v43 }
 0x14d   :  { %v4628_v46 = vpack.c.bf16 %v2571_v37, %v2571_v37  ;;  %3726 = vst.msk [vmem:[%s7106_s3 + $0xcc] sm:$0xf] %vm3674_vm1, %v4502_v41  ;;  %3854 = vst.msk [vmem:[%s7106_s3 + $0x2cc] sm:$0xf] %vm3674_vm1, %v4630_v42  ;;  %v2092_v50 = vadd.f32 %v6263_v54, %v2091_v44  ;;  %v4893_v51 = vpop.f32.mrf.mxu0  ;;  %v5021_v52 = vpop.f32.mrf.mxu1 }
 0x14e   :  { %3724 = vst.msk [vmem:[%s7106_s3 + $0xc4] sm:$0xf] %vm3674_vm1, %v4500_v45  ;;  %v4505_v53 = vpack.c.bf16 %v2448_v47, %v2448_v47  ;;  %v4633_v39 = vpack.c.bf16 %v2576_v48, %v2576_v48  ;;  %v1591_v55 = vadd.f32 %v6263_v54, %v4893_v51  ;;  %v2103_v56 = vadd.f32 %v6263_v54, %v5021_v52 }
 0x14f   :  { %3852 = vst.msk [vmem:[%s7106_s3 + $0x2c4] sm:$0xf] %vm3674_vm1, %v4628_v46  ;;  %v2446_v57 = vmax.f32 %v1580_v49, 0.0  ;;  %v2574_v58 = vmax.f32 %v2092_v50, 0.0  ;;  %v1582_v59 = vpop.f32.mrf.mxu0  ;;  %v2094_v60 = vpop.f32.mrf.mxu1 }
 0x150   :  { %3729 = vst.msk [vmem:[%s7106_s3 + $0xd8] sm:$0xf] %vm3674_vm1, %v4505_v53  ;;  %3857 = vst.msk [vmem:[%s7106_s3 + $0x2d8] sm:$0xf] %vm3674_vm1, %v4633_v39  ;;  %v2449_v61 = vmax.f32 %v1591_v55, 0.0  ;;  %v2577_v62 = vmax.f32 %v2103_v56, 0.0  ;;  %v1583_v63 = vadd.f32 %v6263_v54, %v1582_v59  ;;  %v2095_v0 = vadd.f32 %v6263_v54, %v2094_v60 }
 0x151   :  { %v4503_v1 = vpack.c.bf16 %v2446_v57, %v2446_v57  ;;  %v4631_v2 = vpack.c.bf16 %v2574_v58, %v2574_v58  ;;  %v4896_v3 = vpop.f32.mrf.mxu0  ;;  %v5024_v4 = vpop.f32.mrf.mxu1 }
 0x152   :  { %v4506_v5 = vpack.c.bf16 %v2449_v61, %v2449_v61  ;;  %v4634_v6 = vpack.c.bf16 %v2577_v62, %v2577_v62  ;;  %v2447_v7 = vmax.f32 %v1583_v63, 0.0  ;;  %v2575_v8 = vmax.f32 %v2095_v0, 0.0 }
 0x153   :  { %3727 = vst.msk [vmem:[%s7106_s3 + $0xd0] sm:$0xf] %vm3674_vm1, %v4503_v1  ;;  %3855 = vst.msk [vmem:[%s7106_s3 + $0x2d0] sm:$0xf] %vm3674_vm1, %v4631_v2  ;;  %v1604_v9 = vadd.f32 %v6263_v54, %v4896_v3  ;;  %v2116_v10 = vadd.f32 %v6263_v54, %v5024_v4  ;;  %v1595_v11 = vpop.f32.mrf.mxu0  ;;  %v2107_v12 = vpop.f32.mrf.mxu1 }
 0x154   :  { %3730 = vst.msk [vmem:[%s7106_s3 + $0xdc] sm:$0xf] %vm3674_vm1, %v4506_v5  ;;  %3858 = vst.msk [vmem:[%s7106_s3 + $0x2dc] sm:$0xf] %vm3674_vm1, %v4634_v6  ;;  %v4504_v13 = vpack.c.bf16 %v2447_v7, %v2447_v7  ;;  %v4632_v14 = vpack.c.bf16 %v2575_v8, %v2575_v8  ;;  %v1596_v15 = vadd.f32 %v6263_v54, %v1595_v11 }
 0x155   :  { %v2108_v16 = vadd.f32 %v6263_v54, %v2107_v12  ;;  %v2452_v17 = vmax.f32 %v1604_v9, 0.0  ;;  %v2580_v18 = vmax.f32 %v2116_v10, 0.0  ;;  %v4897_v19 = vpop.f32.mrf.mxu0  ;;  %v5025_v20 = vpop.f32.mrf.mxu1 }
 0x156   :  { %3728 = vst.msk [vmem:[%s7106_s3 + $0xd4] sm:$0xf] %vm3674_vm1, %v4504_v13  ;;  %3856 = vst.msk [vmem:[%s7106_s3 + $0x2d4] sm:$0xf] %vm3674_vm1, %v4632_v14  ;;  %v2450_v21 = vmax.f32 %v1596_v15, 0.0  ;;  %v1607_v23 = vadd.f32 %v6263_v54, %v4897_v19  ;;  %v2119_v24 = vadd.f32 %v6263_v54, %v5025_v20 }
 0x157   :  { %v2578_v22 = vmax.f32 %v2108_v16, 0.0  ;;  %v4509_v25 = vpack.c.bf16 %v2452_v17, %v2452_v17  ;;  %v4637_v26 = vpack.c.bf16 %v2580_v18, %v2580_v18  ;;  %v1598_v27 = vpop.f32.mrf.mxu0  ;;  %v2110_v28 = vpop.f32.mrf.mxu1 }
 0x158   :  { %v4507_v29 = vpack.c.bf16 %v2450_v21, %v2450_v21  ;;  %v2453_v31 = vmax.f32 %v1607_v23, 0.0  ;;  %v2581_v32 = vmax.f32 %v2119_v24, 0.0  ;;  %v1599_v33 = vadd.f32 %v6263_v54, %v1598_v27 }
 0x159   :  { %v4635_v30 = vpack.c.bf16 %v2578_v22, %v2578_v22  ;;  %3733 = vst.msk [vmem:[%s7106_s3 + $0xe8] sm:$0xf] %vm3674_vm1, %v4509_v25  ;;  %3861 = vst.msk [vmem:[%s7106_s3 + $0x2e8] sm:$0xf] %vm3674_vm1, %v4637_v26  ;;  %v2111_v34 = vadd.f32 %v6263_v54, %v2110_v28  ;;  %v4900_v35 = vpop.f32.mrf.mxu0  ;;  %v5028_v36 = vpop.f32.mrf.mxu1 }
 0x15a   :  { %3731 = vst.msk [vmem:[%s7106_s3 + $0xe0] sm:$0xf] %vm3674_vm1, %v4507_v29  ;;  %v4510_v37 = vpack.c.bf16 %v2453_v31, %v2453_v31  ;;  %v4638_v38 = vpack.c.bf16 %v2581_v32, %v2581_v32  ;;  %v1620_v40 = vadd.f32 %v6263_v54, %v4900_v35  ;;  %v2132_v41 = vadd.f32 %v6263_v54, %v5028_v36 }
 0x15b   :  { %3859 = vst.msk [vmem:[%s7106_s3 + $0x2e0] sm:$0xf] %vm3674_vm1, %v4635_v30  ;;  %v2451_v42 = vmax.f32 %v1599_v33, 0.0  ;;  %v2579_v43 = vmax.f32 %v2111_v34, 0.0  ;;  %v1611_v44 = vpop.f32.mrf.mxu0  ;;  %v2123_v45 = vpop.f32.mrf.mxu1 }
 0x15c   :  { %3734 = vst.msk [vmem:[%s7106_s3 + $0xec] sm:$0xf] %vm3674_vm1, %v4510_v37  ;;  %3862 = vst.msk [vmem:[%s7106_s3 + $0x2ec] sm:$0xf] %vm3674_vm1, %v4638_v38  ;;  %v2456_v46 = vmax.f32 %v1620_v40, 0.0  ;;  %v2584_v47 = vmax.f32 %v2132_v41, 0.0  ;;  %v1612_v48 = vadd.f32 %v6263_v54, %v1611_v44  ;;  %v2124_v49 = vadd.f32 %v6263_v54, %v2123_v45 }
 0x15d   :  { %v4508_v50 = vpack.c.bf16 %v2451_v42, %v2451_v42  ;;  %v4636_v51 = vpack.c.bf16 %v2579_v43, %v2579_v43  ;;  %v4901_v52 = vpop.f32.mrf.mxu0  ;;  %v5029_v53 = vpop.f32.mrf.mxu1 }
 0x15e   :  { %v4513_v39 = vpack.c.bf16 %v2456_v46, %v2456_v46  ;;  %v4641_v55 = vpack.c.bf16 %v2584_v47, %v2584_v47  ;;  %v2454_v56 = vmax.f32 %v1612_v48, 0.0  ;;  %v2582_v57 = vmax.f32 %v2124_v49, 0.0 }
 0x15f   :  { %3732 = vst.msk [vmem:[%s7106_s3 + $0xe4] sm:$0xf] %vm3674_vm1, %v4508_v50  ;;  %3860 = vst.msk [vmem:[%s7106_s3 + $0x2e4] sm:$0xf] %vm3674_vm1, %v4636_v51  ;;  %v1623_v58 = vadd.f32 %v6263_v54, %v4901_v52  ;;  %v2135_v59 = vadd.f32 %v6263_v54, %v5029_v53  ;;  %v1614_v60 = vpop.f32.mrf.mxu0  ;;  %v2126_v61 = vpop.f32.mrf.mxu1 }
 0x160   :  { %3737 = vst.msk [vmem:[%s7106_s3 + $0xf8] sm:$0xf] %vm3674_vm1, %v4513_v39  ;;  %3865 = vst.msk [vmem:[%s7106_s3 + $0x2f8] sm:$0xf] %vm3674_vm1, %v4641_v55  ;;  %v4511_v62 = vpack.c.bf16 %v2454_v56, %v2454_v56  ;;  %v4639_v63 = vpack.c.bf16 %v2582_v57, %v2582_v57  ;;  %v1615_v0 = vadd.f32 %v6263_v54, %v1614_v60 }
 0x161   :  { %v2127_v1 = vadd.f32 %v6263_v54, %v2126_v61  ;;  %v2457_v2 = vmax.f32 %v1623_v58, 0.0  ;;  %v2585_v3 = vmax.f32 %v2135_v59, 0.0  ;;  %v4904_v4 = vpop.f32.mrf.mxu0  ;;  %v5032_v5 = vpop.f32.mrf.mxu1 }
 0x162   :  { %3735 = vst.msk [vmem:[%s7106_s3 + $0xf0] sm:$0xf] %vm3674_vm1, %v4511_v62  ;;  %3863 = vst.msk [vmem:[%s7106_s3 + $0x2f0] sm:$0xf] %vm3674_vm1, %v4639_v63  ;;  %v2455_v6 = vmax.f32 %v1615_v0, 0.0  ;;  %v1636_v8 = vadd.f32 %v6263_v54, %v4904_v4  ;;  %v2148_v9 = vadd.f32 %v6263_v54, %v5032_v5 }
 0x163   :  { %v2583_v7 = vmax.f32 %v2127_v1, 0.0  ;;  %v4514_v10 = vpack.c.bf16 %v2457_v2, %v2457_v2  ;;  %v4642_v11 = vpack.c.bf16 %v2585_v3, %v2585_v3  ;;  %v1627_v12 = vpop.f32.mrf.mxu0  ;;  %v2139_v13 = vpop.f32.mrf.mxu1 }
 0x164   :  { %v4512_v14 = vpack.c.bf16 %v2455_v6, %v2455_v6  ;;  %v2460_v16 = vmax.f32 %v1636_v8, 0.0  ;;  %v2588_v17 = vmax.f32 %v2148_v9, 0.0  ;;  %v1628_v18 = vadd.f32 %v6263_v54, %v1627_v12 }
 0x165   :  { %v4640_v15 = vpack.c.bf16 %v2583_v7, %v2583_v7  ;;  %3738 = vst.msk [vmem:[%s7106_s3 + $0xfc] sm:$0xf] %vm3674_vm1, %v4514_v10  ;;  %3866 = vst.msk [vmem:[%s7106_s3 + $0x2fc] sm:$0xf] %vm3674_vm1, %v4642_v11  ;;  %v2140_v19 = vadd.f32 %v6263_v54, %v2139_v13  ;;  %v4905_v20 = vpop.f32.mrf.mxu0  ;;  %v5033_v21 = vpop.f32.mrf.mxu1 }
 0x166   :  { %3736 = vst.msk [vmem:[%s7106_s3 + $0xf4] sm:$0xf] %vm3674_vm1, %v4512_v14  ;;  %v4517_v22 = vpack.c.bf16 %v2460_v16, %v2460_v16  ;;  %v4645_v23 = vpack.c.bf16 %v2588_v17, %v2588_v17  ;;  %v1639_v24 = vadd.f32 %v6263_v54, %v4905_v20  ;;  %v2151_v25 = vadd.f32 %v6263_v54, %v5033_v21 }
 0x167   :  { %3864 = vst.msk [vmem:[%s7106_s3 + $0x2f4] sm:$0xf] %vm3674_vm1, %v4640_v15  ;;  %v2458_v26 = vmax.f32 %v1628_v18, 0.0  ;;  %v2586_v27 = vmax.f32 %v2140_v19, 0.0  ;;  %v1630_v28 = vpop.f32.mrf.mxu0  ;;  %v2142_v29 = vpop.f32.mrf.mxu1 }
 0x168   :  { %3741 = vst.msk [vmem:[%s7106_s3 + $0x108] sm:$0xf] %vm3674_vm1, %v4517_v22  ;;  %3869 = vst.msk [vmem:[%s7106_s3 + $0x308] sm:$0xf] %vm3674_vm1, %v4645_v23  ;;  %v2461_v30 = vmax.f32 %v1639_v24, 0.0  ;;  %v2589_v31 = vmax.f32 %v2151_v25, 0.0  ;;  %v1631_v32 = vadd.f32 %v6263_v54, %v1630_v28  ;;  %v2143_v33 = vadd.f32 %v6263_v54, %v2142_v29 }
 0x169   :  { %v4515_v34 = vpack.c.bf16 %v2458_v26, %v2458_v26  ;;  %v4643_v35 = vpack.c.bf16 %v2586_v27, %v2586_v27  ;;  %v4908_v36 = vpop.f32.mrf.mxu0  ;;  %v5036_v37 = vpop.f32.mrf.mxu1 }
 0x16a   :  { %v4518_v38 = vpack.c.bf16 %v2461_v30, %v2461_v30  ;;  %v4646_v40 = vpack.c.bf16 %v2589_v31, %v2589_v31  ;;  %v2459_v41 = vmax.f32 %v1631_v32, 0.0  ;;  %v2587_v42 = vmax.f32 %v2143_v33, 0.0 }
 0x16b   :  { %3739 = vst.msk [vmem:[%s7106_s3 + $0x100] sm:$0xf] %vm3674_vm1, %v4515_v34  ;;  %3867 = vst.msk [vmem:[%s7106_s3 + $0x300] sm:$0xf] %vm3674_vm1, %v4643_v35  ;;  %v1652_v43 = vadd.f32 %v6263_v54, %v4908_v36  ;;  %v2164_v44 = vadd.f32 %v6263_v54, %v5036_v37  ;;  %v1643_v45 = vpop.f32.mrf.mxu0  ;;  %v2155_v46 = vpop.f32.mrf.mxu1 }
 0x16c   :  { %3742 = vst.msk [vmem:[%s7106_s3 + $0x10c] sm:$0xf] %vm3674_vm1, %v4518_v38  ;;  %3870 = vst.msk [vmem:[%s7106_s3 + $0x30c] sm:$0xf] %vm3674_vm1, %v4646_v40  ;;  %v4516_v47 = vpack.c.bf16 %v2459_v41, %v2459_v41  ;;  %v4644_v48 = vpack.c.bf16 %v2587_v42, %v2587_v42  ;;  %v1644_v49 = vadd.f32 %v6263_v54, %v1643_v45 }
 0x16d   :  { %v2156_v50 = vadd.f32 %v6263_v54, %v2155_v46  ;;  %v2464_v51 = vmax.f32 %v1652_v43, 0.0  ;;  %v2592_v52 = vmax.f32 %v2164_v44, 0.0  ;;  %v4909_v53 = vpop.f32.mrf.mxu0  ;;  %v5037_v39 = vpop.f32.mrf.mxu1 }
 0x16e   :  { %3740 = vst.msk [vmem:[%s7106_s3 + $0x104] sm:$0xf] %vm3674_vm1, %v4516_v47  ;;  %3868 = vst.msk [vmem:[%s7106_s3 + $0x304] sm:$0xf] %vm3674_vm1, %v4644_v48  ;;  %v2462_v55 = vmax.f32 %v1644_v49, 0.0  ;;  %v1655_v57 = vadd.f32 %v6263_v54, %v4909_v53  ;;  %v2167_v58 = vadd.f32 %v6263_v54, %v5037_v39 }
 0x16f   :  { %v2590_v56 = vmax.f32 %v2156_v50, 0.0  ;;  %v4521_v59 = vpack.c.bf16 %v2464_v51, %v2464_v51  ;;  %v4649_v60 = vpack.c.bf16 %v2592_v52, %v2592_v52  ;;  %v1646_v61 = vpop.f32.mrf.mxu0  ;;  %v2158_v62 = vpop.f32.mrf.mxu1 }
 0x170   :  { %v4519_v63 = vpack.c.bf16 %v2462_v55, %v2462_v55  ;;  %v2465_v1 = vmax.f32 %v1655_v57, 0.0  ;;  %v2593_v2 = vmax.f32 %v2167_v58, 0.0  ;;  %v1647_v3 = vadd.f32 %v6263_v54, %v1646_v61 }
 0x171   :  { %v4647_v0 = vpack.c.bf16 %v2590_v56, %v2590_v56  ;;  %3745 = vst.msk [vmem:[%s7106_s3 + $0x118] sm:$0xf] %vm3674_vm1, %v4521_v59  ;;  %3873 = vst.msk [vmem:[%s7106_s3 + $0x318] sm:$0xf] %vm3674_vm1, %v4649_v60  ;;  %v2159_v4 = vadd.f32 %v6263_v54, %v2158_v62  ;;  %v4912_v5 = vpop.f32.mrf.mxu0  ;;  %v5040_v6 = vpop.f32.mrf.mxu1 }
 0x172   :  { %3743 = vst.msk [vmem:[%s7106_s3 + $0x110] sm:$0xf] %vm3674_vm1, %v4519_v63  ;;  %v4522_v7 = vpack.c.bf16 %v2465_v1, %v2465_v1  ;;  %v4650_v8 = vpack.c.bf16 %v2593_v2, %v2593_v2  ;;  %v1668_v9 = vadd.f32 %v6263_v54, %v4912_v5  ;;  %v2180_v10 = vadd.f32 %v6263_v54, %v5040_v6 }
 0x173   :  { %3871 = vst.msk [vmem:[%s7106_s3 + $0x310] sm:$0xf] %vm3674_vm1, %v4647_v0  ;;  %v2463_v11 = vmax.f32 %v1647_v3, 0.0  ;;  %v2591_v12 = vmax.f32 %v2159_v4, 0.0  ;;  %v1659_v13 = vpop.f32.mrf.mxu0  ;;  %v2171_v14 = vpop.f32.mrf.mxu1 }
 0x174   :  { %3746 = vst.msk [vmem:[%s7106_s3 + $0x11c] sm:$0xf] %vm3674_vm1, %v4522_v7  ;;  %3874 = vst.msk [vmem:[%s7106_s3 + $0x31c] sm:$0xf] %vm3674_vm1, %v4650_v8  ;;  %v2468_v15 = vmax.f32 %v1668_v9, 0.0  ;;  %v2596_v16 = vmax.f32 %v2180_v10, 0.0  ;;  %v1660_v17 = vadd.f32 %v6263_v54, %v1659_v13  ;;  %v2172_v18 = vadd.f32 %v6263_v54, %v2171_v14 }
 0x175   :  { %v4520_v19 = vpack.c.bf16 %v2463_v11, %v2463_v11  ;;  %v4648_v20 = vpack.c.bf16 %v2591_v12, %v2591_v12  ;;  %v4913_v21 = vpop.f32.mrf.mxu0  ;;  %v5041_v22 = vpop.f32.mrf.mxu1 }
 0x176   :  { %v4525_v23 = vpack.c.bf16 %v2468_v15, %v2468_v15  ;;  %v4653_v24 = vpack.c.bf16 %v2596_v16, %v2596_v16  ;;  %v2466_v25 = vmax.f32 %v1660_v17, 0.0  ;;  %v2594_v26 = vmax.f32 %v2172_v18, 0.0 }
 0x177   :  { %3744 = vst.msk [vmem:[%s7106_s3 + $0x114] sm:$0xf] %vm3674_vm1, %v4520_v19  ;;  %3872 = vst.msk [vmem:[%s7106_s3 + $0x314] sm:$0xf] %vm3674_vm1, %v4648_v20  ;;  %v1671_v27 = vadd.f32 %v6263_v54, %v4913_v21  ;;  %v2183_v28 = vadd.f32 %v6263_v54, %v5041_v22  ;;  %v1662_v29 = vpop.f32.mrf.mxu0  ;;  %v2174_v30 = vpop.f32.mrf.mxu1 }
 0x178   :  { %3749 = vst.msk [vmem:[%s7106_s3 + $0x128] sm:$0xf] %vm3674_vm1, %v4525_v23  ;;  %3877 = vst.msk [vmem:[%s7106_s3 + $0x328] sm:$0xf] %vm3674_vm1, %v4653_v24  ;;  %v4523_v31 = vpack.c.bf16 %v2466_v25, %v2466_v25  ;;  %v4651_v32 = vpack.c.bf16 %v2594_v26, %v2594_v26  ;;  %v1663_v33 = vadd.f32 %v6263_v54, %v1662_v29 }
 0x179   :  { %v2175_v34 = vadd.f32 %v6263_v54, %v2174_v30  ;;  %v2469_v35 = vmax.f32 %v1671_v27, 0.0  ;;  %v2597_v36 = vmax.f32 %v2183_v28, 0.0  ;;  %v4916_v37 = vpop.f32.mrf.mxu0  ;;  %v5044_v38 = vpop.f32.mrf.mxu1 }
 0x17a   :  { %3747 = vst.msk [vmem:[%s7106_s3 + $0x120] sm:$0xf] %vm3674_vm1, %v4523_v31  ;;  %3875 = vst.msk [vmem:[%s7106_s3 + $0x320] sm:$0xf] %vm3674_vm1, %v4651_v32  ;;  %v2467_v40 = vmax.f32 %v1663_v33, 0.0  ;;  %v1684_v42 = vadd.f32 %v6263_v54, %v4916_v37  ;;  %v2196_v43 = vadd.f32 %v6263_v54, %v5044_v38 }
 0x17b   :  { %v2595_v41 = vmax.f32 %v2175_v34, 0.0  ;;  %v4526_v44 = vpack.c.bf16 %v2469_v35, %v2469_v35  ;;  %v4654_v45 = vpack.c.bf16 %v2597_v36, %v2597_v36  ;;  %v1675_v46 = vpop.f32.mrf.mxu0  ;;  %v2187_v47 = vpop.f32.mrf.mxu1 }
 0x17c   :  { %v4524_v48 = vpack.c.bf16 %v2467_v40, %v2467_v40  ;;  %v2472_v50 = vmax.f32 %v1684_v42, 0.0  ;;  %v2600_v51 = vmax.f32 %v2196_v43, 0.0  ;;  %v1676_v52 = vadd.f32 %v6263_v54, %v1675_v46 }
 0x17d   :  { %v4652_v49 = vpack.c.bf16 %v2595_v41, %v2595_v41  ;;  %3750 = vst.msk [vmem:[%s7106_s3 + $0x12c] sm:$0xf] %vm3674_vm1, %v4526_v44  ;;  %3878 = vst.msk [vmem:[%s7106_s3 + $0x32c] sm:$0xf] %vm3674_vm1, %v4654_v45  ;;  %v2188_v53 = vadd.f32 %v6263_v54, %v2187_v47  ;;  %v4917_v39 = vpop.f32.mrf.mxu0  ;;  %v5045_v55 = vpop.f32.mrf.mxu1 }
 0x17e   :  { %3748 = vst.msk [vmem:[%s7106_s3 + $0x124] sm:$0xf] %vm3674_vm1, %v4524_v48  ;;  %v4529_v56 = vpack.c.bf16 %v2472_v50, %v2472_v50  ;;  %v4657_v57 = vpack.c.bf16 %v2600_v51, %v2600_v51  ;;  %v1687_v58 = vadd.f32 %v6263_v54, %v4917_v39  ;;  %v2199_v59 = vadd.f32 %v6263_v54, %v5045_v55 }
 0x17f   :  { %3876 = vst.msk [vmem:[%s7106_s3 + $0x324] sm:$0xf] %vm3674_vm1, %v4652_v49  ;;  %v2470_v60 = vmax.f32 %v1676_v52, 0.0  ;;  %v2598_v61 = vmax.f32 %v2188_v53, 0.0  ;;  %v1678_v62 = vpop.f32.mrf.mxu0  ;;  %v2190_v63 = vpop.f32.mrf.mxu1 }
 0x180   :  { %3753 = vst.msk [vmem:[%s7106_s3 + $0x138] sm:$0xf] %vm3674_vm1, %v4529_v56  ;;  %3881 = vst.msk [vmem:[%s7106_s3 + $0x338] sm:$0xf] %vm3674_vm1, %v4657_v57  ;;  %v2473_v0 = vmax.f32 %v1687_v58, 0.0  ;;  %v2601_v1 = vmax.f32 %v2199_v59, 0.0  ;;  %v1679_v2 = vadd.f32 %v6263_v54, %v1678_v62  ;;  %v2191_v3 = vadd.f32 %v6263_v54, %v2190_v63 }
 0x181   :  { %v4527_v4 = vpack.c.bf16 %v2470_v60, %v2470_v60  ;;  %v4655_v5 = vpack.c.bf16 %v2598_v61, %v2598_v61  ;;  %v4920_v6 = vpop.f32.mrf.mxu0  ;;  %v5048_v7 = vpop.f32.mrf.mxu1 }
 0x182   :  { %v4530_v8 = vpack.c.bf16 %v2473_v0, %v2473_v0  ;;  %v4658_v9 = vpack.c.bf16 %v2601_v1, %v2601_v1  ;;  %v2471_v10 = vmax.f32 %v1679_v2, 0.0  ;;  %v2599_v11 = vmax.f32 %v2191_v3, 0.0 }
 0x183   :  { %3751 = vst.msk [vmem:[%s7106_s3 + $0x130] sm:$0xf] %vm3674_vm1, %v4527_v4  ;;  %3879 = vst.msk [vmem:[%s7106_s3 + $0x330] sm:$0xf] %vm3674_vm1, %v4655_v5  ;;  %v1700_v12 = vadd.f32 %v6263_v54, %v4920_v6  ;;  %v2212_v13 = vadd.f32 %v6263_v54, %v5048_v7  ;;  %v1691_v14 = vpop.f32.mrf.mxu0  ;;  %v2203_v15 = vpop.f32.mrf.mxu1 }
 0x184   :  { %3754 = vst.msk [vmem:[%s7106_s3 + $0x13c] sm:$0xf] %vm3674_vm1, %v4530_v8  ;;  %3882 = vst.msk [vmem:[%s7106_s3 + $0x33c] sm:$0xf] %vm3674_vm1, %v4658_v9  ;;  %v4528_v16 = vpack.c.bf16 %v2471_v10, %v2471_v10  ;;  %v4656_v17 = vpack.c.bf16 %v2599_v11, %v2599_v11  ;;  %v1692_v18 = vadd.f32 %v6263_v54, %v1691_v14 }
 0x185   :  { %v2204_v19 = vadd.f32 %v6263_v54, %v2203_v15  ;;  %v2476_v20 = vmax.f32 %v1700_v12, 0.0  ;;  %v2604_v21 = vmax.f32 %v2212_v13, 0.0  ;;  %v4921_v22 = vpop.f32.mrf.mxu0  ;;  %v5049_v23 = vpop.f32.mrf.mxu1 }
 0x186   :  { %3752 = vst.msk [vmem:[%s7106_s3 + $0x134] sm:$0xf] %vm3674_vm1, %v4528_v16  ;;  %3880 = vst.msk [vmem:[%s7106_s3 + $0x334] sm:$0xf] %vm3674_vm1, %v4656_v17  ;;  %v2474_v24 = vmax.f32 %v1692_v18, 0.0  ;;  %v1703_v26 = vadd.f32 %v6263_v54, %v4921_v22  ;;  %v2215_v27 = vadd.f32 %v6263_v54, %v5049_v23 }
 0x187   :  { %v2602_v25 = vmax.f32 %v2204_v19, 0.0  ;;  %v4533_v28 = vpack.c.bf16 %v2476_v20, %v2476_v20  ;;  %v4661_v29 = vpack.c.bf16 %v2604_v21, %v2604_v21  ;;  %v1694_v30 = vpop.f32.mrf.mxu0  ;;  %v2206_v31 = vpop.f32.mrf.mxu1 }
 0x188   :  { %v4531_v32 = vpack.c.bf16 %v2474_v24, %v2474_v24  ;;  %v2477_v34 = vmax.f32 %v1703_v26, 0.0  ;;  %v2605_v35 = vmax.f32 %v2215_v27, 0.0  ;;  %v1695_v36 = vadd.f32 %v6263_v54, %v1694_v30 }
 0x189   :  { %v4659_v33 = vpack.c.bf16 %v2602_v25, %v2602_v25  ;;  %3757 = vst.msk [vmem:[%s7106_s3 + $0x148] sm:$0xf] %vm3674_vm1, %v4533_v28  ;;  %3885 = vst.msk [vmem:[%s7106_s3 + $0x348] sm:$0xf] %vm3674_vm1, %v4661_v29  ;;  %v2207_v37 = vadd.f32 %v6263_v54, %v2206_v31  ;;  %v4924_v38 = vpop.f32.mrf.mxu0  ;;  %v5052_v40 = vpop.f32.mrf.mxu1 }
 0x18a   :  { %3755 = vst.msk [vmem:[%s7106_s3 + $0x140] sm:$0xf] %vm3674_vm1, %v4531_v32  ;;  %v4534_v41 = vpack.c.bf16 %v2477_v34, %v2477_v34  ;;  %v4662_v42 = vpack.c.bf16 %v2605_v35, %v2605_v35  ;;  %v1716_v43 = vadd.f32 %v6263_v54, %v4924_v38  ;;  %v2228_v44 = vadd.f32 %v6263_v54, %v5052_v40 }
 0x18b   :  { %3883 = vst.msk [vmem:[%s7106_s3 + $0x340] sm:$0xf] %vm3674_vm1, %v4659_v33  ;;  %v2475_v45 = vmax.f32 %v1695_v36, 0.0  ;;  %v2603_v46 = vmax.f32 %v2207_v37, 0.0  ;;  %v1707_v47 = vpop.f32.mrf.mxu0  ;;  %v2219_v48 = vpop.f32.mrf.mxu1 }
 0x18c   :  { %3758 = vst.msk [vmem:[%s7106_s3 + $0x14c] sm:$0xf] %vm3674_vm1, %v4534_v41  ;;  %3886 = vst.msk [vmem:[%s7106_s3 + $0x34c] sm:$0xf] %vm3674_vm1, %v4662_v42  ;;  %v2480_v49 = vmax.f32 %v1716_v43, 0.0  ;;  %v2608_v50 = vmax.f32 %v2228_v44, 0.0  ;;  %v1708_v51 = vadd.f32 %v6263_v54, %v1707_v47  ;;  %v2220_v52 = vadd.f32 %v6263_v54, %v2219_v48 }
 0x18d   :  { %v4532_v53 = vpack.c.bf16 %v2475_v45, %v2475_v45  ;;  %v4660_v39 = vpack.c.bf16 %v2603_v46, %v2603_v46  ;;  %v4925_v55 = vpop.f32.mrf.mxu0  ;;  %v5053_v56 = vpop.f32.mrf.mxu1 }
 0x18e   :  { %v4537_v57 = vpack.c.bf16 %v2480_v49, %v2480_v49  ;;  %v4665_v58 = vpack.c.bf16 %v2608_v50, %v2608_v50  ;;  %v2478_v59 = vmax.f32 %v1708_v51, 0.0  ;;  %v2606_v60 = vmax.f32 %v2220_v52, 0.0 }
 0x18f   :  { %3756 = vst.msk [vmem:[%s7106_s3 + $0x144] sm:$0xf] %vm3674_vm1, %v4532_v53  ;;  %3884 = vst.msk [vmem:[%s7106_s3 + $0x344] sm:$0xf] %vm3674_vm1, %v4660_v39  ;;  %v1719_v61 = vadd.f32 %v6263_v54, %v4925_v55  ;;  %v2231_v62 = vadd.f32 %v6263_v54, %v5053_v56  ;;  %v1710_v63 = vpop.f32.mrf.mxu0  ;;  %v2222_v0 = vpop.f32.mrf.mxu1 }
 0x190   :  { %3761 = vst.msk [vmem:[%s7106_s3 + $0x158] sm:$0xf] %vm3674_vm1, %v4537_v57  ;;  %3889 = vst.msk [vmem:[%s7106_s3 + $0x358] sm:$0xf] %vm3674_vm1, %v4665_v58  ;;  %v4535_v1 = vpack.c.bf16 %v2478_v59, %v2478_v59  ;;  %v4663_v2 = vpack.c.bf16 %v2606_v60, %v2606_v60  ;;  %v1711_v3 = vadd.f32 %v6263_v54, %v1710_v63 }
 0x191   :  { %v2223_v4 = vadd.f32 %v6263_v54, %v2222_v0  ;;  %v2481_v5 = vmax.f32 %v1719_v61, 0.0  ;;  %v2609_v6 = vmax.f32 %v2231_v62, 0.0  ;;  %v4928_v7 = vpop.f32.mrf.mxu0  ;;  %v5056_v8 = vpop.f32.mrf.mxu1 }
 0x192   :  { %3759 = vst.msk [vmem:[%s7106_s3 + $0x150] sm:$0xf] %vm3674_vm1, %v4535_v1  ;;  %3887 = vst.msk [vmem:[%s7106_s3 + $0x350] sm:$0xf] %vm3674_vm1, %v4663_v2  ;;  %v2479_v9 = vmax.f32 %v1711_v3, 0.0  ;;  %v1732_v11 = vadd.f32 %v6263_v54, %v4928_v7  ;;  %v2244_v12 = vadd.f32 %v6263_v54, %v5056_v8 }
 0x193   :  { %v2607_v10 = vmax.f32 %v2223_v4, 0.0  ;;  %v4538_v13 = vpack.c.bf16 %v2481_v5, %v2481_v5  ;;  %v4666_v14 = vpack.c.bf16 %v2609_v6, %v2609_v6  ;;  %v1723_v15 = vpop.f32.mrf.mxu0  ;;  %v2235_v16 = vpop.f32.mrf.mxu1 }
 0x194   :  { %v4536_v17 = vpack.c.bf16 %v2479_v9, %v2479_v9  ;;  %v2484_v19 = vmax.f32 %v1732_v11, 0.0  ;;  %v2612_v20 = vmax.f32 %v2244_v12, 0.0  ;;  %v1724_v21 = vadd.f32 %v6263_v54, %v1723_v15 }
 0x195   :  { %v4664_v18 = vpack.c.bf16 %v2607_v10, %v2607_v10  ;;  %3762 = vst.msk [vmem:[%s7106_s3 + $0x15c] sm:$0xf] %vm3674_vm1, %v4538_v13  ;;  %3890 = vst.msk [vmem:[%s7106_s3 + $0x35c] sm:$0xf] %vm3674_vm1, %v4666_v14  ;;  %v2236_v22 = vadd.f32 %v6263_v54, %v2235_v16  ;;  %v4929_v23 = vpop.f32.mrf.mxu0  ;;  %v5057_v24 = vpop.f32.mrf.mxu1 }
 0x196   :  { %3760 = vst.msk [vmem:[%s7106_s3 + $0x154] sm:$0xf] %vm3674_vm1, %v4536_v17  ;;  %v4541_v25 = vpack.c.bf16 %v2484_v19, %v2484_v19  ;;  %v4669_v26 = vpack.c.bf16 %v2612_v20, %v2612_v20  ;;  %v1735_v27 = vadd.f32 %v6263_v54, %v4929_v23  ;;  %v2247_v28 = vadd.f32 %v6263_v54, %v5057_v24 }
 0x197   :  { %3888 = vst.msk [vmem:[%s7106_s3 + $0x354] sm:$0xf] %vm3674_vm1, %v4664_v18  ;;  %v2482_v29 = vmax.f32 %v1724_v21, 0.0  ;;  %v2610_v30 = vmax.f32 %v2236_v22, 0.0  ;;  %v1726_v31 = vpop.f32.mrf.mxu0  ;;  %v2238_v32 = vpop.f32.mrf.mxu1 }
 0x198   :  { %3765 = vst.msk [vmem:[%s7106_s3 + $0x168] sm:$0xf] %vm3674_vm1, %v4541_v25  ;;  %3893 = vst.msk [vmem:[%s7106_s3 + $0x368] sm:$0xf] %vm3674_vm1, %v4669_v26  ;;  %v2485_v33 = vmax.f32 %v1735_v27, 0.0  ;;  %v2613_v34 = vmax.f32 %v2247_v28, 0.0  ;;  %v1727_v35 = vadd.f32 %v6263_v54, %v1726_v31  ;;  %v2239_v36 = vadd.f32 %v6263_v54, %v2238_v32 }
 0x199   :  { %v4539_v37 = vpack.c.bf16 %v2482_v29, %v2482_v29  ;;  %v4667_v38 = vpack.c.bf16 %v2610_v30, %v2610_v30  ;;  %v4932_v40 = vpop.f32.mrf.mxu0  ;;  %v5060_v41 = vpop.f32.mrf.mxu1  ;;  %v6785_v30 = vld [vmem:[#allocation4] ss:$0 sm:$0xff] }
 0x19a   :  { %v4542_v42 = vpack.c.bf16 %v2485_v33, %v2485_v33  ;;  %v4670_v43 = vpack.c.bf16 %v2613_v34, %v2613_v34  ;;  %v2483_v44 = vmax.f32 %v1727_v35, 0.0  ;;  %v2611_v45 = vmax.f32 %v2239_v36, 0.0 }
 0x19b   :  { %3763 = vst.msk [vmem:[%s7106_s3 + $0x160] sm:$0xf] %vm3674_vm1, %v4539_v37  ;;  %3891 = vst.msk [vmem:[%s7106_s3 + $0x360] sm:$0xf] %vm3674_vm1, %v4667_v38  ;;  %v1748_v46 = vadd.f32 %v6263_v54, %v4932_v40  ;;  %v2260_v47 = vadd.f32 %v6263_v54, %v5060_v41  ;;  %v1739_v48 = vpop.f32.mrf.mxu0  ;;  %v2251_v49 = vpop.f32.mrf.mxu1 }
 0x19c   :  { %3766 = vst.msk [vmem:[%s7106_s3 + $0x16c] sm:$0xf] %vm3674_vm1, %v4542_v42  ;;  %3894 = vst.msk [vmem:[%s7106_s3 + $0x36c] sm:$0xf] %vm3674_vm1, %v4670_v43  ;;  %v4540_v50 = vpack.c.bf16 %v2483_v44, %v2483_v44  ;;  %v4668_v51 = vpack.c.bf16 %v2611_v45, %v2611_v45  ;;  %v1740_v52 = vadd.f32 %v6263_v54, %v1739_v48 }
 0x19d   :  { %v2252_v53 = vadd.f32 %v6263_v54, %v2251_v49  ;;  %v2488_v39 = vmax.f32 %v1748_v46, 0.0  ;;  %v2616_v55 = vmax.f32 %v2260_v47, 0.0  ;;  %v4933_v56 = vpop.f32.mrf.mxu0  ;;  %v5061_v57 = vpop.f32.mrf.mxu1 }
 0x19e   :  { %3764 = vst.msk [vmem:[%s7106_s3 + $0x164] sm:$0xf] %vm3674_vm1, %v4540_v50  ;;  %3892 = vst.msk [vmem:[%s7106_s3 + $0x364] sm:$0xf] %vm3674_vm1, %v4668_v51  ;;  %v2486_v58 = vmax.f32 %v1740_v52, 0.0  ;;  %v1751_v60 = vadd.f32 %v6263_v54, %v4933_v56  ;;  %v2263_v61 = vadd.f32 %v6263_v54, %v5061_v57 }
 0x19f   :  { %v2614_v59 = vmax.f32 %v2252_v53, 0.0  ;;  %v4545_v62 = vpack.c.bf16 %v2488_v39, %v2488_v39  ;;  %v4673_v63 = vpack.c.bf16 %v2616_v55, %v2616_v55  ;;  %v1742_v0 = vpop.f32.mrf.mxu0  ;;  %v2254_v1 = vpop.f32.mrf.mxu1 }
 0x1a0   :  { %v4543_v2 = vpack.c.bf16 %v2486_v58, %v2486_v58  ;;  %v2489_v4 = vmax.f32 %v1751_v60, 0.0  ;;  %v2617_v5 = vmax.f32 %v2263_v61, 0.0  ;;  %v1743_v6 = vadd.f32 %v6263_v54, %v1742_v0 }
 0x1a1   :  { %v4671_v3 = vpack.c.bf16 %v2614_v59, %v2614_v59  ;;  %3769 = vst.msk [vmem:[%s7106_s3 + $0x178] sm:$0xf] %vm3674_vm1, %v4545_v62  ;;  %3897 = vst.msk [vmem:[%s7106_s3 + $0x378] sm:$0xf] %vm3674_vm1, %v4673_v63  ;;  %v2255_v7 = vadd.f32 %v6263_v54, %v2254_v1  ;;  %v4936_v8 = vpop.f32.mrf.mxu0  ;;  %v5064_v9 = vpop.f32.mrf.mxu1 }
 0x1a2   :  { %3767 = vst.msk [vmem:[%s7106_s3 + $0x170] sm:$0xf] %vm3674_vm1, %v4543_v2  ;;  %v4546_v10 = vpack.c.bf16 %v2489_v4, %v2489_v4  ;;  %v4674_v11 = vpack.c.bf16 %v2617_v5, %v2617_v5  ;;  %v1764_v12 = vadd.f32 %v6263_v54, %v4936_v8  ;;  %v2276_v13 = vadd.f32 %v6263_v54, %v5064_v9 }
 0x1a3   :  { %3895 = vst.msk [vmem:[%s7106_s3 + $0x370] sm:$0xf] %vm3674_vm1, %v4671_v3  ;;  %v2487_v14 = vmax.f32 %v1743_v6, 0.0  ;;  %v2615_v15 = vmax.f32 %v2255_v7, 0.0  ;;  %v1755_v16 = vpop.f32.mrf.mxu0  ;;  %v2267_v17 = vpop.f32.mrf.mxu1 }
 0x1a4   :  { %3770 = vst.msk [vmem:[%s7106_s3 + $0x17c] sm:$0xf] %vm3674_vm1, %v4546_v10  ;;  %3898 = vst.msk [vmem:[%s7106_s3 + $0x37c] sm:$0xf] %vm3674_vm1, %v4674_v11  ;;  %v2492_v18 = vmax.f32 %v1764_v12, 0.0  ;;  %v2620_v19 = vmax.f32 %v2276_v13, 0.0  ;;  %v1756_v20 = vadd.f32 %v6263_v54, %v1755_v16  ;;  %v2268_v21 = vadd.f32 %v6263_v54, %v2267_v17 }
 0x1a5   :  { %v4544_v22 = vpack.c.bf16 %v2487_v14, %v2487_v14  ;;  %v4672_v23 = vpack.c.bf16 %v2615_v15, %v2615_v15  ;;  %v4937_v24 = vpop.f32.mrf.mxu0  ;;  %v5065_v25 = vpop.f32.mrf.mxu1 }
 0x1a6   :  { %v4549_v26 = vpack.c.bf16 %v2492_v18, %v2492_v18  ;;  %v4677_v27 = vpack.c.bf16 %v2620_v19, %v2620_v19  ;;  %v2490_v28 = vmax.f32 %v1756_v20, 0.0  ;;  %v2618_v29 = vmax.f32 %v2268_v21, 0.0 }
 0x1a7   :  { %3768 = vst.msk [vmem:[%s7106_s3 + $0x174] sm:$0xf] %vm3674_vm1, %v4544_v22  ;;  %3896 = vst.msk [vmem:[%s7106_s3 + $0x374] sm:$0xf] %vm3674_vm1, %v4672_v23  ;;  %v1767_v54 = vadd.f32 %v6785_v30, %v4937_v24  ;;  %v2279_v31 = vadd.f32 %v6785_v30, %v5065_v25  ;;  %v1758_v32 = vpop.f32.mrf.mxu0  ;;  %v2270_v33 = vpop.f32.mrf.mxu1 }
 0x1a8   :  { %3773 = vst.msk [vmem:[%s7106_s3 + $0x188] sm:$0xf] %vm3674_vm1, %v4549_v26  ;;  %3901 = vst.msk [vmem:[%s7106_s3 + $0x388] sm:$0xf] %vm3674_vm1, %v4677_v27  ;;  %v4547_v34 = vpack.c.bf16 %v2490_v28, %v2490_v28  ;;  %v4675_v35 = vpack.c.bf16 %v2618_v29, %v2618_v29  ;;  %v1759_v36 = vadd.f32 %v6785_v30, %v1758_v32 }
 0x1a9   :  { %v2271_v37 = vadd.f32 %v6785_v30, %v2270_v33  ;;  %v2493_v38 = vmax.f32 %v1767_v54, 0.0  ;;  %v2621_v40 = vmax.f32 %v2279_v31, 0.0  ;;  %v4940_v41 = vpop.f32.mrf.mxu0  ;;  %v5068_v42 = vpop.f32.mrf.mxu1 }
 0x1aa   :  { %3771 = vst.msk [vmem:[%s7106_s3 + $0x180] sm:$0xf] %vm3674_vm1, %v4547_v34  ;;  %3899 = vst.msk [vmem:[%s7106_s3 + $0x380] sm:$0xf] %vm3674_vm1, %v4675_v35  ;;  %v2491_v43 = vmax.f32 %v1759_v36, 0.0  ;;  %v1780_v45 = vadd.f32 %v6785_v30, %v4940_v41  ;;  %v2292_v46 = vadd.f32 %v6785_v30, %v5068_v42 }
 0x1ab   :  { %v2619_v44 = vmax.f32 %v2271_v37, 0.0  ;;  %v4550_v47 = vpack.c.bf16 %v2493_v38, %v2493_v38  ;;  %v4678_v48 = vpack.c.bf16 %v2621_v40, %v2621_v40  ;;  %v1771_v49 = vpop.f32.mrf.mxu0  ;;  %v2283_v50 = vpop.f32.mrf.mxu1 }
 0x1ac   :  { %v4548_v51 = vpack.c.bf16 %v2491_v43, %v2491_v43  ;;  %v2496_v53 = vmax.f32 %v1780_v45, 0.0  ;;  %v2624_v39 = vmax.f32 %v2292_v46, 0.0  ;;  %v1772_v55 = vadd.f32 %v6785_v30, %v1771_v49 }
 0x1ad   :  { %v4676_v52 = vpack.c.bf16 %v2619_v44, %v2619_v44  ;;  %3774 = vst.msk [vmem:[%s7106_s3 + $0x18c] sm:$0xf] %vm3674_vm1, %v4550_v47  ;;  %3902 = vst.msk [vmem:[%s7106_s3 + $0x38c] sm:$0xf] %vm3674_vm1, %v4678_v48  ;;  %v2284_v56 = vadd.f32 %v6785_v30, %v2283_v50  ;;  %v4941_v57 = vpop.f32.mrf.mxu0  ;;  %v5069_v58 = vpop.f32.mrf.mxu1 }
 0x1ae   :  { %3772 = vst.msk [vmem:[%s7106_s3 + $0x184] sm:$0xf] %vm3674_vm1, %v4548_v51  ;;  %v4553_v59 = vpack.c.bf16 %v2496_v53, %v2496_v53  ;;  %v4681_v60 = vpack.c.bf16 %v2624_v39, %v2624_v39  ;;  %v1783_v61 = vadd.f32 %v6785_v30, %v4941_v57  ;;  %v2295_v62 = vadd.f32 %v6785_v30, %v5069_v58 }
 0x1af   :  { %3900 = vst.msk [vmem:[%s7106_s3 + $0x384] sm:$0xf] %vm3674_vm1, %v4676_v52  ;;  %v2494_v63 = vmax.f32 %v1772_v55, 0.0  ;;  %v2622_v0 = vmax.f32 %v2284_v56, 0.0  ;;  %v1774_v1 = vpop.f32.mrf.mxu0  ;;  %v2286_v2 = vpop.f32.mrf.mxu1 }
 0x1b0   :  { %3777 = vst.msk [vmem:[%s7106_s3 + $0x198] sm:$0xf] %vm3674_vm1, %v4553_v59  ;;  %3905 = vst.msk [vmem:[%s7106_s3 + $0x398] sm:$0xf] %vm3674_vm1, %v4681_v60  ;;  %v2497_v3 = vmax.f32 %v1783_v61, 0.0  ;;  %v2625_v4 = vmax.f32 %v2295_v62, 0.0  ;;  %v1775_v5 = vadd.f32 %v6785_v30, %v1774_v1  ;;  %v2287_v6 = vadd.f32 %v6785_v30, %v2286_v2 }
 0x1b1   :  { %v4551_v7 = vpack.c.bf16 %v2494_v63, %v2494_v63  ;;  %v4679_v8 = vpack.c.bf16 %v2622_v0, %v2622_v0  ;;  %v4944_v9 = vpop.f32.mrf.mxu0  ;;  %v5072_v10 = vpop.f32.mrf.mxu1 }
 0x1b2   :  { %v4554_v11 = vpack.c.bf16 %v2497_v3, %v2497_v3  ;;  %v4682_v12 = vpack.c.bf16 %v2625_v4, %v2625_v4  ;;  %v2495_v13 = vmax.f32 %v1775_v5, 0.0  ;;  %v2623_v14 = vmax.f32 %v2287_v6, 0.0 }
 0x1b3   :  { %3775 = vst.msk [vmem:[%s7106_s3 + $0x190] sm:$0xf] %vm3674_vm1, %v4551_v7  ;;  %3903 = vst.msk [vmem:[%s7106_s3 + $0x390] sm:$0xf] %vm3674_vm1, %v4679_v8  ;;  %v1796_v15 = vadd.f32 %v6785_v30, %v4944_v9  ;;  %v2308_v16 = vadd.f32 %v6785_v30, %v5072_v10  ;;  %v1787_v17 = vpop.f32.mrf.mxu0  ;;  %v2299_v18 = vpop.f32.mrf.mxu1 }
 0x1b4   :  { %3778 = vst.msk [vmem:[%s7106_s3 + $0x19c] sm:$0xf] %vm3674_vm1, %v4554_v11  ;;  %3906 = vst.msk [vmem:[%s7106_s3 + $0x39c] sm:$0xf] %vm3674_vm1, %v4682_v12  ;;  %v4552_v19 = vpack.c.bf16 %v2495_v13, %v2495_v13  ;;  %v4680_v20 = vpack.c.bf16 %v2623_v14, %v2623_v14  ;;  %v1788_v21 = vadd.f32 %v6785_v30, %v1787_v17 }
 0x1b5   :  { %v2300_v22 = vadd.f32 %v6785_v30, %v2299_v18  ;;  %v2500_v23 = vmax.f32 %v1796_v15, 0.0  ;;  %v2628_v24 = vmax.f32 %v2308_v16, 0.0  ;;  %v4945_v25 = vpop.f32.mrf.mxu0  ;;  %v5073_v26 = vpop.f32.mrf.mxu1 }
 0x1b6   :  { %3776 = vst.msk [vmem:[%s7106_s3 + $0x194] sm:$0xf] %vm3674_vm1, %v4552_v19  ;;  %3904 = vst.msk [vmem:[%s7106_s3 + $0x394] sm:$0xf] %vm3674_vm1, %v4680_v20  ;;  %v2498_v27 = vmax.f32 %v1788_v21, 0.0  ;;  %v1799_v29 = vadd.f32 %v6785_v30, %v4945_v25  ;;  %v2311_v54 = vadd.f32 %v6785_v30, %v5073_v26 }
 0x1b7   :  { %v2626_v28 = vmax.f32 %v2300_v22, 0.0  ;;  %v4557_v31 = vpack.c.bf16 %v2500_v23, %v2500_v23  ;;  %v4685_v32 = vpack.c.bf16 %v2628_v24, %v2628_v24  ;;  %v1790_v33 = vpop.f32.mrf.mxu0  ;;  %v2302_v34 = vpop.f32.mrf.mxu1 }
 0x1b8   :  { %v4555_v35 = vpack.c.bf16 %v2498_v27, %v2498_v27  ;;  %v2501_v37 = vmax.f32 %v1799_v29, 0.0  ;;  %v2629_v38 = vmax.f32 %v2311_v54, 0.0  ;;  %v1791_v40 = vadd.f32 %v6785_v30, %v1790_v33 }
 0x1b9   :  { %v4683_v36 = vpack.c.bf16 %v2626_v28, %v2626_v28  ;;  %3781 = vst.msk [vmem:[%s7106_s3 + $0x1a8] sm:$0xf] %vm3674_vm1, %v4557_v31  ;;  %3909 = vst.msk [vmem:[%s7106_s3 + $0x3a8] sm:$0xf] %vm3674_vm1, %v4685_v32  ;;  %v2303_v41 = vadd.f32 %v6785_v30, %v2302_v34  ;;  %v4948_v42 = vpop.f32.mrf.mxu0  ;;  %v5076_v43 = vpop.f32.mrf.mxu1 }
 0x1ba   :  { %3779 = vst.msk [vmem:[%s7106_s3 + $0x1a0] sm:$0xf] %vm3674_vm1, %v4555_v35  ;;  %v4558_v44 = vpack.c.bf16 %v2501_v37, %v2501_v37  ;;  %v4686_v45 = vpack.c.bf16 %v2629_v38, %v2629_v38  ;;  %v1812_v46 = vadd.f32 %v6785_v30, %v4948_v42  ;;  %v2324_v47 = vadd.f32 %v6785_v30, %v5076_v43 }
 0x1bb   :  { %3907 = vst.msk [vmem:[%s7106_s3 + $0x3a0] sm:$0xf] %vm3674_vm1, %v4683_v36  ;;  %v2499_v48 = vmax.f32 %v1791_v40, 0.0  ;;  %v2627_v49 = vmax.f32 %v2303_v41, 0.0  ;;  %v1803_v50 = vpop.f32.mrf.mxu0  ;;  %v2315_v51 = vpop.f32.mrf.mxu1 }
 0x1bc   :  { %3782 = vst.msk [vmem:[%s7106_s3 + $0x1ac] sm:$0xf] %vm3674_vm1, %v4558_v44  ;;  %3910 = vst.msk [vmem:[%s7106_s3 + $0x3ac] sm:$0xf] %vm3674_vm1, %v4686_v45  ;;  %v2504_v52 = vmax.f32 %v1812_v46, 0.0  ;;  %v2632_v53 = vmax.f32 %v2324_v47, 0.0  ;;  %v1804_v39 = vadd.f32 %v6785_v30, %v1803_v50  ;;  %v2316_v55 = vadd.f32 %v6785_v30, %v2315_v51 }
 0x1bd   :  { %v4556_v56 = vpack.c.bf16 %v2499_v48, %v2499_v48  ;;  %v4684_v57 = vpack.c.bf16 %v2627_v49, %v2627_v49  ;;  %v4949_v58 = vpop.f32.mrf.mxu0  ;;  %v5077_v59 = vpop.f32.mrf.mxu1 }
 0x1be   :  { %v4561_v60 = vpack.c.bf16 %v2504_v52, %v2504_v52  ;;  %v4689_v61 = vpack.c.bf16 %v2632_v53, %v2632_v53  ;;  %v2502_v62 = vmax.f32 %v1804_v39, 0.0  ;;  %v2630_v63 = vmax.f32 %v2316_v55, 0.0 }
 0x1bf   :  { %3780 = vst.msk [vmem:[%s7106_s3 + $0x1a4] sm:$0xf] %vm3674_vm1, %v4556_v56  ;;  %3908 = vst.msk [vmem:[%s7106_s3 + $0x3a4] sm:$0xf] %vm3674_vm1, %v4684_v57  ;;  %v1815_v0 = vadd.f32 %v6785_v30, %v4949_v58  ;;  %v2327_v1 = vadd.f32 %v6785_v30, %v5077_v59  ;;  %v1806_v2 = vpop.f32.mrf.mxu0  ;;  %v2318_v3 = vpop.f32.mrf.mxu1 }
 0x1c0   :  { %3785 = vst.msk [vmem:[%s7106_s3 + $0x1b8] sm:$0xf] %vm3674_vm1, %v4561_v60  ;;  %3913 = vst.msk [vmem:[%s7106_s3 + $0x3b8] sm:$0xf] %vm3674_vm1, %v4689_v61  ;;  %v4559_v4 = vpack.c.bf16 %v2502_v62, %v2502_v62  ;;  %v4687_v5 = vpack.c.bf16 %v2630_v63, %v2630_v63  ;;  %v1807_v6 = vadd.f32 %v6785_v30, %v1806_v2 }
 0x1c1   :  { %v2319_v7 = vadd.f32 %v6785_v30, %v2318_v3  ;;  %v2505_v8 = vmax.f32 %v1815_v0, 0.0  ;;  %v2633_v9 = vmax.f32 %v2327_v1, 0.0  ;;  %v4952_v10 = vpop.f32.mrf.mxu0  ;;  %v5080_v11 = vpop.f32.mrf.mxu1 }
 0x1c2   :  { %3783 = vst.msk [vmem:[%s7106_s3 + $0x1b0] sm:$0xf] %vm3674_vm1, %v4559_v4  ;;  %3911 = vst.msk [vmem:[%s7106_s3 + $0x3b0] sm:$0xf] %vm3674_vm1, %v4687_v5  ;;  %v2503_v12 = vmax.f32 %v1807_v6, 0.0  ;;  %v1828_v14 = vadd.f32 %v6785_v30, %v4952_v10  ;;  %v2340_v15 = vadd.f32 %v6785_v30, %v5080_v11 }
 0x1c3   :  { %v2631_v13 = vmax.f32 %v2319_v7, 0.0  ;;  %v4562_v16 = vpack.c.bf16 %v2505_v8, %v2505_v8  ;;  %v4690_v17 = vpack.c.bf16 %v2633_v9, %v2633_v9  ;;  %v1819_v18 = vpop.f32.mrf.mxu0  ;;  %v2331_v19 = vpop.f32.mrf.mxu1 }
 0x1c4   :  { %v4560_v20 = vpack.c.bf16 %v2503_v12, %v2503_v12  ;;  %v2508_v22 = vmax.f32 %v1828_v14, 0.0  ;;  %v2636_v23 = vmax.f32 %v2340_v15, 0.0  ;;  %v1820_v24 = vadd.f32 %v6785_v30, %v1819_v18 }
 0x1c5   :  { %v4688_v21 = vpack.c.bf16 %v2631_v13, %v2631_v13  ;;  %3786 = vst.msk [vmem:[%s7106_s3 + $0x1bc] sm:$0xf] %vm3674_vm1, %v4562_v16  ;;  %3914 = vst.msk [vmem:[%s7106_s3 + $0x3bc] sm:$0xf] %vm3674_vm1, %v4690_v17  ;;  %v2332_v25 = vadd.f32 %v6785_v30, %v2331_v19  ;;  %v4953_v26 = vpop.f32.mrf.mxu0  ;;  %v5081_v27 = vpop.f32.mrf.mxu1 }
 0x1c6   :  { %3784 = vst.msk [vmem:[%s7106_s3 + $0x1b4] sm:$0xf] %vm3674_vm1, %v4560_v20  ;;  %v4565_v28 = vpack.c.bf16 %v2508_v22, %v2508_v22  ;;  %v4693_v29 = vpack.c.bf16 %v2636_v23, %v2636_v23  ;;  %v1831_v54 = vadd.f32 %v6785_v30, %v4953_v26  ;;  %v2343_v31 = vadd.f32 %v6785_v30, %v5081_v27 }
 0x1c7   :  { %3912 = vst.msk [vmem:[%s7106_s3 + $0x3b4] sm:$0xf] %vm3674_vm1, %v4688_v21  ;;  %v2506_v32 = vmax.f32 %v1820_v24, 0.0  ;;  %v2634_v33 = vmax.f32 %v2332_v25, 0.0  ;;  %v1822_v34 = vpop.f32.mrf.mxu0  ;;  %v2334_v35 = vpop.f32.mrf.mxu1 }
 0x1c8   :  { %3789 = vst.msk [vmem:[%s7106_s3 + $0x1c8] sm:$0xf] %vm3674_vm1, %v4565_v28  ;;  %3917 = vst.msk [vmem:[%s7106_s3 + $0x3c8] sm:$0xf] %vm3674_vm1, %v4693_v29  ;;  %v2509_v36 = vmax.f32 %v1831_v54, 0.0  ;;  %v2637_v37 = vmax.f32 %v2343_v31, 0.0  ;;  %v1823_v38 = vadd.f32 %v6785_v30, %v1822_v34  ;;  %v2335_v40 = vadd.f32 %v6785_v30, %v2334_v35 }
 0x1c9   :  { %v4563_v41 = vpack.c.bf16 %v2506_v32, %v2506_v32  ;;  %v4691_v42 = vpack.c.bf16 %v2634_v33, %v2634_v33  ;;  %v4956_v43 = vpop.f32.mrf.mxu0  ;;  %v5084_v44 = vpop.f32.mrf.mxu1 }
 0x1ca   :  { %v4566_v45 = vpack.c.bf16 %v2509_v36, %v2509_v36  ;;  %v4694_v46 = vpack.c.bf16 %v2637_v37, %v2637_v37  ;;  %v2507_v47 = vmax.f32 %v1823_v38, 0.0  ;;  %v2635_v48 = vmax.f32 %v2335_v40, 0.0 }
 0x1cb   :  { %3787 = vst.msk [vmem:[%s7106_s3 + $0x1c0] sm:$0xf] %vm3674_vm1, %v4563_v41  ;;  %3915 = vst.msk [vmem:[%s7106_s3 + $0x3c0] sm:$0xf] %vm3674_vm1, %v4691_v42  ;;  %v1844_v49 = vadd.f32 %v6785_v30, %v4956_v43  ;;  %v2356_v50 = vadd.f32 %v6785_v30, %v5084_v44  ;;  %v1835_v51 = vpop.f32.mrf.mxu0  ;;  %v2347_v52 = vpop.f32.mrf.mxu1 }
 0x1cc   :  { %3790 = vst.msk [vmem:[%s7106_s3 + $0x1cc] sm:$0xf] %vm3674_vm1, %v4566_v45  ;;  %3918 = vst.msk [vmem:[%s7106_s3 + $0x3cc] sm:$0xf] %vm3674_vm1, %v4694_v46  ;;  %v4564_v53 = vpack.c.bf16 %v2507_v47, %v2507_v47  ;;  %v4692_v39 = vpack.c.bf16 %v2635_v48, %v2635_v48  ;;  %v1836_v55 = vadd.f32 %v6785_v30, %v1835_v51 }
 0x1cd   :  { %v2348_v56 = vadd.f32 %v6785_v30, %v2347_v52  ;;  %v2512_v57 = vmax.f32 %v1844_v49, 0.0  ;;  %v2640_v58 = vmax.f32 %v2356_v50, 0.0  ;;  %v4957_v59 = vpop.f32.mrf.mxu0  ;;  %v5085_v60 = vpop.f32.mrf.mxu1 }
 0x1ce   :  { %3788 = vst.msk [vmem:[%s7106_s3 + $0x1c4] sm:$0xf] %vm3674_vm1, %v4564_v53  ;;  %3916 = vst.msk [vmem:[%s7106_s3 + $0x3c4] sm:$0xf] %vm3674_vm1, %v4692_v39  ;;  %v2510_v61 = vmax.f32 %v1836_v55, 0.0  ;;  %v1847_v63 = vadd.f32 %v6785_v30, %v4957_v59  ;;  %v2359_v0 = vadd.f32 %v6785_v30, %v5085_v60 }
 0x1cf   :  { %v2638_v62 = vmax.f32 %v2348_v56, 0.0  ;;  %v4569_v1 = vpack.c.bf16 %v2512_v57, %v2512_v57  ;;  %v4697_v2 = vpack.c.bf16 %v2640_v58, %v2640_v58  ;;  %v1838_v3 = vpop.f32.mrf.mxu0  ;;  %v2350_v4 = vpop.f32.mrf.mxu1 }
 0x1d0   :  { %v4567_v5 = vpack.c.bf16 %v2510_v61, %v2510_v61  ;;  %v2513_v7 = vmax.f32 %v1847_v63, 0.0  ;;  %v2641_v8 = vmax.f32 %v2359_v0, 0.0  ;;  %v1839_v9 = vadd.f32 %v6785_v30, %v1838_v3 }
 0x1d1   :  { %v4695_v6 = vpack.c.bf16 %v2638_v62, %v2638_v62  ;;  %3793 = vst.msk [vmem:[%s7106_s3 + $0x1d8] sm:$0xf] %vm3674_vm1, %v4569_v1  ;;  %3921 = vst.msk [vmem:[%s7106_s3 + $0x3d8] sm:$0xf] %vm3674_vm1, %v4697_v2  ;;  %v2351_v10 = vadd.f32 %v6785_v30, %v2350_v4  ;;  %v4960_v11 = vpop.f32.mrf.mxu0  ;;  %v5088_v12 = vpop.f32.mrf.mxu1 }
 0x1d2   :  { %3791 = vst.msk [vmem:[%s7106_s3 + $0x1d0] sm:$0xf] %vm3674_vm1, %v4567_v5  ;;  %v4570_v13 = vpack.c.bf16 %v2513_v7, %v2513_v7  ;;  %v4698_v14 = vpack.c.bf16 %v2641_v8, %v2641_v8  ;;  %v1860_v15 = vadd.f32 %v6785_v30, %v4960_v11  ;;  %v2372_v16 = vadd.f32 %v6785_v30, %v5088_v12 }
 0x1d3   :  { %3919 = vst.msk [vmem:[%s7106_s3 + $0x3d0] sm:$0xf] %vm3674_vm1, %v4695_v6  ;;  %v2511_v17 = vmax.f32 %v1839_v9, 0.0  ;;  %v2639_v18 = vmax.f32 %v2351_v10, 0.0  ;;  %v1851_v19 = vpop.f32.mrf.mxu0  ;;  %v2363_v20 = vpop.f32.mrf.mxu1 }
 0x1d4   :  { %3794 = vst.msk [vmem:[%s7106_s3 + $0x1dc] sm:$0xf] %vm3674_vm1, %v4570_v13  ;;  %3922 = vst.msk [vmem:[%s7106_s3 + $0x3dc] sm:$0xf] %vm3674_vm1, %v4698_v14  ;;  %v2516_v21 = vmax.f32 %v1860_v15, 0.0  ;;  %v2644_v22 = vmax.f32 %v2372_v16, 0.0  ;;  %v1852_v23 = vadd.f32 %v6785_v30, %v1851_v19  ;;  %v2364_v24 = vadd.f32 %v6785_v30, %v2363_v20 }
 0x1d5   :  { %v4568_v25 = vpack.c.bf16 %v2511_v17, %v2511_v17  ;;  %v4696_v26 = vpack.c.bf16 %v2639_v18, %v2639_v18  ;;  %v4961_v27 = vpop.f32.mrf.mxu0  ;;  %v5089_v28 = vpop.f32.mrf.mxu1 }
 0x1d6   :  { %v4573_v29 = vpack.c.bf16 %v2516_v21, %v2516_v21  ;;  %v4701_v54 = vpack.c.bf16 %v2644_v22, %v2644_v22  ;;  %v2514_v31 = vmax.f32 %v1852_v23, 0.0  ;;  %v2642_v32 = vmax.f32 %v2364_v24, 0.0 }
 0x1d7   :  { %3792 = vst.msk [vmem:[%s7106_s3 + $0x1d4] sm:$0xf] %vm3674_vm1, %v4568_v25  ;;  %3920 = vst.msk [vmem:[%s7106_s3 + $0x3d4] sm:$0xf] %vm3674_vm1, %v4696_v26  ;;  %v1863_v33 = vadd.f32 %v6785_v30, %v4961_v27  ;;  %v2375_v34 = vadd.f32 %v6785_v30, %v5089_v28  ;;  %v1854_v35 = vpop.f32.mrf.mxu0  ;;  %v2366_v36 = vpop.f32.mrf.mxu1 }
 0x1d8   :  { %3797 = vst.msk [vmem:[%s7106_s3 + $0x1e8] sm:$0xf] %vm3674_vm1, %v4573_v29  ;;  %3925 = vst.msk [vmem:[%s7106_s3 + $0x3e8] sm:$0xf] %vm3674_vm1, %v4701_v54  ;;  %v4571_v37 = vpack.c.bf16 %v2514_v31, %v2514_v31  ;;  %v4699_v38 = vpack.c.bf16 %v2642_v32, %v2642_v32  ;;  %v1855_v40 = vadd.f32 %v6785_v30, %v1854_v35 }
 0x1d9   :  { %v2367_v41 = vadd.f32 %v6785_v30, %v2366_v36  ;;  %v2517_v42 = vmax.f32 %v1863_v33, 0.0  ;;  %v2645_v43 = vmax.f32 %v2375_v34, 0.0  ;;  %v4964_v44 = vpop.f32.mrf.mxu0  ;;  %v5092_v45 = vpop.f32.mrf.mxu1 }
 0x1da   :  { %3795 = vst.msk [vmem:[%s7106_s3 + $0x1e0] sm:$0xf] %vm3674_vm1, %v4571_v37  ;;  %3923 = vst.msk [vmem:[%s7106_s3 + $0x3e0] sm:$0xf] %vm3674_vm1, %v4699_v38  ;;  %v2515_v46 = vmax.f32 %v1855_v40, 0.0  ;;  %v1876_v48 = vadd.f32 %v6785_v30, %v4964_v44  ;;  %v2388_v49 = vadd.f32 %v6785_v30, %v5092_v45 }
 0x1db   :  { %v2643_v47 = vmax.f32 %v2367_v41, 0.0  ;;  %v4574_v50 = vpack.c.bf16 %v2517_v42, %v2517_v42  ;;  %v4702_v51 = vpack.c.bf16 %v2645_v43, %v2645_v43  ;;  %v1867_v52 = vpop.f32.mrf.mxu0  ;;  %v2379_v53 = vpop.f32.mrf.mxu1 }
 0x1dc   :  { %v4572_v39 = vpack.c.bf16 %v2515_v46, %v2515_v46  ;;  %v2520_v56 = vmax.f32 %v1876_v48, 0.0  ;;  %v2648_v57 = vmax.f32 %v2388_v49, 0.0  ;;  %v1868_v58 = vadd.f32 %v6785_v30, %v1867_v52 }
 0x1dd   :  { %v4700_v55 = vpack.c.bf16 %v2643_v47, %v2643_v47  ;;  %3798 = vst.msk [vmem:[%s7106_s3 + $0x1ec] sm:$0xf] %vm3674_vm1, %v4574_v50  ;;  %3926 = vst.msk [vmem:[%s7106_s3 + $0x3ec] sm:$0xf] %vm3674_vm1, %v4702_v51  ;;  %v2380_v59 = vadd.f32 %v6785_v30, %v2379_v53  ;;  %v4965_v60 = vpop.f32.mrf.mxu0  ;;  %v5093_v61 = vpop.f32.mrf.mxu1 }
 0x1de   :  { %3796 = vst.msk [vmem:[%s7106_s3 + $0x1e4] sm:$0xf] %vm3674_vm1, %v4572_v39  ;;  %v4577_v62 = vpack.c.bf16 %v2520_v56, %v2520_v56  ;;  %v4705_v63 = vpack.c.bf16 %v2648_v57, %v2648_v57  ;;  %v1879_v0 = vadd.f32 %v6785_v30, %v4965_v60  ;;  %v2391_v1 = vadd.f32 %v6785_v30, %v5093_v61 }
 0x1df   :  { %3924 = vst.msk [vmem:[%s7106_s3 + $0x3e4] sm:$0xf] %vm3674_vm1, %v4700_v55  ;;  %v2518_v2 = vmax.f32 %v1868_v58, 0.0  ;;  %v2646_v3 = vmax.f32 %v2380_v59, 0.0  ;;  %v1870_v4 = vpop.f32.mrf.mxu0  ;;  %v2382_v5 = vpop.f32.mrf.mxu1 }
 0x1e0   :  { %3801 = vst.msk [vmem:[%s7106_s3 + $0x1f8] sm:$0xf] %vm3674_vm1, %v4577_v62  ;;  %3929 = vst.msk [vmem:[%s7106_s3 + $0x3f8] sm:$0xf] %vm3674_vm1, %v4705_v63  ;;  %v2521_v6 = vmax.f32 %v1879_v0, 0.0  ;;  %v2649_v7 = vmax.f32 %v2391_v1, 0.0  ;;  %v1871_v8 = vadd.f32 %v6785_v30, %v1870_v4  ;;  %v2383_v9 = vadd.f32 %v6785_v30, %v2382_v5 }
 0x1e1   :  { %v4575_v10 = vpack.c.bf16 %v2518_v2, %v2518_v2  ;;  %v4703_v11 = vpack.c.bf16 %v2646_v3, %v2646_v3 }
 0x1e2   :  { %v4578_v12 = vpack.c.bf16 %v2521_v6, %v2521_v6  ;;  %v4706_v13 = vpack.c.bf16 %v2649_v7, %v2649_v7  ;;  %v2519_v14 = vmax.f32 %v1871_v8, 0.0  ;;  %v2647_v15 = vmax.f32 %v2383_v9, 0.0 }
 0x1e3   :  { %3799 = vst.msk [vmem:[%s7106_s3 + $0x1f0] sm:$0xf] %vm3674_vm1, %v4575_v10  ;;  %3927 = vst.msk [vmem:[%s7106_s3 + $0x3f0] sm:$0xf] %vm3674_vm1, %v4703_v11 }
 0x1e4   :  { %3802 = vst.msk [vmem:[%s7106_s3 + $0x1fc] sm:$0xf] %vm3674_vm1, %v4578_v12  ;;  %3930 = vst.msk [vmem:[%s7106_s3 + $0x3fc] sm:$0xf] %vm3674_vm1, %v4706_v13  ;;  %v4576_v30 = vpack.c.bf16 %v2519_v14, %v2519_v14  ;;  %v4704_v16 = vpack.c.bf16 %v2647_v15, %v2647_v15 }
 0x1e6   :  { %3800 = vst.msk [vmem:[%s7106_s3 + $0x1f4] sm:$0xf] %vm3674_vm1, %v4576_v30  ;;  %3928 = vst.msk [vmem:[%s7106_s3 + $0x3f4] sm:$0xf] %vm3674_vm1, %v4704_v16 }
 0x1e7   :  { %3935 = vsyncpa [#allocation3], 1 }
 0x1e8   :  { %3936 = vsyncpa [#allocation5], 1 }

// kernel: factorvae1_forward.10
= control target key start
LH: loop header
LB: loop body
LE: loop exit
PB: predicated region body
PF: predicated region fallthrough
CT: control target
= control target key end

     0   :  { %v2524_v0 = vmov 0   ;;  %vm1944_vm0 = vcmask 257024   ;;  %s3399_s1 = inlined_call_operand.vmem [shape: bf16[1,512,128], index: 1, kind: input, shape index: {}]   ;;  %s3400_s0 = inlined_call_operand.vmem [shape: bf16[1,512,512], index: 0, kind: input, shape index: {}]   ;;  %s3401_s2 = inlined_call_operand.vmem [shape: f32[1,128], index: 2, kind: input, shape index: {}]   ;;  %s3402_s3 = inlined_call_operand.vmem [shape: bf16[1,512,32], index: 3, kind: output, shape index: {}]  }
   0x1   :  { %1046 = vmatprep.subr.bf16.mxu0 %v2524_v0  ;;  %1335 = vmatprep.subr.bf16.mxu1 %v2524_v0  ;;  %v2303_v1 = vld [vmem:[%s3399_s1 + $0x38] sm:$0xff]   ;;  %v2305_v3 = vld [vmem:[%s3399_s1 + $0x30] sm:$0xff]   ;;  %v2307_v5 = vld [vmem:[%s3399_s1 + $0x28] sm:$0xff]  }
   0x2   :  { %v2304_v2 = vld [vmem:[%s3399_s1 + $0xb8] sm:$0xff]   ;;  %1047 = vmatpush1.bf16.msra.mxu0 %v2303_v1  ;;  %v2306_v4 = vld [vmem:[%s3399_s1 + $0xb0] sm:$0xff]   ;;  %v2308_v6 = vld [vmem:[%s3399_s1 + $0xa8] sm:$0xff]  }
   0x3   :  { %1336 = vmatpush1.bf16.msra.mxu1 %v2304_v2  ;;  %1048 = vmatprep.subr.bf16.mxu0 %v2524_v0  ;;  %v2309_v7 = vld [vmem:[%s3399_s1 + $0x20] sm:$0xff]   ;;  %v2311_v9 = vld [vmem:[%s3399_s1 + $0x18] sm:$0xff]   ;;  %v2313_v11 = vld [vmem:[%s3399_s1 + $0x10] sm:$0xff]  }
   0x4   :  { %1337 = vmatprep.subr.bf16.mxu1 %v2524_v0  ;;  %v2310_v8 = vld [vmem:[%s3399_s1 + $0xa0] sm:$0xff]   ;;  %v2312_v10 = vld [vmem:[%s3399_s1 + $0x98] sm:$0xff]   ;;  %v2314_v12 = vld [vmem:[%s3399_s1 + $0x90] sm:$0xff]  }
   0x5   :  { %v2315_v13 = vld [vmem:[%s3399_s1 + $0x8] sm:$0xff]   ;;  %v2317_v15 = vld [vmem:[%s3399_s1] sm:$0xff]   ;;  %v2319_v17 = vld [vmem:[%s3399_s1 + $0x78] sm:$0xff]  }
   0x6   :  { %1049 = vmatpush1.bf16.msra.mxu0 %v2305_v3  ;;  %v2316_v14 = vld [vmem:[%s3399_s1 + $0x88] sm:$0xff]   ;;  %v2318_v16 = vld [vmem:[%s3399_s1 + $0x80] sm:$0xff]   ;;  %v2320_v18 = vld [vmem:[%s3399_s1 + $0xf8] sm:$0xff]  }
   0x7   :  { %1338 = vmatpush1.bf16.msra.mxu1 %v2306_v4  ;;  %1050 = vmatprep.subr.bf16.mxu0 %v2524_v0  ;;  %v2337_v19 = vld [vmem:[%s3400_s0 + $0x4] ss:$16 sps:$4 sm:$0xff]   ;;  %v2340_v21 = vld [vmem:[%s3400_s0 + $0xc] ss:$16 sps:$4 sm:$0xff]   ;;  %v2335_v35 = vld [vmem:[%s3400_s0] ss:$16 sps:$4 sm:$0xff]  }
   0x8   :  { %1339 = vmatprep.subr.bf16.mxu1 %v2524_v0  ;;  %v2321_v20 = vld [vmem:[%s3399_s1 + $0x70] sm:$0xff]   ;;  %1078 = vmatprep.mubr.bf16.mxu0 %v2337_v19  ;;  %v2323_v23 = vld [vmem:[%s3399_s1 + $0x68] sm:$0xff]   ;;  %v2325_v25 = vld [vmem:[%s3399_s1 + $0x60] sm:$0xff]  }
   0x9   :  { %v2322_v22 = vld [vmem:[%s3399_s1 + $0xf0] sm:$0xff]   ;;  %1367 = vmatprep.mubr.bf16.mxu1 %v2340_v21  ;;  %v2324_v24 = vld [vmem:[%s3399_s1 + $0xe8] sm:$0xff]   ;;  %v2326_v26 = vld [vmem:[%s3399_s1 + $0xe0] sm:$0xff]  }
   0xa   :  { %1051 = vmatpush1.bf16.msra.mxu0 %v2307_v5  ;;  %v2327_v27 = vld [vmem:[%s3399_s1 + $0x58] sm:$0xff]   ;;  %v2329_v29 = vld [vmem:[%s3399_s1 + $0x50] sm:$0xff]   ;;  %v2331_v31 = vld [vmem:[%s3399_s1 + $0x48] sm:$0xff]  }
   0xb   :  { %1340 = vmatpush1.bf16.msra.mxu1 %v2308_v6  ;;  %1052 = vmatprep.subr.bf16.mxu0 %v2524_v0  ;;  %v2328_v28 = vld [vmem:[%s3399_s1 + $0xd8] sm:$0xff]   ;;  %v2330_v30 = vld [vmem:[%s3399_s1 + $0xd0] sm:$0xff]   ;;  %v2332_v32 = vld [vmem:[%s3399_s1 + $0xc8] sm:$0xff]  }
   0xc   :  { %1341 = vmatprep.subr.bf16.mxu1 %v2524_v0  ;;  %v2333_v33 = vld [vmem:[%s3399_s1 + $0x40] sm:$0xff]   ;;  %v2338_v36 = vld [vmem:[%s3400_s0 + $0x8] ss:$16 sps:$4 sm:$0xff]   ;;  %v2343_v38 = vld [vmem:[%s3400_s0 + $0x2c] ss:$16 sps:$4 sm:$0xff]  }
   0xd   :  { %v2334_v34 = vld [vmem:[%s3399_s1 + $0xc0] sm:$0xff]   ;;  %v2346_v40 = vld [vmem:[%s3400_s0 + $0x28] ss:$16 sps:$4 sm:$0xff]   ;;  %v2349_v42 = vld [vmem:[%s3400_s0 + $0x4c] ss:$16 sps:$4 sm:$0xff]  }
   0xe   :  { %1053 = vmatpush1.bf16.msra.mxu0 %v2309_v7  ;;  %v2341_v37 = vld [vmem:[%s3400_s0 + $0x24] ss:$16 sps:$4 sm:$0xff]   ;;  %v2345_v39 = vld [vmem:[%s3400_s0 + $0x20] ss:$16 sps:$4 sm:$0xff]   ;;  %v2352_v44 = vld [vmem:[%s3400_s0 + $0x48] ss:$16 sps:$4 sm:$0xff]  }
   0xf   :  { %1342 = vmatpush1.bf16.msra.mxu1 %v2310_v8  ;;  %1054 = vmatprep.subr.bf16.mxu0 %v2524_v0  ;;  %v2347_v41 = vld [vmem:[%s3400_s0 + $0x44] ss:$16 sps:$4 sm:$0xff]   ;;  %v2351_v43 = vld [vmem:[%s3400_s0 + $0x40] ss:$16 sps:$4 sm:$0xff]   ;;  %v2355_v46 = vld [vmem:[%s3400_s0 + $0x6c] ss:$16 sps:$4 sm:$0xff]  }
  0x10   :  { %1343 = vmatprep.subr.bf16.mxu1 %v2524_v0  ;;  %v2353_v45 = vld [vmem:[%s3400_s0 + $0x64] ss:$16 sps:$4 sm:$0xff]   ;;  %v2357_v47 = vld [vmem:[%s3400_s0 + $0x60] ss:$16 sps:$4 sm:$0xff]   ;;  %v2358_v48 = vld [vmem:[%s3400_s0 + $0x68] ss:$16 sps:$4 sm:$0xff]  }
  0x11   :  { %v2359_v49 = vld [vmem:[%s3400_s0 + $0x84] ss:$16 sps:$4 sm:$0xff]   ;;  %v2361_v50 = vld [vmem:[%s3400_s0 + $0x8c] ss:$16 sps:$4 sm:$0xff]   ;;  %v2363_v51 = vld [vmem:[%s3400_s0 + $0x80] ss:$16 sps:$4 sm:$0xff]  }
  0x12   :  { %1055 = vmatpush1.bf16.msra.mxu0 %v2311_v9  ;;  %v2364_v52 = vld [vmem:[%s3400_s0 + $0x88] ss:$16 sps:$4 sm:$0xff]   ;;  %v2365_v53 = vld [vmem:[%s3400_s0 + $0xa4] ss:$16 sps:$4 sm:$0xff]   ;;  %v2367_v54 = vld [vmem:[%s3400_s0 + $0xac] ss:$16 sps:$4 sm:$0xff]  }
  0x13   :  { %1344 = vmatpush1.bf16.msra.mxu1 %v2312_v10  ;;  %1056 = vmatprep.subr.bf16.mxu0 %v2524_v0  ;;  %v2369_v55 = vld [vmem:[%s3400_s0 + $0xa0] ss:$16 sps:$4 sm:$0xff]   ;;  %v2370_v56 = vld [vmem:[%s3400_s0 + $0xa8] ss:$16 sps:$4 sm:$0xff]   ;;  %v2371_v57 = vld [vmem:[%s3400_s0 + $0xc4] ss:$16 sps:$4 sm:$0xff]  }
  0x14   :  { %1345 = vmatprep.subr.bf16.mxu1 %v2524_v0  ;;  %v2373_v58 = vld [vmem:[%s3400_s0 + $0xcc] ss:$16 sps:$4 sm:$0xff]   ;;  %v2375_v59 = vld [vmem:[%s3400_s0 + $0xc0] ss:$16 sps:$4 sm:$0xff]   ;;  %v2376_v60 = vld [vmem:[%s3400_s0 + $0xc8] ss:$16 sps:$4 sm:$0xff]  }
  0x15   :  { %v2377_v61 = vld [vmem:[%s3400_s0 + $0xe4] ss:$16 sps:$4 sm:$0xff]   ;;  %v2379_v62 = vld [vmem:[%s3400_s0 + $0xec] ss:$16 sps:$4 sm:$0xff]   ;;  %v2381_v63 = vld [vmem:[%s3400_s0 + $0xe0] ss:$16 sps:$4 sm:$0xff]  }
  0x16   :  { %1057 = vmatpush1.bf16.msra.mxu0 %v2313_v11  ;;  %v2383_v1 = vld [vmem:[%s3400_s0 + $0x104] ss:$16 sps:$4 sm:$0xff]   ;;  %v2385_v2 = vld [vmem:[%s3400_s0 + $0x10c] ss:$16 sps:$4 sm:$0xff]   ;;  %v2387_v3 = vld [vmem:[%s3400_s0 + $0x100] ss:$16 sps:$4 sm:$0xff]  }
  0x17   :  { %1346 = vmatpush1.bf16.msra.mxu1 %v2314_v12  ;;  %1058 = vmatprep.subr.bf16.mxu0 %v2524_v0  ;;  %v2388_v4 = vld [vmem:[%s3400_s0 + $0x108] ss:$16 sps:$4 sm:$0xff]   ;;  %v2389_v5 = vld [vmem:[%s3400_s0 + $0x124] ss:$16 sps:$4 sm:$0xff]   ;;  %v2391_v6 = vld [vmem:[%s3400_s0 + $0x12c] ss:$16 sps:$4 sm:$0xff]  }
  0x18   :  { %1347 = vmatprep.subr.bf16.mxu1 %v2524_v0  ;;  %v2393_v7 = vld [vmem:[%s3400_s0 + $0x120] ss:$16 sps:$4 sm:$0xff]   ;;  %v2394_v8 = vld [vmem:[%s3400_s0 + $0x128] ss:$16 sps:$4 sm:$0xff]   ;;  %v2395_v9 = vld [vmem:[%s3400_s0 + $0x144] ss:$16 sps:$4 sm:$0xff]  }
  0x19   :  { %v2397_v10 = vld [vmem:[%s3400_s0 + $0x14c] ss:$16 sps:$4 sm:$0xff]   ;;  %v2399_v11 = vld [vmem:[%s3400_s0 + $0x140] ss:$16 sps:$4 sm:$0xff]   ;;  %v2400_v12 = vld [vmem:[%s3400_s0 + $0x148] ss:$16 sps:$4 sm:$0xff]  }
  0x1a   :  { %1059 = vmatpush1.bf16.msra.mxu0 %v2315_v13  ;;  %v2401_v13 = vld [vmem:[%s3400_s0 + $0x164] ss:$16 sps:$4 sm:$0xff]   ;;  %v2411_v19 = vld [vmem:[%s3400_s0 + $0x180] ss:$16 sps:$4 sm:$0xff]  }
  0x1b   :  { %1348 = vmatpush1.bf16.msra.mxu1 %v2316_v14  ;;  %1060 = vmatprep.subr.bf16.mxu0 %v2524_v0  ;;  %v2403_v14 = vld [vmem:[%s3400_s0 + $0x16c] ss:$16 sps:$4 sm:$0xff]   ;;  %v2413_v21 = vld [vmem:[%s3400_s0 + $0x1a4] ss:$16 sps:$4 sm:$0xff]  }
  0x1c   :  { %1349 = vmatprep.subr.bf16.mxu1 %v2524_v0 }
  0x1e   :  { %1061 = vmatpush1.bf16.msra.mxu0 %v2317_v15  ;;  %v2405_v15 = vld [vmem:[%s3400_s0 + $0x160] ss:$16 sps:$4 sm:$0xff]  }
  0x1f   :  { %1350 = vmatpush1.bf16.msra.mxu1 %v2318_v16  ;;  %1062 = vmatprep.subr.bf16.mxu0 %v2524_v0  ;;  %v2406_v16 = vld [vmem:[%s3400_s0 + $0x168] ss:$16 sps:$4 sm:$0xff]  }
  0x20   :  { %1351 = vmatprep.subr.bf16.mxu1 %v2524_v0 }
  0x22   :  { %1063 = vmatpush2.bf16.msra.mxu0 %v2319_v17  ;;  %v2407_v17 = vld [vmem:[%s3400_s0 + $0x184] ss:$16 sps:$4 sm:$0xff]  }
  0x23   :  { %1352 = vmatpush2.bf16.msra.mxu1 %v2320_v18  ;;  %1064 = vmatprep.subr.bf16.mxu0 %v2524_v0  ;;  %v2409_v18 = vld [vmem:[%s3400_s0 + $0x18c] ss:$16 sps:$4 sm:$0xff]  }
  0x24   :  { %1353 = vmatprep.subr.bf16.mxu1 %v2524_v0 }
  0x26   :  { %1065 = vmatpush2.bf16.msra.mxu0 %v2321_v20  ;;  %v2412_v20 = vld [vmem:[%s3400_s0 + $0x188] ss:$16 sps:$4 sm:$0xff]  }
  0x27   :  { %1354 = vmatpush2.bf16.msra.mxu1 %v2322_v22  ;;  %1066 = vmatprep.subr.bf16.mxu0 %v2524_v0  ;;  %v2415_v22 = vld [vmem:[%s3400_s0 + $0x1ac] ss:$16 sps:$4 sm:$0xff]  }
  0x28   :  { %1355 = vmatprep.subr.bf16.mxu1 %v2524_v0 }
  0x2a   :  { %1067 = vmatpush2.bf16.msra.mxu0 %v2323_v23  ;;  %v2417_v23 = vld [vmem:[%s3400_s0 + $0x1a0] ss:$16 sps:$4 sm:$0xff]  }
  0x2b   :  { %1356 = vmatpush2.bf16.msra.mxu1 %v2324_v24  ;;  %1068 = vmatprep.subr.bf16.mxu0 %v2524_v0  ;;  %v2418_v24 = vld [vmem:[%s3400_s0 + $0x1a8] ss:$16 sps:$4 sm:$0xff]  }
  0x2c   :  { %1357 = vmatprep.subr.bf16.mxu1 %v2524_v0 }
  0x2e   :  { %1069 = vmatpush2.bf16.msra.mxu0 %v2325_v25  ;;  %v2419_v25 = vld [vmem:[%s3400_s0 + $0x1c4] ss:$16 sps:$4 sm:$0xff]  }
  0x2f   :  { %1358 = vmatpush2.bf16.msra.mxu1 %v2326_v26  ;;  %1070 = vmatprep.subr.bf16.mxu0 %v2524_v0  ;;  %v2421_v26 = vld [vmem:[%s3400_s0 + $0x1cc] ss:$16 sps:$4 sm:$0xff]  }
  0x30   :  { %1359 = vmatprep.subr.bf16.mxu1 %v2524_v0 }
  0x32   :  { %1071 = vmatpush2.bf16.msra.mxu0 %v2327_v27  ;;  %v2423_v27 = vld [vmem:[%s3400_s0 + $0x1c0] ss:$16 sps:$4 sm:$0xff]  }
  0x33   :  { %1360 = vmatpush2.bf16.msra.mxu1 %v2328_v28  ;;  %1072 = vmatprep.subr.bf16.mxu0 %v2524_v0  ;;  %v2424_v28 = vld [vmem:[%s3400_s0 + $0x1c8] ss:$16 sps:$4 sm:$0xff]  }
  0x34   :  { %1361 = vmatprep.subr.bf16.mxu1 %v2524_v0 }
  0x36   :  { %1073 = vmatpush2.bf16.msra.mxu0 %v2329_v29  ;;  %v2425_v29 = vld [vmem:[%s3400_s0 + $0x1e4] ss:$16 sps:$4 sm:$0xff]  }
  0x37   :  { %1362 = vmatpush2.bf16.msra.mxu1 %v2330_v30  ;;  %1074 = vmatprep.subr.bf16.mxu0 %v2524_v0  ;;  %v2427_v30 = vld [vmem:[%s3400_s0 + $0x1ec] ss:$16 sps:$4 sm:$0xff]  }
  0x38   :  { %1363 = vmatprep.subr.bf16.mxu1 %v2524_v0 }
  0x3a   :  { %1075 = vmatpush2.bf16.msra.mxu0 %v2331_v31  ;;  %v2429_v31 = vld [vmem:[%s3400_s0 + $0x1e0] ss:$16 sps:$4 sm:$0xff]  }
  0x3b   :  { %1364 = vmatpush2.bf16.msra.mxu1 %v2332_v32  ;;  %1076 = vmatprep.subr.bf16.mxu0 %v2524_v0  ;;  %v2430_v32 = vld [vmem:[%s3400_s0 + $0x1e8] ss:$16 sps:$4 sm:$0xff]  }
  0x3c   :  { %1365 = vmatprep.subr.bf16.mxu1 %v2524_v0  ;;  %v2382_v0 = vld [vmem:[%s3400_s0 + $0xe8] ss:$16 sps:$4 sm:$0xff]  }
  0x3e   :  { %1077 = vmatpush2.bf16.msra.mxu0 %v2333_v33  ;;  %v2431_v33 = vld [vmem:[%s3400_s0 + $0x204] ss:$16 sps:$4 sm:$0xff]  }
  0x3f   :  { %1366 = vmatpush2.bf16.msra.mxu1 %v2334_v34  ;;  %v2433_v34 = vld [vmem:[%s3400_s0 + $0x20c] ss:$16 sps:$4 sm:$0xff]  }
  0x41   :  { %1079 = vmatmul.mubr.bf16.vlgmr.msra.gmra.mxu0 %v2335_v35  ;;  %v2435_v35 = vld [vmem:[%s3400_s0 + $0x200] ss:$16 sps:$4 sm:$0xff]  }
  0x42   :  { %1368 = vmatmul.mubr.bf16.vlgmr.msra.gmra.mxu1 %v2338_v36  ;;  %1086 = vmatprep.mubr.bf16.mxu0 %v2341_v37  ;;  %v2436_v36 = vld [vmem:[%s3400_s0 + $0x208] ss:$16 sps:$4 sm:$0xff]   ;;  %v2437_v37 = vld [vmem:[%s3400_s0 + $0x224] ss:$16 sps:$4 sm:$0xff]  }
  0x43   :  { %1375 = vmatprep.mubr.bf16.mxu1 %v2343_v38  ;;  %v2439_v38 = vld [vmem:[%s3400_s0 + $0x22c] ss:$16 sps:$4 sm:$0xff]  }
  0x49   :  { %1087 = vmatmul.mubr.bf16.gmra.mxu0 %v2345_v39  ;;  %v2441_v39 = vld [vmem:[%s3400_s0 + $0x220] ss:$16 sps:$4 sm:$0xff]  }
  0x4a   :  { %1376 = vmatmul.mubr.bf16.gmra.mxu1 %v2346_v40  ;;  %1094 = vmatprep.mubr.bf16.mxu0 %v2347_v41  ;;  %v2442_v40 = vld [vmem:[%s3400_s0 + $0x228] ss:$16 sps:$4 sm:$0xff]   ;;  %v2443_v41 = vld [vmem:[%s3400_s0 + $0x244] ss:$16 sps:$4 sm:$0xff]  }
  0x4b   :  { %1383 = vmatprep.mubr.bf16.mxu1 %v2349_v42  ;;  %v2445_v42 = vld [vmem:[%s3400_s0 + $0x24c] ss:$16 sps:$4 sm:$0xff]  }
  0x51   :  { %1095 = vmatmul.mubr.bf16.gmra.mxu0 %v2351_v43  ;;  %v2447_v43 = vld [vmem:[%s3400_s0 + $0x240] ss:$16 sps:$4 sm:$0xff]  }
  0x52   :  { %1384 = vmatmul.mubr.bf16.gmra.mxu1 %v2352_v44  ;;  %1102 = vmatprep.mubr.bf16.mxu0 %v2353_v45  ;;  %v2448_v44 = vld [vmem:[%s3400_s0 + $0x248] ss:$16 sps:$4 sm:$0xff]   ;;  %v2449_v45 = vld [vmem:[%s3400_s0 + $0x264] ss:$16 sps:$4 sm:$0xff]  }
  0x53   :  { %1391 = vmatprep.mubr.bf16.mxu1 %v2355_v46  ;;  %v2451_v46 = vld [vmem:[%s3400_s0 + $0x26c] ss:$16 sps:$4 sm:$0xff]  }
  0x59   :  { %1103 = vmatmul.mubr.bf16.gmra.mxu0 %v2357_v47  ;;  %v2453_v47 = vld [vmem:[%s3400_s0 + $0x260] ss:$16 sps:$4 sm:$0xff]  }
  0x5a   :  { %1392 = vmatmul.mubr.bf16.gmra.mxu1 %v2358_v48  ;;  %1110 = vmatprep.mubr.bf16.mxu0 %v2359_v49  ;;  %v2454_v48 = vld [vmem:[%s3400_s0 + $0x268] ss:$16 sps:$4 sm:$0xff]   ;;  %v2455_v49 = vld [vmem:[%s3400_s0 + $0x284] ss:$16 sps:$4 sm:$0xff]  }
  0x5b   :  { %1399 = vmatprep.mubr.bf16.mxu1 %v2361_v50  ;;  %v2457_v50 = vld [vmem:[%s3400_s0 + $0x28c] ss:$16 sps:$4 sm:$0xff]  }
  0x61   :  { %1111 = vmatmul.mubr.bf16.gmra.mxu0 %v2363_v51  ;;  %v2459_v51 = vld [vmem:[%s3400_s0 + $0x280] ss:$16 sps:$4 sm:$0xff]  }
  0x62   :  { %1400 = vmatmul.mubr.bf16.gmra.mxu1 %v2364_v52  ;;  %1118 = vmatprep.mubr.bf16.mxu0 %v2365_v53  ;;  %v2460_v52 = vld [vmem:[%s3400_s0 + $0x288] ss:$16 sps:$4 sm:$0xff]   ;;  %v2461_v53 = vld [vmem:[%s3400_s0 + $0x2a4] ss:$16 sps:$4 sm:$0xff]  }
  0x63   :  { %1407 = vmatprep.mubr.bf16.mxu1 %v2367_v54  ;;  %v2463_v54 = vld [vmem:[%s3400_s0 + $0x2ac] ss:$16 sps:$4 sm:$0xff]  }
  0x69   :  { %1119 = vmatmul.mubr.bf16.gmra.mxu0 %v2369_v55  ;;  %v2465_v55 = vld [vmem:[%s3400_s0 + $0x2a0] ss:$16 sps:$4 sm:$0xff]  }
  0x6a   :  { %1408 = vmatmul.mubr.bf16.gmra.mxu1 %v2370_v56  ;;  %1126 = vmatprep.mubr.bf16.mxu0 %v2371_v57  ;;  %v2466_v56 = vld [vmem:[%s3400_s0 + $0x2a8] ss:$16 sps:$4 sm:$0xff]   ;;  %v2467_v57 = vld [vmem:[%s3400_s0 + $0x2c4] ss:$16 sps:$4 sm:$0xff]  }
  0x6b   :  { %1415 = vmatprep.mubr.bf16.mxu1 %v2373_v58  ;;  %v2469_v58 = vld [vmem:[%s3400_s0 + $0x2cc] ss:$16 sps:$4 sm:$0xff]  }
  0x71   :  { %1127 = vmatmul.mubr.bf16.gmra.mxu0 %v2375_v59  ;;  %v2471_v59 = vld [vmem:[%s3400_s0 + $0x2c0] ss:$16 sps:$4 sm:$0xff]  }
  0x72   :  { %1416 = vmatmul.mubr.bf16.gmra.mxu1 %v2376_v60  ;;  %1134 = vmatprep.mubr.bf16.mxu0 %v2377_v61  ;;  %v2472_v60 = vld [vmem:[%s3400_s0 + $0x2c8] ss:$16 sps:$4 sm:$0xff]   ;;  %v2473_v61 = vld [vmem:[%s3400_s0 + $0x2e4] ss:$16 sps:$4 sm:$0xff]  }
  0x73   :  { %1423 = vmatprep.mubr.bf16.mxu1 %v2379_v62  ;;  %v2475_v62 = vld [vmem:[%s3400_s0 + $0x2ec] ss:$16 sps:$4 sm:$0xff]  }
  0x79   :  { %1135 = vmatmul.mubr.bf16.gmra.mxu0 %v2381_v63  ;;  %v2477_v63 = vld [vmem:[%s3400_s0 + $0x2e0] ss:$16 sps:$4 sm:$0xff]  }
  0x7a   :  { %1424 = vmatmul.mubr.bf16.gmra.mxu1 %v2382_v0  ;;  %1142 = vmatprep.mubr.bf16.mxu0 %v2383_v1  ;;  %v2478_v0 = vld [vmem:[%s3400_s0 + $0x2e8] ss:$16 sps:$4 sm:$0xff]   ;;  %v2479_v1 = vld [vmem:[%s3400_s0 + $0x304] ss:$16 sps:$4 sm:$0xff]  }
  0x7b   :  { %1431 = vmatprep.mubr.bf16.mxu1 %v2385_v2  ;;  %v2481_v2 = vld [vmem:[%s3400_s0 + $0x30c] ss:$16 sps:$4 sm:$0xff]  }
  0x81   :  { %1143 = vmatmul.mubr.bf16.gmra.mxu0 %v2387_v3  ;;  %v112_v3 = vld [vmem:[%s3400_s0 + $0x308] sm:$0xff] }
  0x82   :  { %1432 = vmatmul.mubr.bf16.gmra.mxu1 %v2388_v4  ;;  %1150 = vmatprep.mubr.bf16.mxu0 %v2389_v5  ;;  %v114_v4 = vld [vmem:[%s3400_s0 + $0x318] sm:$0xff]  ;;  %v2483_v5 = vld [vmem:[%s3400_s0 + $0x300] ss:$16 sps:$4 sm:$0xff]  }
  0x83   :  { %1439 = vmatprep.mubr.bf16.mxu1 %v2391_v6  ;;  %v2112_v6 = vcombine.low %v112_v3, %v114_v4  ;;  %v2501_v4 = vld [vmem:[%s3400_s0 + $0x384] ss:$16 sps:$4 sm:$0xff]  }
  0x89   :  { %1151 = vmatmul.mubr.bf16.gmra.mxu0 %v2393_v7  ;;  %v2484_v7 = vld [vmem:[%s3400_s0 + $0x324] ss:$16 sps:$4 sm:$0xff]  }
  0x8a   :  { %1440 = vmatmul.mubr.bf16.gmra.mxu1 %v2394_v8  ;;  %1158 = vmatprep.mubr.bf16.mxu0 %v2395_v9  ;;  %v2982_v8 = vld [vmem:[%s3401_s2] ss:$0 sm:$0xff]  ;;  %v2486_v9 = vld [vmem:[%s3400_s0 + $0x32c] ss:$16 sps:$4 sm:$0xff]  }
  0x8b   :  { %1447 = vmatprep.mubr.bf16.mxu1 %v2397_v10 }
  0x91   :  { %1159 = vmatmul.mubr.bf16.gmra.mxu0 %v2399_v11 }
  0x92   :  { %1448 = vmatmul.mubr.bf16.gmra.mxu1 %v2400_v12  ;;  %1166 = vmatprep.mubr.bf16.mxu0 %v2401_v13 }
  0x93   :  { %1455 = vmatprep.mubr.bf16.mxu1 %v2403_v14  ;;  %v116_v14 = vld [vmem:[%s3400_s0 + $0x328] sm:$0xff] }
  0x99   :  { %1167 = vmatmul.mubr.bf16.gmra.mxu0 %v2405_v15  ;;  %v118_v15 = vld [vmem:[%s3400_s0 + $0x338] sm:$0xff] }
  0x9a   :  { %1456 = vmatmul.mubr.bf16.gmra.mxu1 %v2406_v16  ;;  %1174 = vmatprep.mubr.bf16.mxu0 %v2407_v17 }
  0x9b   :  { %1463 = vmatprep.mubr.bf16.mxu1 %v2409_v18 }
  0xa1   :  { %1175 = vmatmul.mubr.bf16.gmra.mxu0 %v2411_v19  ;;  %v2488_v19 = vld [vmem:[%s3400_s0 + $0x320] ss:$16 sps:$4 sm:$0xff]  }
  0xa2   :  { %1464 = vmatmul.mubr.bf16.gmra.mxu1 %v2412_v20  ;;  %1182 = vmatprep.mubr.bf16.mxu0 %v2413_v21 }
  0xa3   :  { %1471 = vmatprep.mubr.bf16.mxu1 %v2415_v22 }
  0xa9   :  { %1183 = vmatmul.mubr.bf16.gmra.mxu0 %v2417_v23  ;;  %v2116_v23 = vcombine.low %v116_v14, %v118_v15 }
  0xaa   :  { %1472 = vmatmul.mubr.bf16.gmra.mxu1 %v2418_v24  ;;  %1190 = vmatprep.mubr.bf16.mxu0 %v2419_v25  ;;  %v2489_v24 = vld [vmem:[%s3400_s0 + $0x344] ss:$16 sps:$4 sm:$0xff]  }
  0xab   :  { %1479 = vmatprep.mubr.bf16.mxu1 %v2421_v26  ;;  %v2491_v26 = vld [vmem:[%s3400_s0 + $0x34c] ss:$16 sps:$4 sm:$0xff]  }
  0xb1   :  { %1191 = vmatmul.mubr.bf16.gmra.mxu0 %v2423_v27 }
  0xb2   :  { %1480 = vmatmul.mubr.bf16.gmra.mxu1 %v2424_v28  ;;  %1198 = vmatprep.mubr.bf16.mxu0 %v2425_v29 }
  0xb3   :  { %1487 = vmatprep.mubr.bf16.mxu1 %v2427_v30 }
  0xb9   :  { %1199 = vmatmul.mubr.bf16.gmra.mxu0 %v2429_v31 }
  0xba   :  { %1488 = vmatmul.mubr.bf16.gmra.mxu1 %v2430_v32  ;;  %1206 = vmatprep.mubr.bf16.mxu0 %v2431_v33 }
  0xbb   :  { %1495 = vmatprep.mubr.bf16.mxu1 %v2433_v34 }
  0xc1   :  { %1207 = vmatmul.mubr.bf16.gmra.mxu0 %v2435_v35  ;;  %v120_v35 = vld [vmem:[%s3400_s0 + $0x348] sm:$0xff] }
  0xc2   :  { %1496 = vmatmul.mubr.bf16.gmra.mxu1 %v2436_v36  ;;  %1214 = vmatprep.mubr.bf16.mxu0 %v2437_v37  ;;  %v122_v36 = vld [vmem:[%s3400_s0 + $0x358] sm:$0xff] }
  0xc3   :  { %1503 = vmatprep.mubr.bf16.mxu1 %v2439_v38 }
  0xc9   :  { %1215 = vmatmul.mubr.bf16.gmra.mxu0 %v2441_v39 }
  0xca   :  { %1504 = vmatmul.mubr.bf16.gmra.mxu1 %v2442_v40  ;;  %1222 = vmatprep.mubr.bf16.mxu0 %v2443_v41  ;;  %v2493_v41 = vld [vmem:[%s3400_s0 + $0x340] ss:$16 sps:$4 sm:$0xff]  }
  0xcb   :  { %1511 = vmatprep.mubr.bf16.mxu1 %v2445_v42 }
  0xd1   :  { %1223 = vmatmul.mubr.bf16.gmra.mxu0 %v2447_v43 }
  0xd2   :  { %1512 = vmatmul.mubr.bf16.gmra.mxu1 %v2448_v44  ;;  %1230 = vmatprep.mubr.bf16.mxu0 %v2449_v45  ;;  %v2120_v45 = vcombine.low %v120_v35, %v122_v36 }
  0xd3   :  { %1519 = vmatprep.mubr.bf16.mxu1 %v2451_v46  ;;  %v2494_v46 = vld [vmem:[%s3400_s0 + $0x364] ss:$16 sps:$4 sm:$0xff]  }
  0xd9   :  { %1231 = vmatmul.mubr.bf16.gmra.mxu0 %v2453_v47 }
  0xda   :  { %1520 = vmatmul.mubr.bf16.gmra.mxu1 %v2454_v48  ;;  %1238 = vmatprep.mubr.bf16.mxu0 %v2455_v49  ;;  %v2496_v48 = vld [vmem:[%s3400_s0 + $0x36c] ss:$16 sps:$4 sm:$0xff]  }
  0xdb   :  { %1527 = vmatprep.mubr.bf16.mxu1 %v2457_v50 }
  0xe1   :  { %1239 = vmatmul.mubr.bf16.gmra.mxu0 %v2459_v51 }
  0xe2   :  { %1528 = vmatmul.mubr.bf16.gmra.mxu1 %v2460_v52  ;;  %1246 = vmatprep.mubr.bf16.mxu0 %v2461_v53 }
  0xe3   :  { %1535 = vmatprep.mubr.bf16.mxu1 %v2463_v54 }
  0xe9   :  { %1247 = vmatmul.mubr.bf16.gmra.mxu0 %v2465_v55 }
  0xea   :  { %1536 = vmatmul.mubr.bf16.gmra.mxu1 %v2466_v56  ;;  %1254 = vmatprep.mubr.bf16.mxu0 %v2467_v57  ;;  %v124_v57 = vld [vmem:[%s3400_s0 + $0x368] sm:$0xff] }
  0xeb   :  { %1543 = vmatprep.mubr.bf16.mxu1 %v2469_v58  ;;  %v126_v58 = vld [vmem:[%s3400_s0 + $0x378] sm:$0xff] }
  0xec   :  { %v2124_v3 = vcombine.low %v124_v57, %v126_v58 }
  0xf1   :  { %1255 = vmatmul.mubr.bf16.gmra.mxu0 %v2471_v59 }
  0xf2   :  { %1544 = vmatmul.mubr.bf16.gmra.mxu1 %v2472_v60  ;;  %1262 = vmatprep.mubr.bf16.mxu0 %v2473_v61 }
  0xf3   :  { %1551 = vmatprep.mubr.bf16.mxu1 %v2475_v62 }
  0xf9   :  { %1263 = vmatmul.mubr.bf16.gmra.mxu0 %v2477_v63  ;;  %v2498_v63 = vld [vmem:[%s3400_s0 + $0x360] ss:$16 sps:$4 sm:$0xff]  }
  0xfa   :  { %1552 = vmatmul.mubr.bf16.gmra.mxu1 %v2478_v0  ;;  %1270 = vmatprep.mubr.bf16.mxu0 %v2479_v1 }
  0xfb   :  { %1559 = vmatprep.mubr.bf16.mxu1 %v2481_v2 }
 0x101   :  { %v1080_v10 = vpop.f32.mrf.mxu0  ;;  %1271 = vmatmul.mubr.bf16.gmra.mxu0 %v2483_v5 }
 0x102   :  { %v1081_v11 = vadd.f32 %v2982_v8, %v1080_v10  ;;  %v1369_v12 = vpop.f32.mrf.mxu1  ;;  %1560 = vmatmul.mubr.bf16.gmra.mxu1 %v2112_v6  ;;  %1278 = vmatprep.mubr.bf16.mxu0 %v2484_v7  ;;  %v2504_v6 = vld [vmem:[%s3400_s0 + $0x38c] ss:$16 sps:$4 sm:$0xff]  }
 0x103   :  { %v1082_v13 = vpop.f32.mrf.mxu0  ;;  %1567 = vmatprep.mubr.bf16.mxu1 %v2486_v9 }
 0x104   :  { %v1370_v16 = vadd.f32 %v1369_v12, %v1081_v11  ;;  %v1371_v17 = vpop.f32.mrf.mxu1 }
 0x105   :  { %v1083_v18 = vpop.f32.mrf.mxu0 }
 0x106   :  { %v1624_v20 = vmax.f32 %v1370_v16, 0.0  ;;  %v1084_v21 = vadd.f32 %v2982_v8, %v1083_v18  ;;  %v1372_v22 = vpop.f32.mrf.mxu1 }
 0x107   :  { %v1085_v25 = vpop.f32.mrf.mxu0 }
 0x108   :  { %v2238_v27 = vpack.c.bf16 %v1624_v20, %v1624_v20  ;;  %v1373_v28 = vadd.f32 %v1372_v22, %v1084_v21  ;;  %v1374_v29 = vpop.f32.mrf.mxu1  ;;  %v2499_v20 = vld [vmem:[%s3400_s0 + $0x380] ss:$16 sps:$4 sm:$0xff]   ;;  %v2507_v25 = vld [vmem:[%s3400_s0 + $0x3a4] ss:$16 sps:$4 sm:$0xff]  }
 0x109   :  { %v1088_v30 = vpop.f32.mrf.mxu0  ;;  %1279 = vmatmul.mubr.bf16.gmra.mxu0 %v2488_v19 }
 0x10a   :  { %1945 = vst.msk [vmem:[%s3402_s3] sm:$0xf] %vm1944_vm0, %v2238_v27  ;;  %v1625_v31 = vmax.f32 %v1373_v28, 0.0  ;;  %v1089_v32 = vadd.f32 %v2982_v8, %v1088_v30  ;;  %v1377_v33 = vpop.f32.mrf.mxu1  ;;  %1568 = vmatmul.mubr.bf16.gmra.mxu1 %v2116_v23  ;;  %1286 = vmatprep.mubr.bf16.mxu0 %v2489_v24  ;;  %v2502_v24 = vld [vmem:[%s3400_s0 + $0x388] ss:$16 sps:$4 sm:$0xff]  }
 0x10b   :  { %v1090_v34 = vpop.f32.mrf.mxu0  ;;  %1575 = vmatprep.mubr.bf16.mxu1 %v2491_v26  ;;  %v2510_v27 = vld [vmem:[%s3400_s0 + $0x3ac] ss:$16 sps:$4 sm:$0xff]  }
 0x10c   :  { %v2239_v37 = vpack.c.bf16 %v1625_v31, %v1625_v31  ;;  %v1378_v38 = vadd.f32 %v1377_v33, %v1089_v32  ;;  %v1379_v39 = vpop.f32.mrf.mxu1 }
 0x10d   :  { %v1091_v40 = vpop.f32.mrf.mxu0 }
 0x10e   :  { %1946 = vst.msk [vmem:[%s3402_s3 + $0x4] sm:$0xf] %vm1944_vm0, %v2239_v37  ;;  %v1626_v42 = vmax.f32 %v1378_v38, 0.0  ;;  %v1092_v43 = vadd.f32 %v2982_v8, %v1091_v40  ;;  %v1380_v44 = vpop.f32.mrf.mxu1  ;;  %v2505_v40 = vld [vmem:[%s3400_s0 + $0x3a0] ss:$16 sps:$4 sm:$0xff]  }
 0x10f   :  { %v1093_v47 = vpop.f32.mrf.mxu0 }
 0x110   :  { %v2240_v49 = vpack.c.bf16 %v1626_v42, %v1626_v42  ;;  %v1381_v50 = vadd.f32 %v1380_v44, %v1092_v43  ;;  %v1382_v51 = vpop.f32.mrf.mxu1  ;;  %v2508_v44 = vld [vmem:[%s3400_s0 + $0x3a8] ss:$16 sps:$4 sm:$0xff]   ;;  %v2516_v47 = vld [vmem:[%s3400_s0 + $0x3cc] ss:$16 sps:$4 sm:$0xff]  }
 0x111   :  { %v1096_v52 = vpop.f32.mrf.mxu0  ;;  %1287 = vmatmul.mubr.bf16.gmra.mxu0 %v2493_v41 }
 0x112   :  { %1947 = vst.msk [vmem:[%s3402_s3 + $0x8] sm:$0xf] %vm1944_vm0, %v2240_v49  ;;  %v1627_v53 = vmax.f32 %v1381_v50, 0.0  ;;  %v1097_v54 = vadd.f32 %v2982_v8, %v1096_v52  ;;  %v1385_v55 = vpop.f32.mrf.mxu1  ;;  %1576 = vmatmul.mubr.bf16.gmra.mxu1 %v2120_v45  ;;  %1294 = vmatprep.mubr.bf16.mxu0 %v2494_v46  ;;  %v2513_v45 = vld [vmem:[%s3400_s0 + $0x3c4] ss:$16 sps:$4 sm:$0xff]  }
 0x113   :  { %v1098_v56 = vpop.f32.mrf.mxu0  ;;  %1583 = vmatprep.mubr.bf16.mxu1 %v2496_v48 }
 0x114   :  { %v2241_v59 = vpack.c.bf16 %v1627_v53, %v1627_v53  ;;  %v1386_v60 = vadd.f32 %v1385_v55, %v1097_v54  ;;  %v1387_v61 = vpop.f32.mrf.mxu1 }
 0x115   :  { %v1099_v62 = vpop.f32.mrf.mxu0 }
 0x116   :  { %1948 = vst.msk [vmem:[%s3402_s3 + $0xc] sm:$0xf] %vm1944_vm0, %v2241_v59  ;;  %v1628_v0 = vmax.f32 %v1386_v60, 0.0  ;;  %v1100_v1 = vadd.f32 %v2982_v8, %v1099_v62  ;;  %v1388_v2 = vpop.f32.mrf.mxu1  ;;  %v2511_v60 = vld [vmem:[%s3400_s0 + $0x3c0] ss:$16 sps:$4 sm:$0xff]  }
 0x117   :  { %v1101_v5 = vpop.f32.mrf.mxu0 }
 0x118   :  { %v2242_v7 = vpack.c.bf16 %v1628_v0, %v1628_v0  ;;  %v1389_v9 = vadd.f32 %v1388_v2, %v1100_v1  ;;  %v1390_v10 = vpop.f32.mrf.mxu1  ;;  %v2514_v0 = vld [vmem:[%s3400_s0 + $0x3c8] ss:$16 sps:$4 sm:$0xff]   ;;  %v2519_v1 = vld [vmem:[%s3400_s0 + $0x3e4] ss:$16 sps:$4 sm:$0xff]  }
 0x119   :  { %v1104_v11 = vpop.f32.mrf.mxu0  ;;  %1295 = vmatmul.mubr.bf16.gmra.mxu0 %v2498_v63 }
 0x11a   :  { %1949 = vst.msk [vmem:[%s3402_s3 + $0x10] sm:$0xf] %vm1944_vm0, %v2242_v7  ;;  %v1629_v12 = vmax.f32 %v1389_v9, 0.0  ;;  %v1105_v13 = vadd.f32 %v2982_v8, %v1104_v11  ;;  %v1393_v14 = vpop.f32.mrf.mxu1  ;;  %1584 = vmatmul.mubr.bf16.gmra.mxu1 %v2124_v3  ;;  %1302 = vmatprep.mubr.bf16.mxu0 %v2501_v4  ;;  %v2522_v3 = vld [vmem:[%s3400_s0 + $0x3ec] ss:$16 sps:$4 sm:$0xff]  }
 0x11b   :  { %v1106_v15 = vpop.f32.mrf.mxu0  ;;  %1591 = vmatprep.mubr.bf16.mxu1 %v2504_v6 }
 0x11c   :  { %v2243_v16 = vpack.c.bf16 %v1629_v12, %v1629_v12  ;;  %v1394_v17 = vadd.f32 %v1393_v14, %v1105_v13  ;;  %v1395_v18 = vpop.f32.mrf.mxu1 }
 0x11d   :  { %v1107_v19 = vpop.f32.mrf.mxu0 }
 0x11e   :  { %1950 = vst.msk [vmem:[%s3402_s3 + $0x14] sm:$0xf] %vm1944_vm0, %v2243_v16  ;;  %v1630_v21 = vmax.f32 %v1394_v17, 0.0  ;;  %v1108_v22 = vadd.f32 %v2982_v8, %v1107_v19  ;;  %v1396_v23 = vpop.f32.mrf.mxu1  ;;  %v2517_v17 = vld [vmem:[%s3400_s0 + $0x3e0] ss:$16 sps:$4 sm:$0xff]  }
 0x11f   :  { %v1109_v26 = vpop.f32.mrf.mxu0 }
 0x120   :  { %v2244_v28 = vpack.c.bf16 %v1630_v21, %v1630_v21  ;;  %v1397_v29 = vadd.f32 %v1396_v23, %v1108_v22  ;;  %v1398_v30 = vpop.f32.mrf.mxu1  ;;  %v2520_v21 = vld [vmem:[%s3400_s0 + $0x3e8] ss:$16 sps:$4 sm:$0xff]  }
 0x121   :  { %v1112_v31 = vpop.f32.mrf.mxu0  ;;  %1303 = vmatmul.mubr.bf16.gmra.mxu0 %v2499_v20 }
 0x122   :  { %1951 = vst.msk [vmem:[%s3402_s3 + $0x18] sm:$0xf] %vm1944_vm0, %v2244_v28  ;;  %v1631_v32 = vmax.f32 %v1397_v29, 0.0  ;;  %v1113_v33 = vadd.f32 %v2982_v8, %v1112_v31  ;;  %v1401_v34 = vpop.f32.mrf.mxu1  ;;  %1592 = vmatmul.mubr.bf16.gmra.mxu1 %v2502_v24  ;;  %1310 = vmatprep.mubr.bf16.mxu0 %v2507_v25 }
 0x123   :  { %v1114_v35 = vpop.f32.mrf.mxu0  ;;  %1599 = vmatprep.mubr.bf16.mxu1 %v2510_v27 }
 0x124   :  { %v2245_v36 = vpack.c.bf16 %v1631_v32, %v1631_v32  ;;  %v1402_v37 = vadd.f32 %v1401_v34, %v1113_v33  ;;  %v1403_v38 = vpop.f32.mrf.mxu1 }
 0x125   :  { %v1115_v39 = vpop.f32.mrf.mxu0 }
 0x126   :  { %1952 = vst.msk [vmem:[%s3402_s3 + $0x1c] sm:$0xf] %vm1944_vm0, %v2245_v36  ;;  %v1632_v41 = vmax.f32 %v1402_v37, 0.0  ;;  %v1116_v42 = vadd.f32 %v2982_v8, %v1115_v39  ;;  %v1404_v43 = vpop.f32.mrf.mxu1 }
 0x127   :  { %v1117_v46 = vpop.f32.mrf.mxu0 }
 0x128   :  { %v2246_v48 = vpack.c.bf16 %v1632_v41, %v1632_v41  ;;  %v1405_v49 = vadd.f32 %v1404_v43, %v1116_v42  ;;  %v1406_v50 = vpop.f32.mrf.mxu1 }
 0x129   :  { %v1120_v51 = vpop.f32.mrf.mxu0  ;;  %1311 = vmatmul.mubr.bf16.gmra.mxu0 %v2505_v40 }
 0x12a   :  { %1953 = vst.msk [vmem:[%s3402_s3 + $0x20] sm:$0xf] %vm1944_vm0, %v2246_v48  ;;  %v1633_v52 = vmax.f32 %v1405_v49, 0.0  ;;  %v1121_v53 = vadd.f32 %v2982_v8, %v1120_v51  ;;  %v1409_v54 = vpop.f32.mrf.mxu1  ;;  %1600 = vmatmul.mubr.bf16.gmra.mxu1 %v2508_v44  ;;  %1318 = vmatprep.mubr.bf16.mxu0 %v2513_v45 }
 0x12b   :  { %v1122_v55 = vpop.f32.mrf.mxu0  ;;  %1607 = vmatprep.mubr.bf16.mxu1 %v2516_v47 }
 0x12c   :  { %v2247_v56 = vpack.c.bf16 %v1633_v52, %v1633_v52  ;;  %v1410_v57 = vadd.f32 %v1409_v54, %v1121_v53  ;;  %v1411_v58 = vpop.f32.mrf.mxu1 }
 0x12d   :  { %v1123_v59 = vpop.f32.mrf.mxu0 }
 0x12e   :  { %1954 = vst.msk [vmem:[%s3402_s3 + $0x24] sm:$0xf] %vm1944_vm0, %v2247_v56  ;;  %v1634_v61 = vmax.f32 %v1410_v57, 0.0  ;;  %v1124_v62 = vadd.f32 %v2982_v8, %v1123_v59  ;;  %v1412_v63 = vpop.f32.mrf.mxu1 }
 0x12f   :  { %v1125_v2 = vpop.f32.mrf.mxu0 }
 0x130   :  { %v2248_v4 = vpack.c.bf16 %v1634_v61, %v1634_v61  ;;  %v1413_v5 = vadd.f32 %v1412_v63, %v1124_v62  ;;  %v1414_v6 = vpop.f32.mrf.mxu1 }
 0x131   :  { %v1128_v7 = vpop.f32.mrf.mxu0  ;;  %1319 = vmatmul.mubr.bf16.gmra.mxu0 %v2511_v60 }
 0x132   :  { %1955 = vst.msk [vmem:[%s3402_s3 + $0x28] sm:$0xf] %vm1944_vm0, %v2248_v4  ;;  %v1635_v9 = vmax.f32 %v1413_v5, 0.0  ;;  %v1129_v10 = vadd.f32 %v2982_v8, %v1128_v7  ;;  %v1417_v11 = vpop.f32.mrf.mxu1  ;;  %1608 = vmatmul.mubr.bf16.gmra.mxu1 %v2514_v0  ;;  %1326 = vmatprep.mubr.bf16.mxu0 %v2519_v1 }
 0x133   :  { %v1130_v12 = vpop.f32.mrf.mxu0  ;;  %1615 = vmatprep.mubr.bf16.mxu1 %v2522_v3 }
 0x134   :  { %v2249_v13 = vpack.c.bf16 %v1635_v9, %v1635_v9  ;;  %v1418_v14 = vadd.f32 %v1417_v11, %v1129_v10  ;;  %v1419_v15 = vpop.f32.mrf.mxu1 }
 0x135   :  { %v1131_v16 = vpop.f32.mrf.mxu0 }
 0x136   :  { %1956 = vst.msk [vmem:[%s3402_s3 + $0x2c] sm:$0xf] %vm1944_vm0, %v2249_v13  ;;  %v1636_v18 = vmax.f32 %v1418_v14, 0.0  ;;  %v1132_v19 = vadd.f32 %v2982_v8, %v1131_v16  ;;  %v1420_v20 = vpop.f32.mrf.mxu1 }
 0x137   :  { %v1133_v22 = vpop.f32.mrf.mxu0 }
 0x138   :  { %v2250_v23 = vpack.c.bf16 %v1636_v18, %v1636_v18  ;;  %v1421_v24 = vadd.f32 %v1420_v20, %v1132_v19  ;;  %v1422_v25 = vpop.f32.mrf.mxu1 }
 0x139   :  { %v1136_v26 = vpop.f32.mrf.mxu0  ;;  %1327 = vmatmul.mubr.bf16.gmra.mxu0 %v2517_v17 }
 0x13a   :  { %1957 = vst.msk [vmem:[%s3402_s3 + $0x30] sm:$0xf] %vm1944_vm0, %v2250_v23  ;;  %v1637_v27 = vmax.f32 %v1421_v24, 0.0  ;;  %v1137_v28 = vadd.f32 %v2982_v8, %v1136_v26  ;;  %v1425_v29 = vpop.f32.mrf.mxu1  ;;  %1616 = vmatmul.mubr.bf16.gmra.mxu1 %v2520_v21 }
 0x13b   :  { %v1138_v30 = vpop.f32.mrf.mxu0 }
 0x13c   :  { %v2251_v31 = vpack.c.bf16 %v1637_v27, %v1637_v27  ;;  %v1426_v32 = vadd.f32 %v1425_v29, %v1137_v28  ;;  %v1427_v33 = vpop.f32.mrf.mxu1 }
 0x13d   :  { %v1139_v34 = vpop.f32.mrf.mxu0 }
 0x13e   :  { %1958 = vst.msk [vmem:[%s3402_s3 + $0x34] sm:$0xf] %vm1944_vm0, %v2251_v31  ;;  %v1638_v35 = vmax.f32 %v1426_v32, 0.0  ;;  %v1140_v36 = vadd.f32 %v2982_v8, %v1139_v34  ;;  %v1428_v37 = vpop.f32.mrf.mxu1 }
 0x13f   :  { %v1141_v38 = vpop.f32.mrf.mxu0 }
 0x140   :  { %v2252_v39 = vpack.c.bf16 %v1638_v35, %v1638_v35  ;;  %v1429_v40 = vadd.f32 %v1428_v37, %v1140_v36  ;;  %v1430_v41 = vpop.f32.mrf.mxu1 }
 0x141   :  { %v1144_v42 = vpop.f32.mrf.mxu0 }
 0x142   :  { %1959 = vst.msk [vmem:[%s3402_s3 + $0x38] sm:$0xf] %vm1944_vm0, %v2252_v39  ;;  %v1639_v43 = vmax.f32 %v1429_v40, 0.0  ;;  %v1145_v44 = vadd.f32 %v2982_v8, %v1144_v42  ;;  %v1433_v45 = vpop.f32.mrf.mxu1 }
 0x143   :  { %v1146_v46 = vpop.f32.mrf.mxu0 }
 0x144   :  { %v2253_v47 = vpack.c.bf16 %v1639_v43, %v1639_v43  ;;  %v1434_v48 = vadd.f32 %v1433_v45, %v1145_v44  ;;  %v1435_v49 = vpop.f32.mrf.mxu1 }
 0x145   :  { %v1147_v50 = vpop.f32.mrf.mxu0 }
 0x146   :  { %1960 = vst.msk [vmem:[%s3402_s3 + $0x3c] sm:$0xf] %vm1944_vm0, %v2253_v47  ;;  %v1640_v51 = vmax.f32 %v1434_v48, 0.0  ;;  %v1148_v52 = vadd.f32 %v2982_v8, %v1147_v50  ;;  %v1436_v53 = vpop.f32.mrf.mxu1 }
 0x147   :  { %v1149_v54 = vpop.f32.mrf.mxu0 }
 0x148   :  { %v2254_v55 = vpack.c.bf16 %v1640_v51, %v1640_v51  ;;  %v1437_v56 = vadd.f32 %v1436_v53, %v1148_v52  ;;  %v1438_v57 = vpop.f32.mrf.mxu1 }
 0x149   :  { %v1152_v58 = vpop.f32.mrf.mxu0 }
 0x14a   :  { %1961 = vst.msk [vmem:[%s3402_s3 + $0x40] sm:$0xf] %vm1944_vm0, %v2254_v55  ;;  %v1641_v59 = vmax.f32 %v1437_v56, 0.0  ;;  %v1153_v60 = vadd.f32 %v2982_v8, %v1152_v58  ;;  %v1441_v61 = vpop.f32.mrf.mxu1 }
 0x14b   :  { %v1154_v62 = vpop.f32.mrf.mxu0 }
 0x14c   :  { %v2255_v63 = vpack.c.bf16 %v1641_v59, %v1641_v59  ;;  %v1442_v0 = vadd.f32 %v1441_v61, %v1153_v60  ;;  %v1443_v1 = vpop.f32.mrf.mxu1 }
 0x14d   :  { %v1155_v2 = vpop.f32.mrf.mxu0 }
 0x14e   :  { %1962 = vst.msk [vmem:[%s3402_s3 + $0x44] sm:$0xf] %vm1944_vm0, %v2255_v63  ;;  %v1642_v3 = vmax.f32 %v1442_v0, 0.0  ;;  %v1156_v4 = vadd.f32 %v2982_v8, %v1155_v2  ;;  %v1444_v5 = vpop.f32.mrf.mxu1 }
 0x14f   :  { %v1157_v6 = vpop.f32.mrf.mxu0 }
 0x150   :  { %v2256_v7 = vpack.c.bf16 %v1642_v3, %v1642_v3  ;;  %v1445_v9 = vadd.f32 %v1444_v5, %v1156_v4  ;;  %v1446_v10 = vpop.f32.mrf.mxu1 }
 0x151   :  { %v1160_v11 = vpop.f32.mrf.mxu0 }
 0x152   :  { %1963 = vst.msk [vmem:[%s3402_s3 + $0x48] sm:$0xf] %vm1944_vm0, %v2256_v7  ;;  %v1643_v12 = vmax.f32 %v1445_v9, 0.0  ;;  %v1161_v13 = vadd.f32 %v2982_v8, %v1160_v11  ;;  %v1449_v14 = vpop.f32.mrf.mxu1 }
 0x153   :  { %v1162_v15 = vpop.f32.mrf.mxu0 }
 0x154   :  { %v2257_v16 = vpack.c.bf16 %v1643_v12, %v1643_v12  ;;  %v1450_v17 = vadd.f32 %v1449_v14, %v1161_v13  ;;  %v1451_v18 = vpop.f32.mrf.mxu1 }
 0x155   :  { %v1163_v19 = vpop.f32.mrf.mxu0 }
 0x156   :  { %1964 = vst.msk [vmem:[%s3402_s3 + $0x4c] sm:$0xf] %vm1944_vm0, %v2257_v16  ;;  %v1644_v20 = vmax.f32 %v1450_v17, 0.0  ;;  %v1164_v21 = vadd.f32 %v2982_v8, %v1163_v19  ;;  %v1452_v22 = vpop.f32.mrf.mxu1 }
 0x157   :  { %v1165_v23 = vpop.f32.mrf.mxu0 }
 0x158   :  { %v2258_v24 = vpack.c.bf16 %v1644_v20, %v1644_v20  ;;  %v1453_v25 = vadd.f32 %v1452_v22, %v1164_v21  ;;  %v1454_v26 = vpop.f32.mrf.mxu1 }
 0x159   :  { %v1168_v27 = vpop.f32.mrf.mxu0 }
 0x15a   :  { %1965 = vst.msk [vmem:[%s3402_s3 + $0x50] sm:$0xf] %vm1944_vm0, %v2258_v24  ;;  %v1645_v28 = vmax.f32 %v1453_v25, 0.0  ;;  %v1169_v29 = vadd.f32 %v2982_v8, %v1168_v27  ;;  %v1457_v30 = vpop.f32.mrf.mxu1 }
 0x15b   :  { %v1170_v31 = vpop.f32.mrf.mxu0 }
 0x15c   :  { %v2259_v32 = vpack.c.bf16 %v1645_v28, %v1645_v28  ;;  %v1458_v33 = vadd.f32 %v1457_v30, %v1169_v29  ;;  %v1459_v34 = vpop.f32.mrf.mxu1 }
 0x15d   :  { %v1171_v35 = vpop.f32.mrf.mxu0 }
 0x15e   :  { %1966 = vst.msk [vmem:[%s3402_s3 + $0x54] sm:$0xf] %vm1944_vm0, %v2259_v32  ;;  %v1646_v36 = vmax.f32 %v1458_v33, 0.0  ;;  %v1172_v37 = vadd.f32 %v2982_v8, %v1171_v35  ;;  %v1460_v38 = vpop.f32.mrf.mxu1 }
 0x15f   :  { %v1173_v39 = vpop.f32.mrf.mxu0 }
 0x160   :  { %v2260_v40 = vpack.c.bf16 %v1646_v36, %v1646_v36  ;;  %v1461_v41 = vadd.f32 %v1460_v38, %v1172_v37  ;;  %v1462_v42 = vpop.f32.mrf.mxu1 }
 0x161   :  { %v1176_v43 = vpop.f32.mrf.mxu0 }
 0x162   :  { %1967 = vst.msk [vmem:[%s3402_s3 + $0x58] sm:$0xf] %vm1944_vm0, %v2260_v40  ;;  %v1647_v44 = vmax.f32 %v1461_v41, 0.0  ;;  %v1177_v45 = vadd.f32 %v2982_v8, %v1176_v43  ;;  %v1465_v46 = vpop.f32.mrf.mxu1 }
 0x163   :  { %v1178_v47 = vpop.f32.mrf.mxu0 }
 0x164   :  { %v2261_v48 = vpack.c.bf16 %v1647_v44, %v1647_v44  ;;  %v1466_v49 = vadd.f32 %v1465_v46, %v1177_v45  ;;  %v1467_v50 = vpop.f32.mrf.mxu1 }
 0x165   :  { %v1179_v51 = vpop.f32.mrf.mxu0 }
 0x166   :  { %1968 = vst.msk [vmem:[%s3402_s3 + $0x5c] sm:$0xf] %vm1944_vm0, %v2261_v48  ;;  %v1648_v52 = vmax.f32 %v1466_v49, 0.0  ;;  %v1180_v53 = vadd.f32 %v2982_v8, %v1179_v51  ;;  %v1468_v54 = vpop.f32.mrf.mxu1 }
 0x167   :  { %v1181_v55 = vpop.f32.mrf.mxu0 }
 0x168   :  { %v2262_v56 = vpack.c.bf16 %v1648_v52, %v1648_v52  ;;  %v1469_v57 = vadd.f32 %v1468_v54, %v1180_v53  ;;  %v1470_v58 = vpop.f32.mrf.mxu1 }
 0x169   :  { %v1184_v59 = vpop.f32.mrf.mxu0 }
 0x16a   :  { %1969 = vst.msk [vmem:[%s3402_s3 + $0x60] sm:$0xf] %vm1944_vm0, %v2262_v56  ;;  %v1649_v60 = vmax.f32 %v1469_v57, 0.0  ;;  %v1185_v61 = vadd.f32 %v2982_v8, %v1184_v59  ;;  %v1473_v62 = vpop.f32.mrf.mxu1 }
 0x16b   :  { %v1186_v63 = vpop.f32.mrf.mxu0 }
 0x16c   :  { %v2263_v0 = vpack.c.bf16 %v1649_v60, %v1649_v60  ;;  %v1474_v1 = vadd.f32 %v1473_v62, %v1185_v61  ;;  %v1475_v2 = vpop.f32.mrf.mxu1 }
 0x16d   :  { %v1187_v3 = vpop.f32.mrf.mxu0 }
 0x16e   :  { %1970 = vst.msk [vmem:[%s3402_s3 + $0x64] sm:$0xf] %vm1944_vm0, %v2263_v0  ;;  %v1650_v4 = vmax.f32 %v1474_v1, 0.0  ;;  %v1188_v5 = vadd.f32 %v2982_v8, %v1187_v3  ;;  %v1476_v6 = vpop.f32.mrf.mxu1 }
 0x16f   :  { %v1189_v7 = vpop.f32.mrf.mxu0 }
 0x170   :  { %v2264_v9 = vpack.c.bf16 %v1650_v4, %v1650_v4  ;;  %v1477_v10 = vadd.f32 %v1476_v6, %v1188_v5  ;;  %v1478_v11 = vpop.f32.mrf.mxu1 }
 0x171   :  { %v1192_v12 = vpop.f32.mrf.mxu0 }
 0x172   :  { %1971 = vst.msk [vmem:[%s3402_s3 + $0x68] sm:$0xf] %vm1944_vm0, %v2264_v9  ;;  %v1651_v13 = vmax.f32 %v1477_v10, 0.0  ;;  %v1193_v14 = vadd.f32 %v2982_v8, %v1192_v12  ;;  %v1481_v15 = vpop.f32.mrf.mxu1 }
 0x173   :  { %v1194_v16 = vpop.f32.mrf.mxu0 }
 0x174   :  { %v2265_v17 = vpack.c.bf16 %v1651_v13, %v1651_v13  ;;  %v1482_v18 = vadd.f32 %v1481_v15, %v1193_v14  ;;  %v1483_v19 = vpop.f32.mrf.mxu1 }
 0x175   :  { %v1195_v20 = vpop.f32.mrf.mxu0 }
 0x176   :  { %1972 = vst.msk [vmem:[%s3402_s3 + $0x6c] sm:$0xf] %vm1944_vm0, %v2265_v17  ;;  %v1652_v21 = vmax.f32 %v1482_v18, 0.0  ;;  %v1196_v22 = vadd.f32 %v2982_v8, %v1195_v20  ;;  %v1484_v23 = vpop.f32.mrf.mxu1 }
 0x177   :  { %v1197_v24 = vpop.f32.mrf.mxu0 }
 0x178   :  { %v2266_v25 = vpack.c.bf16 %v1652_v21, %v1652_v21  ;;  %v1485_v26 = vadd.f32 %v1484_v23, %v1196_v22  ;;  %v1486_v27 = vpop.f32.mrf.mxu1 }
 0x179   :  { %v1200_v28 = vpop.f32.mrf.mxu0 }
 0x17a   :  { %1973 = vst.msk [vmem:[%s3402_s3 + $0x70] sm:$0xf] %vm1944_vm0, %v2266_v25  ;;  %v1653_v29 = vmax.f32 %v1485_v26, 0.0  ;;  %v1201_v30 = vadd.f32 %v2982_v8, %v1200_v28  ;;  %v1489_v31 = vpop.f32.mrf.mxu1 }
 0x17b   :  { %v1202_v32 = vpop.f32.mrf.mxu0 }
 0x17c   :  { %v2267_v33 = vpack.c.bf16 %v1653_v29, %v1653_v29  ;;  %v1490_v34 = vadd.f32 %v1489_v31, %v1201_v30  ;;  %v1491_v35 = vpop.f32.mrf.mxu1 }
 0x17d   :  { %v1203_v36 = vpop.f32.mrf.mxu0 }
 0x17e   :  { %1974 = vst.msk [vmem:[%s3402_s3 + $0x74] sm:$0xf] %vm1944_vm0, %v2267_v33  ;;  %v1654_v37 = vmax.f32 %v1490_v34, 0.0  ;;  %v1204_v38 = vadd.f32 %v2982_v8, %v1203_v36  ;;  %v1492_v39 = vpop.f32.mrf.mxu1 }
 0x17f   :  { %v1205_v40 = vpop.f32.mrf.mxu0 }
 0x180   :  { %v2268_v41 = vpack.c.bf16 %v1654_v37, %v1654_v37  ;;  %v1493_v42 = vadd.f32 %v1492_v39, %v1204_v38  ;;  %v1494_v43 = vpop.f32.mrf.mxu1 }
 0x181   :  { %v1208_v44 = vpop.f32.mrf.mxu0 }
 0x182   :  { %1975 = vst.msk [vmem:[%s3402_s3 + $0x78] sm:$0xf] %vm1944_vm0, %v2268_v41  ;;  %v1655_v45 = vmax.f32 %v1493_v42, 0.0  ;;  %v1209_v46 = vadd.f32 %v2982_v8, %v1208_v44  ;;  %v1497_v47 = vpop.f32.mrf.mxu1 }
 0x183   :  { %v1210_v48 = vpop.f32.mrf.mxu0 }
 0x184   :  { %v2269_v49 = vpack.c.bf16 %v1655_v45, %v1655_v45  ;;  %v1498_v50 = vadd.f32 %v1497_v47, %v1209_v46  ;;  %v1499_v51 = vpop.f32.mrf.mxu1 }
 0x185   :  { %v1211_v52 = vpop.f32.mrf.mxu0 }
 0x186   :  { %1976 = vst.msk [vmem:[%s3402_s3 + $0x7c] sm:$0xf] %vm1944_vm0, %v2269_v49  ;;  %v1656_v53 = vmax.f32 %v1498_v50, 0.0  ;;  %v1212_v54 = vadd.f32 %v2982_v8, %v1211_v52  ;;  %v1500_v55 = vpop.f32.mrf.mxu1 }
 0x187   :  { %v1213_v56 = vpop.f32.mrf.mxu0 }
 0x188   :  { %v2270_v57 = vpack.c.bf16 %v1656_v53, %v1656_v53  ;;  %v1501_v58 = vadd.f32 %v1500_v55, %v1212_v54  ;;  %v1502_v59 = vpop.f32.mrf.mxu1 }
 0x189   :  { %v1216_v60 = vpop.f32.mrf.mxu0 }
 0x18a   :  { %1977 = vst.msk [vmem:[%s3402_s3 + $0x80] sm:$0xf] %vm1944_vm0, %v2270_v57  ;;  %v1657_v61 = vmax.f32 %v1501_v58, 0.0  ;;  %v1217_v62 = vadd.f32 %v2982_v8, %v1216_v60  ;;  %v1505_v63 = vpop.f32.mrf.mxu1 }
 0x18b   :  { %v1218_v0 = vpop.f32.mrf.mxu0 }
 0x18c   :  { %v2271_v1 = vpack.c.bf16 %v1657_v61, %v1657_v61  ;;  %v1506_v2 = vadd.f32 %v1505_v63, %v1217_v62  ;;  %v1507_v3 = vpop.f32.mrf.mxu1 }
 0x18d   :  { %v1219_v4 = vpop.f32.mrf.mxu0 }
 0x18e   :  { %1978 = vst.msk [vmem:[%s3402_s3 + $0x84] sm:$0xf] %vm1944_vm0, %v2271_v1  ;;  %v1658_v5 = vmax.f32 %v1506_v2, 0.0  ;;  %v1220_v6 = vadd.f32 %v2982_v8, %v1219_v4  ;;  %v1508_v7 = vpop.f32.mrf.mxu1 }
 0x18f   :  { %v1221_v9 = vpop.f32.mrf.mxu0 }
 0x190   :  { %v2272_v10 = vpack.c.bf16 %v1658_v5, %v1658_v5  ;;  %v1509_v11 = vadd.f32 %v1508_v7, %v1220_v6  ;;  %v1510_v12 = vpop.f32.mrf.mxu1 }
 0x191   :  { %v1224_v13 = vpop.f32.mrf.mxu0 }
 0x192   :  { %1979 = vst.msk [vmem:[%s3402_s3 + $0x88] sm:$0xf] %vm1944_vm0, %v2272_v10  ;;  %v1659_v14 = vmax.f32 %v1509_v11, 0.0  ;;  %v1225_v15 = vadd.f32 %v2982_v8, %v1224_v13  ;;  %v1513_v16 = vpop.f32.mrf.mxu1 }
 0x193   :  { %v1226_v17 = vpop.f32.mrf.mxu0 }
 0x194   :  { %v2273_v18 = vpack.c.bf16 %v1659_v14, %v1659_v14  ;;  %v1514_v19 = vadd.f32 %v1513_v16, %v1225_v15  ;;  %v1515_v20 = vpop.f32.mrf.mxu1 }
 0x195   :  { %v1227_v21 = vpop.f32.mrf.mxu0 }
 0x196   :  { %1980 = vst.msk [vmem:[%s3402_s3 + $0x8c] sm:$0xf] %vm1944_vm0, %v2273_v18  ;;  %v1660_v22 = vmax.f32 %v1514_v19, 0.0  ;;  %v1228_v23 = vadd.f32 %v2982_v8, %v1227_v21  ;;  %v1516_v24 = vpop.f32.mrf.mxu1 }
 0x197   :  { %v1229_v25 = vpop.f32.mrf.mxu0 }
 0x198   :  { %v2274_v26 = vpack.c.bf16 %v1660_v22, %v1660_v22  ;;  %v1517_v27 = vadd.f32 %v1516_v24, %v1228_v23  ;;  %v1518_v28 = vpop.f32.mrf.mxu1 }
 0x199   :  { %v1232_v29 = vpop.f32.mrf.mxu0 }
 0x19a   :  { %1981 = vst.msk [vmem:[%s3402_s3 + $0x90] sm:$0xf] %vm1944_vm0, %v2274_v26  ;;  %v1661_v30 = vmax.f32 %v1517_v27, 0.0  ;;  %v1233_v31 = vadd.f32 %v2982_v8, %v1232_v29  ;;  %v1521_v32 = vpop.f32.mrf.mxu1 }
 0x19b   :  { %v1234_v33 = vpop.f32.mrf.mxu0 }
 0x19c   :  { %v2275_v34 = vpack.c.bf16 %v1661_v30, %v1661_v30  ;;  %v1522_v35 = vadd.f32 %v1521_v32, %v1233_v31  ;;  %v1523_v36 = vpop.f32.mrf.mxu1 }
 0x19d   :  { %v1235_v37 = vpop.f32.mrf.mxu0 }
 0x19e   :  { %1982 = vst.msk [vmem:[%s3402_s3 + $0x94] sm:$0xf] %vm1944_vm0, %v2275_v34  ;;  %v1662_v38 = vmax.f32 %v1522_v35, 0.0  ;;  %v1236_v39 = vadd.f32 %v2982_v8, %v1235_v37  ;;  %v1524_v40 = vpop.f32.mrf.mxu1 }
 0x19f   :  { %v1237_v41 = vpop.f32.mrf.mxu0 }
 0x1a0   :  { %v2276_v42 = vpack.c.bf16 %v1662_v38, %v1662_v38  ;;  %v1525_v43 = vadd.f32 %v1524_v40, %v1236_v39  ;;  %v1526_v44 = vpop.f32.mrf.mxu1 }
 0x1a1   :  { %v1240_v45 = vpop.f32.mrf.mxu0 }
 0x1a2   :  { %1983 = vst.msk [vmem:[%s3402_s3 + $0x98] sm:$0xf] %vm1944_vm0, %v2276_v42  ;;  %v1663_v46 = vmax.f32 %v1525_v43, 0.0  ;;  %v1241_v47 = vadd.f32 %v2982_v8, %v1240_v45  ;;  %v1529_v48 = vpop.f32.mrf.mxu1 }
 0x1a3   :  { %v1242_v49 = vpop.f32.mrf.mxu0 }
 0x1a4   :  { %v2277_v50 = vpack.c.bf16 %v1663_v46, %v1663_v46  ;;  %v1530_v51 = vadd.f32 %v1529_v48, %v1241_v47  ;;  %v1531_v52 = vpop.f32.mrf.mxu1 }
 0x1a5   :  { %v1243_v53 = vpop.f32.mrf.mxu0 }
 0x1a6   :  { %1984 = vst.msk [vmem:[%s3402_s3 + $0x9c] sm:$0xf] %vm1944_vm0, %v2277_v50  ;;  %v1664_v54 = vmax.f32 %v1530_v51, 0.0  ;;  %v1244_v55 = vadd.f32 %v2982_v8, %v1243_v53  ;;  %v1532_v56 = vpop.f32.mrf.mxu1 }
 0x1a7   :  { %v1245_v57 = vpop.f32.mrf.mxu0 }
 0x1a8   :  { %v2278_v58 = vpack.c.bf16 %v1664_v54, %v1664_v54  ;;  %v1533_v59 = vadd.f32 %v1532_v56, %v1244_v55  ;;  %v1534_v60 = vpop.f32.mrf.mxu1 }
 0x1a9   :  { %v1248_v61 = vpop.f32.mrf.mxu0 }
 0x1aa   :  { %1985 = vst.msk [vmem:[%s3402_s3 + $0xa0] sm:$0xf] %vm1944_vm0, %v2278_v58  ;;  %v1665_v62 = vmax.f32 %v1533_v59, 0.0  ;;  %v1249_v63 = vadd.f32 %v2982_v8, %v1248_v61  ;;  %v1537_v0 = vpop.f32.mrf.mxu1 }
 0x1ab   :  { %v1250_v1 = vpop.f32.mrf.mxu0 }
 0x1ac   :  { %v2279_v2 = vpack.c.bf16 %v1665_v62, %v1665_v62  ;;  %v1538_v3 = vadd.f32 %v1537_v0, %v1249_v63  ;;  %v1539_v4 = vpop.f32.mrf.mxu1  ;;  %v3323_v0 = vld [vmem:[%s3401_s2] ss:$0 sm:$0xff] }
 0x1ad   :  { %v1251_v5 = vpop.f32.mrf.mxu0 }
 0x1ae   :  { %1986 = vst.msk [vmem:[%s3402_s3 + $0xa4] sm:$0xf] %vm1944_vm0, %v2279_v2  ;;  %v1666_v6 = vmax.f32 %v1538_v3, 0.0  ;;  %v1252_v7 = vadd.f32 %v2982_v8, %v1251_v5  ;;  %v1540_v9 = vpop.f32.mrf.mxu1 }
 0x1af   :  { %v1253_v10 = vpop.f32.mrf.mxu0 }
 0x1b0   :  { %v2280_v11 = vpack.c.bf16 %v1666_v6, %v1666_v6  ;;  %v1541_v12 = vadd.f32 %v1540_v9, %v1252_v7  ;;  %v1542_v13 = vpop.f32.mrf.mxu1 }
 0x1b1   :  { %v1256_v14 = vpop.f32.mrf.mxu0 }
 0x1b2   :  { %1987 = vst.msk [vmem:[%s3402_s3 + $0xa8] sm:$0xf] %vm1944_vm0, %v2280_v11  ;;  %v1667_v15 = vmax.f32 %v1541_v12, 0.0  ;;  %v1257_v16 = vadd.f32 %v2982_v8, %v1256_v14  ;;  %v1545_v17 = vpop.f32.mrf.mxu1 }
 0x1b3   :  { %v1258_v18 = vpop.f32.mrf.mxu0 }
 0x1b4   :  { %v2281_v19 = vpack.c.bf16 %v1667_v15, %v1667_v15  ;;  %v1546_v20 = vadd.f32 %v1545_v17, %v1257_v16  ;;  %v1547_v21 = vpop.f32.mrf.mxu1 }
 0x1b5   :  { %v1259_v22 = vpop.f32.mrf.mxu0 }
 0x1b6   :  { %1988 = vst.msk [vmem:[%s3402_s3 + $0xac] sm:$0xf] %vm1944_vm0, %v2281_v19  ;;  %v1668_v23 = vmax.f32 %v1546_v20, 0.0  ;;  %v1260_v24 = vadd.f32 %v2982_v8, %v1259_v22  ;;  %v1548_v25 = vpop.f32.mrf.mxu1 }
 0x1b7   :  { %v1261_v26 = vpop.f32.mrf.mxu0 }
 0x1b8   :  { %v2282_v27 = vpack.c.bf16 %v1668_v23, %v1668_v23  ;;  %v1549_v28 = vadd.f32 %v1548_v25, %v1260_v24  ;;  %v1550_v29 = vpop.f32.mrf.mxu1 }
 0x1b9   :  { %v1264_v30 = vpop.f32.mrf.mxu0 }
 0x1ba   :  { %1989 = vst.msk [vmem:[%s3402_s3 + $0xb0] sm:$0xf] %vm1944_vm0, %v2282_v27  ;;  %v1669_v31 = vmax.f32 %v1549_v28, 0.0  ;;  %v1265_v32 = vadd.f32 %v2982_v8, %v1264_v30  ;;  %v1553_v33 = vpop.f32.mrf.mxu1 }
 0x1bb   :  { %v1266_v34 = vpop.f32.mrf.mxu0 }
 0x1bc   :  { %v2283_v35 = vpack.c.bf16 %v1669_v31, %v1669_v31  ;;  %v1554_v36 = vadd.f32 %v1553_v33, %v1265_v32  ;;  %v1555_v37 = vpop.f32.mrf.mxu1 }
 0x1bd   :  { %v1267_v38 = vpop.f32.mrf.mxu0 }
 0x1be   :  { %1990 = vst.msk [vmem:[%s3402_s3 + $0xb4] sm:$0xf] %vm1944_vm0, %v2283_v35  ;;  %v1670_v39 = vmax.f32 %v1554_v36, 0.0  ;;  %v1268_v40 = vadd.f32 %v2982_v8, %v1267_v38  ;;  %v1556_v41 = vpop.f32.mrf.mxu1 }
 0x1bf   :  { %v1269_v42 = vpop.f32.mrf.mxu0 }
 0x1c0   :  { %v2284_v43 = vpack.c.bf16 %v1670_v39, %v1670_v39  ;;  %v1557_v44 = vadd.f32 %v1556_v41, %v1268_v40  ;;  %v1558_v45 = vpop.f32.mrf.mxu1 }
 0x1c1   :  { %v1272_v46 = vpop.f32.mrf.mxu0 }
 0x1c2   :  { %1991 = vst.msk [vmem:[%s3402_s3 + $0xb8] sm:$0xf] %vm1944_vm0, %v2284_v43  ;;  %v1671_v47 = vmax.f32 %v1557_v44, 0.0  ;;  %v1273_v48 = vadd.f32 %v2982_v8, %v1272_v46  ;;  %v1561_v49 = vpop.f32.mrf.mxu1 }
 0x1c3   :  { %v1274_v50 = vpop.f32.mrf.mxu0 }
 0x1c4   :  { %v2285_v51 = vpack.c.bf16 %v1671_v47, %v1671_v47  ;;  %v1562_v52 = vadd.f32 %v1561_v49, %v1273_v48  ;;  %v1563_v53 = vpop.f32.mrf.mxu1 }
 0x1c5   :  { %v1275_v54 = vpop.f32.mrf.mxu0 }
 0x1c6   :  { %1992 = vst.msk [vmem:[%s3402_s3 + $0xbc] sm:$0xf] %vm1944_vm0, %v2285_v51  ;;  %v1672_v55 = vmax.f32 %v1562_v52, 0.0  ;;  %v1276_v56 = vadd.f32 %v2982_v8, %v1275_v54  ;;  %v1564_v57 = vpop.f32.mrf.mxu1 }
 0x1c7   :  { %v1277_v58 = vpop.f32.mrf.mxu0 }
 0x1c8   :  { %v2286_v59 = vpack.c.bf16 %v1672_v55, %v1672_v55  ;;  %v1565_v60 = vadd.f32 %v1564_v57, %v1276_v56  ;;  %v1566_v61 = vpop.f32.mrf.mxu1 }
 0x1c9   :  { %v1280_v62 = vpop.f32.mrf.mxu0 }
 0x1ca   :  { %1993 = vst.msk [vmem:[%s3402_s3 + $0xc0] sm:$0xf] %vm1944_vm0, %v2286_v59  ;;  %v1673_v63 = vmax.f32 %v1565_v60, 0.0  ;;  %v1281_v1 = vadd.f32 %v3323_v0, %v1280_v62  ;;  %v1569_v8 = vpop.f32.mrf.mxu1 }
 0x1cb   :  { %v1282_v2 = vpop.f32.mrf.mxu0 }
 0x1cc   :  { %v2287_v3 = vpack.c.bf16 %v1673_v63, %v1673_v63  ;;  %v1570_v4 = vadd.f32 %v1569_v8, %v1281_v1  ;;  %v1571_v5 = vpop.f32.mrf.mxu1 }
 0x1cd   :  { %v1283_v6 = vpop.f32.mrf.mxu0 }
 0x1ce   :  { %1994 = vst.msk [vmem:[%s3402_s3 + $0xc4] sm:$0xf] %vm1944_vm0, %v2287_v3  ;;  %v1674_v7 = vmax.f32 %v1570_v4, 0.0  ;;  %v1284_v9 = vadd.f32 %v3323_v0, %v1283_v6  ;;  %v1572_v10 = vpop.f32.mrf.mxu1 }
 0x1cf   :  { %v1285_v11 = vpop.f32.mrf.mxu0 }
 0x1d0   :  { %v2288_v12 = vpack.c.bf16 %v1674_v7, %v1674_v7  ;;  %v1573_v13 = vadd.f32 %v1572_v10, %v1284_v9  ;;  %v1574_v14 = vpop.f32.mrf.mxu1 }
 0x1d1   :  { %v1288_v15 = vpop.f32.mrf.mxu0 }
 0x1d2   :  { %1995 = vst.msk [vmem:[%s3402_s3 + $0xc8] sm:$0xf] %vm1944_vm0, %v2288_v12  ;;  %v1675_v16 = vmax.f32 %v1573_v13, 0.0  ;;  %v1289_v17 = vadd.f32 %v3323_v0, %v1288_v15  ;;  %v1577_v18 = vpop.f32.mrf.mxu1 }
 0x1d3   :  { %v1290_v19 = vpop.f32.mrf.mxu0 }
 0x1d4   :  { %v2289_v20 = vpack.c.bf16 %v1675_v16, %v1675_v16  ;;  %v1578_v21 = vadd.f32 %v1577_v18, %v1289_v17  ;;  %v1579_v22 = vpop.f32.mrf.mxu1 }
 0x1d5   :  { %v1291_v23 = vpop.f32.mrf.mxu0 }
 0x1d6   :  { %1996 = vst.msk [vmem:[%s3402_s3 + $0xcc] sm:$0xf] %vm1944_vm0, %v2289_v20  ;;  %v1676_v24 = vmax.f32 %v1578_v21, 0.0  ;;  %v1292_v25 = vadd.f32 %v3323_v0, %v1291_v23  ;;  %v1580_v26 = vpop.f32.mrf.mxu1 }
 0x1d7   :  { %v1293_v27 = vpop.f32.mrf.mxu0 }
 0x1d8   :  { %v2290_v28 = vpack.c.bf16 %v1676_v24, %v1676_v24  ;;  %v1581_v29 = vadd.f32 %v1580_v26, %v1292_v25  ;;  %v1582_v30 = vpop.f32.mrf.mxu1 }
 0x1d9   :  { %v1296_v31 = vpop.f32.mrf.mxu0 }
 0x1da   :  { %1997 = vst.msk [vmem:[%s3402_s3 + $0xd0] sm:$0xf] %vm1944_vm0, %v2290_v28  ;;  %v1677_v32 = vmax.f32 %v1581_v29, 0.0  ;;  %v1297_v33 = vadd.f32 %v3323_v0, %v1296_v31  ;;  %v1585_v34 = vpop.f32.mrf.mxu1 }
 0x1db   :  { %v1298_v35 = vpop.f32.mrf.mxu0 }
 0x1dc   :  { %v2291_v36 = vpack.c.bf16 %v1677_v32, %v1677_v32  ;;  %v1586_v37 = vadd.f32 %v1585_v34, %v1297_v33  ;;  %v1587_v38 = vpop.f32.mrf.mxu1 }
 0x1dd   :  { %v1299_v39 = vpop.f32.mrf.mxu0 }
 0x1de   :  { %1998 = vst.msk [vmem:[%s3402_s3 + $0xd4] sm:$0xf] %vm1944_vm0, %v2291_v36  ;;  %v1678_v40 = vmax.f32 %v1586_v37, 0.0  ;;  %v1300_v41 = vadd.f32 %v3323_v0, %v1299_v39  ;;  %v1588_v42 = vpop.f32.mrf.mxu1 }
 0x1df   :  { %v1301_v43 = vpop.f32.mrf.mxu0 }
 0x1e0   :  { %v2292_v44 = vpack.c.bf16 %v1678_v40, %v1678_v40  ;;  %v1589_v45 = vadd.f32 %v1588_v42, %v1300_v41  ;;  %v1590_v46 = vpop.f32.mrf.mxu1 }
 0x1e1   :  { %v1304_v47 = vpop.f32.mrf.mxu0 }
 0x1e2   :  { %1999 = vst.msk [vmem:[%s3402_s3 + $0xd8] sm:$0xf] %vm1944_vm0, %v2292_v44  ;;  %v1679_v48 = vmax.f32 %v1589_v45, 0.0  ;;  %v1305_v49 = vadd.f32 %v3323_v0, %v1304_v47  ;;  %v1593_v50 = vpop.f32.mrf.mxu1 }
 0x1e3   :  { %v1306_v51 = vpop.f32.mrf.mxu0 }
 0x1e4   :  { %v2293_v52 = vpack.c.bf16 %v1679_v48, %v1679_v48  ;;  %v1594_v53 = vadd.f32 %v1593_v50, %v1305_v49  ;;  %v1595_v54 = vpop.f32.mrf.mxu1 }
 0x1e5   :  { %v1307_v55 = vpop.f32.mrf.mxu0 }
 0x1e6   :  { %2000 = vst.msk [vmem:[%s3402_s3 + $0xdc] sm:$0xf] %vm1944_vm0, %v2293_v52  ;;  %v1680_v56 = vmax.f32 %v1594_v53, 0.0  ;;  %v1308_v57 = vadd.f32 %v3323_v0, %v1307_v55  ;;  %v1596_v58 = vpop.f32.mrf.mxu1 }
 0x1e7   :  { %v1309_v59 = vpop.f32.mrf.mxu0 }
 0x1e8   :  { %v2294_v60 = vpack.c.bf16 %v1680_v56, %v1680_v56  ;;  %v1597_v61 = vadd.f32 %v1596_v58, %v1308_v57  ;;  %v1598_v62 = vpop.f32.mrf.mxu1 }
 0x1e9   :  { %v1312_v63 = vpop.f32.mrf.mxu0 }
 0x1ea   :  { %2001 = vst.msk [vmem:[%s3402_s3 + $0xe0] sm:$0xf] %vm1944_vm0, %v2294_v60  ;;  %v1681_v1 = vmax.f32 %v1597_v61, 0.0  ;;  %v1313_v8 = vadd.f32 %v3323_v0, %v1312_v63  ;;  %v1601_v2 = vpop.f32.mrf.mxu1 }
 0x1eb   :  { %v1314_v3 = vpop.f32.mrf.mxu0 }
 0x1ec   :  { %v2295_v4 = vpack.c.bf16 %v1681_v1, %v1681_v1  ;;  %v1602_v5 = vadd.f32 %v1601_v2, %v1313_v8  ;;  %v1603_v6 = vpop.f32.mrf.mxu1 }
 0x1ed   :  { %v1315_v7 = vpop.f32.mrf.mxu0 }
 0x1ee   :  { %2002 = vst.msk [vmem:[%s3402_s3 + $0xe4] sm:$0xf] %vm1944_vm0, %v2295_v4  ;;  %v1682_v9 = vmax.f32 %v1602_v5, 0.0  ;;  %v1316_v10 = vadd.f32 %v3323_v0, %v1315_v7  ;;  %v1604_v11 = vpop.f32.mrf.mxu1 }
 0x1ef   :  { %v1317_v12 = vpop.f32.mrf.mxu0 }
 0x1f0   :  { %v2296_v13 = vpack.c.bf16 %v1682_v9, %v1682_v9  ;;  %v1605_v14 = vadd.f32 %v1604_v11, %v1316_v10  ;;  %v1606_v15 = vpop.f32.mrf.mxu1 }
 0x1f1   :  { %v1320_v16 = vpop.f32.mrf.mxu0 }
 0x1f2   :  { %2003 = vst.msk [vmem:[%s3402_s3 + $0xe8] sm:$0xf] %vm1944_vm0, %v2296_v13  ;;  %v1683_v17 = vmax.f32 %v1605_v14, 0.0  ;;  %v1321_v18 = vadd.f32 %v3323_v0, %v1320_v16  ;;  %v1609_v19 = vpop.f32.mrf.mxu1 }
 0x1f3   :  { %v1322_v20 = vpop.f32.mrf.mxu0 }
 0x1f4   :  { %v2297_v21 = vpack.c.bf16 %v1683_v17, %v1683_v17  ;;  %v1610_v22 = vadd.f32 %v1609_v19, %v1321_v18  ;;  %v1611_v23 = vpop.f32.mrf.mxu1 }
 0x1f5   :  { %v1323_v24 = vpop.f32.mrf.mxu0 }
 0x1f6   :  { %2004 = vst.msk [vmem:[%s3402_s3 + $0xec] sm:$0xf] %vm1944_vm0, %v2297_v21  ;;  %v1684_v25 = vmax.f32 %v1610_v22, 0.0  ;;  %v1324_v26 = vadd.f32 %v3323_v0, %v1323_v24  ;;  %v1612_v27 = vpop.f32.mrf.mxu1 }
 0x1f7   :  { %v1325_v28 = vpop.f32.mrf.mxu0 }
 0x1f8   :  { %v2298_v29 = vpack.c.bf16 %v1684_v25, %v1684_v25  ;;  %v1613_v30 = vadd.f32 %v1612_v27, %v1324_v26  ;;  %v1614_v31 = vpop.f32.mrf.mxu1 }
 0x1f9   :  { %v1328_v32 = vpop.f32.mrf.mxu0 }
 0x1fa   :  { %2005 = vst.msk [vmem:[%s3402_s3 + $0xf0] sm:$0xf] %vm1944_vm0, %v2298_v29  ;;  %v1685_v33 = vmax.f32 %v1613_v30, 0.0  ;;  %v1329_v34 = vadd.f32 %v3323_v0, %v1328_v32  ;;  %v1617_v35 = vpop.f32.mrf.mxu1 }
 0x1fb   :  { %v1330_v36 = vpop.f32.mrf.mxu0 }
 0x1fc   :  { %v2299_v37 = vpack.c.bf16 %v1685_v33, %v1685_v33  ;;  %v1618_v38 = vadd.f32 %v1617_v35, %v1329_v34  ;;  %v1619_v39 = vpop.f32.mrf.mxu1 }
 0x1fd   :  { %v1331_v40 = vpop.f32.mrf.mxu0 }
 0x1fe   :  { %2006 = vst.msk [vmem:[%s3402_s3 + $0xf4] sm:$0xf] %vm1944_vm0, %v2299_v37  ;;  %v1686_v41 = vmax.f32 %v1618_v38, 0.0  ;;  %v1332_v42 = vadd.f32 %v3323_v0, %v1331_v40  ;;  %v1620_v43 = vpop.f32.mrf.mxu1 }
 0x1ff   :  { %v1333_v44 = vpop.f32.mrf.mxu0 }
 0x200   :  { %v2300_v45 = vpack.c.bf16 %v1686_v41, %v1686_v41  ;;  %v1621_v46 = vadd.f32 %v1620_v43, %v1332_v42  ;;  %v1622_v47 = vpop.f32.mrf.mxu1 }
 0x202   :  { %2007 = vst.msk [vmem:[%s3402_s3 + $0xf8] sm:$0xf] %vm1944_vm0, %v2300_v45  ;;  %v1687_v48 = vmax.f32 %v1621_v46, 0.0 }
 0x204   :  { %v2301_v49 = vpack.c.bf16 %v1687_v48, %v1687_v48 }
 0x206   :  { %2008 = vst.msk [vmem:[%s3402_s3 + $0xfc] sm:$0xf] %vm1944_vm0, %v2301_v49 }

// kernel: factorvae1_forward.11
= control target key start
LH: loop header
LB: loop body
LE: loop exit
PB: predicated region body
PF: predicated region fallthrough
CT: control target
= control target key end

     0   :  { %vm744_vm0 = vcmask 519168   ;;  %s1367_s1 = inlined_call_operand.vmem [shape: bf16[1,512,128], index: 1, kind: input, shape index: {}]   ;;  %s1368_s0 = inlined_call_operand.vmem [shape: bf16[1,128,512], index: 0, kind: input, shape index: {}]   ;;  %s1369_s2 = inlined_call_operand.vmem [shape: f32[1,128], index: 2, kind: input, shape index: {}]   ;;  %s1370_s3 = inlined_call_operand.vmem [shape: bf16[1,128,64], index: 3, kind: output, shape index: {}]  }
   0x1   :  { %v990_v0 = vld [vmem:[%s1367_s1 + $0x78] sm:$0xff]   ;;  %v994_v4 = vld [vmem:[%s1367_s1 + $0x70] sm:$0xff]   ;;  %v998_v8 = vld [vmem:[%s1367_s1 + $0x68] sm:$0xff]  }
   0x2   :  { %v991_v1 = vld [vmem:[%s1367_s1 + $0xf8] sm:$0xff]   ;;  %862 = vmatprep.subr.bf16.mxu0 %v990_v0  ;;  %v995_v5 = vld [vmem:[%s1367_s1 + $0xf0] sm:$0xff]   ;;  %v999_v9 = vld [vmem:[%s1367_s1 + $0xe8] sm:$0xff]  }
   0x3   :  { %v992_v2 = vld [vmem:[%s1367_s1 + $0x38] sm:$0xff]   ;;  %926 = vmatprep.subr.bf16.mxu1 %v991_v1  ;;  %v996_v6 = vld [vmem:[%s1367_s1 + $0x30] sm:$0xff]   ;;  %v1000_v10 = vld [vmem:[%s1367_s1 + $0x28] sm:$0xff]  }
   0x4   :  { %v993_v3 = vld [vmem:[%s1367_s1 + $0xb8] sm:$0xff]   ;;  %863 = vmatpush3.bf16.msra.mxu0 %v992_v2  ;;  %v997_v7 = vld [vmem:[%s1367_s1 + $0xb0] sm:$0xff]   ;;  %v1001_v11 = vld [vmem:[%s1367_s1 + $0xa8] sm:$0xff]  }
   0x5   :  { %927 = vmatpush3.bf16.msra.mxu1 %v993_v3  ;;  %864 = vmatprep.subr.bf16.mxu0 %v994_v4  ;;  %v1002_v12 = vld [vmem:[%s1367_s1 + $0x60] sm:$0xff]   ;;  %v1006_v16 = vld [vmem:[%s1367_s1 + $0x58] sm:$0xff]   ;;  %v1010_v20 = vld [vmem:[%s1367_s1 + $0x50] sm:$0xff]  }
   0x6   :  { %928 = vmatprep.subr.bf16.mxu1 %v995_v5  ;;  %v1003_v13 = vld [vmem:[%s1367_s1 + $0xe0] sm:$0xff]   ;;  %v1007_v17 = vld [vmem:[%s1367_s1 + $0xd8] sm:$0xff]   ;;  %v1011_v21 = vld [vmem:[%s1367_s1 + $0xd0] sm:$0xff]  }
   0x7   :  { %v1004_v14 = vld [vmem:[%s1367_s1 + $0x20] sm:$0xff]   ;;  %v1008_v18 = vld [vmem:[%s1367_s1 + $0x18] sm:$0xff]   ;;  %v1012_v22 = vld [vmem:[%s1367_s1 + $0x10] sm:$0xff]  }
   0x8   :  { %865 = vmatpush3.bf16.msra.mxu0 %v996_v6  ;;  %v1005_v15 = vld [vmem:[%s1367_s1 + $0xa0] sm:$0xff]   ;;  %v1009_v19 = vld [vmem:[%s1367_s1 + $0x98] sm:$0xff]   ;;  %v1013_v23 = vld [vmem:[%s1367_s1 + $0x90] sm:$0xff]  }
   0x9   :  { %929 = vmatpush3.bf16.msra.mxu1 %v997_v7  ;;  %866 = vmatprep.subr.bf16.mxu0 %v998_v8  ;;  %v1014_v24 = vld [vmem:[%s1367_s1 + $0x48] sm:$0xff]   ;;  %v1018_v28 = vld [vmem:[%s1367_s1 + $0x40] sm:$0xff]  }
   0xa   :  { %930 = vmatprep.subr.bf16.mxu1 %v999_v9  ;;  %v1015_v25 = vld [vmem:[%s1367_s1 + $0xc8] sm:$0xff]   ;;  %v1019_v29 = vld [vmem:[%s1367_s1 + $0xc0] sm:$0xff]  }
   0xb   :  { %v1016_v26 = vld [vmem:[%s1367_s1 + $0x8] sm:$0xff]   ;;  %v1020_v30 = vld [vmem:[%s1367_s1] sm:$0xff]  }
   0xc   :  { %867 = vmatpush3.bf16.msra.mxu0 %v1000_v10  ;;  %v1017_v27 = vld [vmem:[%s1367_s1 + $0x88] sm:$0xff]   ;;  %v1021_v31 = vld [vmem:[%s1367_s1 + $0x80] sm:$0xff]  }
   0xd   :  { %931 = vmatpush3.bf16.msra.mxu1 %v1001_v11  ;;  %868 = vmatprep.subr.bf16.mxu0 %v1002_v12  ;;  %v1022_v32 = vld [vmem:[%s1368_s0] ss:$16 sps:$4 sm:$0xff]   ;;  %v1024_v33 = vld [vmem:[%s1368_s0 + $0x4] ss:$16 sps:$4 sm:$0xff]   ;;  %v1025_v34 = vld [vmem:[%s1368_s0 + $0x8] ss:$16 sps:$4 sm:$0xff]  }
   0xe   :  { %932 = vmatprep.subr.bf16.mxu1 %v1003_v13  ;;  %v1027_v35 = vld [vmem:[%s1368_s0 + $0xc] ss:$16 sps:$4 sm:$0xff]   ;;  %502 = vmatprep.mubr.bf16.mxu0 %v1024_v33  ;;  %v1028_v36 = vld [vmem:[%s1368_s0 + $0x24] ss:$16 sps:$4 sm:$0xff]   ;;  %v1032_v38 = vld [vmem:[%s1368_s0 + $0x20] ss:$16 sps:$4 sm:$0xff]  }
   0xf   :  { %599 = vmatprep.mubr.bf16.mxu1 %v1027_v35  ;;  %v1030_v37 = vld [vmem:[%s1368_s0 + $0x2c] ss:$16 sps:$4 sm:$0xff]   ;;  %v1033_v39 = vld [vmem:[%s1368_s0 + $0x28] ss:$16 sps:$4 sm:$0xff]   ;;  %v1034_v40 = vld [vmem:[%s1368_s0 + $0x44] ss:$16 sps:$4 sm:$0xff]  }
  0x10   :  { %869 = vmatpush3.bf16.msra.mxu0 %v1004_v14  ;;  %v1036_v41 = vld [vmem:[%s1368_s0 + $0x4c] ss:$16 sps:$4 sm:$0xff]   ;;  %v1038_v42 = vld [vmem:[%s1368_s0 + $0x40] ss:$16 sps:$4 sm:$0xff]   ;;  %v1039_v43 = vld [vmem:[%s1368_s0 + $0x48] ss:$16 sps:$4 sm:$0xff]  }
  0x11   :  { %933 = vmatpush3.bf16.msra.mxu1 %v1005_v15  ;;  %870 = vmatprep.subr.bf16.mxu0 %v1006_v16  ;;  %v1040_v44 = vld [vmem:[%s1368_s0 + $0x64] ss:$16 sps:$4 sm:$0xff]   ;;  %v1042_v45 = vld [vmem:[%s1368_s0 + $0x6c] ss:$16 sps:$4 sm:$0xff]   ;;  %v1044_v46 = vld [vmem:[%s1368_s0 + $0x60] ss:$16 sps:$4 sm:$0xff]  }
  0x12   :  { %934 = vmatprep.subr.bf16.mxu1 %v1007_v17  ;;  %v1045_v47 = vld [vmem:[%s1368_s0 + $0x68] ss:$16 sps:$4 sm:$0xff]   ;;  %v1046_v48 = vld [vmem:[%s1368_s0 + $0x84] ss:$16 sps:$4 sm:$0xff]   ;;  %v1048_v49 = vld [vmem:[%s1368_s0 + $0x8c] ss:$16 sps:$4 sm:$0xff]  }
  0x13   :  { %v1050_v50 = vld [vmem:[%s1368_s0 + $0x80] ss:$16 sps:$4 sm:$0xff]   ;;  %v1051_v51 = vld [vmem:[%s1368_s0 + $0x88] ss:$16 sps:$4 sm:$0xff]   ;;  %v1052_v52 = vld [vmem:[%s1368_s0 + $0xa4] ss:$16 sps:$4 sm:$0xff]  }
  0x14   :  { %871 = vmatpush3.bf16.msra.mxu0 %v1008_v18  ;;  %v1054_v53 = vld [vmem:[%s1368_s0 + $0xac] ss:$16 sps:$4 sm:$0xff]   ;;  %v1056_v54 = vld [vmem:[%s1368_s0 + $0xa0] ss:$16 sps:$4 sm:$0xff]   ;;  %v1057_v55 = vld [vmem:[%s1368_s0 + $0xa8] ss:$16 sps:$4 sm:$0xff]  }
  0x15   :  { %935 = vmatpush3.bf16.msra.mxu1 %v1009_v19  ;;  %872 = vmatprep.subr.bf16.mxu0 %v1010_v20  ;;  %v1058_v56 = vld [vmem:[%s1368_s0 + $0xc4] ss:$16 sps:$4 sm:$0xff]   ;;  %v1060_v57 = vld [vmem:[%s1368_s0 + $0xcc] ss:$16 sps:$4 sm:$0xff]   ;;  %v1062_v58 = vld [vmem:[%s1368_s0 + $0xc0] ss:$16 sps:$4 sm:$0xff]  }
  0x16   :  { %936 = vmatprep.subr.bf16.mxu1 %v1011_v21  ;;  %v1063_v59 = vld [vmem:[%s1368_s0 + $0xc8] ss:$16 sps:$4 sm:$0xff]   ;;  %v1064_v60 = vld [vmem:[%s1368_s0 + $0xe4] ss:$16 sps:$4 sm:$0xff]   ;;  %v1066_v61 = vld [vmem:[%s1368_s0 + $0xec] ss:$16 sps:$4 sm:$0xff]  }
  0x17   :  { %v1068_v62 = vld [vmem:[%s1368_s0 + $0xe0] ss:$16 sps:$4 sm:$0xff]   ;;  %v1069_v63 = vld [vmem:[%s1368_s0 + $0xe8] ss:$16 sps:$4 sm:$0xff]  }
  0x18   :  { %873 = vmatpush3.bf16.msra.mxu0 %v1012_v22  ;;  %v1285_v2 = vld [vmem:[%s1369_s2] ss:$0 sm:$0xff] }
  0x19   :  { %937 = vmatpush3.bf16.msra.mxu1 %v1013_v23  ;;  %874 = vmatprep.subr.bf16.mxu0 %v1014_v24 }
  0x1a   :  { %938 = vmatprep.subr.bf16.mxu1 %v1015_v25 }
  0x1c   :  { %875 = vmatpush3.bf16.msra.mxu0 %v1016_v26 }
  0x1d   :  { %939 = vmatpush3.bf16.msra.mxu1 %v1017_v27  ;;  %876 = vmatprep.subr.bf16.mxu0 %v1018_v28 }
  0x1e   :  { %940 = vmatprep.subr.bf16.mxu1 %v1019_v29 }
  0x20   :  { %877 = vmatpush3.bf16.msra.mxu0 %v1020_v30 }
  0x21   :  { %941 = vmatpush3.bf16.msra.mxu1 %v1021_v31 }
  0x23   :  { %503 = vmatmul.mubr.bf16.vlgmr.msra.gmra.mxu0 %v1022_v32 }
  0x24   :  { %600 = vmatmul.mubr.bf16.vlgmr.msra.gmra.mxu1 %v1025_v34  ;;  %510 = vmatprep.mubr.bf16.mxu0 %v1028_v36 }
  0x25   :  { %607 = vmatprep.mubr.bf16.mxu1 %v1030_v37 }
  0x2b   :  { %511 = vmatmul.mubr.bf16.gmra.mxu0 %v1032_v38 }
  0x2c   :  { %608 = vmatmul.mubr.bf16.gmra.mxu1 %v1033_v39  ;;  %518 = vmatprep.mubr.bf16.mxu0 %v1034_v40 }
  0x2d   :  { %615 = vmatprep.mubr.bf16.mxu1 %v1036_v41 }
  0x33   :  { %519 = vmatmul.mubr.bf16.gmra.mxu0 %v1038_v42 }
  0x34   :  { %616 = vmatmul.mubr.bf16.gmra.mxu1 %v1039_v43  ;;  %526 = vmatprep.mubr.bf16.mxu0 %v1040_v44 }
  0x35   :  { %623 = vmatprep.mubr.bf16.mxu1 %v1042_v45 }
  0x3b   :  { %527 = vmatmul.mubr.bf16.gmra.mxu0 %v1044_v46 }
  0x3c   :  { %624 = vmatmul.mubr.bf16.gmra.mxu1 %v1045_v47  ;;  %534 = vmatprep.mubr.bf16.mxu0 %v1046_v48 }
  0x3d   :  { %631 = vmatprep.mubr.bf16.mxu1 %v1048_v49 }
  0x43   :  { %535 = vmatmul.mubr.bf16.gmra.mxu0 %v1050_v50 }
  0x44   :  { %632 = vmatmul.mubr.bf16.gmra.mxu1 %v1051_v51  ;;  %542 = vmatprep.mubr.bf16.mxu0 %v1052_v52 }
  0x45   :  { %639 = vmatprep.mubr.bf16.mxu1 %v1054_v53 }
  0x4b   :  { %543 = vmatmul.mubr.bf16.gmra.mxu0 %v1056_v54 }
  0x4c   :  { %640 = vmatmul.mubr.bf16.gmra.mxu1 %v1057_v55  ;;  %550 = vmatprep.mubr.bf16.mxu0 %v1058_v56 }
  0x4d   :  { %647 = vmatprep.mubr.bf16.mxu1 %v1060_v57 }
  0x53   :  { %551 = vmatmul.mubr.bf16.gmra.mxu0 %v1062_v58 }
  0x54   :  { %648 = vmatmul.mubr.bf16.gmra.mxu1 %v1063_v59  ;;  %558 = vmatprep.mubr.bf16.mxu0 %v1064_v60 }
  0x55   :  { %655 = vmatprep.mubr.bf16.mxu1 %v1066_v61 }
  0x5b   :  { %559 = vmatmul.mubr.bf16.gmra.mxu0 %v1068_v62 }
  0x5c   :  { %656 = vmatmul.mubr.bf16.gmra.mxu1 %v1069_v63 }
  0xe3   :  { %v878_v0 = vpop.f32.mrf.mxu0 }
  0xe4   :  { %v942_v1 = vpop.f32.mrf.mxu1 }
  0xe5   :  { %v879_v3 = vpop.f32.mrf.mxu0 }
  0xe6   :  { %v880_v4 = vadd.f32 %v879_v3, %v878_v0  ;;  %v943_v5 = vpop.f32.mrf.mxu1 }
  0xe7   :  { %v881_v6 = vpop.f32.mrf.mxu0  ;;  %v944_v8 = vadd.f32 %v943_v5, %v942_v1 }
  0xe8   :  { %v505_v7 = vadd.f32 %v880_v4, %v1285_v2  ;;  %v945_v9 = vpop.f32.mrf.mxu1 }
  0xe9   :  { %v882_v10 = vpop.f32.mrf.mxu0 }
  0xea   :  { %v602_v11 = vadd.f32 %v944_v8, %v505_v7  ;;  %v883_v12 = vadd.f32 %v882_v10, %v881_v6  ;;  %v946_v13 = vpop.f32.mrf.mxu1 }
  0xeb   :  { %v884_v14 = vpop.f32.mrf.mxu0  ;;  %v947_v17 = vadd.f32 %v946_v13, %v945_v9 }
  0xec   :  { %v664_v15 = vmax.f32 %v602_v11, 0.0  ;;  %v508_v16 = vadd.f32 %v883_v12, %v1285_v2  ;;  %v948_v18 = vpop.f32.mrf.mxu1 }
  0xed   :  { %v885_v19 = vpop.f32.mrf.mxu0 }
  0xee   :  { %v846_v20 = vpack.c.bf16 %v664_v15, %v664_v15  ;;  %v605_v21 = vadd.f32 %v947_v17, %v508_v16  ;;  %v886_v22 = vadd.f32 %v885_v19, %v884_v14  ;;  %v949_v23 = vpop.f32.mrf.mxu1 }
  0xef   :  { %v887_v24 = vpop.f32.mrf.mxu0  ;;  %v950_v27 = vadd.f32 %v949_v23, %v948_v18 }
  0xf0   :  { %745 = vst.msk [vmem:[%s1370_s3] sm:$0xf] %vm744_vm0, %v846_v20  ;;  %v665_v25 = vmax.f32 %v605_v21, 0.0  ;;  %v513_v26 = vadd.f32 %v886_v22, %v1285_v2  ;;  %v951_v28 = vpop.f32.mrf.mxu1 }
  0xf1   :  { %v888_v29 = vpop.f32.mrf.mxu0 }
  0xf2   :  { %v847_v30 = vpack.c.bf16 %v665_v25, %v665_v25  ;;  %v610_v31 = vadd.f32 %v950_v27, %v513_v26  ;;  %v889_v32 = vadd.f32 %v888_v29, %v887_v24  ;;  %v952_v33 = vpop.f32.mrf.mxu1 }
  0xf3   :  { %v890_v34 = vpop.f32.mrf.mxu0  ;;  %v953_v37 = vadd.f32 %v952_v33, %v951_v28 }
  0xf4   :  { %746 = vst.msk [vmem:[%s1370_s3 + $0x4] sm:$0xf] %vm744_vm0, %v847_v30  ;;  %v666_v35 = vmax.f32 %v610_v31, 0.0  ;;  %v516_v36 = vadd.f32 %v889_v32, %v1285_v2  ;;  %v954_v38 = vpop.f32.mrf.mxu1 }
  0xf5   :  { %v891_v39 = vpop.f32.mrf.mxu0 }
  0xf6   :  { %v848_v40 = vpack.c.bf16 %v666_v35, %v666_v35  ;;  %v613_v41 = vadd.f32 %v953_v37, %v516_v36  ;;  %v892_v42 = vadd.f32 %v891_v39, %v890_v34  ;;  %v955_v43 = vpop.f32.mrf.mxu1 }
  0xf7   :  { %v893_v44 = vpop.f32.mrf.mxu0  ;;  %v956_v47 = vadd.f32 %v955_v43, %v954_v38 }
  0xf8   :  { %747 = vst.msk [vmem:[%s1370_s3 + $0x8] sm:$0xf] %vm744_vm0, %v848_v40  ;;  %v667_v45 = vmax.f32 %v613_v41, 0.0  ;;  %v521_v46 = vadd.f32 %v892_v42, %v1285_v2  ;;  %v957_v48 = vpop.f32.mrf.mxu1 }
  0xf9   :  { %v894_v49 = vpop.f32.mrf.mxu0 }
  0xfa   :  { %v849_v50 = vpack.c.bf16 %v667_v45, %v667_v45  ;;  %v618_v51 = vadd.f32 %v956_v47, %v521_v46  ;;  %v895_v52 = vadd.f32 %v894_v49, %v893_v44  ;;  %v958_v53 = vpop.f32.mrf.mxu1 }
  0xfb   :  { %v896_v54 = vpop.f32.mrf.mxu0  ;;  %v959_v57 = vadd.f32 %v958_v53, %v957_v48 }
  0xfc   :  { %748 = vst.msk [vmem:[%s1370_s3 + $0xc] sm:$0xf] %vm744_vm0, %v849_v50  ;;  %v668_v55 = vmax.f32 %v618_v51, 0.0  ;;  %v524_v56 = vadd.f32 %v895_v52, %v1285_v2  ;;  %v960_v58 = vpop.f32.mrf.mxu1 }
  0xfd   :  { %v897_v59 = vpop.f32.mrf.mxu0 }
  0xfe   :  { %v850_v60 = vpack.c.bf16 %v668_v55, %v668_v55  ;;  %v621_v61 = vadd.f32 %v959_v57, %v524_v56  ;;  %v898_v62 = vadd.f32 %v897_v59, %v896_v54  ;;  %v961_v63 = vpop.f32.mrf.mxu1 }
  0xff   :  { %v899_v0 = vpop.f32.mrf.mxu0  ;;  %v962_v4 = vadd.f32 %v961_v63, %v960_v58 }
 0x100   :  { %749 = vst.msk [vmem:[%s1370_s3 + $0x10] sm:$0xf] %vm744_vm0, %v850_v60  ;;  %v669_v1 = vmax.f32 %v621_v61, 0.0  ;;  %v529_v3 = vadd.f32 %v898_v62, %v1285_v2  ;;  %v963_v5 = vpop.f32.mrf.mxu1 }
 0x101   :  { %v900_v6 = vpop.f32.mrf.mxu0 }
 0x102   :  { %v851_v7 = vpack.c.bf16 %v669_v1, %v669_v1  ;;  %v626_v8 = vadd.f32 %v962_v4, %v529_v3  ;;  %v901_v9 = vadd.f32 %v900_v6, %v899_v0  ;;  %v964_v10 = vpop.f32.mrf.mxu1 }
 0x103   :  { %v902_v11 = vpop.f32.mrf.mxu0  ;;  %v965_v14 = vadd.f32 %v964_v10, %v963_v5 }
 0x104   :  { %750 = vst.msk [vmem:[%s1370_s3 + $0x14] sm:$0xf] %vm744_vm0, %v851_v7  ;;  %v670_v12 = vmax.f32 %v626_v8, 0.0  ;;  %v532_v13 = vadd.f32 %v901_v9, %v1285_v2  ;;  %v966_v15 = vpop.f32.mrf.mxu1 }
 0x105   :  { %v903_v16 = vpop.f32.mrf.mxu0 }
 0x106   :  { %v852_v17 = vpack.c.bf16 %v670_v12, %v670_v12  ;;  %v629_v18 = vadd.f32 %v965_v14, %v532_v13  ;;  %v904_v19 = vadd.f32 %v903_v16, %v902_v11  ;;  %v967_v20 = vpop.f32.mrf.mxu1 }
 0x107   :  { %v905_v21 = vpop.f32.mrf.mxu0  ;;  %v968_v24 = vadd.f32 %v967_v20, %v966_v15 }
 0x108   :  { %751 = vst.msk [vmem:[%s1370_s3 + $0x18] sm:$0xf] %vm744_vm0, %v852_v17  ;;  %v671_v22 = vmax.f32 %v629_v18, 0.0  ;;  %v537_v23 = vadd.f32 %v904_v19, %v1285_v2  ;;  %v969_v25 = vpop.f32.mrf.mxu1 }
 0x109   :  { %v906_v26 = vpop.f32.mrf.mxu0 }
 0x10a   :  { %v853_v27 = vpack.c.bf16 %v671_v22, %v671_v22  ;;  %v634_v28 = vadd.f32 %v968_v24, %v537_v23  ;;  %v907_v29 = vadd.f32 %v906_v26, %v905_v21  ;;  %v970_v30 = vpop.f32.mrf.mxu1 }
 0x10b   :  { %v908_v31 = vpop.f32.mrf.mxu0  ;;  %v971_v34 = vadd.f32 %v970_v30, %v969_v25 }
 0x10c   :  { %752 = vst.msk [vmem:[%s1370_s3 + $0x1c] sm:$0xf] %vm744_vm0, %v853_v27  ;;  %v672_v32 = vmax.f32 %v634_v28, 0.0  ;;  %v540_v33 = vadd.f32 %v907_v29, %v1285_v2  ;;  %v972_v35 = vpop.f32.mrf.mxu1 }
 0x10d   :  { %v909_v36 = vpop.f32.mrf.mxu0 }
 0x10e   :  { %v854_v37 = vpack.c.bf16 %v672_v32, %v672_v32  ;;  %v637_v38 = vadd.f32 %v971_v34, %v540_v33  ;;  %v910_v39 = vadd.f32 %v909_v36, %v908_v31  ;;  %v973_v40 = vpop.f32.mrf.mxu1 }
 0x10f   :  { %v911_v41 = vpop.f32.mrf.mxu0  ;;  %v974_v44 = vadd.f32 %v973_v40, %v972_v35 }
 0x110   :  { %753 = vst.msk [vmem:[%s1370_s3 + $0x20] sm:$0xf] %vm744_vm0, %v854_v37  ;;  %v673_v42 = vmax.f32 %v637_v38, 0.0  ;;  %v545_v43 = vadd.f32 %v910_v39, %v1285_v2  ;;  %v975_v45 = vpop.f32.mrf.mxu1 }
 0x111   :  { %v912_v46 = vpop.f32.mrf.mxu0 }
 0x112   :  { %v855_v47 = vpack.c.bf16 %v673_v42, %v673_v42  ;;  %v642_v48 = vadd.f32 %v974_v44, %v545_v43  ;;  %v913_v49 = vadd.f32 %v912_v46, %v911_v41  ;;  %v976_v50 = vpop.f32.mrf.mxu1 }
 0x113   :  { %v914_v51 = vpop.f32.mrf.mxu0  ;;  %v977_v54 = vadd.f32 %v976_v50, %v975_v45 }
 0x114   :  { %754 = vst.msk [vmem:[%s1370_s3 + $0x24] sm:$0xf] %vm744_vm0, %v855_v47  ;;  %v674_v52 = vmax.f32 %v642_v48, 0.0  ;;  %v548_v53 = vadd.f32 %v913_v49, %v1285_v2  ;;  %v978_v55 = vpop.f32.mrf.mxu1 }
 0x115   :  { %v915_v56 = vpop.f32.mrf.mxu0 }
 0x116   :  { %v856_v57 = vpack.c.bf16 %v674_v52, %v674_v52  ;;  %v645_v58 = vadd.f32 %v977_v54, %v548_v53  ;;  %v916_v59 = vadd.f32 %v915_v56, %v914_v51  ;;  %v979_v60 = vpop.f32.mrf.mxu1 }
 0x117   :  { %v917_v61 = vpop.f32.mrf.mxu0  ;;  %v980_v0 = vadd.f32 %v979_v60, %v978_v55 }
 0x118   :  { %755 = vst.msk [vmem:[%s1370_s3 + $0x28] sm:$0xf] %vm744_vm0, %v856_v57  ;;  %v675_v62 = vmax.f32 %v645_v58, 0.0  ;;  %v553_v63 = vadd.f32 %v916_v59, %v1285_v2  ;;  %v981_v1 = vpop.f32.mrf.mxu1 }
 0x119   :  { %v918_v3 = vpop.f32.mrf.mxu0 }
 0x11a   :  { %v857_v4 = vpack.c.bf16 %v675_v62, %v675_v62  ;;  %v650_v5 = vadd.f32 %v980_v0, %v553_v63  ;;  %v919_v6 = vadd.f32 %v918_v3, %v917_v61  ;;  %v982_v7 = vpop.f32.mrf.mxu1 }
 0x11b   :  { %v920_v8 = vpop.f32.mrf.mxu0  ;;  %v983_v11 = vadd.f32 %v982_v7, %v981_v1 }
 0x11c   :  { %756 = vst.msk [vmem:[%s1370_s3 + $0x2c] sm:$0xf] %vm744_vm0, %v857_v4  ;;  %v676_v9 = vmax.f32 %v650_v5, 0.0  ;;  %v556_v10 = vadd.f32 %v919_v6, %v1285_v2  ;;  %v984_v12 = vpop.f32.mrf.mxu1 }
 0x11d   :  { %v921_v13 = vpop.f32.mrf.mxu0 }
 0x11e   :  { %v858_v14 = vpack.c.bf16 %v676_v9, %v676_v9  ;;  %v653_v15 = vadd.f32 %v983_v11, %v556_v10  ;;  %v922_v16 = vadd.f32 %v921_v13, %v920_v8  ;;  %v985_v17 = vpop.f32.mrf.mxu1 }
 0x11f   :  { %v923_v18 = vpop.f32.mrf.mxu0  ;;  %v986_v21 = vadd.f32 %v985_v17, %v984_v12 }
 0x120   :  { %757 = vst.msk [vmem:[%s1370_s3 + $0x30] sm:$0xf] %vm744_vm0, %v858_v14  ;;  %v677_v19 = vmax.f32 %v653_v15, 0.0  ;;  %v561_v20 = vadd.f32 %v922_v16, %v1285_v2  ;;  %v987_v22 = vpop.f32.mrf.mxu1 }
 0x121   :  { %v924_v23 = vpop.f32.mrf.mxu0 }
 0x122   :  { %v859_v24 = vpack.c.bf16 %v677_v19, %v677_v19  ;;  %v658_v25 = vadd.f32 %v986_v21, %v561_v20  ;;  %v925_v26 = vadd.f32 %v924_v23, %v923_v18  ;;  %v988_v27 = vpop.f32.mrf.mxu1 }
 0x123   :  { %v989_v30 = vadd.f32 %v988_v27, %v987_v22 }
 0x124   :  { %758 = vst.msk [vmem:[%s1370_s3 + $0x34] sm:$0xf] %vm744_vm0, %v859_v24  ;;  %v678_v28 = vmax.f32 %v658_v25, 0.0  ;;  %v564_v29 = vadd.f32 %v925_v26, %v1285_v2 }
 0x126   :  { %v860_v31 = vpack.c.bf16 %v678_v28, %v678_v28  ;;  %v661_v32 = vadd.f32 %v989_v30, %v564_v29 }
 0x128   :  { %759 = vst.msk [vmem:[%s1370_s3 + $0x38] sm:$0xf] %vm744_vm0, %v860_v31  ;;  %v679_v33 = vmax.f32 %v661_v32, 0.0 }
 0x12a   :  { %v861_v34 = vpack.c.bf16 %v679_v33, %v679_v33 }
 0x12c   :  { %760 = vst.msk [vmem:[%s1370_s3 + $0x3c] sm:$0xf] %vm744_vm0, %v861_v34 }

// kernel: factorvae1_forward.12
= control target key start
LH: loop header
LB: loop body
LE: loop exit
PB: predicated region body
PF: predicated region fallthrough
CT: control target
= control target key end

     0   :  { %vm846_vm0 = vcmask 519168   ;;  %s1399_s1 = inlined_call_operand.vmem [shape: bf16[1,1024,128], index: 1, kind: input, shape index: {}]   ;;  %s1400_s0 = inlined_call_operand.vmem [shape: bf16[1,32,1024], index: 0, kind: input, shape index: {}]   ;;  %s1401_s2 = inlined_call_operand.vmem [shape: f32[1,128], index: 2, kind: input, shape index: {}]   ;;  %s1402_s3 = inlined_call_operand.vmem [shape: bf16[1,32,64], index: 3, kind: output, shape index: {}]  }
   0x1   :  { %v1056_v0 = vld [vmem:[%s1399_s1 + $0x78] sm:$0xff]   ;;  %v1060_v4 = vld [vmem:[%s1399_s1 + $0x70] sm:$0xff]   ;;  %v1064_v8 = vld [vmem:[%s1399_s1 + $0x68] sm:$0xff]  }
   0x2   :  { %v1057_v1 = vld [vmem:[%s1399_s1 + $0xf8] sm:$0xff]   ;;  %944 = vmatprep.subr.bf16.mxu0 %v1056_v0  ;;  %v1061_v5 = vld [vmem:[%s1399_s1 + $0xf0] sm:$0xff]   ;;  %v1065_v9 = vld [vmem:[%s1399_s1 + $0xe8] sm:$0xff]  }
   0x3   :  { %v1058_v2 = vld [vmem:[%s1399_s1 + $0x38] sm:$0xff]   ;;  %972 = vmatprep.subr.bf16.mxu1 %v1057_v1  ;;  %v1062_v6 = vld [vmem:[%s1399_s1 + $0x30] sm:$0xff]   ;;  %v1066_v10 = vld [vmem:[%s1399_s1 + $0x28] sm:$0xff]  }
   0x4   :  { %v1059_v3 = vld [vmem:[%s1399_s1 + $0xb8] sm:$0xff]   ;;  %945 = vmatpush3.bf16.msra.mxu0 %v1058_v2  ;;  %v1063_v7 = vld [vmem:[%s1399_s1 + $0xb0] sm:$0xff]   ;;  %v1067_v11 = vld [vmem:[%s1399_s1 + $0xa8] sm:$0xff]  }
   0x5   :  { %973 = vmatpush3.bf16.msra.mxu1 %v1059_v3  ;;  %946 = vmatprep.subr.bf16.mxu0 %v1060_v4  ;;  %v1068_v12 = vld [vmem:[%s1399_s1 + $0x60] sm:$0xff]   ;;  %v1072_v16 = vld [vmem:[%s1399_s1 + $0x58] sm:$0xff]   ;;  %v1076_v20 = vld [vmem:[%s1399_s1 + $0x50] sm:$0xff]  }
   0x6   :  { %974 = vmatprep.subr.bf16.mxu1 %v1061_v5  ;;  %v1069_v13 = vld [vmem:[%s1399_s1 + $0xe0] sm:$0xff]   ;;  %v1073_v17 = vld [vmem:[%s1399_s1 + $0xd8] sm:$0xff]   ;;  %v1077_v21 = vld [vmem:[%s1399_s1 + $0xd0] sm:$0xff]  }
   0x7   :  { %v1070_v14 = vld [vmem:[%s1399_s1 + $0x20] sm:$0xff]   ;;  %v1074_v18 = vld [vmem:[%s1399_s1 + $0x18] sm:$0xff]   ;;  %v1078_v22 = vld [vmem:[%s1399_s1 + $0x10] sm:$0xff]  }
   0x8   :  { %947 = vmatpush3.bf16.msra.mxu0 %v1062_v6  ;;  %v1071_v15 = vld [vmem:[%s1399_s1 + $0xa0] sm:$0xff]   ;;  %v1075_v19 = vld [vmem:[%s1399_s1 + $0x98] sm:$0xff]   ;;  %v1079_v23 = vld [vmem:[%s1399_s1 + $0x90] sm:$0xff]  }
   0x9   :  { %975 = vmatpush3.bf16.msra.mxu1 %v1063_v7  ;;  %948 = vmatprep.subr.bf16.mxu0 %v1064_v8  ;;  %v1080_v24 = vld [vmem:[%s1399_s1 + $0x48] sm:$0xff]   ;;  %v1084_v28 = vld [vmem:[%s1399_s1 + $0x40] sm:$0xff]   ;;  %v1088_v40 = vld [vmem:[%s1399_s1 + $0x178] sm:$0xff]  }
   0xa   :  { %976 = vmatprep.subr.bf16.mxu1 %v1065_v9  ;;  %v1081_v25 = vld [vmem:[%s1399_s1 + $0xc8] sm:$0xff]   ;;  %v1085_v29 = vld [vmem:[%s1399_s1 + $0xc0] sm:$0xff]   ;;  %v1089_v41 = vld [vmem:[%s1399_s1 + $0x1f8] sm:$0xff]  }
   0xb   :  { %v1082_v26 = vld [vmem:[%s1399_s1 + $0x8] sm:$0xff]   ;;  %v1086_v30 = vld [vmem:[%s1399_s1] sm:$0xff]   ;;  %v1090_v42 = vld [vmem:[%s1399_s1 + $0x138] sm:$0xff]  }
   0xc   :  { %949 = vmatpush3.bf16.msra.mxu0 %v1066_v10  ;;  %v1083_v27 = vld [vmem:[%s1399_s1 + $0x88] sm:$0xff]   ;;  %v1087_v31 = vld [vmem:[%s1399_s1 + $0x80] sm:$0xff]   ;;  %v1091_v43 = vld [vmem:[%s1399_s1 + $0x1b8] sm:$0xff]  }
   0xd   :  { %977 = vmatpush3.bf16.msra.mxu1 %v1067_v11  ;;  %950 = vmatprep.subr.bf16.mxu0 %v1068_v12  ;;  %v15_v32 = vld [vmem:[%s1400_s0] sm:$0xff]  ;;  %v16_v34 = vld [vmem:[%s1400_s0 + $0x8] sm:$0xff]  ;;  %v1092_v44 = vld [vmem:[%s1399_s1 + $0x170] sm:$0xff]  }
   0xe   :  { %978 = vmatprep.subr.bf16.mxu1 %v1069_v13  ;;  %v19_v33 = vld [vmem:[%s1400_s0 + $0x20] sm:$0xff]  ;;  %v20_v37 = vld [vmem:[%s1400_s0 + $0x28] sm:$0xff]  ;;  %v1093_v45 = vld [vmem:[%s1399_s1 + $0x1f0] sm:$0xff]  }
   0xf   :  { %v856_v35 = vcombine.low %v15_v32, %v19_v33  ;;  %v857_v36 = vcombine.high %v15_v32, %v19_v33  ;;  %v858_v38 = vcombine.low %v16_v34, %v20_v37  ;;  %v859_v39 = vcombine.high %v16_v34, %v20_v37  ;;  %v1094_v46 = vld [vmem:[%s1399_s1 + $0x130] sm:$0xff]   ;;  %v1096_v48 = vld [vmem:[%s1399_s1 + $0x168] sm:$0xff]   ;;  %v1100_v52 = vld [vmem:[%s1399_s1 + $0x160] sm:$0xff]  }
  0x10   :  { %951 = vmatpush3.bf16.msra.mxu0 %v1070_v14  ;;  %v1095_v47 = vld [vmem:[%s1399_s1 + $0x1b0] sm:$0xff]   ;;  %v1097_v49 = vld [vmem:[%s1399_s1 + $0x1e8] sm:$0xff]   ;;  %v1101_v53 = vld [vmem:[%s1399_s1 + $0x1e0] sm:$0xff]  }
  0x11   :  { %979 = vmatpush3.bf16.msra.mxu1 %v1071_v15  ;;  %952 = vmatprep.subr.bf16.mxu0 %v1072_v16  ;;  %v1098_v50 = vld [vmem:[%s1399_s1 + $0x128] sm:$0xff]   ;;  %v1102_v54 = vld [vmem:[%s1399_s1 + $0x120] sm:$0xff]   ;;  %v1104_v56 = vld [vmem:[%s1399_s1 + $0x158] sm:$0xff]  }
  0x12   :  { %980 = vmatprep.subr.bf16.mxu1 %v1073_v17  ;;  %662 = vmatprep.mubr.bf16.mxu0 %v857_v36  ;;  %v1099_v51 = vld [vmem:[%s1399_s1 + $0x1a8] sm:$0xff]   ;;  %v1103_v55 = vld [vmem:[%s1399_s1 + $0x1a0] sm:$0xff]   ;;  %v1105_v57 = vld [vmem:[%s1399_s1 + $0x1d8] sm:$0xff]  }
  0x13   :  { %711 = vmatprep.mubr.bf16.mxu1 %v859_v39  ;;  %v23_v58 = vld [vmem:[%s1400_s0 + $0x40] sm:$0xff]  ;;  %v1106_v61 = vld [vmem:[%s1399_s1 + $0x118] sm:$0xff]   ;;  %v24_v0 = vld [vmem:[%s1400_s0 + $0x48] sm:$0xff] }
  0x14   :  { %953 = vmatpush3.bf16.msra.mxu0 %v1074_v18  ;;  %v27_v59 = vld [vmem:[%s1400_s0 + $0x60] sm:$0xff]  ;;  %v1107_v63 = vld [vmem:[%s1399_s1 + $0x198] sm:$0xff]   ;;  %v28_v1 = vld [vmem:[%s1400_s0 + $0x68] sm:$0xff] }
  0x15   :  { %981 = vmatpush3.bf16.msra.mxu1 %v1075_v19  ;;  %954 = vmatprep.subr.bf16.mxu0 %v1076_v20  ;;  %v865_v60 = vcombine.high %v23_v58, %v27_v59  ;;  %v864_v62 = vcombine.low %v23_v58, %v27_v59  ;;  %v867_v2 = vcombine.high %v24_v0, %v28_v1  ;;  %v1108_v4 = vld [vmem:[%s1399_s1 + $0x150] sm:$0xff]   ;;  %v1112_v8 = vld [vmem:[%s1399_s1 + $0x148] sm:$0xff]   ;;  %v1116_v12 = vld [vmem:[%s1399_s1 + $0x140] sm:$0xff]  }
  0x16   :  { %982 = vmatprep.subr.bf16.mxu1 %v1077_v21  ;;  %v866_v3 = vcombine.low %v24_v0, %v28_v1  ;;  %v1109_v5 = vld [vmem:[%s1399_s1 + $0x1d0] sm:$0xff]   ;;  %v1113_v9 = vld [vmem:[%s1399_s1 + $0x1c8] sm:$0xff]   ;;  %v1117_v13 = vld [vmem:[%s1399_s1 + $0x1c0] sm:$0xff]  }
  0x17   :  { %v1110_v6 = vld [vmem:[%s1399_s1 + $0x110] sm:$0xff]   ;;  %v1114_v10 = vld [vmem:[%s1399_s1 + $0x108] sm:$0xff]   ;;  %v1118_v14 = vld [vmem:[%s1399_s1 + $0x100] sm:$0xff]  }
  0x18   :  { %955 = vmatpush3.bf16.msra.mxu0 %v1078_v22  ;;  %v1111_v7 = vld [vmem:[%s1399_s1 + $0x190] sm:$0xff]   ;;  %v1115_v11 = vld [vmem:[%s1399_s1 + $0x188] sm:$0xff]   ;;  %v1119_v15 = vld [vmem:[%s1399_s1 + $0x180] sm:$0xff]  }
  0x19   :  { %983 = vmatpush3.bf16.msra.mxu1 %v1079_v23  ;;  %956 = vmatprep.subr.bf16.mxu0 %v1080_v24  ;;  %v17_v16 = vld [vmem:[%s1400_s0 + $0x10] sm:$0xff]  ;;  %v18_v18 = vld [vmem:[%s1400_s0 + $0x18] sm:$0xff] }
  0x1a   :  { %984 = vmatprep.subr.bf16.mxu1 %v1081_v25  ;;  %v21_v17 = vld [vmem:[%s1400_s0 + $0x30] sm:$0xff]  ;;  %v22_v19 = vld [vmem:[%s1400_s0 + $0x38] sm:$0xff] }
  0x1b   :  { %v860_v20 = vcombine.low %v17_v16, %v21_v17  ;;  %v861_v21 = vcombine.high %v17_v16, %v21_v17  ;;  %v862_v22 = vcombine.low %v18_v18, %v22_v19  ;;  %v863_v23 = vcombine.high %v18_v18, %v22_v19  ;;  %v25_v24 = vld [vmem:[%s1400_s0 + $0x50] sm:$0xff] }
  0x1c   :  { %957 = vmatpush3.bf16.msra.mxu0 %v1082_v26  ;;  %v29_v25 = vld [vmem:[%s1400_s0 + $0x70] sm:$0xff]  ;;  %v26_v26 = vld [vmem:[%s1400_s0 + $0x58] sm:$0xff] }
  0x1d   :  { %985 = vmatpush3.bf16.msra.mxu1 %v1083_v27  ;;  %958 = vmatprep.subr.bf16.mxu0 %v1084_v28  ;;  %v869_v27 = vcombine.high %v25_v24, %v29_v25  ;;  %v30_v28 = vld [vmem:[%s1400_s0 + $0x78] sm:$0xff] }
  0x1e   :  { %986 = vmatprep.subr.bf16.mxu1 %v1085_v29  ;;  %v871_v29 = vcombine.high %v26_v26, %v30_v28 }
  0x20   :  { %959 = vmatpush3.bf16.msra.mxu0 %v1086_v30  ;;  %v868_v30 = vcombine.low %v25_v24, %v29_v25 }
  0x21   :  { %987 = vmatpush3.bf16.msra.mxu1 %v1087_v31  ;;  %1000 = vmatprep.subr.bf16.mxu0 %v1088_v40  ;;  %v870_v31 = vcombine.low %v26_v26, %v30_v28 }
  0x22   :  { %1028 = vmatprep.subr.bf16.mxu1 %v1089_v41 }
  0x23   :  { %663 = vmatmul.mubr.bf16.vlgmr.msra.gmra.mxu0 %v856_v35 }
  0x24   :  { %712 = vmatmul.mubr.bf16.vlgmr.msra.gmra.mxu1 %v858_v38  ;;  %1001 = vmatpush3.bf16.msra.mxu0 %v1090_v42 }
  0x25   :  { %1029 = vmatpush3.bf16.msra.mxu1 %v1091_v43  ;;  %1002 = vmatprep.subr.bf16.mxu0 %v1092_v44 }
  0x26   :  { %1030 = vmatprep.subr.bf16.mxu1 %v1093_v45  ;;  %670 = vmatprep.mubr.bf16.mxu0 %v865_v60 }
  0x27   :  { %719 = vmatprep.mubr.bf16.mxu1 %v867_v2 }
  0x28   :  { %1003 = vmatpush3.bf16.msra.mxu0 %v1094_v46 }
  0x29   :  { %1031 = vmatpush3.bf16.msra.mxu1 %v1095_v47  ;;  %1004 = vmatprep.subr.bf16.mxu0 %v1096_v48  ;;  %v855_v47 = vld [vmem:[%s1401_s2] ss:$0 sm:$0xff] }
  0x2a   :  { %1032 = vmatprep.subr.bf16.mxu1 %v1097_v49 }
  0x2b   :  { %671 = vmatmul.mubr.bf16.gmra.mxu0 %v864_v62 }
  0x2c   :  { %1005 = vmatpush3.bf16.msra.mxu0 %v1098_v50  ;;  %720 = vmatmul.mubr.bf16.gmra.mxu1 %v866_v3 }
  0x2d   :  { %1033 = vmatpush3.bf16.msra.mxu1 %v1099_v51  ;;  %1006 = vmatprep.subr.bf16.mxu0 %v1100_v52 }
  0x2e   :  { %1034 = vmatprep.subr.bf16.mxu1 %v1101_v53  ;;  %760 = vmatprep.mubr.bf16.mxu0 %v861_v21 }
  0x2f   :  { %809 = vmatprep.mubr.bf16.mxu1 %v863_v23 }
  0x30   :  { %1007 = vmatpush3.bf16.msra.mxu0 %v1102_v54 }
  0x31   :  { %1035 = vmatpush3.bf16.msra.mxu1 %v1103_v55  ;;  %1008 = vmatprep.subr.bf16.mxu0 %v1104_v56 }
  0x32   :  { %1036 = vmatprep.subr.bf16.mxu1 %v1105_v57 }
  0x34   :  { %1009 = vmatpush3.bf16.msra.mxu0 %v1106_v61 }
  0x35   :  { %1037 = vmatpush3.bf16.msra.mxu1 %v1107_v63  ;;  %1010 = vmatprep.subr.bf16.mxu0 %v1108_v4 }
  0x36   :  { %1038 = vmatprep.subr.bf16.mxu1 %v1109_v5 }
  0x38   :  { %1011 = vmatpush3.bf16.msra.mxu0 %v1110_v6 }
  0x39   :  { %1039 = vmatpush3.bf16.msra.mxu1 %v1111_v7  ;;  %1012 = vmatprep.subr.bf16.mxu0 %v1112_v8 }
  0x3a   :  { %1040 = vmatprep.subr.bf16.mxu1 %v1113_v9 }
  0x3c   :  { %1013 = vmatpush3.bf16.msra.mxu0 %v1114_v10 }
  0x3d   :  { %1041 = vmatpush3.bf16.msra.mxu1 %v1115_v11  ;;  %1014 = vmatprep.subr.bf16.mxu0 %v1116_v12 }
  0x3e   :  { %1042 = vmatprep.subr.bf16.mxu1 %v1117_v13 }
  0x40   :  { %1015 = vmatpush3.bf16.msra.mxu0 %v1118_v14 }
  0x41   :  { %1043 = vmatpush3.bf16.msra.mxu1 %v1119_v15 }
  0x43   :  { %761 = vmatmul.mubr.bf16.vlgmr.msra.gmra.mxu0 %v860_v20 }
  0x44   :  { %810 = vmatmul.mubr.bf16.vlgmr.msra.gmra.mxu1 %v862_v22  ;;  %768 = vmatprep.mubr.bf16.mxu0 %v869_v27 }
  0x45   :  { %817 = vmatprep.mubr.bf16.mxu1 %v871_v29 }
  0x4b   :  { %769 = vmatmul.mubr.bf16.gmra.mxu0 %v868_v30 }
  0x4c   :  { %818 = vmatmul.mubr.bf16.gmra.mxu1 %v870_v31 }
  0xe3   :  { %v960_v32 = vpop.f32.mrf.mxu0 }
  0xe4   :  { %v988_v33 = vpop.f32.mrf.mxu1 }
  0xe5   :  { %v961_v34 = vpop.f32.mrf.mxu0 }
  0xe6   :  { %v989_v35 = vpop.f32.mrf.mxu1  ;;  %v962_v46 = vadd.f32 %v961_v34, %v960_v32 }
  0xe7   :  { %v963_v36 = vpop.f32.mrf.mxu0  ;;  %v990_v51 = vadd.f32 %v989_v35, %v988_v33 }
  0xe8   :  { %v991_v37 = vpop.f32.mrf.mxu1  ;;  %v665_v50 = vadd.f32 %v962_v46, %v855_v47 }
  0xe9   :  { %v964_v38 = vpop.f32.mrf.mxu0 }
  0xea   :  { %v992_v39 = vpop.f32.mrf.mxu1  ;;  %v965_v52 = vadd.f32 %v964_v38, %v963_v36  ;;  %v714_v58 = vadd.f32 %v990_v51, %v665_v50 }
  0xeb   :  { %v966_v40 = vpop.f32.mrf.mxu0  ;;  %v993_v63 = vadd.f32 %v992_v39, %v991_v37 }
  0xec   :  { %v994_v41 = vpop.f32.mrf.mxu1  ;;  %v668_v59 = vadd.f32 %v965_v52, %v855_v47 }
  0xed   :  { %v967_v42 = vpop.f32.mrf.mxu0 }
  0xee   :  { %v995_v43 = vpop.f32.mrf.mxu1  ;;  %v968_v55 = vadd.f32 %v967_v42, %v966_v40  ;;  %v717_v7 = vadd.f32 %v993_v63, %v668_v59 }
  0xef   :  { %v969_v44 = vpop.f32.mrf.mxu0  ;;  %v996_v3 = vadd.f32 %v995_v43, %v994_v41 }
  0xf0   :  { %v997_v45 = vpop.f32.mrf.mxu1  ;;  %v673_v2 = vadd.f32 %v968_v55, %v855_v47 }
  0xf1   :  { %v970_v48 = vpop.f32.mrf.mxu0 }
  0xf2   :  { %v998_v49 = vpop.f32.mrf.mxu1  ;;  %v971_v4 = vadd.f32 %v970_v48, %v969_v44  ;;  %v722_v15 = vadd.f32 %v996_v3, %v673_v2 }
  0xf3   :  { %v999_v19 = vadd.f32 %v998_v49, %v997_v45 }
  0xf4   :  { %v676_v16 = vadd.f32 %v971_v4, %v855_v47 }
  0xf6   :  { %v725_v30 = vadd.f32 %v999_v19, %v676_v16 }
 0x103   :  { %v1016_v53 = vpop.f32.mrf.mxu0 }
 0x104   :  { %v1044_v54 = vpop.f32.mrf.mxu1 }
 0x105   :  { %v1017_v56 = vpop.f32.mrf.mxu0 }
 0x106   :  { %v1045_v57 = vpop.f32.mrf.mxu1  ;;  %v1018_v60 = vadd.f32 %v1017_v56, %v1016_v53 }
 0x107   :  { %v1019_v61 = vpop.f32.mrf.mxu0  ;;  %v1046_v1 = vadd.f32 %v1045_v57, %v1044_v54 }
 0x108   :  { %v1047_v62 = vpop.f32.mrf.mxu1  ;;  %v763_v0 = vadd.f32 %v1018_v60, %v714_v58 }
 0x109   :  { %v1020_v5 = vpop.f32.mrf.mxu0 }
 0x10a   :  { %v1048_v6 = vpop.f32.mrf.mxu1  ;;  %v812_v8 = vadd.f32 %v1046_v1, %v763_v0  ;;  %v1021_v9 = vadd.f32 %v1020_v5, %v1019_v61 }
 0x10b   :  { %v1022_v10 = vpop.f32.mrf.mxu0  ;;  %v1049_v14 = vadd.f32 %v1048_v6, %v1047_v62 }
 0x10c   :  { %v1050_v11 = vpop.f32.mrf.mxu1  ;;  %v826_v12 = vmax.f32 %v812_v8, 0.0  ;;  %v766_v13 = vadd.f32 %v1021_v9, %v717_v7 }
 0x10d   :  { %v1023_v17 = vpop.f32.mrf.mxu0 }
 0x10e   :  { %v1051_v18 = vpop.f32.mrf.mxu1  ;;  %v940_v20 = vpack.c.bf16 %v826_v12, %v826_v12  ;;  %v815_v21 = vadd.f32 %v1049_v14, %v766_v13  ;;  %v1024_v22 = vadd.f32 %v1023_v17, %v1022_v10 }
 0x10f   :  { %v1025_v23 = vpop.f32.mrf.mxu0  ;;  %v1052_v27 = vadd.f32 %v1051_v18, %v1050_v11 }
 0x110   :  { %v1053_v24 = vpop.f32.mrf.mxu1  ;;  %847 = vst.msk [vmem:[%s1402_s3] sm:$0xf] %vm846_vm0, %v940_v20  ;;  %v827_v25 = vmax.f32 %v815_v21, 0.0  ;;  %v771_v26 = vadd.f32 %v1024_v22, %v722_v15 }
 0x111   :  { %v1026_v28 = vpop.f32.mrf.mxu0 }
 0x112   :  { %v1054_v29 = vpop.f32.mrf.mxu1  ;;  %v941_v31 = vpack.c.bf16 %v827_v25, %v827_v25  ;;  %v820_v32 = vadd.f32 %v1052_v27, %v771_v26  ;;  %v1027_v33 = vadd.f32 %v1026_v28, %v1025_v23 }
 0x113   :  { %v1055_v36 = vadd.f32 %v1054_v29, %v1053_v24 }
 0x114   :  { %848 = vst.msk [vmem:[%s1402_s3 + $0x4] sm:$0xf] %vm846_vm0, %v941_v31  ;;  %v828_v34 = vmax.f32 %v820_v32, 0.0  ;;  %v774_v35 = vadd.f32 %v1027_v33, %v725_v30 }
 0x116   :  { %v942_v37 = vpack.c.bf16 %v828_v34, %v828_v34  ;;  %v823_v38 = vadd.f32 %v1055_v36, %v774_v35 }
 0x118   :  { %849 = vst.msk [vmem:[%s1402_s3 + $0x8] sm:$0xf] %vm846_vm0, %v942_v37  ;;  %v829_v39 = vmax.f32 %v823_v38, 0.0 }
 0x11a   :  { %v943_v40 = vpack.c.bf16 %v829_v39, %v829_v39 }
 0x11c   :  { %850 = vst.msk [vmem:[%s1402_s3 + $0xc] sm:$0xf] %vm846_vm0, %v943_v40 }

// kernel: factorvae1_forward.14
= control target key start
LH: loop header
LB: loop body
LE: loop exit
PB: predicated region body
PF: predicated region fallthrough
CT: control target
= control target key end

     0   :  { %s748_s12 = smov 0   ;;  %s750_s13 = smov 0   ;;  %s810_s0 = inlined_call_operand.vmem [shape: bf16[4,32,256], index: 0, kind: input, shape index: {}]   ;;  %s811_s1 = inlined_call_operand.vmem [shape: bf16[4,256,128], index: 1, kind: input, shape index: {}]   ;;  %s812_s2 = inlined_call_operand.vmem [shape: f32[1,128], index: 2, kind: input, shape index: {}]   ;;  %s813_s3 = inlined_call_operand.vmem [shape: bf16[4,32,64], index: 3, kind: output, shape index: {}]  }
   0x1   :  { %s752_s14 = smov 0  }
   0x2 LB: > { %s25_s15 = sadd.s32 1, %s722_s13  ;;  %p573_p0 = scmp.ge.s32.totalorder %s726_s14, 1  ;;  %s726_s14 = sphi %s752_s14, %s13_s14   ;;  %s722_s13 = sphi %s750_s13, %s815_s13   ;;  %s718_s12 = sphi %s748_s12, %s814_s12  }
   0x3   : > { %p27_p1 = scmp.ge.s32.totalorder %s25_s15, 4  ;;  %p169_p2 = scmp.lt.s32.totalorder %s726_s14, 5 }
   0x5   : > { %s817_s15 = smov (%p27_p1, %s25_s15), 0  ;;  %p170_p3 = pnand %p573_p0, %p169_p2 }
   0x6   : > { %p208_p4 = scmp.lt.s32.totalorder (!%p170_p3), %s718_s12, 3 }
   0x7   : > { %173 = sbr.rel (%p170_p3) target bundleno = 256 (0x100), region = 32 }
   0xc   : > { %s819_s12 = smov (!%p208_p4, %s718_s12), 3  ;;  %v580_v22 = vld [vmem:[%s812_s2] ss:$0 sm:$0xff]  ;;  %vm462_vm0 = vcmask 519168  }
   0xd   : > { %s608_s16 = sshll.u32 %s819_s12, 7  ;;  %s607_s20 = sshll.u32 %s819_s12, 5 }
   0xe   : > { %s772_s19 = scalar_lea.vmem %s811_s1, %s608_s16  ;;  %s216_s23 = scalar_lea.vmem %s810_s0, %s607_s20 }
   0xf   : > { %v682_v0 = vld [vmem:[%s772_s19 + $0x78] sm:$0xff]   ;;  %v684_v2 = vld [vmem:[%s772_s19 + $0x70] sm:$0xff]   ;;  %v686_v4 = vld [vmem:[%s772_s19 + $0x68] sm:$0xff]   ;;  %s609_s26 = sshll.u32 %s819_s12, 4 }
  0x10   : > { %v683_v1 = vld [vmem:[%s772_s19 + $0x38] sm:$0xff]   ;;  %614 = vmatprep.subr.bf16.mxu0 %v682_v0  ;;  %642 = vmatprep.subr.bf16.mxu1 %v682_v0  ;;  %v685_v3 = vld [vmem:[%s772_s19 + $0x30] sm:$0xff]   ;;  %v687_v5 = vld [vmem:[%s772_s19 + $0x28] sm:$0xff]   ;;  %s231_s29 = scalar_lea.vmem %s813_s3, %s609_s26 }
  0x11   : > { %615 = vmatpush3.bf16.msra.mxu0 %v683_v1  ;;  %650 = vmatpush3.bf16.msra.mxu1 %v683_v1  ;;  %v688_v6 = vld [vmem:[%s772_s19 + $0x60] sm:$0xff]   ;;  %v690_v8 = vld [vmem:[%s772_s19 + $0x58] sm:$0xff]   ;;  %v692_v10 = vld [vmem:[%s772_s19 + $0x50] sm:$0xff]  }
  0x12   : > { %616 = vmatprep.subr.bf16.mxu0 %v684_v2  ;;  %643 = vmatprep.subr.bf16.mxu1 %v684_v2  ;;  %v689_v7 = vld [vmem:[%s772_s19 + $0x20] sm:$0xff]   ;;  %v691_v9 = vld [vmem:[%s772_s19 + $0x18] sm:$0xff]   ;;  %v693_v13 = vld [vmem:[%s772_s19 + $0x10] sm:$0xff]  }
  0x13   : > { %v700_v11 = vld [vmem:[%s216_s23 + $0x4] ss:$8 sps:$4 sm:$0xff]   ;;  %v703_v12 = vld [vmem:[%s216_s23 + $0x14] ss:$8 sps:$4 sm:$0xff]   ;;  %v698_v18 = vld [vmem:[%s216_s23] ss:$8 sps:$4 sm:$0xff]  }
  0x14   : > { %v694_v14 = vld [vmem:[%s772_s19 + $0x48] sm:$0xff]   ;;  %425 = vmatprep.mubr.bf16.mxu0 %v700_v11  ;;  %433 = vmatprep.mubr.bf16.mxu1 %v703_v12  ;;  %v696_v16 = vld [vmem:[%s772_s19 + $0x40] sm:$0xff]   ;;  %v701_v19 = vld [vmem:[%s216_s23 + $0x10] ss:$8 sps:$4 sm:$0xff]  }
  0x15   : > { %617 = vmatpush3.bf16.msra.mxu0 %v685_v3  ;;  %651 = vmatpush3.bf16.msra.mxu1 %v685_v3  ;;  %v695_v15 = vld [vmem:[%s772_s19 + $0x8] sm:$0xff]   ;;  %v697_v17 = vld [vmem:[%s772_s19] sm:$0xff]  }
  0x16   : > { %618 = vmatprep.subr.bf16.mxu0 %v686_v4  ;;  %644 = vmatprep.subr.bf16.mxu1 %v686_v4 }
  0x19   : > { %619 = vmatpush3.bf16.msra.mxu0 %v687_v5  ;;  %652 = vmatpush3.bf16.msra.mxu1 %v687_v5 }
  0x1a   : > { %620 = vmatprep.subr.bf16.mxu0 %v688_v6  ;;  %645 = vmatprep.subr.bf16.mxu1 %v688_v6 }
  0x1d   : > { %621 = vmatpush3.bf16.msra.mxu0 %v689_v7  ;;  %653 = vmatpush3.bf16.msra.mxu1 %v689_v7 }
  0x1e   : > { %622 = vmatprep.subr.bf16.mxu0 %v690_v8  ;;  %646 = vmatprep.subr.bf16.mxu1 %v690_v8 }
  0x21   : > { %623 = vmatpush3.bf16.msra.mxu0 %v691_v9  ;;  %654 = vmatpush3.bf16.msra.mxu1 %v691_v9 }
  0x22   : > { %624 = vmatprep.subr.bf16.mxu0 %v692_v10  ;;  %647 = vmatprep.subr.bf16.mxu1 %v692_v10 }
  0x25   : > { %625 = vmatpush3.bf16.msra.mxu0 %v693_v13  ;;  %655 = vmatpush3.bf16.msra.mxu1 %v693_v13 }
  0x26   : > { %626 = vmatprep.subr.bf16.mxu0 %v694_v14  ;;  %648 = vmatprep.subr.bf16.mxu1 %v694_v14 }
  0x29   : > { %627 = vmatpush3.bf16.msra.mxu0 %v695_v15  ;;  %656 = vmatpush3.bf16.msra.mxu1 %v695_v15 }
  0x2a   : > { %628 = vmatprep.subr.bf16.mxu0 %v696_v16  ;;  %649 = vmatprep.subr.bf16.mxu1 %v696_v16 }
  0x2d   : > { %629 = vmatpush3.bf16.msra.mxu0 %v697_v17  ;;  %657 = vmatpush3.bf16.msra.mxu1 %v697_v17 }
  0x30   : > { %426 = vmatmul.mubr.bf16.vlgmr.msra.gmra.mxu0 %v698_v18  ;;  %434 = vmatmul.mubr.bf16.vlgmr.msra.gmra.mxu1 %v701_v19 }
  0xf0   : > { %v630_v20 = vpop.f32.mrf.mxu0  ;;  %v636_v21 = vpop.f32.mrf.mxu1 }
  0xf2   : > { %v631_v23 = vpop.f32.mrf.mxu0  ;;  %v637_v24 = vpop.f32.mrf.mxu1 }
  0xf3   : > { %v632_v25 = vadd.f32 %v631_v23, %v630_v20  ;;  %v638_v26 = vadd.f32 %v637_v24, %v636_v21 }
  0xf4   : > { %v633_v27 = vpop.f32.mrf.mxu0  ;;  %v639_v28 = vpop.f32.mrf.mxu1 }
  0xf5   : > { %v428_v29 = vadd.f32 %v632_v25, %v580_v22  ;;  %v436_v30 = vadd.f32 %v638_v26, %v580_v22 }
  0xf6   : > { %v634_v31 = vpop.f32.mrf.mxu0  ;;  %v640_v32 = vpop.f32.mrf.mxu1 }
  0xf7   : > { %v442_v33 = vmax.f32 %v428_v29, 0.0  ;;  %v444_v34 = vmax.f32 %v436_v30, 0.0  ;;  %v635_v35 = vadd.f32 %v634_v31, %v633_v27  ;;  %v641_v36 = vadd.f32 %v640_v32, %v639_v28 }
  0xf9   : > { %v610_v37 = vpack.c.bf16 %v442_v33, %v442_v33  ;;  %v612_v38 = vpack.c.bf16 %v444_v34, %v444_v34  ;;  %v431_v39 = vadd.f32 %v635_v35, %v580_v22  ;;  %v439_v40 = vadd.f32 %v641_v36, %v580_v22 }
  0xfb   : > { %463 = vst.msk [vmem:[%s231_s29] sm:$0xf] %vm462_vm0, %v610_v37  ;;  %465 = vst.msk [vmem:[%s231_s29 + $0x8] sm:$0xf] %vm462_vm0, %v612_v38  ;;  %v443_v41 = vmax.f32 %v431_v39, 0.0  ;;  %v445_v42 = vmax.f32 %v439_v40, 0.0 }
  0xfd   : > { %v611_v43 = vpack.c.bf16 %v443_v41, %v443_v41  ;;  %v613_v44 = vpack.c.bf16 %v445_v42, %v445_v42 }
  0xff   : > { %464 = vst.msk [vmem:[%s231_s29 + $0x4] sm:$0xf] %vm462_vm0, %v611_v43  ;;  %466 = vst.msk [vmem:[%s231_s29 + $0xc] sm:$0xf] %vm462_vm0, %v613_v44 }
 0x100 PF: > { %s13_s14 = sadd.s32 1, %s726_s14   ;;  %s814_s12 = smov %s722_s13 }
 0x101   : > { %p10_p5 = scmp.ge.s32.totalorder %s13_s14, 6   ;;  %s815_s13 = smov %s817_s15 }
 0x103   :  { %12 = sbr.rel (!%p10_p5) target bundleno = 2 (0x2), region = 65 }

// kernel: factorvae1_forward.15
= control target key start
LH: loop header
LB: loop body
LE: loop exit
PB: predicated region body
PF: predicated region fallthrough
CT: control target
= control target key end

     0   :  { %s1030_s12 = smov 0   ;;  %s1032_s13 = smov 0   ;;  %s1161_s0 = inlined_call_operand.vmem [shape: bf16[4,128,256], index: 0, kind: input, shape index: {}]   ;;  %s1162_s1 = inlined_call_operand.vmem [shape: bf16[4,256,128], index: 1, kind: input, shape index: {}]   ;;  %s1163_s2 = inlined_call_operand.vmem [shape: f32[1,128], index: 2, kind: input, shape index: {}]   ;;  %s1164_s3 = inlined_call_operand.vmem [shape: bf16[4,128,32], index: 3, kind: output, shape index: {}]  }
   0x1   :  { %s1034_s14 = smov 0  }
   0x2 LB: > { %s25_s15 = sadd.s32 1, %s1004_s13  ;;  %p765_p0 = scmp.ge.s32.totalorder %s1008_s14, 1  ;;  %s1008_s14 = sphi %s1034_s14, %s13_s14   ;;  %s1004_s13 = sphi %s1032_s13, %s1166_s13   ;;  %s1000_s12 = sphi %s1030_s12, %s1165_s12  }
   0x3   : > { %p27_p1 = scmp.ge.s32.totalorder %s25_s15, 4  ;;  %p169_p2 = scmp.lt.s32.totalorder %s1008_s14, 5 }
   0x5   : > { %s1168_s15 = smov (%p27_p1, %s25_s15), 0  ;;  %p170_p3 = pnand %p765_p0, %p169_p2 }
   0x6   : > { %p208_p4 = scmp.lt.s32.totalorder (!%p170_p3), %s1000_s12, 3 }
   0x7   : > { %173 = sbr.rel (%p170_p3) target bundleno = 280 (0x118), region = 32 }
   0xc   : > { %s1170_s12 = smov (!%p208_p4, %s1000_s12), 3  ;;  %v1096_v34 = vld [vmem:[%s1163_s2] ss:$0 sm:$0xff]  ;;  %vm642_vm0 = vcmask 257024  }
   0xd   : > { %s823_s16 = sshll.u32 %s1170_s12, 7  ;;  %s825_s25 = sshll.u32 %s1170_s12, 6 }
   0xe   : > { %s1054_s19 = scalar_lea.vmem %s1162_s1, %s823_s16  ;;  %s1068_s22 = scalar_lea.vmem %s1161_s0, %s823_s16 }
   0xf   : > { %v946_v0 = vld [vmem:[%s1054_s19 + $0x78] sm:$0xff]   ;;  %v948_v2 = vld [vmem:[%s1054_s19 + $0x70] sm:$0xff]   ;;  %v950_v4 = vld [vmem:[%s1054_s19 + $0x68] sm:$0xff]   ;;  %s1104_s28 = scalar_lea.vmem %s1164_s3, %s825_s25 }
  0x10   : > { %v947_v1 = vld [vmem:[%s1054_s19 + $0x38] sm:$0xff]   ;;  %842 = vmatprep.subr.bf16.mxu0 %v946_v0  ;;  %906 = vmatprep.subr.bf16.mxu1 %v946_v0  ;;  %v949_v3 = vld [vmem:[%s1054_s19 + $0x30] sm:$0xff]   ;;  %v951_v5 = vld [vmem:[%s1054_s19 + $0x28] sm:$0xff]  }
  0x11   : > { %843 = vmatpush3.bf16.msra.mxu0 %v947_v1  ;;  %914 = vmatpush3.bf16.msra.mxu1 %v947_v1  ;;  %v952_v6 = vld [vmem:[%s1054_s19 + $0x60] sm:$0xff]   ;;  %v954_v8 = vld [vmem:[%s1054_s19 + $0x58] sm:$0xff]   ;;  %v956_v10 = vld [vmem:[%s1054_s19 + $0x50] sm:$0xff]  }
  0x12   : > { %844 = vmatprep.subr.bf16.mxu0 %v948_v2  ;;  %907 = vmatprep.subr.bf16.mxu1 %v948_v2  ;;  %v953_v7 = vld [vmem:[%s1054_s19 + $0x20] sm:$0xff]   ;;  %v955_v9 = vld [vmem:[%s1054_s19 + $0x18] sm:$0xff]   ;;  %v957_v13 = vld [vmem:[%s1054_s19 + $0x10] sm:$0xff]  }
  0x13   : > { %v964_v11 = vld [vmem:[%s1068_s22 + $0x4] ss:$8 sps:$4 sm:$0xff]   ;;  %v962_v18 = vld [vmem:[%s1068_s22] ss:$8 sps:$4 sm:$0xff]   ;;  %v968_v20 = vld [vmem:[%s1068_s22 + $0x14] ss:$8 sps:$4 sm:$0xff]  }
  0x14   : > { %v967_v12 = vld [vmem:[%s1068_s22 + $0x44] ss:$8 sps:$4 sm:$0xff]   ;;  %497 = vmatprep.mubr.bf16.mxu0 %v964_v11  ;;  %v965_v19 = vld [vmem:[%s1068_s22 + $0x40] ss:$8 sps:$4 sm:$0xff]   ;;  %v970_v21 = vld [vmem:[%s1068_s22 + $0x54] ss:$8 sps:$4 sm:$0xff]  }
  0x15   : > { %845 = vmatpush3.bf16.msra.mxu0 %v949_v3  ;;  %915 = vmatpush3.bf16.msra.mxu1 %v949_v3  ;;  %v958_v14 = vld [vmem:[%s1054_s19 + $0x48] sm:$0xff]   ;;  %v960_v16 = vld [vmem:[%s1054_s19 + $0x40] sm:$0xff]   ;;  %v972_v22 = vld [vmem:[%s1068_s22 + $0x10] ss:$8 sps:$4 sm:$0xff]  }
  0x16   : > { %846 = vmatprep.subr.bf16.mxu0 %v950_v4  ;;  %908 = vmatprep.subr.bf16.mxu1 %v950_v4  ;;  %v959_v15 = vld [vmem:[%s1054_s19 + $0x8] sm:$0xff]   ;;  %v961_v17 = vld [vmem:[%s1054_s19] sm:$0xff]   ;;  %v973_v23 = vld [vmem:[%s1068_s22 + $0x50] ss:$8 sps:$4 sm:$0xff]  }
  0x17   : > { %529 = vmatprep.mubr.bf16.mxu1 %v967_v12  ;;  %v974_v24 = vld [vmem:[%s1068_s22 + $0x24] ss:$8 sps:$4 sm:$0xff]   ;;  %v978_v26 = vld [vmem:[%s1068_s22 + $0x20] ss:$8 sps:$4 sm:$0xff]   ;;  %v980_v28 = vld [vmem:[%s1068_s22 + $0x34] ss:$8 sps:$4 sm:$0xff]  }
  0x18   : > { %v976_v25 = vld [vmem:[%s1068_s22 + $0x64] ss:$8 sps:$4 sm:$0xff]   ;;  %v979_v27 = vld [vmem:[%s1068_s22 + $0x60] ss:$8 sps:$4 sm:$0xff]   ;;  %v982_v29 = vld [vmem:[%s1068_s22 + $0x74] ss:$8 sps:$4 sm:$0xff]  }
  0x19   : > { %847 = vmatpush3.bf16.msra.mxu0 %v951_v5  ;;  %916 = vmatpush3.bf16.msra.mxu1 %v951_v5  ;;  %v984_v30 = vld [vmem:[%s1068_s22 + $0x30] ss:$8 sps:$4 sm:$0xff]  }
  0x1a   : > { %848 = vmatprep.subr.bf16.mxu0 %v952_v6  ;;  %909 = vmatprep.subr.bf16.mxu1 %v952_v6  ;;  %v985_v31 = vld [vmem:[%s1068_s22 + $0x70] ss:$8 sps:$4 sm:$0xff]  }
  0x1d   : > { %849 = vmatpush3.bf16.msra.mxu0 %v953_v7  ;;  %917 = vmatpush3.bf16.msra.mxu1 %v953_v7 }
  0x1e   : > { %850 = vmatprep.subr.bf16.mxu0 %v954_v8  ;;  %910 = vmatprep.subr.bf16.mxu1 %v954_v8 }
  0x21   : > { %851 = vmatpush3.bf16.msra.mxu0 %v955_v9  ;;  %918 = vmatpush3.bf16.msra.mxu1 %v955_v9 }
  0x22   : > { %852 = vmatprep.subr.bf16.mxu0 %v956_v10  ;;  %911 = vmatprep.subr.bf16.mxu1 %v956_v10 }
  0x25   : > { %853 = vmatpush3.bf16.msra.mxu0 %v957_v13  ;;  %919 = vmatpush3.bf16.msra.mxu1 %v957_v13 }
  0x26   : > { %854 = vmatprep.subr.bf16.mxu0 %v958_v14  ;;  %912 = vmatprep.subr.bf16.mxu1 %v958_v14 }
  0x29   : > { %855 = vmatpush3.bf16.msra.mxu0 %v959_v15  ;;  %920 = vmatpush3.bf16.msra.mxu1 %v959_v15 }
  0x2a   : > { %856 = vmatprep.subr.bf16.mxu0 %v960_v16  ;;  %913 = vmatprep.subr.bf16.mxu1 %v960_v16 }
  0x2d   : > { %857 = vmatpush3.bf16.msra.mxu0 %v961_v17  ;;  %921 = vmatpush3.bf16.msra.mxu1 %v961_v17 }
  0x30   : > { %498 = vmatmul.mubr.bf16.vlgmr.msra.gmra.mxu0 %v962_v18  ;;  %530 = vmatmul.mubr.bf16.vlgmr.msra.gmra.mxu1 %v965_v19 }
  0x31   : > { %505 = vmatprep.mubr.bf16.mxu0 %v968_v20  ;;  %537 = vmatprep.mubr.bf16.mxu1 %v970_v21 }
  0x38   : > { %506 = vmatmul.mubr.bf16.gmra.mxu0 %v972_v22  ;;  %538 = vmatmul.mubr.bf16.gmra.mxu1 %v973_v23 }
  0x39   : > { %513 = vmatprep.mubr.bf16.mxu0 %v974_v24  ;;  %545 = vmatprep.mubr.bf16.mxu1 %v976_v25 }
  0x40   : > { %514 = vmatmul.mubr.bf16.gmra.mxu0 %v978_v26  ;;  %546 = vmatmul.mubr.bf16.gmra.mxu1 %v979_v27 }
  0x41   : > { %521 = vmatprep.mubr.bf16.mxu0 %v980_v28  ;;  %553 = vmatprep.mubr.bf16.mxu1 %v982_v29 }
  0x48   : > { %522 = vmatmul.mubr.bf16.gmra.mxu0 %v984_v30  ;;  %554 = vmatmul.mubr.bf16.gmra.mxu1 %v985_v31 }
  0xf0   : > { %v858_v32 = vpop.f32.mrf.mxu0  ;;  %v882_v33 = vpop.f32.mrf.mxu1 }
  0xf2   : > { %v859_v35 = vpop.f32.mrf.mxu0  ;;  %v883_v36 = vpop.f32.mrf.mxu1 }
  0xf3   : > { %v860_v37 = vadd.f32 %v859_v35, %v858_v32  ;;  %v884_v38 = vadd.f32 %v883_v36, %v882_v33 }
  0xf4   : > { %v861_v39 = vpop.f32.mrf.mxu0  ;;  %v885_v40 = vpop.f32.mrf.mxu1 }
  0xf5   : > { %v500_v41 = vadd.f32 %v860_v37, %v1096_v34  ;;  %v532_v42 = vadd.f32 %v884_v38, %v1096_v34 }
  0xf6   : > { %v862_v43 = vpop.f32.mrf.mxu0  ;;  %v886_v44 = vpop.f32.mrf.mxu1 }
  0xf7   : > { %v562_v45 = vmax.f32 %v500_v41, 0.0  ;;  %v570_v46 = vmax.f32 %v532_v42, 0.0  ;;  %v863_v47 = vadd.f32 %v862_v43, %v861_v39  ;;  %v887_v48 = vadd.f32 %v886_v44, %v885_v40 }
  0xf8   : > { %v864_v49 = vpop.f32.mrf.mxu0  ;;  %v888_v50 = vpop.f32.mrf.mxu1 }
  0xf9   : > { %v826_v51 = vpack.c.bf16 %v562_v45, %v562_v45  ;;  %v834_v52 = vpack.c.bf16 %v570_v46, %v570_v46  ;;  %v503_v53 = vadd.f32 %v863_v47, %v1096_v34  ;;  %v535_v54 = vadd.f32 %v887_v48, %v1096_v34 }
  0xfa   : > { %v865_v55 = vpop.f32.mrf.mxu0  ;;  %v889_v56 = vpop.f32.mrf.mxu1 }
  0xfb   : > { %643 = vst.msk [vmem:[%s1104_s28] sm:$0xf] %vm642_vm0, %v826_v51  ;;  %651 = vst.msk [vmem:[%s1104_s28 + $0x20] sm:$0xf] %vm642_vm0, %v834_v52  ;;  %v563_v57 = vmax.f32 %v503_v53, 0.0  ;;  %v571_v58 = vmax.f32 %v535_v54, 0.0  ;;  %v866_v59 = vadd.f32 %v865_v55, %v864_v49  ;;  %v890_v60 = vadd.f32 %v889_v56, %v888_v50 }
  0xfc   : > { %v867_v61 = vpop.f32.mrf.mxu0  ;;  %v891_v62 = vpop.f32.mrf.mxu1 }
  0xfd   : > { %v827_v63 = vpack.c.bf16 %v563_v57, %v563_v57  ;;  %v835_v0 = vpack.c.bf16 %v571_v58, %v571_v58  ;;  %v508_v1 = vadd.f32 %v866_v59, %v1096_v34  ;;  %v540_v2 = vadd.f32 %v890_v60, %v1096_v34 }
  0xfe   : > { %v868_v3 = vpop.f32.mrf.mxu0  ;;  %v892_v4 = vpop.f32.mrf.mxu1 }
  0xff   : > { %644 = vst.msk [vmem:[%s1104_s28 + $0x4] sm:$0xf] %vm642_vm0, %v827_v63  ;;  %652 = vst.msk [vmem:[%s1104_s28 + $0x24] sm:$0xf] %vm642_vm0, %v835_v0  ;;  %v564_v5 = vmax.f32 %v508_v1, 0.0  ;;  %v572_v6 = vmax.f32 %v540_v2, 0.0  ;;  %v869_v7 = vadd.f32 %v868_v3, %v867_v61  ;;  %v893_v8 = vadd.f32 %v892_v4, %v891_v62 }
 0x100   : > { %v870_v9 = vpop.f32.mrf.mxu0  ;;  %v894_v10 = vpop.f32.mrf.mxu1 }
 0x101   : > { %v828_v11 = vpack.c.bf16 %v564_v5, %v564_v5  ;;  %v836_v12 = vpack.c.bf16 %v572_v6, %v572_v6  ;;  %v511_v13 = vadd.f32 %v869_v7, %v1096_v34  ;;  %v543_v14 = vadd.f32 %v893_v8, %v1096_v34 }
 0x102   : > { %v871_v15 = vpop.f32.mrf.mxu0  ;;  %v895_v16 = vpop.f32.mrf.mxu1 }
 0x103   : > { %645 = vst.msk [vmem:[%s1104_s28 + $0x8] sm:$0xf] %vm642_vm0, %v828_v11  ;;  %653 = vst.msk [vmem:[%s1104_s28 + $0x28] sm:$0xf] %vm642_vm0, %v836_v12  ;;  %v565_v17 = vmax.f32 %v511_v13, 0.0  ;;  %v573_v18 = vmax.f32 %v543_v14, 0.0  ;;  %v872_v19 = vadd.f32 %v871_v15, %v870_v9  ;;  %v896_v20 = vadd.f32 %v895_v16, %v894_v10 }
 0x104   : > { %v873_v21 = vpop.f32.mrf.mxu0  ;;  %v897_v22 = vpop.f32.mrf.mxu1 }
 0x105   : > { %v829_v23 = vpack.c.bf16 %v565_v17, %v565_v17  ;;  %v837_v24 = vpack.c.bf16 %v573_v18, %v573_v18  ;;  %v516_v25 = vadd.f32 %v872_v19, %v1096_v34  ;;  %v548_v26 = vadd.f32 %v896_v20, %v1096_v34 }
 0x106   : > { %v874_v27 = vpop.f32.mrf.mxu0  ;;  %v898_v28 = vpop.f32.mrf.mxu1 }
 0x107   : > { %646 = vst.msk [vmem:[%s1104_s28 + $0xc] sm:$0xf] %vm642_vm0, %v829_v23  ;;  %654 = vst.msk [vmem:[%s1104_s28 + $0x2c] sm:$0xf] %vm642_vm0, %v837_v24  ;;  %v566_v29 = vmax.f32 %v516_v25, 0.0  ;;  %v574_v30 = vmax.f32 %v548_v26, 0.0  ;;  %v875_v31 = vadd.f32 %v874_v27, %v873_v21  ;;  %v899_v32 = vadd.f32 %v898_v28, %v897_v22 }
 0x108   : > { %v876_v33 = vpop.f32.mrf.mxu0  ;;  %v900_v35 = vpop.f32.mrf.mxu1 }
 0x109   : > { %v830_v36 = vpack.c.bf16 %v566_v29, %v566_v29  ;;  %v838_v37 = vpack.c.bf16 %v574_v30, %v574_v30  ;;  %v519_v38 = vadd.f32 %v875_v31, %v1096_v34  ;;  %v551_v39 = vadd.f32 %v899_v32, %v1096_v34 }
 0x10a   : > { %v877_v40 = vpop.f32.mrf.mxu0  ;;  %v901_v41 = vpop.f32.mrf.mxu1 }
 0x10b   : > { %647 = vst.msk [vmem:[%s1104_s28 + $0x10] sm:$0xf] %vm642_vm0, %v830_v36  ;;  %655 = vst.msk [vmem:[%s1104_s28 + $0x30] sm:$0xf] %vm642_vm0, %v838_v37  ;;  %v567_v42 = vmax.f32 %v519_v38, 0.0  ;;  %v575_v43 = vmax.f32 %v551_v39, 0.0  ;;  %v878_v44 = vadd.f32 %v877_v40, %v876_v33  ;;  %v902_v45 = vadd.f32 %v901_v41, %v900_v35 }
 0x10c   : > { %v879_v46 = vpop.f32.mrf.mxu0  ;;  %v903_v47 = vpop.f32.mrf.mxu1 }
 0x10d   : > { %v831_v48 = vpack.c.bf16 %v567_v42, %v567_v42  ;;  %v839_v49 = vpack.c.bf16 %v575_v43, %v575_v43  ;;  %v524_v50 = vadd.f32 %v878_v44, %v1096_v34  ;;  %v556_v51 = vadd.f32 %v902_v45, %v1096_v34 }
 0x10e   : > { %v880_v52 = vpop.f32.mrf.mxu0  ;;  %v904_v53 = vpop.f32.mrf.mxu1 }
 0x10f   : > { %648 = vst.msk [vmem:[%s1104_s28 + $0x14] sm:$0xf] %vm642_vm0, %v831_v48  ;;  %656 = vst.msk [vmem:[%s1104_s28 + $0x34] sm:$0xf] %vm642_vm0, %v839_v49  ;;  %v568_v54 = vmax.f32 %v524_v50, 0.0  ;;  %v576_v55 = vmax.f32 %v556_v51, 0.0  ;;  %v881_v56 = vadd.f32 %v880_v52, %v879_v46  ;;  %v905_v57 = vadd.f32 %v904_v53, %v903_v47 }
 0x111   : > { %v832_v58 = vpack.c.bf16 %v568_v54, %v568_v54  ;;  %v840_v59 = vpack.c.bf16 %v576_v55, %v576_v55  ;;  %v527_v60 = vadd.f32 %v881_v56, %v1096_v34  ;;  %v559_v61 = vadd.f32 %v905_v57, %v1096_v34 }
 0x113   : > { %649 = vst.msk [vmem:[%s1104_s28 + $0x18] sm:$0xf] %vm642_vm0, %v832_v58  ;;  %657 = vst.msk [vmem:[%s1104_s28 + $0x38] sm:$0xf] %vm642_vm0, %v840_v59  ;;  %v569_v62 = vmax.f32 %v527_v60, 0.0  ;;  %v577_v63 = vmax.f32 %v559_v61, 0.0 }
 0x115   : > { %v833_v0 = vpack.c.bf16 %v569_v62, %v569_v62  ;;  %v841_v1 = vpack.c.bf16 %v577_v63, %v577_v63 }
 0x117   : > { %650 = vst.msk [vmem:[%s1104_s28 + $0x1c] sm:$0xf] %vm642_vm0, %v833_v0  ;;  %658 = vst.msk [vmem:[%s1104_s28 + $0x3c] sm:$0xf] %vm642_vm0, %v841_v1 }
 0x118 PF: > { %s13_s14 = sadd.s32 1, %s1008_s14   ;;  %s1165_s12 = smov %s1004_s13 }
 0x119   : > { %p10_p5 = scmp.ge.s32.totalorder %s13_s14, 6   ;;  %s1166_s13 = smov %s1168_s15 }
 0x11b   :  { %12 = sbr.rel (!%p10_p5) target bundleno = 2 (0x2), region = 65 }

// kernel: factorvae1_forward.13
= control target key start
LH: loop header
LB: loop body
LE: loop exit
PB: predicated region body
PF: predicated region fallthrough
CT: control target
= control target key end

     0   :  { %v181_v28 = vlaneseq  ;;  %v2077_v36 = vmov 1966171168   ;;  %s2732_s0 = inlined_call_operand.vmem [shape: bf16[2,1024], index: 0, kind: input, shape index: {}]   ;;  %s2733_s1 = inlined_call_operand.vmem [shape: f32[2,10], index: 1, kind: input, shape index: {}]   ;;  %s2734_s2 = inlined_call_operand.vmem [shape: bf16[1024,128], index: 2, kind: input, shape index: {}]   ;;  %s2735_s3 = inlined_call_operand.vmem [shape: f32[1,128], index: 3, kind: input, shape index: {}]   ;;  %s2736_s4 = inlined_call_operand.vmem [shape: f32[128,128], index: 4, kind: input, shape index: {}]   ;;  %s2737_s5 = inlined_call_operand.vmem [shape: f32[1,20], index: 5, kind: input, shape index: {}]   ;;  %s2738_s6 = inlined_call_operand.vmem [shape: f32[10,128], index: 6, kind: input, shape index: {}]   ;;  %s2739_s7 = inlined_call_operand.vmem [shape: f32[1,128], index: 7, kind: input, shape index: {}]   ;;  %s2740_s8 = inlined_call_operand.vmem [shape: bf16[128,1024], index: 8, kind: input, shape index: {}]   ;;  %s2741_s9 = inlined_call_operand.vmem [shape: f32[1,1024], index: 9, kind: input, shape index: {}]   ;;  %s2742_s10 = inlined_call_operand.vmem [shape: f32[2,20], index: 10, kind: output, shape index: {0}]   ;;  %s2743_s11 = inlined_call_operand.hbm [shape: f32[2,10], index: 11, kind: output, shape index: {1}]   ;;  %s2744_s12 = inlined_call_operand.vmem [shape: bf16[2,1024], index: 12, kind: output, shape index: {2}]  }
   0x1   :  { %v1988_v0 = vld [vmem:[%s2734_s2 + $0x78] sm:$0xff]   ;;  %v1992_v4 = vld [vmem:[%s2734_s2 + $0x70] sm:$0xff]   ;;  %v1996_v8 = vld [vmem:[%s2734_s2 + $0x68] sm:$0xff]   ;;  %v179_v37 = vunpack.c.l.s4 %v2077_v36 }
   0x2   :  { %v1989_v1 = vld [vmem:[%s2734_s2 + $0xf8] sm:$0xff]   ;;  %1822 = vmatprep.subr.bf16.mxu0 %v1988_v0  ;;  %v1993_v5 = vld [vmem:[%s2734_s2 + $0xf0] sm:$0xff]   ;;  %v1997_v9 = vld [vmem:[%s2734_s2 + $0xe8] sm:$0xff]   ;;  %v2253_v33 = vshrl.u32 %v181_v28, 7 }
   0x3   :  { %v1990_v2 = vld [vmem:[%s2734_s2 + $0x38] sm:$0xff]   ;;  %1844 = vmatprep.subr.bf16.mxu1 %v1989_v1  ;;  %v1994_v6 = vld [vmem:[%s2734_s2 + $0x30] sm:$0xff]   ;;  %v1998_v10 = vld [vmem:[%s2734_s2 + $0x28] sm:$0xff]   ;;  %v180_v40 = vunpack.c.0.s8 %v179_v37 }
   0x4   :  { %v1991_v3 = vld [vmem:[%s2734_s2 + $0xb8] sm:$0xff]   ;;  %1823 = vmatpush3.bf16.msra.mxu0 %v1990_v2  ;;  %v1995_v7 = vld [vmem:[%s2734_s2 + $0xb0] sm:$0xff]   ;;  %v1999_v11 = vld [vmem:[%s2734_s2 + $0xa8] sm:$0xff]  }
   0x5   :  { %1845 = vmatpush3.bf16.msra.mxu1 %v1991_v3  ;;  %1824 = vmatprep.subr.bf16.mxu0 %v1992_v4  ;;  %v2000_v12 = vld [vmem:[%s2734_s2 + $0x60] sm:$0xff]   ;;  %v2004_v16 = vld [vmem:[%s2734_s2 + $0x58] sm:$0xff]   ;;  %v2008_v20 = vld [vmem:[%s2734_s2 + $0x50] sm:$0xff]   ;;  %v2265_v41 = vsub.s32 %v180_v40, %v2253_v33 }
   0x6   :  { %1846 = vmatprep.subr.bf16.mxu1 %v1993_v5  ;;  %v2001_v13 = vld [vmem:[%s2734_s2 + $0xe0] sm:$0xff]   ;;  %v2005_v17 = vld [vmem:[%s2734_s2 + $0xd8] sm:$0xff]   ;;  %v2009_v21 = vld [vmem:[%s2734_s2 + $0xd0] sm:$0xff]  }
   0x7   :  { %v2002_v14 = vld [vmem:[%s2734_s2 + $0x20] sm:$0xff]   ;;  %v2006_v18 = vld [vmem:[%s2734_s2 + $0x18] sm:$0xff]   ;;  %v2010_v22 = vld [vmem:[%s2734_s2 + $0x10] sm:$0xff]  }
   0x8   :  { %1825 = vmatpush3.bf16.msra.mxu0 %v1994_v6  ;;  %v2003_v15 = vld [vmem:[%s2734_s2 + $0xa0] sm:$0xff]   ;;  %v2007_v19 = vld [vmem:[%s2734_s2 + $0x98] sm:$0xff]   ;;  %v2011_v23 = vld [vmem:[%s2734_s2 + $0x90] sm:$0xff]  }
   0x9   :  { %1847 = vmatpush3.bf16.msra.mxu1 %v1995_v7  ;;  %1826 = vmatprep.subr.bf16.mxu0 %v1996_v8  ;;  %v2012_v24 = vld [vmem:[%s2734_s2 + $0x48] sm:$0xff]   ;;  %v2016_v29 = vld [vmem:[%s2734_s2 + $0x40] sm:$0xff]   ;;  %v2021_v35 = vld [vmem:[%s2734_s2 + $0x178] sm:$0xff]  }
   0xa   :  { %1848 = vmatprep.subr.bf16.mxu1 %v1997_v9  ;;  %v2013_v25 = vld [vmem:[%s2734_s2 + $0xc8] sm:$0xff]   ;;  %v2017_v30 = vld [vmem:[%s2734_s2 + $0xc0] sm:$0xff]   ;;  %v2022_v38 = vld [vmem:[%s2734_s2 + $0x1f8] sm:$0xff]  }
   0xb   :  { %v2014_v26 = vld [vmem:[%s2734_s2 + $0x8] sm:$0xff]   ;;  %v2018_v31 = vld [vmem:[%s2734_s2] sm:$0xff]   ;;  %v2023_v48 = vld [vmem:[%s2734_s2 + $0x138] sm:$0xff]  }
   0xc   :  { %1827 = vmatpush3.bf16.msra.mxu0 %v1998_v10  ;;  %v2015_v27 = vld [vmem:[%s2734_s2 + $0x88] sm:$0xff]   ;;  %v2019_v32 = vld [vmem:[%s2734_s2 + $0x80] sm:$0xff]   ;;  %v2025_v51 = vld [vmem:[%s2734_s2 + $0x170] sm:$0xff]  }
   0xd   :  { %1849 = vmatpush3.bf16.msra.mxu1 %v1999_v11  ;;  %1828 = vmatprep.subr.bf16.mxu0 %v2000_v12  ;;  %v40_v34 = vld [vmem:[%s2732_s0] sm:$0xff]  ;;  %v2024_v53 = vld [vmem:[%s2734_s2 + $0x1b8] sm:$0xff]   ;;  %v2026_v54 = vld [vmem:[%s2734_s2 + $0x1f0] sm:$0xff]  }
   0xe   :  { %1850 = vmatprep.subr.bf16.mxu1 %v2001_v13  ;;  %v177_v39 = vcombine.high %v40_v34, %v40_v34  ;;  %v184_v42 = vrot.slane %v40_v34, %v2265_v41  ;;  %v2027_v56 = vld [vmem:[%s2734_s2 + $0x130] sm:$0xff]   ;;  %v2029_v57 = vld [vmem:[%s2734_s2 + $0x168] sm:$0xff]   ;;  %v2033_v61 = vld [vmem:[%s2734_s2 + $0x160] sm:$0xff]  }
   0xf   :  { %v2028_v58 = vld [vmem:[%s2734_s2 + $0x1b0] sm:$0xff]   ;;  %v2030_v59 = vld [vmem:[%s2734_s2 + $0x1e8] sm:$0xff]   ;;  %v2034_v63 = vld [vmem:[%s2734_s2 + $0x1e0] sm:$0xff]  }
  0x10   :  { %1829 = vmatpush3.bf16.msra.mxu0 %v2002_v14  ;;  %v2269_v43 = vrot.slane %v177_v39, %v2265_v41  ;;  %v192_v44 = vcombine.high %v184_v42, %v184_v42  ;;  %v200_v45 = vrot.slane %v184_v42, %v2265_v41  ;;  %v2031_v60 = vld [vmem:[%s2734_s2 + $0x128] sm:$0xff]   ;;  %v2035_v0 = vld [vmem:[%s2734_s2 + $0x120] sm:$0xff]   ;;  %v2037_v1 = vld [vmem:[%s2734_s2 + $0x158] sm:$0xff]  }
  0x11   :  { %1851 = vmatpush3.bf16.msra.mxu1 %v2003_v15  ;;  %1830 = vmatprep.subr.bf16.mxu0 %v2004_v16  ;;  %v2032_v62 = vld [vmem:[%s2734_s2 + $0x1a8] sm:$0xff]   ;;  %v2036_v2 = vld [vmem:[%s2734_s2 + $0x1a0] sm:$0xff]   ;;  %v2038_v3 = vld [vmem:[%s2734_s2 + $0x1d8] sm:$0xff]  }
  0x12   :  { %1852 = vmatprep.subr.bf16.mxu1 %v2005_v17  ;;  %v193_v46 = vcombine.high %v2269_v43, %v2269_v43  ;;  %v214_v47 = vrot.slane %v192_v44, %v2265_v41  ;;  %v222_v50 = vcombine.high %v200_v45, %v200_v45  ;;  %v2039_v4 = vld [vmem:[%s2734_s2 + $0x118] sm:$0xff]   ;;  %v2041_v5 = vld [vmem:[%s2734_s2 + $0x150] sm:$0xff]   ;;  %v2045_v9 = vld [vmem:[%s2734_s2 + $0x148] sm:$0xff]  }
  0x13   :  { %v2040_v6 = vld [vmem:[%s2734_s2 + $0x198] sm:$0xff]   ;;  %v2042_v7 = vld [vmem:[%s2734_s2 + $0x1d0] sm:$0xff]  }
  0x14   :  { %1831 = vmatpush3.bf16.msra.mxu0 %v2006_v18  ;;  %v221_v49 = vrot.slane %v193_v46, %v2265_v41  ;;  %650 = vmatprep.mubr.bf16.mxu0 %v214_v47  ;;  %v224_v52 = vcombine.high %v214_v47, %v214_v47  ;;  %v2043_v8 = vld [vmem:[%s2734_s2 + $0x110] sm:$0xff]  }
  0x15   :  { %1853 = vmatpush3.bf16.msra.mxu1 %v2007_v19  ;;  %1832 = vmatprep.subr.bf16.mxu0 %v2008_v20 }
  0x16   :  { %1854 = vmatprep.subr.bf16.mxu1 %v2009_v21  ;;  %v225_v55 = vcombine.high %v221_v49, %v221_v49  ;;  %690 = vmatprep.mubr.bf16.mxu1 %v224_v52 }
  0x18   :  { %1833 = vmatpush3.bf16.msra.mxu0 %v2010_v22 }
  0x19   :  { %1855 = vmatpush3.bf16.msra.mxu1 %v2011_v23  ;;  %1834 = vmatprep.subr.bf16.mxu0 %v2012_v24 }
  0x1a   :  { %1856 = vmatprep.subr.bf16.mxu1 %v2013_v25 }
  0x1c   :  { %1835 = vmatpush3.bf16.msra.mxu0 %v2014_v26 }
  0x1d   :  { %1857 = vmatpush3.bf16.msra.mxu1 %v2015_v27  ;;  %1836 = vmatprep.subr.bf16.mxu0 %v2016_v29 }
  0x1e   :  { %1858 = vmatprep.subr.bf16.mxu1 %v2017_v30 }
  0x20   :  { %1837 = vmatpush3.bf16.msra.mxu0 %v2018_v31 }
  0x21   :  { %1859 = vmatpush3.bf16.msra.mxu1 %v2019_v32  ;;  %1866 = vmatprep.subr.bf16.mxu0 %v2021_v35 }
  0x22   :  { %1888 = vmatprep.subr.bf16.mxu1 %v2022_v38 }
  0x23   :  { %651 = vmatmul.mubr.bf16.vlgmr.msra.gmra.mxu0 %v200_v45 }
  0x24   :  { %1867 = vmatpush3.bf16.msra.mxu0 %v2023_v48  ;;  %691 = vmatmul.mubr.bf16.vlgmr.msra.gmra.mxu1 %v222_v50 }
  0x25   :  { %1868 = vmatprep.subr.bf16.mxu0 %v2025_v51  ;;  %1889 = vmatpush3.bf16.msra.mxu1 %v2024_v53 }
  0x26   :  { %730 = vmatprep.mubr.bf16.mxu0 %v221_v49  ;;  %1890 = vmatprep.subr.bf16.mxu1 %v2026_v54 }
  0x27   :  { %770 = vmatprep.mubr.bf16.mxu1 %v225_v55 }
  0x28   :  { %1869 = vmatpush3.bf16.msra.mxu0 %v2027_v56 }
  0x29   :  { %1870 = vmatprep.subr.bf16.mxu0 %v2029_v57  ;;  %1891 = vmatpush3.bf16.msra.mxu1 %v2028_v58 }
  0x2a   :  { %1892 = vmatprep.subr.bf16.mxu1 %v2030_v59 }
  0x2c   :  { %1871 = vmatpush3.bf16.msra.mxu0 %v2031_v60 }
  0x2d   :  { %1872 = vmatprep.subr.bf16.mxu0 %v2033_v61  ;;  %1893 = vmatpush3.bf16.msra.mxu1 %v2032_v62 }
  0x2e   :  { %1894 = vmatprep.subr.bf16.mxu1 %v2034_v63 }
  0x30   :  { %1873 = vmatpush3.bf16.msra.mxu0 %v2035_v0 }
  0x31   :  { %1874 = vmatprep.subr.bf16.mxu0 %v2037_v1  ;;  %1895 = vmatpush3.bf16.msra.mxu1 %v2036_v2 }
  0x32   :  { %1896 = vmatprep.subr.bf16.mxu1 %v2038_v3 }
  0x34   :  { %1875 = vmatpush3.bf16.msra.mxu0 %v2039_v4 }
  0x35   :  { %1876 = vmatprep.subr.bf16.mxu0 %v2041_v5 }
  0x36   :  { %18 = vsyncpa [#allocation3], 0  ;;  %1897 = vmatpush3.bf16.msra.mxu1 %v2040_v6  ;;  %v2044_v10 = vld [vmem:[%s2734_s2 + $0x190] sm:$0xff]   ;;  %v2046_v11 = vld [vmem:[%s2734_s2 + $0x1c8] sm:$0xff]   ;;  %v207_v17 = vrot.slane %v2269_v43, %v2265_v41  ;;  %v2078_v21 = vmov 0.0   ;;  %vm2079_vm0 = vmmov 0  }
  0x37   :  { %1898 = vmatprep.subr.bf16.mxu1 %v2042_v7  ;;  %v2047_v12 = vld [vmem:[%s2734_s2 + $0x108] sm:$0xff]   ;;  %v2049_v13 = vld [vmem:[%s2734_s2 + $0x140] sm:$0xff]   ;;  %v794_v20 = vld [vmem:[%s2736_s4 + $0x78] sm:$0xff]  ;;  %vm873_vm1 = vcmask 156672   ;;  %v2080_v7 = vmov 1   ;;  %vm885_vm2 = vcmask 74752  }
  0x38   :  { %1877 = vmatpush3.bf16.msra.mxu0 %v2043_v8  ;;  %v2048_v14 = vld [vmem:[%s2734_s2 + $0x188] sm:$0xff]   ;;  %v2050_v15 = vld [vmem:[%s2734_s2 + $0x1c0] sm:$0xff]   ;;  %v223_v19 = vcombine.high %v207_v17, %v207_v17  ;;  %v793_v22 = vld [vmem:[%s2736_s4 + $0x70] sm:$0xff]  ;;  %1978 = vset.pattern.permute.xlu1 %v2080_v7  ;;  %v2081_v8 = vmov 0  }
  0x39   :  { %1878 = vmatprep.subr.bf16.mxu0 %v2045_v9  ;;  %v2051_v16 = vld [vmem:[%s2734_s2 + $0x100] sm:$0xff]   ;;  %v792_v23 = vld [vmem:[%s2736_s4 + $0x68] sm:$0xff]  ;;  %v790_v25 = vld [vmem:[%s2736_s4 + $0x58] sm:$0xff]  ;;  %1977 = vset.pattern.permute.xlu0 %v2081_v8 }
  0x3a   :  { %1899 = vmatpush3.bf16.msra.mxu1 %v2044_v10  ;;  %v2052_v18 = vld [vmem:[%s2734_s2 + $0x180] sm:$0xff]   ;;  %v789_v26 = vld [vmem:[%s2736_s4 + $0x50] sm:$0xff]  ;;  %v788_v27 = vld [vmem:[%s2736_s4 + $0x48] sm:$0xff] }
  0x3b   :  { %1900 = vmatprep.subr.bf16.mxu1 %v2046_v11  ;;  %v791_v24 = vld [vmem:[%s2736_s4 + $0x60] sm:$0xff]  ;;  %v786_v29 = vld [vmem:[%s2736_s4 + $0x38] sm:$0xff]  ;;  %v785_v30 = vld [vmem:[%s2736_s4 + $0x30] sm:$0xff] }
  0x3c   :  { %1879 = vmatpush3.bf16.msra.mxu0 %v2047_v12  ;;  %v787_v28 = vld [vmem:[%s2736_s4 + $0x40] sm:$0xff]  ;;  %v784_v31 = vld [vmem:[%s2736_s4 + $0x28] sm:$0xff]  ;;  %v782_v34 = vld [vmem:[%s2736_s4 + $0x18] sm:$0xff] }
  0x3d   :  { %1880 = vmatprep.subr.bf16.mxu0 %v2049_v13  ;;  %v783_v32 = vld [vmem:[%s2736_s4 + $0x20] sm:$0xff]  ;;  %v781_v35 = vld [vmem:[%s2736_s4 + $0x10] sm:$0xff]  ;;  %v780_v36 = vld [vmem:[%s2736_s4 + $0x8] sm:$0xff] }
  0x3e   :  { %1901 = vmatpush3.bf16.msra.mxu1 %v2048_v14  ;;  %v779_v37 = vld [vmem:[%s2736_s4] sm:$0xff] }
  0x3f   :  { %1902 = vmatprep.subr.bf16.mxu1 %v2050_v15  ;;  %v1687_v48 = vld [vmem:[%s2735_s3] ss:$0 sm:$0xff] }
  0x40   :  { %1881 = vmatpush3.bf16.msra.mxu0 %v2051_v16  ;;  %v1752_v1 = vld [vmem:[%s2737_s5] ss:$0 sm:$0xff]  ;;  %s2082_s5 = smov 118   ;;  %v1057_v16 = vld [vmem:[%s2740_s8 + $0x1c8] sm:$0xff] }
  0x41   :  { %1927 = vmatprep.subr.mxu0 %v2078_v21  ;;  %v875_v10 = vld [vmem:[%s2733_s1] sm:$0x3] }
  0x42   :  { %1903 = vmatpush3.bf16.msra.mxu1 %v2052_v18  ;;  %v1056_v14 = vld [vmem:[%s2740_s8 + $0x1c0] sm:$0xff] }
  0x43   :  { %731 = vmatmul.mubr.bf16.vlgmr.msra.gmra.mxu0 %v207_v17  ;;  %v1060_v15 = vld [vmem:[%s2740_s8 + $0x1e0] sm:$0xff] }
  0x44   :  { %1928 = vmatpush3.msra.mxu0 %v794_v20  ;;  %1959 = vmatprep.mubr.msk.f32.mxu0 %vm2079_vm0, %v2078_v21  ;;  %v1810_v17 = vcombine.low %v1056_v14, %v1060_v15  ;;  %v1811_v18 = vcombine.high %v1056_v14, %v1060_v15  ;;  %v2083_v20 = vmov 2   ;;  %v1013_v14 = vld [vmem:[%s2740_s8 + $0x68] sm:$0xff] }
  0x45   :  { %771 = vmatmul.mubr.bf16.vlgmr.msra.gmra.mxu1 %v223_v19  ;;  %1929 = vmatprep.subr.mxu0 %v2078_v21  ;;  %v1061_v19 = vld [vmem:[%s2740_s8 + $0x1e8] sm:$0xff] }
  0x46   :  { %1930 = vmatpush3.msra.mxu0 %v793_v22  ;;  %1458 = vmatprep.mubr.bf16.mxu1 %v2081_v8  ;;  %v1812_v22 = vcombine.low %v1057_v16, %v1061_v19 }
  0x47   :  { %1931 = vmatprep.subr.mxu0 %v2078_v21  ;;  %1426 = vmatprep.subr.bf16.mxu1 %v1811_v18  ;;  %v1000_v18 = vld [vmem:[%s2740_s8] sm:$0xff] }
  0x48   :  { %1932 = vmatpush3.msra.mxu0 %v792_v23  ;;  %v1813_v23 = vcombine.high %v1057_v16, %v1061_v19  ;;  %1427 = vmatpush1.bf16.msra.mxu1 %v1810_v17  ;;  %v1004_v19 = vld [vmem:[%s2740_s8 + $0x20] sm:$0xff] }
  0x49   :  { %1933 = vmatprep.subr.mxu0 %v2078_v21 }
  0x4a   :  { %1934 = vmatpush3.msra.mxu0 %v791_v24  ;;  %v1048_v24 = vld [vmem:[%s2740_s8 + $0x180] sm:$0xff] }
  0x4b   :  { %1935 = vmatprep.subr.mxu0 %v2078_v21 }
  0x4c   :  { %1936 = vmatpush3.msra.mxu0 %v790_v25  ;;  %v1052_v25 = vld [vmem:[%s2740_s8 + $0x1a0] sm:$0xff] }
  0x4d   :  { %1937 = vmatprep.subr.mxu0 %v2078_v21 }
  0x4e   :  { %1938 = vmatpush3.msra.mxu0 %v789_v26  ;;  %v1049_v26 = vld [vmem:[%s2740_s8 + $0x188] sm:$0xff] }
  0x4f   :  { %1939 = vmatprep.subr.mxu0 %v2078_v21 }
  0x50   :  { %1940 = vmatpush3.msra.mxu0 %v788_v27  ;;  %v1803_v27 = vcombine.high %v1048_v24, %v1052_v25 }
  0x51   :  { %1941 = vmatprep.subr.mxu0 %v2078_v21 }
  0x52   :  { %1942 = vmatpush3.msra.mxu0 %v787_v28  ;;  %v1053_v28 = vld [vmem:[%s2740_s8 + $0x1a8] sm:$0xff]  ;;  %1428 = vmatprep.subr.bf16.mxu1 %v1803_v27  ;;  %v2553_v27 = vld [vmem:[%s2740_s8 + $0x1d8] sm:$0xff] }
  0x53   :  { %1943 = vmatprep.subr.mxu0 %v2078_v21 }
  0x54   :  { %1944 = vmatpush3.msra.mxu0 %v786_v29  ;;  %v1802_v29 = vcombine.low %v1048_v24, %v1052_v25  ;;  %v2543_v25 = vld [vmem:[%s2740_s8 + $0x1d0] sm:$0xff] }
  0x55   :  { %1945 = vmatprep.subr.mxu0 %v2078_v21 }
  0x56   :  { %1946 = vmatpush3.msra.mxu0 %v785_v30  ;;  %v1804_v30 = vcombine.low %v1049_v26, %v1053_v28  ;;  %1429 = vmatpush1.bf16.msra.mxu1 %v1802_v29 }
  0x57   :  { %1947 = vmatprep.subr.mxu0 %v2078_v21 }
  0x58   :  { %1948 = vmatpush3.msra.mxu0 %v784_v31  ;;  %v1805_v31 = vcombine.high %v1049_v26, %v1053_v28  ;;  %v2548_v26 = vld [vmem:[%s2740_s8 + $0x1f0] sm:$0xff] }
  0x59   :  { %1949 = vmatprep.subr.mxu0 %v2078_v21  ;;  %v1814_v28 = vcombine.low %v2543_v25, %v2548_v26  ;;  %v1815_v29 = vcombine.high %v2543_v25, %v2548_v26  ;;  %v1035_v25 = vld [vmem:[%s2740_s8 + $0x118] sm:$0xff] }
  0x5a   :  { %1950 = vmatpush3.msra.mxu0 %v783_v32  ;;  %v2085_v32 = vmov 3   ;;  %v1039_v26 = vld [vmem:[%s2740_s8 + $0x138] sm:$0xff] }
  0x5b   :  { %1951 = vmatprep.subr.mxu0 %v2078_v21 }
  0x5c   :  { %1952 = vmatpush3.msra.mxu0 %v782_v34  ;;  %v2086_v34 = vmov 7  }
  0x5d   :  { %1953 = vmatprep.subr.mxu0 %v2078_v21 }
  0x5e   :  { %1954 = vmatpush3.msra.mxu0 %v781_v35  ;;  %v1040_v35 = vld [vmem:[%s2740_s8 + $0x140] sm:$0xff] }
  0x5f   :  { %1955 = vmatprep.subr.mxu0 %v2078_v21 }
  0x60   :  { %1956 = vmatpush3.msra.mxu0 %v780_v36  ;;  %v1044_v36 = vld [vmem:[%s2740_s8 + $0x160] sm:$0xff] }
  0x61   :  { %1957 = vmatprep.subr.mxu0 %v2078_v21  ;;  %v2084_v21 = vmov 4  }
  0x62   :  { %1958 = vmatpush3.msra.mxu0 %v779_v37  ;;  %v1041_v37 = vld [vmem:[%s2740_s8 + $0x148] sm:$0xff] }
  0x63   :  { %1467 = vmatprep.subr.bf16.mxu0 %v1813_v23 }
  0xe3   :  { %v1838_v38 = vpop.f32.mrf.mxu0 }
  0xe4   :  { %v1860_v39 = vpop.f32.mrf.mxu1 }
  0xe5   :  { %v1839_v40 = vpop.f32.mrf.mxu0 }
  0xe6   :  { %v1861_v42 = vpop.f32.mrf.mxu1  ;;  %v1840_v47 = vadd.f32 %v1839_v40, %v1838_v38  ;;  %v1795_v38 = vcombine.high %v1040_v35, %v1044_v36  ;;  %v1794_v40 = vcombine.low %v1040_v35, %v1044_v36  ;;  %v2572_v35 = vsub.s32 0, %v2253_v33  ;;  %v887_v36 = vld [vmem:[%s2738_s6] sm:$0xff] }
  0xe7   :  { %v1841_v43 = vpop.f32.mrf.mxu0  ;;  %v1862_v50 = vadd.f32 %v1861_v42, %v1860_v39  ;;  %v1045_v39 = vld [vmem:[%s2740_s8 + $0x168] sm:$0xff] }
  0xe8   :  { %v1863_v44 = vpop.f32.mrf.mxu1  ;;  %v653_v49 = vadd.f32 %v1840_v47, %v1687_v48  ;;  %v1796_v42 = vcombine.low %v1041_v37, %v1045_v39  ;;  %v1797_v43 = vcombine.high %v1041_v37, %v1045_v39  ;;  %1430 = vmatprep.subr.bf16.mxu1 %v1795_v38  ;;  %v2087_v47 = vmov 5  }
  0xe9   :  { %v1842_v45 = vpop.f32.mrf.mxu0  ;;  %v1032_v44 = vld [vmem:[%s2740_s8 + $0x100] sm:$0xff]  ;;  %1431 = vmatpush1.bf16.msra.mxu1 %v1794_v40  ;;  %v917_v37 = vsub.s32 2, %v2253_v33  ;;  %v898_v40 = vrot.slane %v887_v36, %v2572_v35 }
  0xea   :  { %v1864_v46 = vpop.f32.mrf.mxu1  ;;  %v693_v54 = vadd.f32 %v1862_v50, %v653_v49  ;;  %v1036_v45 = vld [vmem:[%s2740_s8 + $0x120] sm:$0xff]  ;;  %v1037_v49 = vld [vmem:[%s2740_s8 + $0x128] sm:$0xff] }
  0xeb   :  { %v1033_v46 = vld [vmem:[%s2740_s8 + $0x108] sm:$0xff]  ;;  %v1787_v48 = vcombine.high %v1032_v44, %v1036_v45 }
  0xec   :  { %v1789_v50 = vcombine.high %v1033_v46, %v1037_v49 }
  0xed   :  { %1432 = vmatprep.subr.bf16.mxu1 %v1787_v48 }
 0x103   :  { %v1882_v51 = vpop.f32.mrf.mxu0 }
 0x105   :  { %v1904_v52 = vpop.f32.mrf.mxu1  ;;  %v1883_v53 = vpop.f32.mrf.mxu0 }
 0x106   :  { %v1884_v55 = vadd.f32 %v1883_v53, %v1882_v51  ;;  %v2088_v51 = vmov 9   ;;  %v1788_v53 = vcombine.low %v1033_v46, %v1037_v49  ;;  %v937_v49 = vsub.s32 4, %v2253_v33 }
 0x107   :  { %v1905_v56 = vpop.f32.mrf.mxu1  ;;  %v1885_v57 = vpop.f32.mrf.mxu0 }
 0x108   :  { %v733_v58 = vadd.f32 %v1884_v55, %v693_v54  ;;  %v1906_v59 = vadd.f32 %v1905_v56, %v1904_v52  ;;  %v1786_v52 = vcombine.low %v1032_v44, %v1036_v45  ;;  %v1024_v54 = vld [vmem:[%s2740_s8 + $0xc0] sm:$0xff]  ;;  %v1025_v56 = vld [vmem:[%s2740_s8 + $0xc8] sm:$0xff]  ;;  %v2089_v57 = vmov 6  }
 0x109   :  { %v1907_v60 = vpop.f32.mrf.mxu1  ;;  %v1886_v61 = vpop.f32.mrf.mxu0  ;;  %v1028_v55 = vld [vmem:[%s2740_s8 + $0xe0] sm:$0xff]  ;;  %v927_v44 = vsub.s32 3, %v2253_v33 }
 0x10a   :  { %v773_v62 = vadd.f32 %v1906_v59, %v733_v58  ;;  %v1779_v58 = vcombine.high %v1024_v54, %v1028_v55  ;;  %v1029_v59 = vld [vmem:[%s2740_s8 + $0xe8] sm:$0xff]  ;;  %1433 = vmatpush1.bf16.msra.mxu1 %v1786_v52  ;;  %v1778_v60 = vcombine.low %v1024_v54, %v1028_v55  ;;  %v947_v52 = vsub.s32 5, %v2253_v33 }
 0x10b   :  { %v1908_v63 = vpop.f32.mrf.mxu1  ;;  %v1781_v61 = vcombine.high %v1025_v56, %v1029_v59  ;;  %v938_v55 = vrot.slane %v887_v36, %v937_v49 }
 0x10c   :  { %v778_v0 = vmax.f32 %v773_v62, 0.0  ;;  %1434 = vmatprep.subr.bf16.mxu1 %v1779_v58  ;;  %v1780_v62 = vcombine.low %v1025_v56, %v1029_v59  ;;  %v1016_v63 = vld [vmem:[%s2740_s8 + $0x80] sm:$0xff]  ;;  %v948_v59 = vrot.slane %v887_v36, %v947_v52 }
 0x10e   :  { %1960 = vmatmul.mubr.f32.vlgmr.msra.gmra.mxu0 %v778_v0  ;;  %v1020_v0 = vld [vmem:[%s2740_s8 + $0xa0] sm:$0xff]  ;;  %1435 = vmatpush1.bf16.msra.mxu1 %v1778_v60  ;;  %v957_v60 = vsub.s32 6, %v2253_v33 }
 0x10f   :  { %1499 = vmatprep.mubr.bf16.mxu0 %v2081_v8  ;;  %1468 = vmatpush1.bf16.msra.mxu0 %v1812_v22  ;;  %v1005_v22 = vld [vmem:[%s2740_s8 + $0x28] sm:$0xff] }
 0x110   :  { %1469 = vmatprep.subr.bf16.mxu0 %v1805_v31 }
 0x113   :  { %1470 = vmatpush1.bf16.msra.mxu0 %v1804_v30  ;;  %v2562_v30 = vld [vmem:[%s2740_s8 + $0x1f8] sm:$0xff] }
 0x114   :  { %1471 = vmatprep.subr.bf16.mxu0 %v1797_v43  ;;  %v1816_v31 = vcombine.low %v2553_v27, %v2562_v30  ;;  %v918_v43 = vrot.slane %v887_v36, %v917_v37 }
 0x117   :  { %1472 = vmatpush1.bf16.msra.mxu0 %v1796_v42 }
 0x118   :  { %1473 = vmatprep.subr.bf16.mxu0 %v1789_v50  ;;  %v928_v50 = vrot.slane %v887_v36, %v927_v44 }
 0x11b   :  { %1474 = vmatpush1.bf16.msra.mxu0 %v1788_v53 }
 0x11c   :  { %1475 = vmatprep.subr.bf16.mxu0 %v1781_v61 }
 0x11f   :  { %1476 = vmatpush1.bf16.msra.mxu0 %v1780_v62 }
 0x1ce   :  { %v861_v2 = vpop.f32.mrf.mxu0 }
 0x1cf   :  { %v872_v3 = vadd.f32 %v1752_v1, %v861_v2  ;;  %v1017_v1 = vld [vmem:[%s2740_s8 + $0x88] sm:$0xff]  ;;  %v1771_v2 = vcombine.high %v1016_v63, %v1020_v0 }
 0x1d0   :  { %v1961_v4 = vpop.f32.mrf.mxu0 }
 0x1d1   :  { %874 = vst.msk [vmem:[%s2742_s10] sm:$0x3] %vm873_vm1, %v872_v3  ;;  %v876_v5 = vmul.f32 0.5, %v872_v3  ;;  %v2090_v4 = vmov 8   ;;  %1436 = vmatprep.subr.bf16.mxu1 %v1771_v2  ;;  %v958_v2 = vrot.slane %v887_v36, %v957_v60 }
 0x1d3   :  { %v877_v6 = vmul.f32 1.442695, %v876_v5  ;;  %v1770_v5 = vcombine.low %v1016_v63, %v1020_v0  ;;  %v967_v63 = vsub.s32 7, %v2253_v33 }
 0x1d5   :  { %2053 = vpow2.f32 %v877_v6  ;;  %1437 = vmatpush1.bf16.msra.mxu1 %v1770_v5  ;;  %v968_v5 = vrot.slane %v887_v36, %v967_v63 }
 0x1e2   :  { %v2054_v9 = vpop.eup %2053 }
 0x1e3   :  { %880 = vrot.lane.b32.xlu0 %v2054_v9, %s2082_s5  ;;  %v1008_v9 = vld [vmem:[%s2740_s8 + $0x40] sm:$0xff] }
 0x255   :  { %v881_v11 = vpop.permute.xlu0 %880 }
 0x256   :  { %v883_v12 = vmul.f32 %v881_v11, %v875_v10  ;;  %v1012_v10 = vld [vmem:[%s2740_s8 + $0x60] sm:$0xff]  ;;  %v1009_v11 = vld [vmem:[%s2740_s8 + $0x48] sm:$0xff] }
 0x257   :  { %v1762_v15 = vcombine.low %v1008_v9, %v1012_v10  ;;  %v1765_v16 = vcombine.high %v1009_v11, %v1013_v14  ;;  %v1764_v17 = vcombine.low %v1009_v11, %v1013_v14 }
 0x258   :  { %v2431_v13 = vadd.f32 %v883_v12, %v872_v3  ;;  %v1021_v3 = vld [vmem:[%s2740_s8 + $0xa8] sm:$0xff]  ;;  %v1763_v12 = vcombine.high %v1008_v9, %v1012_v10 }
 0x259   :  { %v1773_v6 = vcombine.high %v1017_v1, %v1021_v3  ;;  %v1772_v7 = vcombine.low %v1017_v1, %v1021_v3 }
 0x25a   :  { %902 = vperm.xlu1 %1978, %v2431_v13   ;;  %892 = vperm.xlu0 %1977, %v2431_v13   ;;  %886 = vst.msk [vmem:[#allocation2] sm:$0x3] %vm885_vm2, %v2431_v13 }
 0x25b   :  { %1477 = vmatprep.subr.bf16.mxu0 %v1773_v6  ;;  %1438 = vmatprep.subr.bf16.mxu1 %v1763_v12 }
 0x25c   :  { %1478 = vmatpush1.bf16.msra.mxu0 %v1772_v7  ;;  %1439 = vmatpush1.bf16.msra.mxu1 %v1762_v15 }
 0x25d   :  { %1479 = vmatprep.subr.bf16.mxu0 %v1765_v16 }
 0x25e   :  { %1979 = vset.pattern.permute.xlu1 %v2083_v20  ;;  %1981 = vset.pattern.permute.xlu0 %v2084_v21  ;;  %v1001_v20 = vld [vmem:[%s2740_s8 + $0x8] sm:$0xff]  ;;  %v1755_v21 = vcombine.high %v1000_v18, %v1004_v19 }
 0x25f   :  { %912 = vperm.xlu1 %1979, %v2431_v13   ;;  %932 = vperm.xlu0 %1981, %v2431_v13   ;;  %v1757_v23 = vcombine.high %v1001_v20, %v1005_v22  ;;  %v1756_v24 = vcombine.low %v1001_v20, %v1005_v22 }
 0x260   :  { %1480 = vmatpush1.bf16.msra.mxu0 %v1764_v17  ;;  %1440 = vmatprep.subr.bf16.mxu1 %v1755_v21  ;;  %v1753_v21 = vld [vmem:[%s2739_s7] ss:$0 sm:$0xff] }
 0x261   :  { %1481 = vmatprep.subr.bf16.mxu0 %v1757_v23  ;;  %v1050_v23 = vld [vmem:[%s2740_s8 + $0x190] sm:$0xff] }
 0x263   :  { %1980 = vset.pattern.permute.xlu1 %v2085_v32  ;;  %1984 = vset.pattern.permute.xlu0 %v2086_v34  ;;  %v1817_v32 = vcombine.high %v2553_v27, %v2562_v30  ;;  %v2569_v34 = vsub.s32 1, %v2253_v33 }
 0x264   :  { %922 = vperm.xlu1 %1980, %v2431_v13   ;;  %962 = vperm.xlu0 %1984, %v2431_v13  }
 0x265   :  { %1482 = vmatpush1.bf16.msra.mxu0 %v1756_v24  ;;  %v908_v39 = vrot.slane %v887_v36, %v2569_v34  ;;  %v1054_v24 = vld [vmem:[%s2740_s8 + $0x1b0] sm:$0xff] }
 0x266   :  { %1549 = vmatprep.subr.bf16.mxu0 %v1817_v32  ;;  %v1055_v32 = vld [vmem:[%s2740_s8 + $0x1b8] sm:$0xff] }
 0x268   :  { %1982 = vset.pattern.permute.xlu1 %v2087_v47  ;;  %1987 = vset.pattern.permute.xlu0 %v2088_v51 }
 0x269   :  { %942 = vperm.xlu1 %1982, %v2431_v13  }
 0x26d   :  { %1983 = vset.pattern.permute.xlu1 %v2089_v57 }
 0x26e   :  { %952 = vperm.xlu1 %1983, %v2431_v13  }
 0x272   :  { %1985 = vset.pattern.permute.xlu1 %v2090_v4  ;;  %v888_v4 = vld [vmem:[%s2738_s6 + $0x8] sm:$0x3] }
 0x273   :  { %972 = vperm.xlu1 %1985, %v2431_v13   ;;  %v978_v11 = vrot.slane %v888_v4, %v2572_v35  ;;  %v988_v17 = vrot.slane %v888_v4, %v2569_v34 }
 0x277   :  { %1986 = vset.pattern.permute.xlu1 %v2088_v51 }
 0x278   :  { %982 = vperm.xlu1 %1986, %v2431_v13   ;;  %v1754_v13 = vcombine.low %v1000_v18, %v1004_v19 }
 0x27a   :  { %1441 = vmatpush1.bf16.msra.mxu1 %v1754_v13 }
 0x27b   :  { %1508 = vmatprep.subr.bf16.mxu1 %v1815_v29  ;;  %v1051_v29 = vld [vmem:[%s2740_s8 + $0x198] sm:$0xff] }
 0x2d5   :  { %v903_v38 = vpop.permute.xlu1 %902  ;;  %v893_v42 = vpop.permute.xlu0 %892 }
 0x2d6   :  { %v909_v45 = vmul.f32 %v908_v39, %v903_v38  ;;  %v899_v46 = vmul.f32 %v898_v40, %v893_v42  ;;  %v1807_v39 = vcombine.high %v1050_v23, %v1054_v24  ;;  %v1809_v40 = vcombine.high %v1051_v29, %v1055_v32  ;;  %v1042_v42 = vld [vmem:[%s2740_s8 + $0x150] sm:$0xff] }
 0x2d8   :  { %v910_v51 = vadd.f32 %v909_v45, %v899_v46  ;;  %v1043_v45 = vld [vmem:[%s2740_s8 + $0x158] sm:$0xff] }
 0x2d9   :  { %v1047_v46 = vld [vmem:[%s2740_s8 + $0x178] sm:$0xff] }
 0x2da   :  { %v913_v47 = vpop.permute.xlu1 %912  ;;  %v933_v57 = vpop.permute.xlu0 %932 }
 0x2db   :  { %v919_v48 = vmul.f32 %v918_v43, %v913_v47  ;;  %v939_v61 = vmul.f32 %v938_v55, %v933_v57  ;;  %v1046_v43 = vld [vmem:[%s2740_s8 + $0x170] sm:$0xff]  ;;  %v1806_v47 = vcombine.low %v1050_v23, %v1054_v24  ;;  %v1031_v57 = vld [vmem:[%s2740_s8 + $0xf8] sm:$0xff] }
 0x2dc   :  { %v1798_v27 = vcombine.low %v1042_v42, %v1046_v43  ;;  %v1026_v55 = vld [vmem:[%s2740_s8 + $0xd0] sm:$0xff] }
 0x2dd   :  { %v920_v54 = vadd.f32 %v919_v48, %v910_v51  ;;  %v1808_v48 = vcombine.low %v1051_v29, %v1055_v32  ;;  %v1801_v51 = vcombine.high %v1043_v45, %v1047_v46 }
 0x2df   :  { %v923_v53 = vpop.permute.xlu1 %922  ;;  %v963_v9 = vpop.permute.xlu0 %962 }
 0x2e0   :  { %v929_v56 = vmul.f32 %v928_v50, %v923_v53  ;;  %v969_v12 = vmul.f32 %v968_v5, %v963_v9  ;;  %v1799_v50 = vcombine.high %v1042_v42, %v1046_v43  ;;  %v1034_v53 = vld [vmem:[%s2740_s8 + $0x110] sm:$0xff] }
 0x2e1   :  { %v1010_v9 = vld [vmem:[%s2740_s8 + $0x50] sm:$0xff] }
 0x2e2   :  { %v930_v58 = vadd.f32 %v929_v56, %v920_v54  ;;  %v1038_v54 = vld [vmem:[%s2740_s8 + $0x130] sm:$0xff] }
 0x2e3   :  { %v1791_v30 = vcombine.high %v1034_v53, %v1038_v54  ;;  %v1030_v56 = vld [vmem:[%s2740_s8 + $0xf0] sm:$0xff] }
 0x2e4   :  { %v943_v62 = vpop.permute.xlu1 %942  ;;  %v940_v0 = vadd.f32 %v939_v61, %v930_v58  ;;  %v1790_v58 = vcombine.low %v1034_v53, %v1038_v54  ;;  %v1783_v61 = vcombine.high %v1026_v55, %v1030_v56  ;;  %v1782_v4 = vcombine.low %v1026_v55, %v1030_v56 }
 0x2e5   :  { %v949_v1 = vmul.f32 %v948_v59, %v943_v62  ;;  %v1792_v59 = vcombine.low %v1035_v25, %v1039_v26 }
 0x2e7   :  { %v950_v6 = vadd.f32 %v949_v1, %v940_v0  ;;  %v1018_v0 = vld [vmem:[%s2740_s8 + $0x90] sm:$0xff] }
 0x2e8   :  { %v1022_v1 = vld [vmem:[%s2740_s8 + $0xb0] sm:$0xff] }
 0x2e9   :  { %v953_v3 = vpop.permute.xlu1 %952 }
 0x2ea   :  { %v959_v7 = vmul.f32 %v958_v2, %v953_v3  ;;  %v1019_v2 = vld [vmem:[%s2740_s8 + $0x98] sm:$0xff] }
 0x2eb   :  { %v1023_v3 = vld [vmem:[%s2740_s8 + $0xb8] sm:$0xff] }
 0x2ec   :  { %v960_v10 = vadd.f32 %v959_v7, %v950_v6  ;;  %v1775_v6 = vcombine.high %v1018_v0, %v1022_v1  ;;  %v1777_v7 = vcombine.high %v1019_v2, %v1023_v3 }
 0x2ee   :  { %v973_v14 = vpop.permute.xlu1 %972  ;;  %v970_v15 = vadd.f32 %v969_v12, %v960_v10  ;;  %v1014_v10 = vld [vmem:[%s2740_s8 + $0x70] sm:$0xff]  ;;  %v1015_v12 = vld [vmem:[%s2740_s8 + $0x78] sm:$0xff] }
 0x2ef   :  { %v979_v16 = vmul.f32 %v978_v11, %v973_v14  ;;  %v1011_v11 = vld [vmem:[%s2740_s8 + $0x58] sm:$0xff]  ;;  %v1774_v14 = vcombine.low %v1018_v0, %v1022_v1 }
 0x2f1   :  { %v980_v19 = vadd.f32 %v979_v16, %v970_v15  ;;  %v1776_v15 = vcombine.low %v1019_v2, %v1023_v3  ;;  %v1767_v16 = vcombine.high %v1010_v9, %v1014_v10 }
 0x2f3   :  { %v983_v18 = vpop.permute.xlu1 %982 }
 0x2f4   :  { %v989_v20 = vmul.f32 %v988_v17, %v983_v18  ;;  %v1769_v17 = vcombine.high %v1011_v11, %v1015_v12  ;;  %v1002_v18 = vld [vmem:[%s2740_s8 + $0x10] sm:$0xff] }
 0x2f6   :  { %v990_v22 = vadd.f32 %v989_v20, %v980_v19  ;;  %v1006_v19 = vld [vmem:[%s2740_s8 + $0x30] sm:$0xff]  ;;  %v1003_v20 = vld [vmem:[%s2740_s8 + $0x18] sm:$0xff] }
 0x2f7   :  { %v1759_v23 = vcombine.high %v1002_v18, %v1006_v19  ;;  %v1758_v29 = vcombine.low %v1002_v18, %v1006_v19 }
 0x2f8   :  { %v997_v13 = vadd.f32 %v1753_v21, %v990_v22  ;;  %v1007_v21 = vld [vmem:[%s2740_s8 + $0x38] sm:$0xff]  ;;  %v1766_v22 = vcombine.low %v1010_v9, %v1014_v10 }
 0x2f9   :  { %v1761_v24 = vcombine.high %v1003_v20, %v1007_v21  ;;  %v1760_v32 = vcombine.low %v1003_v20, %v1007_v21 }
 0x2fa   :  { %v998_v36 = vmax.f32 %v997_v13, 0.0  ;;  %v1768_v13 = vcombine.low %v1011_v11, %v1015_v12 }
 0x2fc   :  { %v2617_v38 = vpack.c.bf16 %v998_v36, %v998_v36 }
 0x2fe   :  { %1459 = vmatmul.mubr.bf16.vlgmr.msra.gmra.mxu1 %v2617_v38  ;;  %1500 = vmatmul.mubr.bf16.vlgmr.msra.gmra.mxu0 %v2617_v38 }
 0x2ff   :  { %1509 = vmatpush1.bf16.msra.mxu1 %v1814_v28  ;;  %1550 = vmatpush1.bf16.msra.mxu0 %v1816_v31  ;;  %v1800_v28 = vcombine.low %v1043_v45, %v1047_v46  ;;  %v1793_v31 = vcombine.high %v1035_v25, %v1039_v26 }
 0x300   :  { %1510 = vmatprep.subr.bf16.mxu1 %v1807_v39  ;;  %1551 = vmatprep.subr.bf16.mxu0 %v1809_v40 }
 0x301   :  { %1540 = vmatprep.mubr.bf16.mxu1 %v2081_v8  ;;  %1581 = vmatprep.mubr.bf16.mxu0 %v2081_v8  ;;  %v1027_v8 = vld [vmem:[%s2740_s8 + $0xd8] sm:$0xff]  ;;  %s2091_s8 = smov [#allocation2]  }
 0x302   :  { %v1785_v62 = vcombine.high %v1027_v8, %v1031_v57  ;;  %v1784_v5 = vcombine.low %v1027_v8, %v1031_v57  ;;  %s1673_s1 = sshll.u32 %s2091_s8, 4  ;;  %s1674_s1 = int_to_ptr.vmem [resolvable:$true] %s1673_s1 }
 0x303   :  { %1511 = vmatpush1.bf16.msra.mxu1 %v1806_v47  ;;  %1552 = vmatpush1.bf16.msra.mxu0 %v1808_v48  ;;  %s2055_s22 = scalar_lea.vmem %s1674_s1, 32  ;;  %p2060_p1 = scmp.lt.s32.totalorder %s1674_s1, %s1674_s1 }
 0x304   :  { %1512 = vmatprep.subr.bf16.mxu1 %v1799_v50  ;;  %1553 = vmatprep.subr.bf16.mxu0 %v1801_v51  ;;  %p2056_p0 = scmp.ne.s32.totalorder %s1674_s1, %s2055_s22  ;;  %p2061_p2 = scmp.lt.s32.totalorder %s2055_s22, %s2055_s22 }
 0x306   :  { %p2062_p3 = por %p2061_p2, %p2060_p1 }
 0x307   :  { %1513 = vmatpush1.bf16.msra.mxu1 %v1798_v27  ;;  %1554 = vmatpush1.bf16.msra.mxu0 %v1800_v28 }
 0x308   :  { %1514 = vmatprep.subr.bf16.mxu1 %v1791_v30  ;;  %1555 = vmatprep.subr.bf16.mxu0 %v1793_v31  ;;  %p2063_p4 = pnand %p2062_p3, %p2056_p0 }
 0x30b   :  { %1515 = vmatpush1.bf16.msra.mxu1 %v1790_v58  ;;  %1556 = vmatpush1.bf16.msra.mxu0 %v1792_v59 }
 0x30c   :  { %1516 = vmatprep.subr.bf16.mxu1 %v1783_v61  ;;  %1557 = vmatprep.subr.bf16.mxu0 %v1785_v62 }
 0x30f   :  { %1517 = vmatpush1.bf16.msra.mxu1 %v1782_v4  ;;  %1558 = vmatpush1.bf16.msra.mxu0 %v1784_v5 }
 0x310   :  { %1518 = vmatprep.subr.bf16.mxu1 %v1775_v6  ;;  %1559 = vmatprep.subr.bf16.mxu0 %v1777_v7 }
 0x313   :  { %1519 = vmatpush1.bf16.msra.mxu1 %v1774_v14  ;;  %1560 = vmatpush1.bf16.msra.mxu0 %v1776_v15 }
 0x314   :  { %1520 = vmatprep.subr.bf16.mxu1 %v1767_v16  ;;  %1561 = vmatprep.subr.bf16.mxu0 %v1769_v17 }
 0x317   :  { %1521 = vmatpush1.bf16.msra.mxu1 %v1766_v22  ;;  %1562 = vmatpush1.bf16.msra.mxu0 %v1768_v13 }
 0x318   :  { %1522 = vmatprep.subr.bf16.mxu1 %v1759_v23  ;;  %1563 = vmatprep.subr.bf16.mxu0 %v1761_v24 }
 0x31b   :  { %1523 = vmatpush1.bf16.msra.mxu1 %v1758_v29  ;;  %1564 = vmatpush1.bf16.msra.mxu0 %v1760_v32 }
 0x31e   :  { %1541 = vmatmul.mubr.bf16.vlgmr.msra.gmra.mxu1 %v2617_v38  ;;  %1582 = vmatmul.mubr.bf16.vlgmr.msra.gmra.mxu0 %v2617_v38 }
 0x31f   :  { %2066 = shalt.err (!%p2063_p4)
}
 0x320   :  { %1676 = dma.vmem_to_hbm [thread:$0]  %s1674_s1, 32, %s2743_s11, [#allocation3]   ;;  %v1064_v47 = vld [vmem:[%s2741_s9] sm:$0xff] }
 0x321   :  { %v1073_v48 = vrot.slane %v1064_v47, %v2569_v34  ;;  %v1081_v50 = vrot.slane %v1064_v47, %v927_v44  ;;  %v1069_v51 = vrot.slane %v1064_v47, %v2572_v35  ;;  %v1077_v53 = vrot.slane %v1064_v47, %v917_v37 }
 0x322   :  { %v1085_v31 = vrot.slane %v1064_v47, %v937_v49  ;;  %v1093_v34 = vrot.slane %v1064_v47, %v957_v60  ;;  %v1089_v35 = vrot.slane %v1064_v47, %v947_v52  ;;  %v1097_v37 = vrot.slane %v1064_v47, %v967_v63 }
 0x3be   :  { %v1460_v36 = vpop.f32.mrf.mxu1  ;;  %v1501_v39 = vpop.f32.mrf.mxu0 }
 0x3bf   :  { %v1461_v26 = vadd.f32 %v1460_v36, %v1069_v51  ;;  %v1502_v27 = vadd.f32 %v1501_v39, %v1077_v53 }
 0x3c0   :  { %v1462_v40 = vpop.f32.mrf.mxu1  ;;  %v1503_v42 = vpop.f32.mrf.mxu0 }
 0x3c1   :  { %v1463_v54 = vadd.f32 %v1462_v40, %v1073_v48  ;;  %v1504_v25 = vadd.f32 %v1503_v42, %v1081_v50  ;;  %v1590_v55 = vmax.f32 %v1461_v26, 0.0  ;;  %v1592_v56 = vmax.f32 %v1502_v27, 0.0 }
 0x3c2   :  { %v1464_v43 = vpop.f32.mrf.mxu1  ;;  %v1505_v38 = vpop.f32.mrf.mxu0 }
 0x3c3   :  { %v1591_v28 = vmax.f32 %v1463_v54, 0.0  ;;  %v1593_v30 = vmax.f32 %v1504_v25, 0.0 }
 0x3c4   :  { %v1465_v45 = vpop.f32.mrf.mxu1  ;;  %v1506_v46 = vpop.f32.mrf.mxu0 }
 0x3c5   :  { %v1818_v44 = vpack.c.bf16 %v1591_v28, %v1590_v55  ;;  %v1819_v8 = vpack.c.bf16 %v1593_v30, %v1592_v56 }
 0x3c7   :  { %v1624_v60 = vrot.slane %v1818_v44, %v2265_v41  ;;  %v1631_v2 = vrot.slane %v1819_v8, %v2265_v41 }
 0x3c9   :  { %v1646_v11 = vcombine.low %v1624_v60, %v1631_v2 }
 0x3cb   :  { %v1654_v16 = vrot.slane %v1646_v11, %v2265_v41 }
 0x3de   :  { %v1542_v57 = vpop.f32.mrf.mxu1  ;;  %v1583_v58 = vpop.f32.mrf.mxu0 }
 0x3df   :  { %v1543_v59 = vadd.f32 %v1542_v57, %v1085_v31  ;;  %v1584_v61 = vadd.f32 %v1583_v58, %v1093_v34 }
 0x3e0   :  { %v1544_v62 = vpop.f32.mrf.mxu1  ;;  %v1585_v0 = vpop.f32.mrf.mxu0 }
 0x3e1   :  { %v1545_v49 = vadd.f32 %v1544_v62, %v1089_v35  ;;  %v1586_v1 = vadd.f32 %v1585_v0, %v1097_v37  ;;  %v1594_v52 = vmax.f32 %v1543_v59, 0.0  ;;  %v1596_v5 = vmax.f32 %v1584_v61, 0.0 }
 0x3e2   :  { %v1546_v3 = vpop.f32.mrf.mxu1  ;;  %v1587_v4 = vpop.f32.mrf.mxu0 }
 0x3e3   :  { %v1595_v33 = vmax.f32 %v1545_v49, 0.0  ;;  %v1597_v63 = vmax.f32 %v1586_v1, 0.0 }
 0x3e4   :  { %v1547_v6 = vpop.f32.mrf.mxu1  ;;  %v1588_v7 = vpop.f32.mrf.mxu0 }
 0x3e5   :  { %v1820_v9 = vpack.c.bf16 %v1595_v33, %v1594_v52  ;;  %v1821_v10 = vpack.c.bf16 %v1597_v63, %v1596_v5 }
 0x3e7   :  { %v1638_v12 = vrot.slane %v1820_v9, %v2265_v41  ;;  %v1645_v14 = vrot.slane %v1821_v10, %v2265_v41 }
 0x3e9   :  { %v1647_v15 = vcombine.low %v1638_v12, %v1645_v14 }
 0x3eb   :  { %v1661_v17 = vrot.slane %v1647_v15, %v2265_v41 }
 0x3ed   :  { %v1662_v18 = vcombine.low %v1654_v16, %v1661_v17 }
 0x3ef   :  { %1664 = vst [vmem:[%s2744_s12] sm:$0xff] %v1662_v18 }
 0x3f0   :  { %2075 = dma.done.wait [#allocation3], 32  }
 0x3f1   :  { %2076 = vsyncadd [#allocation3], 4294967264 }
 0x3f2   :  { %1686 = vsyncpa [#allocation3], 1 }

// kernel: factorvae1_forward.16
= control target key start
LH: loop header
LB: loop body
LE: loop exit
PB: predicated region body
PF: predicated region fallthrough
CT: control target
= control target key end

     0   :  { %s1760_s12 = smov 0   ;;  %s1762_s13 = smov 0   ;;  %s2047_s0 = inlined_call_operand.vmem [shape: bf16[4,512,128], index: 0, kind: input, shape index: {}]   ;;  %s2048_s1 = inlined_call_operand.vmem [shape: bf16[4,128,128], index: 1, kind: input, shape index: {}]   ;;  %s2049_s2 = inlined_call_operand.vmem [shape: f32[1,128], index: 2, kind: input, shape index: {}]   ;;  %s2050_s3 = inlined_call_operand.vmem [shape: bf16[4,512,32], index: 3, kind: output, shape index: {}]  }
   0x1   :  { %s1764_s14 = smov 0  }
   0x2 LB: > { %s25_s15 = sadd.s32 1, %s1734_s13  ;;  %p1335_p0 = scmp.ge.s32.totalorder %s1738_s14, 1  ;;  %s1738_s14 = sphi %s1764_s14, %s13_s14   ;;  %s1734_s13 = sphi %s1762_s13, %s2052_s13   ;;  %s1730_s12 = sphi %s1760_s12, %s2051_s12  }
   0x3   : > { %p27_p1 = scmp.ge.s32.totalorder %s25_s15, 4  ;;  %p168_p2 = scmp.lt.s32.totalorder %s1738_s14, 5 }
   0x5   : > { %s2054_s15 = smov (%p27_p1, %s25_s15), 0  ;;  %p169_p3 = pnand %p1335_p0, %p168_p2 }
   0x6   : > { %p206_p4 = scmp.lt.s32.totalorder (!%p169_p3), %s1730_s12, 3 }
   0x7   : > { %172 = sbr.rel (%p169_p3) target bundleno = 310 (0x136), region = 32 }
   0xc   : > { %s2056_s12 = smov (!%p206_p4, %s1730_s12), 3  ;;  %v1837_v40 = vld [vmem:[%s2049_s2] ss:$0 sm:$0xff]  ;;  %vm1167_vm0 = vcmask 257024  }
   0xd   : > { %s1450_s16 = sshll.u32 %s2056_s12, 6  ;;  %s1449_s20 = sshll.u32 %s2056_s12, 8 }
   0xe   : > { %s1784_s19 = scalar_lea.vmem %s2048_s1, %s1450_s16  ;;  %s1795_s23 = scalar_lea.vmem %s2047_s0, %s1449_s20 }
   0xf   : > { %v1676_v0 = vld [vmem:[%s1784_s19 + $0x38] sm:$0xff]   ;;  %v1677_v1 = vld [vmem:[%s1784_s19 + $0x30] sm:$0xff]   ;;  %v1678_v2 = vld [vmem:[%s1784_s19 + $0x28] sm:$0xff]   ;;  %s1848_s28 = scalar_lea.vmem %s2050_s3, %s1449_s20 }
  0x10   : > { %1556 = vmatprep.subr.bf16.mxu0 %v1676_v0  ;;  %1636 = vmatprep.subr.bf16.mxu1 %v1676_v0  ;;  %v1679_v3 = vld [vmem:[%s1784_s19 + $0x20] sm:$0xff]   ;;  %v1680_v6 = vld [vmem:[%s1784_s19 + $0x18] sm:$0xff]   ;;  %v1681_v7 = vld [vmem:[%s1784_s19 + $0x10] sm:$0xff]  }
  0x11   : > { %1557 = vmatpush3.bf16.msra.mxu0 %v1676_v0  ;;  %1644 = vmatpush3.bf16.msra.mxu1 %v1676_v0  ;;  %v1684_v4 = vld [vmem:[%s1795_s23] sm:$0xff]   ;;  %v1682_v8 = vld [vmem:[%s1784_s19 + $0x8] sm:$0xff]   ;;  %v1688_v12 = vld [vmem:[%s1795_s23 + $0x10] sm:$0xff]  }
  0x12   : > { %1558 = vmatprep.subr.bf16.mxu0 %v1677_v1  ;;  %1637 = vmatprep.subr.bf16.mxu1 %v1677_v1  ;;  %v1685_v5 = vld [vmem:[%s1795_s23 + $0x80] sm:$0xff]   ;;  %v1686_v10 = vld [vmem:[%s1795_s23 + $0x8] sm:$0xff]   ;;  %v1689_v13 = vld [vmem:[%s1795_s23 + $0x90] sm:$0xff]  }
  0x13   : > { %1572 = vmatprep.mubr.bf16.mxu0 %v1684_v4  ;;  %1604 = vmatprep.mubr.bf16.mxu1 %v1685_v5  ;;  %v1683_v9 = vld [vmem:[%s1784_s19] sm:$0xff]   ;;  %v1687_v11 = vld [vmem:[%s1795_s23 + $0x88] sm:$0xff]   ;;  %v1690_v14 = vld [vmem:[%s1795_s23 + $0x18] sm:$0xff]  }
  0x14   : > { %v1691_v15 = vld [vmem:[%s1795_s23 + $0x98] sm:$0xff]   ;;  %v1692_v16 = vld [vmem:[%s1795_s23 + $0x20] sm:$0xff]   ;;  %v1694_v18 = vld [vmem:[%s1795_s23 + $0x28] sm:$0xff]  }
  0x15   : > { %1559 = vmatpush3.bf16.msra.mxu0 %v1677_v1  ;;  %1645 = vmatpush3.bf16.msra.mxu1 %v1677_v1  ;;  %v1693_v17 = vld [vmem:[%s1795_s23 + $0xa0] sm:$0xff]   ;;  %v1695_v19 = vld [vmem:[%s1795_s23 + $0xa8] sm:$0xff]   ;;  %v1696_v20 = vld [vmem:[%s1795_s23 + $0x30] sm:$0xff]  }
  0x16   : > { %1560 = vmatprep.subr.bf16.mxu0 %v1678_v2  ;;  %1638 = vmatprep.subr.bf16.mxu1 %v1678_v2  ;;  %v1697_v21 = vld [vmem:[%s1795_s23 + $0xb0] sm:$0xff]   ;;  %v1698_v22 = vld [vmem:[%s1795_s23 + $0x38] sm:$0xff]   ;;  %v1700_v24 = vld [vmem:[%s1795_s23 + $0x40] sm:$0xff]  }
  0x17   : > { %v1699_v23 = vld [vmem:[%s1795_s23 + $0xb8] sm:$0xff]   ;;  %v1701_v25 = vld [vmem:[%s1795_s23 + $0xc0] sm:$0xff]   ;;  %v1702_v26 = vld [vmem:[%s1795_s23 + $0x48] sm:$0xff]  }
  0x18   : > { %v1703_v27 = vld [vmem:[%s1795_s23 + $0xc8] sm:$0xff]   ;;  %v1704_v28 = vld [vmem:[%s1795_s23 + $0x50] sm:$0xff]   ;;  %v1706_v30 = vld [vmem:[%s1795_s23 + $0x58] sm:$0xff]  }
  0x19   : > { %1561 = vmatpush3.bf16.msra.mxu0 %v1678_v2  ;;  %1646 = vmatpush3.bf16.msra.mxu1 %v1678_v2  ;;  %v1705_v29 = vld [vmem:[%s1795_s23 + $0xd0] sm:$0xff]   ;;  %v1707_v31 = vld [vmem:[%s1795_s23 + $0xd8] sm:$0xff]   ;;  %v1708_v32 = vld [vmem:[%s1795_s23 + $0x60] sm:$0xff]  }
  0x1a   : > { %1562 = vmatprep.subr.bf16.mxu0 %v1679_v3  ;;  %1639 = vmatprep.subr.bf16.mxu1 %v1679_v3  ;;  %v1709_v33 = vld [vmem:[%s1795_s23 + $0xe0] sm:$0xff]   ;;  %v1710_v34 = vld [vmem:[%s1795_s23 + $0x68] sm:$0xff]   ;;  %v1712_v36 = vld [vmem:[%s1795_s23 + $0x70] sm:$0xff]  }
  0x1b   : > { %v1711_v35 = vld [vmem:[%s1795_s23 + $0xe8] sm:$0xff]   ;;  %v1713_v37 = vld [vmem:[%s1795_s23 + $0xf0] sm:$0xff]   ;;  %v1714_v38 = vld [vmem:[%s1795_s23 + $0x78] sm:$0xff]  }
  0x1c   : > { %v1715_v39 = vld [vmem:[%s1795_s23 + $0xf8] sm:$0xff]  }
  0x1d   : > { %1563 = vmatpush3.bf16.msra.mxu0 %v1679_v3  ;;  %1647 = vmatpush3.bf16.msra.mxu1 %v1679_v3 }
  0x1e   : > { %1564 = vmatprep.subr.bf16.mxu0 %v1680_v6  ;;  %1640 = vmatprep.subr.bf16.mxu1 %v1680_v6 }
  0x21   : > { %1565 = vmatpush3.bf16.msra.mxu0 %v1680_v6  ;;  %1648 = vmatpush3.bf16.msra.mxu1 %v1680_v6 }
  0x22   : > { %1566 = vmatprep.subr.bf16.mxu0 %v1681_v7  ;;  %1641 = vmatprep.subr.bf16.mxu1 %v1681_v7 }
  0x25   : > { %1567 = vmatpush3.bf16.msra.mxu0 %v1681_v7  ;;  %1649 = vmatpush3.bf16.msra.mxu1 %v1681_v7 }
  0x26   : > { %1568 = vmatprep.subr.bf16.mxu0 %v1682_v8  ;;  %1642 = vmatprep.subr.bf16.mxu1 %v1682_v8 }
  0x29   : > { %1569 = vmatpush3.bf16.msra.mxu0 %v1682_v8  ;;  %1650 = vmatpush3.bf16.msra.mxu1 %v1682_v8 }
  0x2a   : > { %1570 = vmatprep.subr.bf16.mxu0 %v1683_v9  ;;  %1643 = vmatprep.subr.bf16.mxu1 %v1683_v9 }
  0x2d   : > { %1571 = vmatpush3.bf16.msra.mxu0 %v1683_v9  ;;  %1651 = vmatpush3.bf16.msra.mxu1 %v1683_v9 }
  0x30   : > { %1573 = vmatmul.mubr.bf16.vlgmr.msra.gmra.mxu0 %v1686_v10  ;;  %1605 = vmatmul.mubr.bf16.vlgmr.msra.gmra.mxu1 %v1687_v11 }
  0x31   : > { %1576 = vmatprep.mubr.bf16.mxu0 %v1688_v12  ;;  %1608 = vmatprep.mubr.bf16.mxu1 %v1689_v13 }
  0x38   : > { %1577 = vmatmul.mubr.bf16.gmra.mxu0 %v1690_v14  ;;  %1609 = vmatmul.mubr.bf16.gmra.mxu1 %v1691_v15 }
  0x39   : > { %1580 = vmatprep.mubr.bf16.mxu0 %v1692_v16  ;;  %1612 = vmatprep.mubr.bf16.mxu1 %v1693_v17 }
  0x40   : > { %1581 = vmatmul.mubr.bf16.gmra.mxu0 %v1694_v18  ;;  %1613 = vmatmul.mubr.bf16.gmra.mxu1 %v1695_v19 }
  0x41   : > { %1584 = vmatprep.mubr.bf16.mxu0 %v1696_v20  ;;  %1616 = vmatprep.mubr.bf16.mxu1 %v1697_v21 }
  0x48   : > { %1585 = vmatmul.mubr.bf16.gmra.mxu0 %v1698_v22  ;;  %1617 = vmatmul.mubr.bf16.gmra.mxu1 %v1699_v23 }
  0x49   : > { %1588 = vmatprep.mubr.bf16.mxu0 %v1700_v24  ;;  %1620 = vmatprep.mubr.bf16.mxu1 %v1701_v25 }
  0x50   : > { %1589 = vmatmul.mubr.bf16.gmra.mxu0 %v1702_v26  ;;  %1621 = vmatmul.mubr.bf16.gmra.mxu1 %v1703_v27 }
  0x51   : > { %1592 = vmatprep.mubr.bf16.mxu0 %v1704_v28  ;;  %1624 = vmatprep.mubr.bf16.mxu1 %v1705_v29 }
  0x58   : > { %1593 = vmatmul.mubr.bf16.gmra.mxu0 %v1706_v30  ;;  %1625 = vmatmul.mubr.bf16.gmra.mxu1 %v1707_v31 }
  0x59   : > { %1596 = vmatprep.mubr.bf16.mxu0 %v1708_v32  ;;  %1628 = vmatprep.mubr.bf16.mxu1 %v1709_v33 }
  0x60   : > { %1597 = vmatmul.mubr.bf16.gmra.mxu0 %v1710_v34  ;;  %1629 = vmatmul.mubr.bf16.gmra.mxu1 %v1711_v35 }
  0x61   : > { %1600 = vmatprep.mubr.bf16.mxu0 %v1712_v36  ;;  %1632 = vmatprep.mubr.bf16.mxu1 %v1713_v37 }
  0x68   : > { %1601 = vmatmul.mubr.bf16.gmra.mxu0 %v1714_v38  ;;  %1633 = vmatmul.mubr.bf16.gmra.mxu1 %v1715_v39 }
  0xf0   : > { %v1574_v41 = vpop.f32.mrf.mxu0  ;;  %v1606_v42 = vpop.f32.mrf.mxu1 }
  0xf1   : > { %v601_v43 = vadd.f32 %v1574_v41, %v1837_v40  ;;  %v729_v44 = vadd.f32 %v1606_v42, %v1837_v40 }
  0xf2   : > { %v592_v45 = vpop.f32.mrf.mxu0  ;;  %v720_v46 = vpop.f32.mrf.mxu1 }
  0xf3   : > { %v849_v47 = vmax.f32 %v601_v43, 0.0  ;;  %v881_v48 = vmax.f32 %v729_v44, 0.0  ;;  %v593_v49 = vadd.f32 %v1837_v40, %v592_v45  ;;  %v721_v50 = vadd.f32 %v1837_v40, %v720_v46 }
  0xf4   : > { %v1575_v51 = vpop.f32.mrf.mxu0  ;;  %v1607_v52 = vpop.f32.mrf.mxu1 }
  0xf5   : > { %v1454_v53 = vpack.c.bf16 %v849_v47, %v849_v47  ;;  %v1486_v54 = vpack.c.bf16 %v881_v48, %v881_v48  ;;  %v847_v55 = vmax.f32 %v593_v49, 0.0  ;;  %v879_v56 = vmax.f32 %v721_v50, 0.0 }
  0xf6   : > { %v604_v57 = vadd.f32 %v1575_v51, %v1837_v40  ;;  %v732_v58 = vadd.f32 %v1607_v52, %v1837_v40  ;;  %v595_v59 = vpop.f32.mrf.mxu0  ;;  %v723_v60 = vpop.f32.mrf.mxu1 }
  0xf7   : > { %1170 = vst.msk [vmem:[%s1848_s28 + $0x8] sm:$0xf] %vm1167_vm0, %v1454_v53  ;;  %1202 = vst.msk [vmem:[%s1848_s28 + $0x88] sm:$0xf] %vm1167_vm0, %v1486_v54  ;;  %v1452_v61 = vpack.c.bf16 %v847_v55, %v847_v55  ;;  %v1484_v62 = vpack.c.bf16 %v879_v56, %v879_v56  ;;  %v596_v63 = vadd.f32 %v1837_v40, %v595_v59 }
  0xf8   : > { %v724_v0 = vadd.f32 %v1837_v40, %v723_v60  ;;  %v850_v1 = vmax.f32 %v604_v57, 0.0  ;;  %v882_v2 = vmax.f32 %v732_v58, 0.0  ;;  %v1578_v3 = vpop.f32.mrf.mxu0  ;;  %v1610_v4 = vpop.f32.mrf.mxu1 }
  0xf9   : > { %1168 = vst.msk [vmem:[%s1848_s28] sm:$0xf] %vm1167_vm0, %v1452_v61  ;;  %1200 = vst.msk [vmem:[%s1848_s28 + $0x80] sm:$0xf] %vm1167_vm0, %v1484_v62  ;;  %v848_v5 = vmax.f32 %v596_v63, 0.0  ;;  %v617_v7 = vadd.f32 %v1578_v3, %v1837_v40  ;;  %v745_v8 = vadd.f32 %v1610_v4, %v1837_v40 }
  0xfa   : > { %v880_v6 = vmax.f32 %v724_v0, 0.0  ;;  %v1455_v9 = vpack.c.bf16 %v850_v1, %v850_v1  ;;  %v1487_v10 = vpack.c.bf16 %v882_v2, %v882_v2  ;;  %v608_v11 = vpop.f32.mrf.mxu0  ;;  %v736_v12 = vpop.f32.mrf.mxu1 }
  0xfb   : > { %v1453_v13 = vpack.c.bf16 %v848_v5, %v848_v5  ;;  %v853_v15 = vmax.f32 %v617_v7, 0.0  ;;  %v885_v16 = vmax.f32 %v745_v8, 0.0  ;;  %v609_v17 = vadd.f32 %v1837_v40, %v608_v11 }
  0xfc   : > { %v1485_v14 = vpack.c.bf16 %v880_v6, %v880_v6  ;;  %1171 = vst.msk [vmem:[%s1848_s28 + $0xc] sm:$0xf] %vm1167_vm0, %v1455_v9  ;;  %1203 = vst.msk [vmem:[%s1848_s28 + $0x8c] sm:$0xf] %vm1167_vm0, %v1487_v10  ;;  %v737_v18 = vadd.f32 %v1837_v40, %v736_v12  ;;  %v1579_v19 = vpop.f32.mrf.mxu0  ;;  %v1611_v20 = vpop.f32.mrf.mxu1 }
  0xfd   : > { %1169 = vst.msk [vmem:[%s1848_s28 + $0x4] sm:$0xf] %vm1167_vm0, %v1453_v13  ;;  %v1458_v21 = vpack.c.bf16 %v853_v15, %v853_v15  ;;  %v1490_v22 = vpack.c.bf16 %v885_v16, %v885_v16  ;;  %v620_v23 = vadd.f32 %v1579_v19, %v1837_v40  ;;  %v748_v24 = vadd.f32 %v1611_v20, %v1837_v40 }
  0xfe   : > { %1201 = vst.msk [vmem:[%s1848_s28 + $0x84] sm:$0xf] %vm1167_vm0, %v1485_v14  ;;  %v851_v25 = vmax.f32 %v609_v17, 0.0  ;;  %v883_v26 = vmax.f32 %v737_v18, 0.0  ;;  %v611_v27 = vpop.f32.mrf.mxu0  ;;  %v739_v28 = vpop.f32.mrf.mxu1 }
  0xff   : > { %1174 = vst.msk [vmem:[%s1848_s28 + $0x18] sm:$0xf] %vm1167_vm0, %v1458_v21  ;;  %1206 = vst.msk [vmem:[%s1848_s28 + $0x98] sm:$0xf] %vm1167_vm0, %v1490_v22  ;;  %v854_v29 = vmax.f32 %v620_v23, 0.0  ;;  %v886_v30 = vmax.f32 %v748_v24, 0.0  ;;  %v612_v31 = vadd.f32 %v1837_v40, %v611_v27  ;;  %v740_v32 = vadd.f32 %v1837_v40, %v739_v28 }
 0x100   : > { %v1456_v33 = vpack.c.bf16 %v851_v25, %v851_v25  ;;  %v1488_v34 = vpack.c.bf16 %v883_v26, %v883_v26  ;;  %v1582_v35 = vpop.f32.mrf.mxu0  ;;  %v1614_v36 = vpop.f32.mrf.mxu1 }
 0x101   : > { %v1459_v37 = vpack.c.bf16 %v854_v29, %v854_v29  ;;  %v1491_v38 = vpack.c.bf16 %v886_v30, %v886_v30  ;;  %v852_v39 = vmax.f32 %v612_v31, 0.0  ;;  %v884_v41 = vmax.f32 %v740_v32, 0.0 }
 0x102   : > { %1172 = vst.msk [vmem:[%s1848_s28 + $0x10] sm:$0xf] %vm1167_vm0, %v1456_v33  ;;  %1204 = vst.msk [vmem:[%s1848_s28 + $0x90] sm:$0xf] %vm1167_vm0, %v1488_v34  ;;  %v633_v42 = vadd.f32 %v1582_v35, %v1837_v40  ;;  %v761_v43 = vadd.f32 %v1614_v36, %v1837_v40  ;;  %v624_v44 = vpop.f32.mrf.mxu0  ;;  %v752_v45 = vpop.f32.mrf.mxu1 }
 0x103   : > { %1175 = vst.msk [vmem:[%s1848_s28 + $0x1c] sm:$0xf] %vm1167_vm0, %v1459_v37  ;;  %1207 = vst.msk [vmem:[%s1848_s28 + $0x9c] sm:$0xf] %vm1167_vm0, %v1491_v38  ;;  %v1457_v46 = vpack.c.bf16 %v852_v39, %v852_v39  ;;  %v1489_v47 = vpack.c.bf16 %v884_v41, %v884_v41  ;;  %v625_v48 = vadd.f32 %v1837_v40, %v624_v44 }
 0x104   : > { %v753_v49 = vadd.f32 %v1837_v40, %v752_v45  ;;  %v857_v50 = vmax.f32 %v633_v42, 0.0  ;;  %v889_v51 = vmax.f32 %v761_v43, 0.0  ;;  %v1583_v52 = vpop.f32.mrf.mxu0  ;;  %v1615_v53 = vpop.f32.mrf.mxu1 }
 0x105   : > { %1173 = vst.msk [vmem:[%s1848_s28 + $0x14] sm:$0xf] %vm1167_vm0, %v1457_v46  ;;  %1205 = vst.msk [vmem:[%s1848_s28 + $0x94] sm:$0xf] %vm1167_vm0, %v1489_v47  ;;  %v855_v54 = vmax.f32 %v625_v48, 0.0  ;;  %v636_v56 = vadd.f32 %v1583_v52, %v1837_v40  ;;  %v764_v57 = vadd.f32 %v1615_v53, %v1837_v40 }
 0x106   : > { %v887_v55 = vmax.f32 %v753_v49, 0.0  ;;  %v1462_v58 = vpack.c.bf16 %v857_v50, %v857_v50  ;;  %v1494_v59 = vpack.c.bf16 %v889_v51, %v889_v51  ;;  %v627_v60 = vpop.f32.mrf.mxu0  ;;  %v755_v61 = vpop.f32.mrf.mxu1 }
 0x107   : > { %v1460_v62 = vpack.c.bf16 %v855_v54, %v855_v54  ;;  %v858_v0 = vmax.f32 %v636_v56, 0.0  ;;  %v890_v1 = vmax.f32 %v764_v57, 0.0  ;;  %v628_v2 = vadd.f32 %v1837_v40, %v627_v60 }
 0x108   : > { %v1492_v63 = vpack.c.bf16 %v887_v55, %v887_v55  ;;  %1178 = vst.msk [vmem:[%s1848_s28 + $0x28] sm:$0xf] %vm1167_vm0, %v1462_v58  ;;  %1210 = vst.msk [vmem:[%s1848_s28 + $0xa8] sm:$0xf] %vm1167_vm0, %v1494_v59  ;;  %v756_v3 = vadd.f32 %v1837_v40, %v755_v61  ;;  %v1586_v4 = vpop.f32.mrf.mxu0  ;;  %v1618_v5 = vpop.f32.mrf.mxu1 }
 0x109   : > { %1176 = vst.msk [vmem:[%s1848_s28 + $0x20] sm:$0xf] %vm1167_vm0, %v1460_v62  ;;  %v1463_v6 = vpack.c.bf16 %v858_v0, %v858_v0  ;;  %v1495_v7 = vpack.c.bf16 %v890_v1, %v890_v1  ;;  %v649_v8 = vadd.f32 %v1586_v4, %v1837_v40  ;;  %v777_v9 = vadd.f32 %v1618_v5, %v1837_v40 }
 0x10a   : > { %1208 = vst.msk [vmem:[%s1848_s28 + $0xa0] sm:$0xf] %vm1167_vm0, %v1492_v63  ;;  %v856_v10 = vmax.f32 %v628_v2, 0.0  ;;  %v888_v11 = vmax.f32 %v756_v3, 0.0  ;;  %v640_v12 = vpop.f32.mrf.mxu0  ;;  %v768_v13 = vpop.f32.mrf.mxu1 }
 0x10b   : > { %1179 = vst.msk [vmem:[%s1848_s28 + $0x2c] sm:$0xf] %vm1167_vm0, %v1463_v6  ;;  %1211 = vst.msk [vmem:[%s1848_s28 + $0xac] sm:$0xf] %vm1167_vm0, %v1495_v7  ;;  %v861_v14 = vmax.f32 %v649_v8, 0.0  ;;  %v893_v15 = vmax.f32 %v777_v9, 0.0  ;;  %v641_v16 = vadd.f32 %v1837_v40, %v640_v12  ;;  %v769_v17 = vadd.f32 %v1837_v40, %v768_v13 }
 0x10c   : > { %v1461_v18 = vpack.c.bf16 %v856_v10, %v856_v10  ;;  %v1493_v19 = vpack.c.bf16 %v888_v11, %v888_v11  ;;  %v1587_v20 = vpop.f32.mrf.mxu0  ;;  %v1619_v21 = vpop.f32.mrf.mxu1 }
 0x10d   : > { %v1466_v22 = vpack.c.bf16 %v861_v14, %v861_v14  ;;  %v1498_v23 = vpack.c.bf16 %v893_v15, %v893_v15  ;;  %v859_v24 = vmax.f32 %v641_v16, 0.0  ;;  %v891_v25 = vmax.f32 %v769_v17, 0.0 }
 0x10e   : > { %1177 = vst.msk [vmem:[%s1848_s28 + $0x24] sm:$0xf] %vm1167_vm0, %v1461_v18  ;;  %1209 = vst.msk [vmem:[%s1848_s28 + $0xa4] sm:$0xf] %vm1167_vm0, %v1493_v19  ;;  %v652_v26 = vadd.f32 %v1587_v20, %v1837_v40  ;;  %v780_v27 = vadd.f32 %v1619_v21, %v1837_v40  ;;  %v643_v28 = vpop.f32.mrf.mxu0  ;;  %v771_v29 = vpop.f32.mrf.mxu1 }
 0x10f   : > { %1182 = vst.msk [vmem:[%s1848_s28 + $0x38] sm:$0xf] %vm1167_vm0, %v1466_v22  ;;  %1214 = vst.msk [vmem:[%s1848_s28 + $0xb8] sm:$0xf] %vm1167_vm0, %v1498_v23  ;;  %v1464_v30 = vpack.c.bf16 %v859_v24, %v859_v24  ;;  %v1496_v31 = vpack.c.bf16 %v891_v25, %v891_v25  ;;  %v644_v32 = vadd.f32 %v1837_v40, %v643_v28 }
 0x110   : > { %v772_v33 = vadd.f32 %v1837_v40, %v771_v29  ;;  %v862_v34 = vmax.f32 %v652_v26, 0.0  ;;  %v894_v35 = vmax.f32 %v780_v27, 0.0  ;;  %v1590_v36 = vpop.f32.mrf.mxu0  ;;  %v1622_v37 = vpop.f32.mrf.mxu1 }
 0x111   : > { %1180 = vst.msk [vmem:[%s1848_s28 + $0x30] sm:$0xf] %vm1167_vm0, %v1464_v30  ;;  %1212 = vst.msk [vmem:[%s1848_s28 + $0xb0] sm:$0xf] %vm1167_vm0, %v1496_v31  ;;  %v860_v38 = vmax.f32 %v644_v32, 0.0  ;;  %v665_v41 = vadd.f32 %v1590_v36, %v1837_v40  ;;  %v793_v42 = vadd.f32 %v1622_v37, %v1837_v40 }
 0x112   : > { %v892_v39 = vmax.f32 %v772_v33, 0.0  ;;  %v1467_v43 = vpack.c.bf16 %v862_v34, %v862_v34  ;;  %v1499_v44 = vpack.c.bf16 %v894_v35, %v894_v35  ;;  %v656_v45 = vpop.f32.mrf.mxu0  ;;  %v784_v46 = vpop.f32.mrf.mxu1 }
 0x113   : > { %v1465_v47 = vpack.c.bf16 %v860_v38, %v860_v38  ;;  %v865_v49 = vmax.f32 %v665_v41, 0.0  ;;  %v897_v50 = vmax.f32 %v793_v42, 0.0  ;;  %v657_v51 = vadd.f32 %v1837_v40, %v656_v45 }
 0x114   : > { %v1497_v48 = vpack.c.bf16 %v892_v39, %v892_v39  ;;  %1183 = vst.msk [vmem:[%s1848_s28 + $0x3c] sm:$0xf] %vm1167_vm0, %v1467_v43  ;;  %1215 = vst.msk [vmem:[%s1848_s28 + $0xbc] sm:$0xf] %vm1167_vm0, %v1499_v44  ;;  %v785_v52 = vadd.f32 %v1837_v40, %v784_v46  ;;  %v1591_v53 = vpop.f32.mrf.mxu0  ;;  %v1623_v54 = vpop.f32.mrf.mxu1 }
 0x115   : > { %1181 = vst.msk [vmem:[%s1848_s28 + $0x34] sm:$0xf] %vm1167_vm0, %v1465_v47  ;;  %v1470_v55 = vpack.c.bf16 %v865_v49, %v865_v49  ;;  %v1502_v56 = vpack.c.bf16 %v897_v50, %v897_v50  ;;  %v668_v57 = vadd.f32 %v1591_v53, %v1837_v40  ;;  %v796_v58 = vadd.f32 %v1623_v54, %v1837_v40 }
 0x116   : > { %1213 = vst.msk [vmem:[%s1848_s28 + $0xb4] sm:$0xf] %vm1167_vm0, %v1497_v48  ;;  %v863_v59 = vmax.f32 %v657_v51, 0.0  ;;  %v895_v60 = vmax.f32 %v785_v52, 0.0  ;;  %v659_v61 = vpop.f32.mrf.mxu0  ;;  %v787_v62 = vpop.f32.mrf.mxu1 }
 0x117   : > { %1186 = vst.msk [vmem:[%s1848_s28 + $0x48] sm:$0xf] %vm1167_vm0, %v1470_v55  ;;  %1218 = vst.msk [vmem:[%s1848_s28 + $0xc8] sm:$0xf] %vm1167_vm0, %v1502_v56  ;;  %v866_v63 = vmax.f32 %v668_v57, 0.0  ;;  %v898_v0 = vmax.f32 %v796_v58, 0.0  ;;  %v660_v1 = vadd.f32 %v1837_v40, %v659_v61  ;;  %v788_v2 = vadd.f32 %v1837_v40, %v787_v62 }
 0x118   : > { %v1468_v3 = vpack.c.bf16 %v863_v59, %v863_v59  ;;  %v1500_v4 = vpack.c.bf16 %v895_v60, %v895_v60  ;;  %v1594_v5 = vpop.f32.mrf.mxu0  ;;  %v1626_v6 = vpop.f32.mrf.mxu1 }
 0x119   : > { %v1471_v7 = vpack.c.bf16 %v866_v63, %v866_v63  ;;  %v1503_v8 = vpack.c.bf16 %v898_v0, %v898_v0  ;;  %v864_v9 = vmax.f32 %v660_v1, 0.0  ;;  %v896_v10 = vmax.f32 %v788_v2, 0.0 }
 0x11a   : > { %1184 = vst.msk [vmem:[%s1848_s28 + $0x40] sm:$0xf] %vm1167_vm0, %v1468_v3  ;;  %1216 = vst.msk [vmem:[%s1848_s28 + $0xc0] sm:$0xf] %vm1167_vm0, %v1500_v4  ;;  %v681_v11 = vadd.f32 %v1594_v5, %v1837_v40  ;;  %v809_v12 = vadd.f32 %v1626_v6, %v1837_v40  ;;  %v672_v13 = vpop.f32.mrf.mxu0  ;;  %v800_v14 = vpop.f32.mrf.mxu1 }
 0x11b   : > { %1187 = vst.msk [vmem:[%s1848_s28 + $0x4c] sm:$0xf] %vm1167_vm0, %v1471_v7  ;;  %1219 = vst.msk [vmem:[%s1848_s28 + $0xcc] sm:$0xf] %vm1167_vm0, %v1503_v8  ;;  %v1469_v15 = vpack.c.bf16 %v864_v9, %v864_v9  ;;  %v1501_v16 = vpack.c.bf16 %v896_v10, %v896_v10  ;;  %v673_v17 = vadd.f32 %v1837_v40, %v672_v13 }
 0x11c   : > { %v801_v18 = vadd.f32 %v1837_v40, %v800_v14  ;;  %v869_v19 = vmax.f32 %v681_v11, 0.0  ;;  %v901_v20 = vmax.f32 %v809_v12, 0.0  ;;  %v1595_v21 = vpop.f32.mrf.mxu0  ;;  %v1627_v22 = vpop.f32.mrf.mxu1 }
 0x11d   : > { %1185 = vst.msk [vmem:[%s1848_s28 + $0x44] sm:$0xf] %vm1167_vm0, %v1469_v15  ;;  %1217 = vst.msk [vmem:[%s1848_s28 + $0xc4] sm:$0xf] %vm1167_vm0, %v1501_v16  ;;  %v867_v23 = vmax.f32 %v673_v17, 0.0  ;;  %v684_v25 = vadd.f32 %v1595_v21, %v1837_v40  ;;  %v812_v26 = vadd.f32 %v1627_v22, %v1837_v40 }
 0x11e   : > { %v899_v24 = vmax.f32 %v801_v18, 0.0  ;;  %v1474_v27 = vpack.c.bf16 %v869_v19, %v869_v19  ;;  %v1506_v28 = vpack.c.bf16 %v901_v20, %v901_v20  ;;  %v675_v29 = vpop.f32.mrf.mxu0  ;;  %v803_v30 = vpop.f32.mrf.mxu1 }
 0x11f   : > { %v1472_v31 = vpack.c.bf16 %v867_v23, %v867_v23  ;;  %v870_v33 = vmax.f32 %v684_v25, 0.0  ;;  %v902_v34 = vmax.f32 %v812_v26, 0.0  ;;  %v676_v35 = vadd.f32 %v1837_v40, %v675_v29 }
 0x120   : > { %v1504_v32 = vpack.c.bf16 %v899_v24, %v899_v24  ;;  %1190 = vst.msk [vmem:[%s1848_s28 + $0x58] sm:$0xf] %vm1167_vm0, %v1474_v27  ;;  %1222 = vst.msk [vmem:[%s1848_s28 + $0xd8] sm:$0xf] %vm1167_vm0, %v1506_v28  ;;  %v804_v36 = vadd.f32 %v1837_v40, %v803_v30  ;;  %v1598_v37 = vpop.f32.mrf.mxu0  ;;  %v1630_v38 = vpop.f32.mrf.mxu1 }
 0x121   : > { %1188 = vst.msk [vmem:[%s1848_s28 + $0x50] sm:$0xf] %vm1167_vm0, %v1472_v31  ;;  %v1475_v39 = vpack.c.bf16 %v870_v33, %v870_v33  ;;  %v1507_v41 = vpack.c.bf16 %v902_v34, %v902_v34  ;;  %v697_v42 = vadd.f32 %v1598_v37, %v1837_v40  ;;  %v825_v43 = vadd.f32 %v1630_v38, %v1837_v40 }
 0x122   : > { %1220 = vst.msk [vmem:[%s1848_s28 + $0xd0] sm:$0xf] %vm1167_vm0, %v1504_v32  ;;  %v868_v44 = vmax.f32 %v676_v35, 0.0  ;;  %v900_v45 = vmax.f32 %v804_v36, 0.0  ;;  %v688_v46 = vpop.f32.mrf.mxu0  ;;  %v816_v47 = vpop.f32.mrf.mxu1 }
 0x123   : > { %1191 = vst.msk [vmem:[%s1848_s28 + $0x5c] sm:$0xf] %vm1167_vm0, %v1475_v39  ;;  %1223 = vst.msk [vmem:[%s1848_s28 + $0xdc] sm:$0xf] %vm1167_vm0, %v1507_v41  ;;  %v873_v48 = vmax.f32 %v697_v42, 0.0  ;;  %v905_v49 = vmax.f32 %v825_v43, 0.0  ;;  %v689_v50 = vadd.f32 %v1837_v40, %v688_v46  ;;  %v817_v51 = vadd.f32 %v1837_v40, %v816_v47 }
 0x124   : > { %v1473_v52 = vpack.c.bf16 %v868_v44, %v868_v44  ;;  %v1505_v53 = vpack.c.bf16 %v900_v45, %v900_v45  ;;  %v1599_v54 = vpop.f32.mrf.mxu0  ;;  %v1631_v55 = vpop.f32.mrf.mxu1 }
 0x125   : > { %v1478_v56 = vpack.c.bf16 %v873_v48, %v873_v48  ;;  %v1510_v57 = vpack.c.bf16 %v905_v49, %v905_v49  ;;  %v871_v58 = vmax.f32 %v689_v50, 0.0  ;;  %v903_v59 = vmax.f32 %v817_v51, 0.0 }
 0x126   : > { %1189 = vst.msk [vmem:[%s1848_s28 + $0x54] sm:$0xf] %vm1167_vm0, %v1473_v52  ;;  %1221 = vst.msk [vmem:[%s1848_s28 + $0xd4] sm:$0xf] %vm1167_vm0, %v1505_v53  ;;  %v700_v60 = vadd.f32 %v1599_v54, %v1837_v40  ;;  %v828_v61 = vadd.f32 %v1631_v55, %v1837_v40  ;;  %v691_v62 = vpop.f32.mrf.mxu0  ;;  %v819_v63 = vpop.f32.mrf.mxu1 }
 0x127   : > { %1194 = vst.msk [vmem:[%s1848_s28 + $0x68] sm:$0xf] %vm1167_vm0, %v1478_v56  ;;  %1226 = vst.msk [vmem:[%s1848_s28 + $0xe8] sm:$0xf] %vm1167_vm0, %v1510_v57  ;;  %v1476_v0 = vpack.c.bf16 %v871_v58, %v871_v58  ;;  %v1508_v1 = vpack.c.bf16 %v903_v59, %v903_v59  ;;  %v692_v2 = vadd.f32 %v1837_v40, %v691_v62 }
 0x128   : > { %v820_v3 = vadd.f32 %v1837_v40, %v819_v63  ;;  %v874_v4 = vmax.f32 %v700_v60, 0.0  ;;  %v906_v5 = vmax.f32 %v828_v61, 0.0  ;;  %v1602_v6 = vpop.f32.mrf.mxu0  ;;  %v1634_v7 = vpop.f32.mrf.mxu1 }
 0x129   : > { %1192 = vst.msk [vmem:[%s1848_s28 + $0x60] sm:$0xf] %vm1167_vm0, %v1476_v0  ;;  %1224 = vst.msk [vmem:[%s1848_s28 + $0xe0] sm:$0xf] %vm1167_vm0, %v1508_v1  ;;  %v872_v8 = vmax.f32 %v692_v2, 0.0  ;;  %v713_v10 = vadd.f32 %v1602_v6, %v1837_v40  ;;  %v841_v11 = vadd.f32 %v1634_v7, %v1837_v40 }
 0x12a   : > { %v904_v9 = vmax.f32 %v820_v3, 0.0  ;;  %v1479_v12 = vpack.c.bf16 %v874_v4, %v874_v4  ;;  %v1511_v13 = vpack.c.bf16 %v906_v5, %v906_v5  ;;  %v704_v14 = vpop.f32.mrf.mxu0  ;;  %v832_v15 = vpop.f32.mrf.mxu1 }
 0x12b   : > { %v1477_v16 = vpack.c.bf16 %v872_v8, %v872_v8  ;;  %v877_v18 = vmax.f32 %v713_v10, 0.0  ;;  %v909_v19 = vmax.f32 %v841_v11, 0.0  ;;  %v705_v20 = vadd.f32 %v1837_v40, %v704_v14 }
 0x12c   : > { %v1509_v17 = vpack.c.bf16 %v904_v9, %v904_v9  ;;  %1195 = vst.msk [vmem:[%s1848_s28 + $0x6c] sm:$0xf] %vm1167_vm0, %v1479_v12  ;;  %1227 = vst.msk [vmem:[%s1848_s28 + $0xec] sm:$0xf] %vm1167_vm0, %v1511_v13  ;;  %v833_v21 = vadd.f32 %v1837_v40, %v832_v15  ;;  %v1603_v22 = vpop.f32.mrf.mxu0  ;;  %v1635_v23 = vpop.f32.mrf.mxu1 }
 0x12d   : > { %1193 = vst.msk [vmem:[%s1848_s28 + $0x64] sm:$0xf] %vm1167_vm0, %v1477_v16  ;;  %v1482_v24 = vpack.c.bf16 %v877_v18, %v877_v18  ;;  %v1514_v25 = vpack.c.bf16 %v909_v19, %v909_v19  ;;  %v716_v26 = vadd.f32 %v1603_v22, %v1837_v40  ;;  %v844_v27 = vadd.f32 %v1635_v23, %v1837_v40 }
 0x12e   : > { %1225 = vst.msk [vmem:[%s1848_s28 + $0xe4] sm:$0xf] %vm1167_vm0, %v1509_v17  ;;  %v875_v28 = vmax.f32 %v705_v20, 0.0  ;;  %v907_v29 = vmax.f32 %v833_v21, 0.0  ;;  %v707_v30 = vpop.f32.mrf.mxu0  ;;  %v835_v31 = vpop.f32.mrf.mxu1 }
 0x12f   : > { %1198 = vst.msk [vmem:[%s1848_s28 + $0x78] sm:$0xf] %vm1167_vm0, %v1482_v24  ;;  %1230 = vst.msk [vmem:[%s1848_s28 + $0xf8] sm:$0xf] %vm1167_vm0, %v1514_v25  ;;  %v878_v32 = vmax.f32 %v716_v26, 0.0  ;;  %v910_v33 = vmax.f32 %v844_v27, 0.0  ;;  %v708_v34 = vadd.f32 %v1837_v40, %v707_v30  ;;  %v836_v35 = vadd.f32 %v1837_v40, %v835_v31 }
 0x130   : > { %v1480_v36 = vpack.c.bf16 %v875_v28, %v875_v28  ;;  %v1512_v37 = vpack.c.bf16 %v907_v29, %v907_v29 }
 0x131   : > { %v1483_v38 = vpack.c.bf16 %v878_v32, %v878_v32  ;;  %v1515_v39 = vpack.c.bf16 %v910_v33, %v910_v33  ;;  %v876_v41 = vmax.f32 %v708_v34, 0.0  ;;  %v908_v42 = vmax.f32 %v836_v35, 0.0 }
 0x132   : > { %1196 = vst.msk [vmem:[%s1848_s28 + $0x70] sm:$0xf] %vm1167_vm0, %v1480_v36  ;;  %1228 = vst.msk [vmem:[%s1848_s28 + $0xf0] sm:$0xf] %vm1167_vm0, %v1512_v37 }
 0x133   : > { %1199 = vst.msk [vmem:[%s1848_s28 + $0x7c] sm:$0xf] %vm1167_vm0, %v1483_v38  ;;  %1231 = vst.msk [vmem:[%s1848_s28 + $0xfc] sm:$0xf] %vm1167_vm0, %v1515_v39  ;;  %v1481_v43 = vpack.c.bf16 %v876_v41, %v876_v41  ;;  %v1513_v44 = vpack.c.bf16 %v908_v42, %v908_v42 }
 0x135   : > { %1197 = vst.msk [vmem:[%s1848_s28 + $0x74] sm:$0xf] %vm1167_vm0, %v1481_v43  ;;  %1229 = vst.msk [vmem:[%s1848_s28 + $0xf4] sm:$0xf] %vm1167_vm0, %v1513_v44 }
 0x136 PF: > { %s13_s14 = sadd.s32 1, %s1738_s14   ;;  %s2051_s12 = smov %s1734_s13 }
 0x137   : > { %p10_p5 = scmp.ge.s32.totalorder %s13_s14, 6   ;;  %s2052_s13 = smov %s2054_s15 }
 0x139   :  { %12 = sbr.rel (!%p10_p5) target bundleno = 2 (0x2), region = 65 }

// kernel: factorvae1_forward.17
= control target key start
LH: loop header
LB: loop body
LE: loop exit
PB: predicated region body
PF: predicated region fallthrough
CT: control target
= control target key end

     0   :  { %s3521_s12 = smov 0   ;;  %s3523_s13 = smov 0   ;;  %s4482_s0 = inlined_call_operand.vmem [shape: bf16[4,2048,128], index: 0, kind: input, shape index: {}]   ;;  %s4483_s1 = inlined_call_operand.vmem [shape: bf16[4,128,128], index: 1, kind: input, shape index: {}]   ;;  %s4484_s2 = inlined_call_operand.vmem [shape: f32[1,128], index: 2, kind: input, shape index: {}]   ;;  %s4485_s3 = inlined_call_operand.vmem [shape: f32[4,2048,1], index: 3, kind: output, shape index: {}]  }
   0x1   :  { %s3525_s14 = smov 0  }
   0x2 LB: > { %s25_s15 = sadd.s32 1, %s3495_s13  ;;  %p2743_p0 = scmp.ge.s32.totalorder %s3499_s14, 1  ;;  %s3499_s14 = sphi %s3525_s14, %s13_s14   ;;  %s3495_s13 = sphi %s3523_s13, %s4487_s13   ;;  %s3491_s12 = sphi %s3521_s12, %s4486_s12  }
   0x3   : > { %p27_p1 = scmp.ge.s32.totalorder %s25_s15, 4  ;;  %p168_p2 = scmp.lt.s32.totalorder %s3499_s14, 5 }
   0x5   : > { %s4489_s15 = smov (%p27_p1, %s25_s15), 0  ;;  %p169_p3 = pnand %p2743_p0, %p168_p2 }
   0x6   : > { %p206_p4 = scmp.lt.s32.totalorder (!%p169_p3), %s3491_s12, 3 }
   0x7   : > { %172 = sbr.rel (%p169_p3) target bundleno = 498 (0x1f2), region = 32 }
   0xc   : > { %s4491_s12 = smov (!%p206_p4, %s3491_s12), 3  ;;  %vm2383_vm0 = vcmask 7168  }
   0xd   : > { %s2890_s16 = sshll.u32 %s4491_s12, 6  ;;  %s2889_s20 = sshll.u32 %s4491_s12, 10 }
   0xe   : > { %s3545_s19 = scalar_lea.vmem %s4483_s1, %s2890_s16  ;;  %s3554_s23 = scalar_lea.vmem %s4482_s0, %s2889_s20 }
   0xf   : > { %v3340_v0 = vld [vmem:[%s3545_s19 + $0x38] sm:$0xff]   ;;  %v3341_v1 = vld [vmem:[%s3545_s19 + $0x30] sm:$0xff]   ;;  %v3342_v2 = vld [vmem:[%s3545_s19 + $0x28] sm:$0xff]   ;;  %s2891_s24 = sshll.u32 %s4491_s12, 11 }
  0x10   : > { %3028 = vmatprep.subr.bf16.mxu0 %v3340_v0  ;;  %3300 = vmatprep.subr.bf16.mxu1 %v3340_v0  ;;  %v3343_v3 = vld [vmem:[%s3545_s19 + $0x20] sm:$0xff]   ;;  %v3344_v6 = vld [vmem:[%s3545_s19 + $0x18] sm:$0xff]   ;;  %v3345_v7 = vld [vmem:[%s3545_s19 + $0x10] sm:$0xff]   ;;  %s3672_s29 = scalar_lea.vmem %s4485_s3, %s2891_s24 }
  0x11   : > { %3029 = vmatpush3.bf16.msra.mxu0 %v3340_v0  ;;  %3308 = vmatpush3.bf16.msra.mxu1 %v3340_v0  ;;  %v3348_v4 = vld [vmem:[%s3554_s23] sm:$0xff]   ;;  %v3346_v8 = vld [vmem:[%s3545_s19 + $0x8] sm:$0xff]   ;;  %v3352_v12 = vld [vmem:[%s3554_s23 + $0x10] sm:$0xff]  }
  0x12   : > { %3030 = vmatprep.subr.bf16.mxu0 %v3341_v1  ;;  %3301 = vmatprep.subr.bf16.mxu1 %v3341_v1  ;;  %v3349_v5 = vld [vmem:[%s3554_s23 + $0x200] sm:$0xff]   ;;  %v3350_v10 = vld [vmem:[%s3554_s23 + $0x8] sm:$0xff]   ;;  %v3353_v13 = vld [vmem:[%s3554_s23 + $0x210] sm:$0xff]  }
  0x13   : > { %3044 = vmatprep.mubr.bf16.mxu0 %v3348_v4  ;;  %3172 = vmatprep.mubr.bf16.mxu1 %v3349_v5  ;;  %v3347_v9 = vld [vmem:[%s3545_s19] sm:$0xff]   ;;  %v3351_v11 = vld [vmem:[%s3554_s23 + $0x208] sm:$0xff]   ;;  %v3354_v14 = vld [vmem:[%s3554_s23 + $0x18] sm:$0xff]  }
  0x14   : > { %v3355_v15 = vld [vmem:[%s3554_s23 + $0x218] sm:$0xff]   ;;  %v3356_v16 = vld [vmem:[%s3554_s23 + $0x20] sm:$0xff]   ;;  %v3358_v18 = vld [vmem:[%s3554_s23 + $0x28] sm:$0xff]  }
  0x15   : > { %3031 = vmatpush3.bf16.msra.mxu0 %v3341_v1  ;;  %3309 = vmatpush3.bf16.msra.mxu1 %v3341_v1  ;;  %v3357_v17 = vld [vmem:[%s3554_s23 + $0x220] sm:$0xff]   ;;  %v3359_v19 = vld [vmem:[%s3554_s23 + $0x228] sm:$0xff]   ;;  %v3360_v20 = vld [vmem:[%s3554_s23 + $0x30] sm:$0xff]  }
  0x16   : > { %3032 = vmatprep.subr.bf16.mxu0 %v3342_v2  ;;  %3302 = vmatprep.subr.bf16.mxu1 %v3342_v2  ;;  %v3361_v21 = vld [vmem:[%s3554_s23 + $0x230] sm:$0xff]   ;;  %v3362_v22 = vld [vmem:[%s3554_s23 + $0x38] sm:$0xff]   ;;  %v3364_v24 = vld [vmem:[%s3554_s23 + $0x40] sm:$0xff]  }
  0x17   : > { %v3363_v23 = vld [vmem:[%s3554_s23 + $0x238] sm:$0xff]   ;;  %v3365_v25 = vld [vmem:[%s3554_s23 + $0x240] sm:$0xff]   ;;  %v3366_v26 = vld [vmem:[%s3554_s23 + $0x48] sm:$0xff]  }
  0x18   : > { %v3367_v27 = vld [vmem:[%s3554_s23 + $0x248] sm:$0xff]   ;;  %v3368_v28 = vld [vmem:[%s3554_s23 + $0x50] sm:$0xff]   ;;  %v3370_v30 = vld [vmem:[%s3554_s23 + $0x58] sm:$0xff]  }
  0x19   : > { %3033 = vmatpush3.bf16.msra.mxu0 %v3342_v2  ;;  %3310 = vmatpush3.bf16.msra.mxu1 %v3342_v2  ;;  %v3369_v29 = vld [vmem:[%s3554_s23 + $0x250] sm:$0xff]   ;;  %v3371_v31 = vld [vmem:[%s3554_s23 + $0x258] sm:$0xff]   ;;  %v3372_v32 = vld [vmem:[%s3554_s23 + $0x60] sm:$0xff]  }
  0x1a   : > { %3034 = vmatprep.subr.bf16.mxu0 %v3343_v3  ;;  %3303 = vmatprep.subr.bf16.mxu1 %v3343_v3  ;;  %v3373_v33 = vld [vmem:[%s3554_s23 + $0x260] sm:$0xff]   ;;  %v3374_v34 = vld [vmem:[%s3554_s23 + $0x68] sm:$0xff]   ;;  %v3376_v36 = vld [vmem:[%s3554_s23 + $0x70] sm:$0xff]  }
  0x1b   : > { %v3375_v35 = vld [vmem:[%s3554_s23 + $0x268] sm:$0xff]   ;;  %v3377_v37 = vld [vmem:[%s3554_s23 + $0x270] sm:$0xff]   ;;  %v3378_v38 = vld [vmem:[%s3554_s23 + $0x78] sm:$0xff]  }
  0x1c   : > { %v3379_v39 = vld [vmem:[%s3554_s23 + $0x278] sm:$0xff]   ;;  %v3380_v40 = vld [vmem:[%s3554_s23 + $0x80] sm:$0xff]   ;;  %v3382_v42 = vld [vmem:[%s3554_s23 + $0x88] sm:$0xff]  }
  0x1d   : > { %3035 = vmatpush3.bf16.msra.mxu0 %v3343_v3  ;;  %3311 = vmatpush3.bf16.msra.mxu1 %v3343_v3  ;;  %v3381_v41 = vld [vmem:[%s3554_s23 + $0x280] sm:$0xff]   ;;  %v3383_v43 = vld [vmem:[%s3554_s23 + $0x288] sm:$0xff]   ;;  %v3384_v44 = vld [vmem:[%s3554_s23 + $0x90] sm:$0xff]  }
  0x1e   : > { %3036 = vmatprep.subr.bf16.mxu0 %v3344_v6  ;;  %3304 = vmatprep.subr.bf16.mxu1 %v3344_v6  ;;  %v3385_v45 = vld [vmem:[%s3554_s23 + $0x290] sm:$0xff]   ;;  %v3386_v46 = vld [vmem:[%s3554_s23 + $0x98] sm:$0xff]   ;;  %v3388_v48 = vld [vmem:[%s3554_s23 + $0xa0] sm:$0xff]  }
  0x1f   : > { %v3387_v47 = vld [vmem:[%s3554_s23 + $0x298] sm:$0xff]   ;;  %v3389_v49 = vld [vmem:[%s3554_s23 + $0x2a0] sm:$0xff]   ;;  %v3390_v50 = vld [vmem:[%s3554_s23 + $0xa8] sm:$0xff]  }
  0x20   : > { %v3391_v51 = vld [vmem:[%s3554_s23 + $0x2a8] sm:$0xff]   ;;  %v3392_v52 = vld [vmem:[%s3554_s23 + $0xb0] sm:$0xff]   ;;  %v3394_v54 = vld [vmem:[%s3554_s23 + $0xb8] sm:$0xff]  }
  0x21   : > { %3037 = vmatpush3.bf16.msra.mxu0 %v3344_v6  ;;  %3312 = vmatpush3.bf16.msra.mxu1 %v3344_v6  ;;  %v3393_v53 = vld [vmem:[%s3554_s23 + $0x2b0] sm:$0xff]   ;;  %v3395_v55 = vld [vmem:[%s3554_s23 + $0x2b8] sm:$0xff]   ;;  %v3396_v56 = vld [vmem:[%s3554_s23 + $0xc0] sm:$0xff]  }
  0x22   : > { %3038 = vmatprep.subr.bf16.mxu0 %v3345_v7  ;;  %3305 = vmatprep.subr.bf16.mxu1 %v3345_v7  ;;  %v3397_v57 = vld [vmem:[%s3554_s23 + $0x2c0] sm:$0xff]   ;;  %v3398_v58 = vld [vmem:[%s3554_s23 + $0xc8] sm:$0xff]   ;;  %v3400_v60 = vld [vmem:[%s3554_s23 + $0xd0] sm:$0xff]  }
  0x23   : > { %v3399_v59 = vld [vmem:[%s3554_s23 + $0x2c8] sm:$0xff]   ;;  %v3401_v61 = vld [vmem:[%s3554_s23 + $0x2d0] sm:$0xff]   ;;  %v3402_v62 = vld [vmem:[%s3554_s23 + $0xd8] sm:$0xff]  }
  0x24   : > { %v3403_v63 = vld [vmem:[%s3554_s23 + $0x2d8] sm:$0xff]   ;;  %v3404_v0 = vld [vmem:[%s3554_s23 + $0xe0] sm:$0xff]   ;;  %v3406_v2 = vld [vmem:[%s3554_s23 + $0xe8] sm:$0xff]  }
  0x25   : > { %3039 = vmatpush3.bf16.msra.mxu0 %v3345_v7  ;;  %3313 = vmatpush3.bf16.msra.mxu1 %v3345_v7  ;;  %v3405_v1 = vld [vmem:[%s3554_s23 + $0x2e0] sm:$0xff]   ;;  %v3407_v3 = vld [vmem:[%s3554_s23 + $0x2e8] sm:$0xff]   ;;  %v3408_v4 = vld [vmem:[%s3554_s23 + $0xf0] sm:$0xff]  }
  0x26   : > { %3040 = vmatprep.subr.bf16.mxu0 %v3346_v8  ;;  %3306 = vmatprep.subr.bf16.mxu1 %v3346_v8  ;;  %v3409_v5 = vld [vmem:[%s3554_s23 + $0x2f0] sm:$0xff]   ;;  %v3410_v6 = vld [vmem:[%s3554_s23 + $0xf8] sm:$0xff]  }
  0x27   : > { %v3411_v7 = vld [vmem:[%s3554_s23 + $0x2f8] sm:$0xff]  }
  0x29   : > { %3041 = vmatpush3.bf16.msra.mxu0 %v3346_v8  ;;  %3314 = vmatpush3.bf16.msra.mxu1 %v3346_v8  ;;  %v3412_v8 = vld [vmem:[%s3554_s23 + $0x100] sm:$0xff]  }
  0x2a   : > { %3042 = vmatprep.subr.bf16.mxu0 %v3347_v9  ;;  %3307 = vmatprep.subr.bf16.mxu1 %v3347_v9 }
  0x2d   : > { %3043 = vmatpush3.bf16.msra.mxu0 %v3347_v9  ;;  %3315 = vmatpush3.bf16.msra.mxu1 %v3347_v9  ;;  %v3413_v9 = vld [vmem:[%s3554_s23 + $0x300] sm:$0xff]  }
  0x30   : > { %3045 = vmatmul.mubr.bf16.vlgmr.msra.gmra.mxu0 %v3350_v10  ;;  %3173 = vmatmul.mubr.bf16.vlgmr.msra.gmra.mxu1 %v3351_v11  ;;  %v3414_v10 = vld [vmem:[%s3554_s23 + $0x108] sm:$0xff]  }
  0x31   : > { %3048 = vmatprep.mubr.bf16.mxu0 %v3352_v12  ;;  %3176 = vmatprep.mubr.bf16.mxu1 %v3353_v13  ;;  %v3415_v11 = vld [vmem:[%s3554_s23 + $0x308] sm:$0xff]   ;;  %v3416_v12 = vld [vmem:[%s3554_s23 + $0x110] sm:$0xff]  }
  0x32   : > { %v3417_v13 = vld [vmem:[%s3554_s23 + $0x310] sm:$0xff]  }
  0x38   : > { %3049 = vmatmul.mubr.bf16.gmra.mxu0 %v3354_v14  ;;  %3177 = vmatmul.mubr.bf16.gmra.mxu1 %v3355_v15  ;;  %v3418_v14 = vld [vmem:[%s3554_s23 + $0x118] sm:$0xff]  }
  0x39   : > { %3052 = vmatprep.mubr.bf16.mxu0 %v3356_v16  ;;  %3180 = vmatprep.mubr.bf16.mxu1 %v3357_v17  ;;  %v3419_v15 = vld [vmem:[%s3554_s23 + $0x318] sm:$0xff]   ;;  %v3420_v16 = vld [vmem:[%s3554_s23 + $0x120] sm:$0xff]  }
  0x3a   : > { %v3421_v17 = vld [vmem:[%s3554_s23 + $0x320] sm:$0xff]  }
  0x40   : > { %3053 = vmatmul.mubr.bf16.gmra.mxu0 %v3358_v18  ;;  %3181 = vmatmul.mubr.bf16.gmra.mxu1 %v3359_v19  ;;  %v3422_v18 = vld [vmem:[%s3554_s23 + $0x128] sm:$0xff]  }
  0x41   : > { %3056 = vmatprep.mubr.bf16.mxu0 %v3360_v20  ;;  %3184 = vmatprep.mubr.bf16.mxu1 %v3361_v21  ;;  %v3423_v19 = vld [vmem:[%s3554_s23 + $0x328] sm:$0xff]   ;;  %v3424_v20 = vld [vmem:[%s3554_s23 + $0x130] sm:$0xff]  }
  0x42   : > { %v3425_v21 = vld [vmem:[%s3554_s23 + $0x330] sm:$0xff]  }
  0x48   : > { %3057 = vmatmul.mubr.bf16.gmra.mxu0 %v3362_v22  ;;  %3185 = vmatmul.mubr.bf16.gmra.mxu1 %v3363_v23  ;;  %v3426_v22 = vld [vmem:[%s3554_s23 + $0x138] sm:$0xff]  }
  0x49   : > { %3060 = vmatprep.mubr.bf16.mxu0 %v3364_v24  ;;  %3188 = vmatprep.mubr.bf16.mxu1 %v3365_v25  ;;  %v3427_v23 = vld [vmem:[%s3554_s23 + $0x338] sm:$0xff]   ;;  %v3428_v24 = vld [vmem:[%s3554_s23 + $0x140] sm:$0xff]  }
  0x4a   : > { %v3429_v25 = vld [vmem:[%s3554_s23 + $0x340] sm:$0xff]  }
  0x50   : > { %3061 = vmatmul.mubr.bf16.gmra.mxu0 %v3366_v26  ;;  %3189 = vmatmul.mubr.bf16.gmra.mxu1 %v3367_v27  ;;  %v3430_v26 = vld [vmem:[%s3554_s23 + $0x148] sm:$0xff]  }
  0x51   : > { %3064 = vmatprep.mubr.bf16.mxu0 %v3368_v28  ;;  %3192 = vmatprep.mubr.bf16.mxu1 %v3369_v29  ;;  %v3431_v27 = vld [vmem:[%s3554_s23 + $0x348] sm:$0xff]   ;;  %v3432_v28 = vld [vmem:[%s3554_s23 + $0x150] sm:$0xff]  }
  0x52   : > { %v3433_v29 = vld [vmem:[%s3554_s23 + $0x350] sm:$0xff]  }
  0x58   : > { %3065 = vmatmul.mubr.bf16.gmra.mxu0 %v3370_v30  ;;  %3193 = vmatmul.mubr.bf16.gmra.mxu1 %v3371_v31  ;;  %v3434_v30 = vld [vmem:[%s3554_s23 + $0x158] sm:$0xff]  }
  0x59   : > { %3068 = vmatprep.mubr.bf16.mxu0 %v3372_v32  ;;  %3196 = vmatprep.mubr.bf16.mxu1 %v3373_v33  ;;  %v3435_v31 = vld [vmem:[%s3554_s23 + $0x358] sm:$0xff]   ;;  %v3436_v32 = vld [vmem:[%s3554_s23 + $0x160] sm:$0xff]  }
  0x5a   : > { %v3437_v33 = vld [vmem:[%s3554_s23 + $0x360] sm:$0xff]  }
  0x60   : > { %3069 = vmatmul.mubr.bf16.gmra.mxu0 %v3374_v34  ;;  %3197 = vmatmul.mubr.bf16.gmra.mxu1 %v3375_v35  ;;  %v3438_v34 = vld [vmem:[%s3554_s23 + $0x168] sm:$0xff]  }
  0x61   : > { %3072 = vmatprep.mubr.bf16.mxu0 %v3376_v36  ;;  %3200 = vmatprep.mubr.bf16.mxu1 %v3377_v37  ;;  %v3439_v35 = vld [vmem:[%s3554_s23 + $0x368] sm:$0xff]   ;;  %v3440_v36 = vld [vmem:[%s3554_s23 + $0x170] sm:$0xff]  }
  0x62   : > { %v3441_v37 = vld [vmem:[%s3554_s23 + $0x370] sm:$0xff]  }
  0x68   : > { %3073 = vmatmul.mubr.bf16.gmra.mxu0 %v3378_v38  ;;  %3201 = vmatmul.mubr.bf16.gmra.mxu1 %v3379_v39  ;;  %v3442_v38 = vld [vmem:[%s3554_s23 + $0x178] sm:$0xff]  }
  0x69   : > { %3076 = vmatprep.mubr.bf16.mxu0 %v3380_v40  ;;  %3204 = vmatprep.mubr.bf16.mxu1 %v3381_v41  ;;  %v3443_v39 = vld [vmem:[%s3554_s23 + $0x378] sm:$0xff]   ;;  %v3444_v40 = vld [vmem:[%s3554_s23 + $0x180] sm:$0xff]  }
  0x6a   : > { %v3445_v41 = vld [vmem:[%s3554_s23 + $0x380] sm:$0xff]  }
  0x70   : > { %3077 = vmatmul.mubr.bf16.gmra.mxu0 %v3382_v42  ;;  %3205 = vmatmul.mubr.bf16.gmra.mxu1 %v3383_v43  ;;  %v3446_v42 = vld [vmem:[%s3554_s23 + $0x188] sm:$0xff]  }
  0x71   : > { %3080 = vmatprep.mubr.bf16.mxu0 %v3384_v44  ;;  %3208 = vmatprep.mubr.bf16.mxu1 %v3385_v45  ;;  %v3447_v43 = vld [vmem:[%s3554_s23 + $0x388] sm:$0xff]   ;;  %v3448_v44 = vld [vmem:[%s3554_s23 + $0x190] sm:$0xff]  }
  0x72   : > { %v3449_v45 = vld [vmem:[%s3554_s23 + $0x390] sm:$0xff]  }
  0x78   : > { %3081 = vmatmul.mubr.bf16.gmra.mxu0 %v3386_v46  ;;  %3209 = vmatmul.mubr.bf16.gmra.mxu1 %v3387_v47  ;;  %v3667_v46 = vld [vmem:[%s4484_s2] ss:$0 sm:$0xff] }
  0x79   : > { %3084 = vmatprep.mubr.bf16.mxu0 %v3388_v48  ;;  %3212 = vmatprep.mubr.bf16.mxu1 %v3389_v49 }
  0x80   : > { %3085 = vmatmul.mubr.bf16.gmra.mxu0 %v3390_v50  ;;  %3213 = vmatmul.mubr.bf16.gmra.mxu1 %v3391_v51 }
  0x81   : > { %3088 = vmatprep.mubr.bf16.mxu0 %v3392_v52  ;;  %3216 = vmatprep.mubr.bf16.mxu1 %v3393_v53 }
  0x88   : > { %3089 = vmatmul.mubr.bf16.gmra.mxu0 %v3394_v54  ;;  %3217 = vmatmul.mubr.bf16.gmra.mxu1 %v3395_v55 }
  0x89   : > { %3092 = vmatprep.mubr.bf16.mxu0 %v3396_v56  ;;  %3220 = vmatprep.mubr.bf16.mxu1 %v3397_v57  ;;  %v3450_v57 = vld [vmem:[%s3554_s23 + $0x198] sm:$0xff]  }
  0x90   : > { %3093 = vmatmul.mubr.bf16.gmra.mxu0 %v3398_v58  ;;  %3221 = vmatmul.mubr.bf16.gmra.mxu1 %v3399_v59  ;;  %v3451_v58 = vld [vmem:[%s3554_s23 + $0x398] sm:$0xff]  }
  0x91   : > { %3096 = vmatprep.mubr.bf16.mxu0 %v3400_v60  ;;  %3224 = vmatprep.mubr.bf16.mxu1 %v3401_v61  ;;  %v3452_v61 = vld [vmem:[%s3554_s23 + $0x1a0] sm:$0xff]  }
  0x98   : > { %3097 = vmatmul.mubr.bf16.gmra.mxu0 %v3402_v62  ;;  %3225 = vmatmul.mubr.bf16.gmra.mxu1 %v3403_v63  ;;  %v3453_v62 = vld [vmem:[%s3554_s23 + $0x3a0] sm:$0xff]  }
  0x99   : > { %3100 = vmatprep.mubr.bf16.mxu0 %v3404_v0  ;;  %3228 = vmatprep.mubr.bf16.mxu1 %v3405_v1 }
  0xa0   : > { %3101 = vmatmul.mubr.bf16.gmra.mxu0 %v3406_v2  ;;  %3229 = vmatmul.mubr.bf16.gmra.mxu1 %v3407_v3 }
  0xa1   : > { %3104 = vmatprep.mubr.bf16.mxu0 %v3408_v4  ;;  %3232 = vmatprep.mubr.bf16.mxu1 %v3409_v5 }
  0xa8   : > { %3105 = vmatmul.mubr.bf16.gmra.mxu0 %v3410_v6  ;;  %3233 = vmatmul.mubr.bf16.gmra.mxu1 %v3411_v7 }
  0xa9   : > { %3108 = vmatprep.mubr.bf16.mxu0 %v3412_v8  ;;  %3236 = vmatprep.mubr.bf16.mxu1 %v3413_v9 }
  0xb0   : > { %3109 = vmatmul.mubr.bf16.gmra.mxu0 %v3414_v10  ;;  %3237 = vmatmul.mubr.bf16.gmra.mxu1 %v3415_v11 }
  0xb1   : > { %3112 = vmatprep.mubr.bf16.mxu0 %v3416_v12  ;;  %3240 = vmatprep.mubr.bf16.mxu1 %v3417_v13  ;;  %v3454_v13 = vld [vmem:[%s3554_s23 + $0x1a8] sm:$0xff]  }
  0xb8   : > { %3113 = vmatmul.mubr.bf16.gmra.mxu0 %v3418_v14  ;;  %3241 = vmatmul.mubr.bf16.gmra.mxu1 %v3419_v15  ;;  %v3455_v14 = vld [vmem:[%s3554_s23 + $0x3a8] sm:$0xff]  }
  0xb9   : > { %3116 = vmatprep.mubr.bf16.mxu0 %v3420_v16  ;;  %3244 = vmatprep.mubr.bf16.mxu1 %v3421_v17  ;;  %v3456_v17 = vld [vmem:[%s3554_s23 + $0x1b0] sm:$0xff]  }
  0xc0   : > { %3117 = vmatmul.mubr.bf16.gmra.mxu0 %v3422_v18  ;;  %3245 = vmatmul.mubr.bf16.gmra.mxu1 %v3423_v19  ;;  %v3457_v18 = vld [vmem:[%s3554_s23 + $0x3b0] sm:$0xff]  }
  0xc1   : > { %3120 = vmatprep.mubr.bf16.mxu0 %v3424_v20  ;;  %3248 = vmatprep.mubr.bf16.mxu1 %v3425_v21 }
  0xc8   : > { %3121 = vmatmul.mubr.bf16.gmra.mxu0 %v3426_v22  ;;  %3249 = vmatmul.mubr.bf16.gmra.mxu1 %v3427_v23 }
  0xc9   : > { %3124 = vmatprep.mubr.bf16.mxu0 %v3428_v24  ;;  %3252 = vmatprep.mubr.bf16.mxu1 %v3429_v25 }
  0xd0   : > { %3125 = vmatmul.mubr.bf16.gmra.mxu0 %v3430_v26  ;;  %3253 = vmatmul.mubr.bf16.gmra.mxu1 %v3431_v27 }
  0xd1   : > { %3128 = vmatprep.mubr.bf16.mxu0 %v3432_v28  ;;  %3256 = vmatprep.mubr.bf16.mxu1 %v3433_v29 }
  0xd8   : > { %3129 = vmatmul.mubr.bf16.gmra.mxu0 %v3434_v30  ;;  %3257 = vmatmul.mubr.bf16.gmra.mxu1 %v3435_v31 }
  0xd9   : > { %3132 = vmatprep.mubr.bf16.mxu0 %v3436_v32  ;;  %3260 = vmatprep.mubr.bf16.mxu1 %v3437_v33  ;;  %v3458_v33 = vld [vmem:[%s3554_s23 + $0x1b8] sm:$0xff]  }
  0xe0   : > { %3133 = vmatmul.mubr.bf16.gmra.mxu0 %v3438_v34  ;;  %3261 = vmatmul.mubr.bf16.gmra.mxu1 %v3439_v35  ;;  %v3459_v34 = vld [vmem:[%s3554_s23 + $0x3b8] sm:$0xff]  }
  0xe1   : > { %3136 = vmatprep.mubr.bf16.mxu0 %v3440_v36  ;;  %3264 = vmatprep.mubr.bf16.mxu1 %v3441_v37  ;;  %v3460_v37 = vld [vmem:[%s3554_s23 + $0x1c0] sm:$0xff]  }
  0xe8   : > { %3137 = vmatmul.mubr.bf16.gmra.mxu0 %v3442_v38  ;;  %3265 = vmatmul.mubr.bf16.gmra.mxu1 %v3443_v39  ;;  %v3461_v38 = vld [vmem:[%s3554_s23 + $0x3c0] sm:$0xff]  }
  0xe9   : > { %3140 = vmatprep.mubr.bf16.mxu0 %v3444_v40  ;;  %3268 = vmatprep.mubr.bf16.mxu1 %v3445_v41 }
  0xf0   : > { %v3046_v47 = vpop.f32.mrf.mxu0  ;;  %3141 = vmatmul.mubr.bf16.gmra.mxu0 %v3446_v42  ;;  %v3174_v48 = vpop.f32.mrf.mxu1  ;;  %3269 = vmatmul.mubr.bf16.gmra.mxu1 %v3447_v43 }
  0xf1   : > { %v1369_v49 = vadd.f32 %v3046_v47, %v3667_v46  ;;  %v1881_v50 = vadd.f32 %v3174_v48, %v3667_v46  ;;  %3144 = vmatprep.mubr.bf16.mxu0 %v3448_v44  ;;  %3272 = vmatprep.mubr.bf16.mxu1 %v3449_v45 }
  0xf2   : > { %v1360_v51 = vpop.f32.mrf.mxu0  ;;  %v1872_v52 = vpop.f32.mrf.mxu1 }
  0xf3   : > { %2386 = vst.msk [vmem:[%s3672_s29 + $0x10] sm:$0xff] %vm2383_vm0, %v1369_v49  ;;  %2514 = vst.msk [vmem:[%s3672_s29 + $0x410] sm:$0xff] %vm2383_vm0, %v1881_v50  ;;  %v1361_v53 = vadd.f32 %v3667_v46, %v1360_v51  ;;  %v1873_v54 = vadd.f32 %v3667_v46, %v1872_v52 }
  0xf4   : > { %v3047_v55 = vpop.f32.mrf.mxu0  ;;  %v3175_v56 = vpop.f32.mrf.mxu1 }
  0xf5   : > { %2384 = vst.msk [vmem:[%s3672_s29] sm:$0xff] %vm2383_vm0, %v1361_v53  ;;  %2512 = vst.msk [vmem:[%s3672_s29 + $0x400] sm:$0xff] %vm2383_vm0, %v1873_v54  ;;  %v1372_v59 = vadd.f32 %v3047_v55, %v3667_v46  ;;  %v1884_v60 = vadd.f32 %v3175_v56, %v3667_v46  ;;  %v3462_v54 = vld [vmem:[%s3554_s23 + $0x1c8] sm:$0xff]  }
  0xf6   : > { %v1363_v63 = vpop.f32.mrf.mxu0  ;;  %v1875_v0 = vpop.f32.mrf.mxu1  ;;  %v3463_v55 = vld [vmem:[%s3554_s23 + $0x3c8] sm:$0xff]  }
  0xf7   : > { %2387 = vst.msk [vmem:[%s3672_s29 + $0x18] sm:$0xff] %vm2383_vm0, %v1372_v59  ;;  %2515 = vst.msk [vmem:[%s3672_s29 + $0x418] sm:$0xff] %vm2383_vm0, %v1884_v60  ;;  %v1364_v1 = vadd.f32 %v3667_v46, %v1363_v63  ;;  %v1876_v2 = vadd.f32 %v3667_v46, %v1875_v0  ;;  %v3465_v59 = vld [vmem:[%s3554_s23 + $0x3d0] sm:$0xff]  }
  0xf8   : > { %v3050_v3 = vpop.f32.mrf.mxu0  ;;  %3145 = vmatmul.mubr.bf16.gmra.mxu0 %v3450_v57  ;;  %v3178_v4 = vpop.f32.mrf.mxu1  ;;  %3273 = vmatmul.mubr.bf16.gmra.mxu1 %v3451_v58  ;;  %v3464_v58 = vld [vmem:[%s3554_s23 + $0x1d0] sm:$0xff]  }
  0xf9   : > { %2385 = vst.msk [vmem:[%s3672_s29 + $0x8] sm:$0xff] %vm2383_vm0, %v1364_v1  ;;  %2513 = vst.msk [vmem:[%s3672_s29 + $0x408] sm:$0xff] %vm2383_vm0, %v1876_v2  ;;  %v1385_v5 = vadd.f32 %v3050_v3, %v3667_v46  ;;  %v1897_v6 = vadd.f32 %v3178_v4, %v3667_v46  ;;  %3148 = vmatprep.mubr.bf16.mxu0 %v3452_v61  ;;  %3276 = vmatprep.mubr.bf16.mxu1 %v3453_v62 }
  0xfa   : > { %v1376_v7 = vpop.f32.mrf.mxu0  ;;  %v1888_v8 = vpop.f32.mrf.mxu1 }
  0xfb   : > { %2390 = vst.msk [vmem:[%s3672_s29 + $0x30] sm:$0xff] %vm2383_vm0, %v1385_v5  ;;  %2518 = vst.msk [vmem:[%s3672_s29 + $0x430] sm:$0xff] %vm2383_vm0, %v1897_v6  ;;  %v1377_v9 = vadd.f32 %v3667_v46, %v1376_v7  ;;  %v1889_v10 = vadd.f32 %v3667_v46, %v1888_v8 }
  0xfc   : > { %v3051_v11 = vpop.f32.mrf.mxu0  ;;  %v3179_v12 = vpop.f32.mrf.mxu1 }
  0xfd   : > { %2388 = vst.msk [vmem:[%s3672_s29 + $0x20] sm:$0xff] %vm2383_vm0, %v1377_v9  ;;  %2516 = vst.msk [vmem:[%s3672_s29 + $0x420] sm:$0xff] %vm2383_vm0, %v1889_v10  ;;  %v1388_v15 = vadd.f32 %v3051_v11, %v3667_v46  ;;  %v1900_v16 = vadd.f32 %v3179_v12, %v3667_v46  ;;  %v3466_v10 = vld [vmem:[%s3554_s23 + $0x1d8] sm:$0xff]  }
  0xfe   : > { %v1379_v19 = vpop.f32.mrf.mxu0  ;;  %v1891_v20 = vpop.f32.mrf.mxu1  ;;  %v3467_v11 = vld [vmem:[%s3554_s23 + $0x3d8] sm:$0xff]  }
  0xff   : > { %2391 = vst.msk [vmem:[%s3672_s29 + $0x38] sm:$0xff] %vm2383_vm0, %v1388_v15  ;;  %2519 = vst.msk [vmem:[%s3672_s29 + $0x438] sm:$0xff] %vm2383_vm0, %v1900_v16  ;;  %v1380_v21 = vadd.f32 %v3667_v46, %v1379_v19  ;;  %v1892_v22 = vadd.f32 %v3667_v46, %v1891_v20  ;;  %v3469_v15 = vld [vmem:[%s3554_s23 + $0x3e0] sm:$0xff]  }
 0x100   : > { %v3054_v23 = vpop.f32.mrf.mxu0  ;;  %3149 = vmatmul.mubr.bf16.gmra.mxu0 %v3454_v13  ;;  %v3182_v24 = vpop.f32.mrf.mxu1  ;;  %3277 = vmatmul.mubr.bf16.gmra.mxu1 %v3455_v14  ;;  %v3468_v14 = vld [vmem:[%s3554_s23 + $0x1e0] sm:$0xff]  }
 0x101   : > { %2389 = vst.msk [vmem:[%s3672_s29 + $0x28] sm:$0xff] %vm2383_vm0, %v1380_v21  ;;  %2517 = vst.msk [vmem:[%s3672_s29 + $0x428] sm:$0xff] %vm2383_vm0, %v1892_v22  ;;  %v1401_v25 = vadd.f32 %v3054_v23, %v3667_v46  ;;  %v1913_v26 = vadd.f32 %v3182_v24, %v3667_v46  ;;  %3152 = vmatprep.mubr.bf16.mxu0 %v3456_v17  ;;  %3280 = vmatprep.mubr.bf16.mxu1 %v3457_v18 }
 0x102   : > { %v1392_v27 = vpop.f32.mrf.mxu0  ;;  %v1904_v28 = vpop.f32.mrf.mxu1 }
 0x103   : > { %2394 = vst.msk [vmem:[%s3672_s29 + $0x50] sm:$0xff] %vm2383_vm0, %v1401_v25  ;;  %2522 = vst.msk [vmem:[%s3672_s29 + $0x450] sm:$0xff] %vm2383_vm0, %v1913_v26  ;;  %v1393_v29 = vadd.f32 %v3667_v46, %v1392_v27  ;;  %v1905_v30 = vadd.f32 %v3667_v46, %v1904_v28 }
 0x104   : > { %v3055_v31 = vpop.f32.mrf.mxu0  ;;  %v3183_v32 = vpop.f32.mrf.mxu1 }
 0x105   : > { %2392 = vst.msk [vmem:[%s3672_s29 + $0x40] sm:$0xff] %vm2383_vm0, %v1393_v29  ;;  %2520 = vst.msk [vmem:[%s3672_s29 + $0x440] sm:$0xff] %vm2383_vm0, %v1905_v30  ;;  %v1404_v35 = vadd.f32 %v3055_v31, %v3667_v46  ;;  %v1916_v36 = vadd.f32 %v3183_v32, %v3667_v46  ;;  %v3470_v30 = vld [vmem:[%s3554_s23 + $0x1e8] sm:$0xff]  }
 0x106   : > { %v1395_v39 = vpop.f32.mrf.mxu0  ;;  %v1907_v40 = vpop.f32.mrf.mxu1  ;;  %v3471_v31 = vld [vmem:[%s3554_s23 + $0x3e8] sm:$0xff]  }
 0x107   : > { %2395 = vst.msk [vmem:[%s3672_s29 + $0x58] sm:$0xff] %vm2383_vm0, %v1404_v35  ;;  %2523 = vst.msk [vmem:[%s3672_s29 + $0x458] sm:$0xff] %vm2383_vm0, %v1916_v36  ;;  %v1396_v41 = vadd.f32 %v3667_v46, %v1395_v39  ;;  %v1908_v42 = vadd.f32 %v3667_v46, %v1907_v40  ;;  %v3473_v35 = vld [vmem:[%s3554_s23 + $0x3f0] sm:$0xff]  }
 0x108   : > { %v3058_v43 = vpop.f32.mrf.mxu0  ;;  %3153 = vmatmul.mubr.bf16.gmra.mxu0 %v3458_v33  ;;  %v3186_v44 = vpop.f32.mrf.mxu1  ;;  %3281 = vmatmul.mubr.bf16.gmra.mxu1 %v3459_v34  ;;  %v3472_v34 = vld [vmem:[%s3554_s23 + $0x1f0] sm:$0xff]  }
 0x109   : > { %2393 = vst.msk [vmem:[%s3672_s29 + $0x48] sm:$0xff] %vm2383_vm0, %v1396_v41  ;;  %2521 = vst.msk [vmem:[%s3672_s29 + $0x448] sm:$0xff] %vm2383_vm0, %v1908_v42  ;;  %v1417_v45 = vadd.f32 %v3058_v43, %v3667_v46  ;;  %v1929_v47 = vadd.f32 %v3186_v44, %v3667_v46  ;;  %3156 = vmatprep.mubr.bf16.mxu0 %v3460_v37  ;;  %3284 = vmatprep.mubr.bf16.mxu1 %v3461_v38 }
 0x10a   : > { %v1408_v48 = vpop.f32.mrf.mxu0  ;;  %v1920_v49 = vpop.f32.mrf.mxu1 }
 0x10b   : > { %2398 = vst.msk [vmem:[%s3672_s29 + $0x70] sm:$0xff] %vm2383_vm0, %v1417_v45  ;;  %2526 = vst.msk [vmem:[%s3672_s29 + $0x470] sm:$0xff] %vm2383_vm0, %v1929_v47  ;;  %v1409_v50 = vadd.f32 %v3667_v46, %v1408_v48  ;;  %v1921_v51 = vadd.f32 %v3667_v46, %v1920_v49 }
 0x10c   : > { %v3059_v52 = vpop.f32.mrf.mxu0  ;;  %v3187_v53 = vpop.f32.mrf.mxu1 }
 0x10d   : > { %2396 = vst.msk [vmem:[%s3672_s29 + $0x60] sm:$0xff] %vm2383_vm0, %v1409_v50  ;;  %2524 = vst.msk [vmem:[%s3672_s29 + $0x460] sm:$0xff] %vm2383_vm0, %v1921_v51  ;;  %v1420_v56 = vadd.f32 %v3059_v52, %v3667_v46  ;;  %v1932_v57 = vadd.f32 %v3187_v53, %v3667_v46  ;;  %v3474_v51 = vld [vmem:[%s3554_s23 + $0x1f8] sm:$0xff]  }
 0x10e   : > { %v1411_v60 = vpop.f32.mrf.mxu0  ;;  %v1923_v61 = vpop.f32.mrf.mxu1  ;;  %v3475_v52 = vld [vmem:[%s3554_s23 + $0x3f8] sm:$0xff]  }
 0x10f   : > { %2399 = vst.msk [vmem:[%s3672_s29 + $0x78] sm:$0xff] %vm2383_vm0, %v1420_v56  ;;  %2527 = vst.msk [vmem:[%s3672_s29 + $0x478] sm:$0xff] %vm2383_vm0, %v1932_v57  ;;  %v1412_v62 = vadd.f32 %v3667_v46, %v1411_v60  ;;  %v1924_v63 = vadd.f32 %v3667_v46, %v1923_v61 }
 0x110   : > { %v3062_v0 = vpop.f32.mrf.mxu0  ;;  %3157 = vmatmul.mubr.bf16.gmra.mxu0 %v3462_v54  ;;  %v3190_v1 = vpop.f32.mrf.mxu1  ;;  %3285 = vmatmul.mubr.bf16.gmra.mxu1 %v3463_v55 }
 0x111   : > { %2397 = vst.msk [vmem:[%s3672_s29 + $0x68] sm:$0xff] %vm2383_vm0, %v1412_v62  ;;  %2525 = vst.msk [vmem:[%s3672_s29 + $0x468] sm:$0xff] %vm2383_vm0, %v1924_v63  ;;  %v1433_v2 = vadd.f32 %v3062_v0, %v3667_v46  ;;  %v1945_v3 = vadd.f32 %v3190_v1, %v3667_v46  ;;  %3160 = vmatprep.mubr.bf16.mxu0 %v3464_v58  ;;  %3288 = vmatprep.mubr.bf16.mxu1 %v3465_v59 }
 0x112   : > { %v1424_v4 = vpop.f32.mrf.mxu0  ;;  %v1936_v5 = vpop.f32.mrf.mxu1 }
 0x113   : > { %2402 = vst.msk [vmem:[%s3672_s29 + $0x90] sm:$0xff] %vm2383_vm0, %v1433_v2  ;;  %2530 = vst.msk [vmem:[%s3672_s29 + $0x490] sm:$0xff] %vm2383_vm0, %v1945_v3  ;;  %v1425_v6 = vadd.f32 %v3667_v46, %v1424_v4  ;;  %v1937_v7 = vadd.f32 %v3667_v46, %v1936_v5 }
 0x114   : > { %v3063_v8 = vpop.f32.mrf.mxu0  ;;  %v3191_v9 = vpop.f32.mrf.mxu1 }
 0x115   : > { %2400 = vst.msk [vmem:[%s3672_s29 + $0x80] sm:$0xff] %vm2383_vm0, %v1425_v6  ;;  %2528 = vst.msk [vmem:[%s3672_s29 + $0x480] sm:$0xff] %vm2383_vm0, %v1937_v7  ;;  %v1436_v12 = vadd.f32 %v3063_v8, %v3667_v46  ;;  %v1948_v13 = vadd.f32 %v3191_v9, %v3667_v46 }
 0x116   : > { %v1427_v16 = vpop.f32.mrf.mxu0  ;;  %v1939_v17 = vpop.f32.mrf.mxu1 }
 0x117   : > { %2403 = vst.msk [vmem:[%s3672_s29 + $0x98] sm:$0xff] %vm2383_vm0, %v1436_v12  ;;  %2531 = vst.msk [vmem:[%s3672_s29 + $0x498] sm:$0xff] %vm2383_vm0, %v1948_v13  ;;  %v1428_v18 = vadd.f32 %v3667_v46, %v1427_v16  ;;  %v1940_v19 = vadd.f32 %v3667_v46, %v1939_v17 }
 0x118   : > { %v3066_v20 = vpop.f32.mrf.mxu0  ;;  %3161 = vmatmul.mubr.bf16.gmra.mxu0 %v3466_v10  ;;  %v3194_v21 = vpop.f32.mrf.mxu1  ;;  %3289 = vmatmul.mubr.bf16.gmra.mxu1 %v3467_v11 }
 0x119   : > { %2401 = vst.msk [vmem:[%s3672_s29 + $0x88] sm:$0xff] %vm2383_vm0, %v1428_v18  ;;  %2529 = vst.msk [vmem:[%s3672_s29 + $0x488] sm:$0xff] %vm2383_vm0, %v1940_v19  ;;  %v1449_v22 = vadd.f32 %v3066_v20, %v3667_v46  ;;  %v1961_v23 = vadd.f32 %v3194_v21, %v3667_v46  ;;  %3164 = vmatprep.mubr.bf16.mxu0 %v3468_v14  ;;  %3292 = vmatprep.mubr.bf16.mxu1 %v3469_v15 }
 0x11a   : > { %v1440_v24 = vpop.f32.mrf.mxu0  ;;  %v1952_v25 = vpop.f32.mrf.mxu1 }
 0x11b   : > { %2406 = vst.msk [vmem:[%s3672_s29 + $0xb0] sm:$0xff] %vm2383_vm0, %v1449_v22  ;;  %2534 = vst.msk [vmem:[%s3672_s29 + $0x4b0] sm:$0xff] %vm2383_vm0, %v1961_v23  ;;  %v1441_v26 = vadd.f32 %v3667_v46, %v1440_v24  ;;  %v1953_v27 = vadd.f32 %v3667_v46, %v1952_v25 }
 0x11c   : > { %v3067_v28 = vpop.f32.mrf.mxu0  ;;  %v3195_v29 = vpop.f32.mrf.mxu1 }
 0x11d   : > { %2404 = vst.msk [vmem:[%s3672_s29 + $0xa0] sm:$0xff] %vm2383_vm0, %v1441_v26  ;;  %2532 = vst.msk [vmem:[%s3672_s29 + $0x4a0] sm:$0xff] %vm2383_vm0, %v1953_v27  ;;  %v1452_v32 = vadd.f32 %v3067_v28, %v3667_v46  ;;  %v1964_v33 = vadd.f32 %v3195_v29, %v3667_v46 }
 0x11e   : > { %v1443_v36 = vpop.f32.mrf.mxu0  ;;  %v1955_v37 = vpop.f32.mrf.mxu1 }
 0x11f   : > { %2407 = vst.msk [vmem:[%s3672_s29 + $0xb8] sm:$0xff] %vm2383_vm0, %v1452_v32  ;;  %2535 = vst.msk [vmem:[%s3672_s29 + $0x4b8] sm:$0xff] %vm2383_vm0, %v1964_v33  ;;  %v1444_v38 = vadd.f32 %v3667_v46, %v1443_v36  ;;  %v1956_v39 = vadd.f32 %v3667_v46, %v1955_v37 }
 0x120   : > { %v3070_v40 = vpop.f32.mrf.mxu0  ;;  %3165 = vmatmul.mubr.bf16.gmra.mxu0 %v3470_v30  ;;  %v3198_v41 = vpop.f32.mrf.mxu1  ;;  %3293 = vmatmul.mubr.bf16.gmra.mxu1 %v3471_v31 }
 0x121   : > { %2405 = vst.msk [vmem:[%s3672_s29 + $0xa8] sm:$0xff] %vm2383_vm0, %v1444_v38  ;;  %2533 = vst.msk [vmem:[%s3672_s29 + $0x4a8] sm:$0xff] %vm2383_vm0, %v1956_v39  ;;  %v1465_v42 = vadd.f32 %v3070_v40, %v3667_v46  ;;  %v1977_v43 = vadd.f32 %v3198_v41, %v3667_v46  ;;  %3168 = vmatprep.mubr.bf16.mxu0 %v3472_v34  ;;  %3296 = vmatprep.mubr.bf16.mxu1 %v3473_v35 }
 0x122   : > { %v1456_v44 = vpop.f32.mrf.mxu0  ;;  %v1968_v45 = vpop.f32.mrf.mxu1 }
 0x123   : > { %2410 = vst.msk [vmem:[%s3672_s29 + $0xd0] sm:$0xff] %vm2383_vm0, %v1465_v42  ;;  %2538 = vst.msk [vmem:[%s3672_s29 + $0x4d0] sm:$0xff] %vm2383_vm0, %v1977_v43  ;;  %v1457_v47 = vadd.f32 %v3667_v46, %v1456_v44  ;;  %v1969_v48 = vadd.f32 %v3667_v46, %v1968_v45 }
 0x124   : > { %v3071_v49 = vpop.f32.mrf.mxu0  ;;  %v3199_v50 = vpop.f32.mrf.mxu1 }
 0x125   : > { %2408 = vst.msk [vmem:[%s3672_s29 + $0xc0] sm:$0xff] %vm2383_vm0, %v1457_v47  ;;  %2536 = vst.msk [vmem:[%s3672_s29 + $0x4c0] sm:$0xff] %vm2383_vm0, %v1969_v48  ;;  %v1468_v53 = vadd.f32 %v3071_v49, %v3667_v46  ;;  %v1980_v54 = vadd.f32 %v3199_v50, %v3667_v46 }
 0x126   : > { %v1459_v55 = vpop.f32.mrf.mxu0  ;;  %v1971_v56 = vpop.f32.mrf.mxu1 }
 0x127   : > { %2411 = vst.msk [vmem:[%s3672_s29 + $0xd8] sm:$0xff] %vm2383_vm0, %v1468_v53  ;;  %2539 = vst.msk [vmem:[%s3672_s29 + $0x4d8] sm:$0xff] %vm2383_vm0, %v1980_v54  ;;  %v1460_v57 = vadd.f32 %v3667_v46, %v1459_v55  ;;  %v1972_v58 = vadd.f32 %v3667_v46, %v1971_v56 }
 0x128   : > { %v3074_v59 = vpop.f32.mrf.mxu0  ;;  %3169 = vmatmul.mubr.bf16.gmra.mxu0 %v3474_v51  ;;  %v3202_v60 = vpop.f32.mrf.mxu1  ;;  %3297 = vmatmul.mubr.bf16.gmra.mxu1 %v3475_v52 }
 0x129   : > { %2409 = vst.msk [vmem:[%s3672_s29 + $0xc8] sm:$0xff] %vm2383_vm0, %v1460_v57  ;;  %2537 = vst.msk [vmem:[%s3672_s29 + $0x4c8] sm:$0xff] %vm2383_vm0, %v1972_v58  ;;  %v1481_v61 = vadd.f32 %v3074_v59, %v3667_v46  ;;  %v1993_v62 = vadd.f32 %v3202_v60, %v3667_v46 }
 0x12a   : > { %v1472_v63 = vpop.f32.mrf.mxu0  ;;  %v1984_v0 = vpop.f32.mrf.mxu1 }
 0x12b   : > { %2414 = vst.msk [vmem:[%s3672_s29 + $0xf0] sm:$0xff] %vm2383_vm0, %v1481_v61  ;;  %2542 = vst.msk [vmem:[%s3672_s29 + $0x4f0] sm:$0xff] %vm2383_vm0, %v1993_v62  ;;  %v1473_v1 = vadd.f32 %v3667_v46, %v1472_v63  ;;  %v1985_v2 = vadd.f32 %v3667_v46, %v1984_v0 }
 0x12c   : > { %v3075_v3 = vpop.f32.mrf.mxu0  ;;  %v3203_v4 = vpop.f32.mrf.mxu1 }
 0x12d   : > { %2412 = vst.msk [vmem:[%s3672_s29 + $0xe0] sm:$0xff] %vm2383_vm0, %v1473_v1  ;;  %2540 = vst.msk [vmem:[%s3672_s29 + $0x4e0] sm:$0xff] %vm2383_vm0, %v1985_v2  ;;  %v1484_v5 = vadd.f32 %v3075_v3, %v3667_v46  ;;  %v1996_v6 = vadd.f32 %v3203_v4, %v3667_v46 }
 0x12e   : > { %v1475_v7 = vpop.f32.mrf.mxu0  ;;  %v1987_v8 = vpop.f32.mrf.mxu1 }
 0x12f   : > { %2415 = vst.msk [vmem:[%s3672_s29 + $0xf8] sm:$0xff] %vm2383_vm0, %v1484_v5  ;;  %2543 = vst.msk [vmem:[%s3672_s29 + $0x4f8] sm:$0xff] %vm2383_vm0, %v1996_v6  ;;  %v1476_v9 = vadd.f32 %v3667_v46, %v1475_v7  ;;  %v1988_v10 = vadd.f32 %v3667_v46, %v1987_v8 }
 0x130   : > { %v3078_v11 = vpop.f32.mrf.mxu0  ;;  %v3206_v12 = vpop.f32.mrf.mxu1 }
 0x131   : > { %2413 = vst.msk [vmem:[%s3672_s29 + $0xe8] sm:$0xff] %vm2383_vm0, %v1476_v9  ;;  %2541 = vst.msk [vmem:[%s3672_s29 + $0x4e8] sm:$0xff] %vm2383_vm0, %v1988_v10  ;;  %v1497_v13 = vadd.f32 %v3078_v11, %v3667_v46  ;;  %v2009_v14 = vadd.f32 %v3206_v12, %v3667_v46 }
 0x132   : > { %v1488_v15 = vpop.f32.mrf.mxu0  ;;  %v2000_v16 = vpop.f32.mrf.mxu1 }
 0x133   : > { %2418 = vst.msk [vmem:[%s3672_s29 + $0x110] sm:$0xff] %vm2383_vm0, %v1497_v13  ;;  %2546 = vst.msk [vmem:[%s3672_s29 + $0x510] sm:$0xff] %vm2383_vm0, %v2009_v14  ;;  %v1489_v17 = vadd.f32 %v3667_v46, %v1488_v15  ;;  %v2001_v18 = vadd.f32 %v3667_v46, %v2000_v16 }
 0x134   : > { %v3079_v19 = vpop.f32.mrf.mxu0  ;;  %v3207_v20 = vpop.f32.mrf.mxu1 }
 0x135   : > { %2416 = vst.msk [vmem:[%s3672_s29 + $0x100] sm:$0xff] %vm2383_vm0, %v1489_v17  ;;  %2544 = vst.msk [vmem:[%s3672_s29 + $0x500] sm:$0xff] %vm2383_vm0, %v2001_v18  ;;  %v1500_v21 = vadd.f32 %v3079_v19, %v3667_v46  ;;  %v2012_v22 = vadd.f32 %v3207_v20, %v3667_v46 }
 0x136   : > { %v1491_v23 = vpop.f32.mrf.mxu0  ;;  %v2003_v24 = vpop.f32.mrf.mxu1 }
 0x137   : > { %2419 = vst.msk [vmem:[%s3672_s29 + $0x118] sm:$0xff] %vm2383_vm0, %v1500_v21  ;;  %2547 = vst.msk [vmem:[%s3672_s29 + $0x518] sm:$0xff] %vm2383_vm0, %v2012_v22  ;;  %v1492_v25 = vadd.f32 %v3667_v46, %v1491_v23  ;;  %v2004_v26 = vadd.f32 %v3667_v46, %v2003_v24 }
 0x138   : > { %v3082_v27 = vpop.f32.mrf.mxu0  ;;  %v3210_v28 = vpop.f32.mrf.mxu1 }
 0x139   : > { %2417 = vst.msk [vmem:[%s3672_s29 + $0x108] sm:$0xff] %vm2383_vm0, %v1492_v25  ;;  %2545 = vst.msk [vmem:[%s3672_s29 + $0x508] sm:$0xff] %vm2383_vm0, %v2004_v26  ;;  %v1513_v29 = vadd.f32 %v3082_v27, %v3667_v46  ;;  %v2025_v30 = vadd.f32 %v3210_v28, %v3667_v46 }
 0x13a   : > { %v1504_v31 = vpop.f32.mrf.mxu0  ;;  %v2016_v32 = vpop.f32.mrf.mxu1 }
 0x13b   : > { %2422 = vst.msk [vmem:[%s3672_s29 + $0x130] sm:$0xff] %vm2383_vm0, %v1513_v29  ;;  %2550 = vst.msk [vmem:[%s3672_s29 + $0x530] sm:$0xff] %vm2383_vm0, %v2025_v30  ;;  %v1505_v33 = vadd.f32 %v3667_v46, %v1504_v31  ;;  %v2017_v34 = vadd.f32 %v3667_v46, %v2016_v32 }
 0x13c   : > { %v3083_v35 = vpop.f32.mrf.mxu0  ;;  %v3211_v36 = vpop.f32.mrf.mxu1 }
 0x13d   : > { %2420 = vst.msk [vmem:[%s3672_s29 + $0x120] sm:$0xff] %vm2383_vm0, %v1505_v33  ;;  %2548 = vst.msk [vmem:[%s3672_s29 + $0x520] sm:$0xff] %vm2383_vm0, %v2017_v34  ;;  %v1516_v37 = vadd.f32 %v3083_v35, %v3667_v46  ;;  %v2028_v38 = vadd.f32 %v3211_v36, %v3667_v46 }
 0x13e   : > { %v1507_v39 = vpop.f32.mrf.mxu0  ;;  %v2019_v40 = vpop.f32.mrf.mxu1 }
 0x13f   : > { %2423 = vst.msk [vmem:[%s3672_s29 + $0x138] sm:$0xff] %vm2383_vm0, %v1516_v37  ;;  %2551 = vst.msk [vmem:[%s3672_s29 + $0x538] sm:$0xff] %vm2383_vm0, %v2028_v38  ;;  %v1508_v41 = vadd.f32 %v3667_v46, %v1507_v39  ;;  %v2020_v42 = vadd.f32 %v3667_v46, %v2019_v40 }
 0x140   : > { %v3086_v43 = vpop.f32.mrf.mxu0  ;;  %v3214_v44 = vpop.f32.mrf.mxu1 }
 0x141   : > { %2421 = vst.msk [vmem:[%s3672_s29 + $0x128] sm:$0xff] %vm2383_vm0, %v1508_v41  ;;  %2549 = vst.msk [vmem:[%s3672_s29 + $0x528] sm:$0xff] %vm2383_vm0, %v2020_v42  ;;  %v1529_v45 = vadd.f32 %v3086_v43, %v3667_v46  ;;  %v2041_v47 = vadd.f32 %v3214_v44, %v3667_v46 }
 0x142   : > { %v1520_v48 = vpop.f32.mrf.mxu0  ;;  %v2032_v49 = vpop.f32.mrf.mxu1 }
 0x143   : > { %2426 = vst.msk [vmem:[%s3672_s29 + $0x150] sm:$0xff] %vm2383_vm0, %v1529_v45  ;;  %2554 = vst.msk [vmem:[%s3672_s29 + $0x550] sm:$0xff] %vm2383_vm0, %v2041_v47  ;;  %v1521_v50 = vadd.f32 %v3667_v46, %v1520_v48  ;;  %v2033_v51 = vadd.f32 %v3667_v46, %v2032_v49 }
 0x144   : > { %v3087_v52 = vpop.f32.mrf.mxu0  ;;  %v3215_v53 = vpop.f32.mrf.mxu1 }
 0x145   : > { %2424 = vst.msk [vmem:[%s3672_s29 + $0x140] sm:$0xff] %vm2383_vm0, %v1521_v50  ;;  %2552 = vst.msk [vmem:[%s3672_s29 + $0x540] sm:$0xff] %vm2383_vm0, %v2033_v51  ;;  %v1532_v54 = vadd.f32 %v3087_v52, %v3667_v46  ;;  %v2044_v55 = vadd.f32 %v3215_v53, %v3667_v46 }
 0x146   : > { %v1523_v56 = vpop.f32.mrf.mxu0  ;;  %v2035_v57 = vpop.f32.mrf.mxu1 }
 0x147   : > { %2427 = vst.msk [vmem:[%s3672_s29 + $0x158] sm:$0xff] %vm2383_vm0, %v1532_v54  ;;  %2555 = vst.msk [vmem:[%s3672_s29 + $0x558] sm:$0xff] %vm2383_vm0, %v2044_v55  ;;  %v1524_v58 = vadd.f32 %v3667_v46, %v1523_v56  ;;  %v2036_v59 = vadd.f32 %v3667_v46, %v2035_v57 }
 0x148   : > { %v3090_v60 = vpop.f32.mrf.mxu0  ;;  %v3218_v61 = vpop.f32.mrf.mxu1 }
 0x149   : > { %2425 = vst.msk [vmem:[%s3672_s29 + $0x148] sm:$0xff] %vm2383_vm0, %v1524_v58  ;;  %2553 = vst.msk [vmem:[%s3672_s29 + $0x548] sm:$0xff] %vm2383_vm0, %v2036_v59  ;;  %v1545_v62 = vadd.f32 %v3090_v60, %v3667_v46  ;;  %v2057_v63 = vadd.f32 %v3218_v61, %v3667_v46 }
 0x14a   : > { %v1536_v0 = vpop.f32.mrf.mxu0  ;;  %v2048_v1 = vpop.f32.mrf.mxu1 }
 0x14b   : > { %2430 = vst.msk [vmem:[%s3672_s29 + $0x170] sm:$0xff] %vm2383_vm0, %v1545_v62  ;;  %2558 = vst.msk [vmem:[%s3672_s29 + $0x570] sm:$0xff] %vm2383_vm0, %v2057_v63  ;;  %v1537_v2 = vadd.f32 %v3667_v46, %v1536_v0  ;;  %v2049_v3 = vadd.f32 %v3667_v46, %v2048_v1 }
 0x14c   : > { %v3091_v4 = vpop.f32.mrf.mxu0  ;;  %v3219_v5 = vpop.f32.mrf.mxu1 }
 0x14d   : > { %2428 = vst.msk [vmem:[%s3672_s29 + $0x160] sm:$0xff] %vm2383_vm0, %v1537_v2  ;;  %2556 = vst.msk [vmem:[%s3672_s29 + $0x560] sm:$0xff] %vm2383_vm0, %v2049_v3  ;;  %v1548_v6 = vadd.f32 %v3091_v4, %v3667_v46  ;;  %v2060_v7 = vadd.f32 %v3219_v5, %v3667_v46 }
 0x14e   : > { %v1539_v8 = vpop.f32.mrf.mxu0  ;;  %v2051_v9 = vpop.f32.mrf.mxu1 }
 0x14f   : > { %2431 = vst.msk [vmem:[%s3672_s29 + $0x178] sm:$0xff] %vm2383_vm0, %v1548_v6  ;;  %2559 = vst.msk [vmem:[%s3672_s29 + $0x578] sm:$0xff] %vm2383_vm0, %v2060_v7  ;;  %v1540_v10 = vadd.f32 %v3667_v46, %v1539_v8  ;;  %v2052_v11 = vadd.f32 %v3667_v46, %v2051_v9 }
 0x150   : > { %v3094_v12 = vpop.f32.mrf.mxu0  ;;  %v3222_v13 = vpop.f32.mrf.mxu1 }
 0x151   : > { %2429 = vst.msk [vmem:[%s3672_s29 + $0x168] sm:$0xff] %vm2383_vm0, %v1540_v10  ;;  %2557 = vst.msk [vmem:[%s3672_s29 + $0x568] sm:$0xff] %vm2383_vm0, %v2052_v11  ;;  %v1561_v14 = vadd.f32 %v3094_v12, %v3667_v46  ;;  %v2073_v15 = vadd.f32 %v3222_v13, %v3667_v46 }
 0x152   : > { %v1552_v16 = vpop.f32.mrf.mxu0  ;;  %v2064_v17 = vpop.f32.mrf.mxu1 }
 0x153   : > { %2434 = vst.msk [vmem:[%s3672_s29 + $0x190] sm:$0xff] %vm2383_vm0, %v1561_v14  ;;  %2562 = vst.msk [vmem:[%s3672_s29 + $0x590] sm:$0xff] %vm2383_vm0, %v2073_v15  ;;  %v1553_v18 = vadd.f32 %v3667_v46, %v1552_v16  ;;  %v2065_v19 = vadd.f32 %v3667_v46, %v2064_v17 }
 0x154   : > { %v3095_v20 = vpop.f32.mrf.mxu0  ;;  %v3223_v21 = vpop.f32.mrf.mxu1 }
 0x155   : > { %2432 = vst.msk [vmem:[%s3672_s29 + $0x180] sm:$0xff] %vm2383_vm0, %v1553_v18  ;;  %2560 = vst.msk [vmem:[%s3672_s29 + $0x580] sm:$0xff] %vm2383_vm0, %v2065_v19  ;;  %v1564_v22 = vadd.f32 %v3095_v20, %v3667_v46  ;;  %v2076_v23 = vadd.f32 %v3223_v21, %v3667_v46 }
 0x156   : > { %v1555_v24 = vpop.f32.mrf.mxu0  ;;  %v2067_v25 = vpop.f32.mrf.mxu1 }
 0x157   : > { %2435 = vst.msk [vmem:[%s3672_s29 + $0x198] sm:$0xff] %vm2383_vm0, %v1564_v22  ;;  %2563 = vst.msk [vmem:[%s3672_s29 + $0x598] sm:$0xff] %vm2383_vm0, %v2076_v23  ;;  %v1556_v26 = vadd.f32 %v3667_v46, %v1555_v24  ;;  %v2068_v27 = vadd.f32 %v3667_v46, %v2067_v25 }
 0x158   : > { %v3098_v28 = vpop.f32.mrf.mxu0  ;;  %v3226_v29 = vpop.f32.mrf.mxu1 }
 0x159   : > { %2433 = vst.msk [vmem:[%s3672_s29 + $0x188] sm:$0xff] %vm2383_vm0, %v1556_v26  ;;  %2561 = vst.msk [vmem:[%s3672_s29 + $0x588] sm:$0xff] %vm2383_vm0, %v2068_v27  ;;  %v1577_v30 = vadd.f32 %v3098_v28, %v3667_v46  ;;  %v2089_v31 = vadd.f32 %v3226_v29, %v3667_v46 }
 0x15a   : > { %v1568_v32 = vpop.f32.mrf.mxu0  ;;  %v2080_v33 = vpop.f32.mrf.mxu1 }
 0x15b   : > { %2438 = vst.msk [vmem:[%s3672_s29 + $0x1b0] sm:$0xff] %vm2383_vm0, %v1577_v30  ;;  %2566 = vst.msk [vmem:[%s3672_s29 + $0x5b0] sm:$0xff] %vm2383_vm0, %v2089_v31  ;;  %v1569_v34 = vadd.f32 %v3667_v46, %v1568_v32  ;;  %v2081_v35 = vadd.f32 %v3667_v46, %v2080_v33 }
 0x15c   : > { %v3099_v36 = vpop.f32.mrf.mxu0  ;;  %v3227_v37 = vpop.f32.mrf.mxu1 }
 0x15d   : > { %2436 = vst.msk [vmem:[%s3672_s29 + $0x1a0] sm:$0xff] %vm2383_vm0, %v1569_v34  ;;  %2564 = vst.msk [vmem:[%s3672_s29 + $0x5a0] sm:$0xff] %vm2383_vm0, %v2081_v35  ;;  %v1580_v38 = vadd.f32 %v3099_v36, %v3667_v46  ;;  %v2092_v39 = vadd.f32 %v3227_v37, %v3667_v46 }
 0x15e   : > { %v1571_v40 = vpop.f32.mrf.mxu0  ;;  %v2083_v41 = vpop.f32.mrf.mxu1 }
 0x15f   : > { %2439 = vst.msk [vmem:[%s3672_s29 + $0x1b8] sm:$0xff] %vm2383_vm0, %v1580_v38  ;;  %2567 = vst.msk [vmem:[%s3672_s29 + $0x5b8] sm:$0xff] %vm2383_vm0, %v2092_v39  ;;  %v1572_v42 = vadd.f32 %v3667_v46, %v1571_v40  ;;  %v2084_v43 = vadd.f32 %v3667_v46, %v2083_v41 }
 0x160   : > { %v3102_v44 = vpop.f32.mrf.mxu0  ;;  %v3230_v45 = vpop.f32.mrf.mxu1 }
 0x161   : > { %2437 = vst.msk [vmem:[%s3672_s29 + $0x1a8] sm:$0xff] %vm2383_vm0, %v1572_v42  ;;  %2565 = vst.msk [vmem:[%s3672_s29 + $0x5a8] sm:$0xff] %vm2383_vm0, %v2084_v43  ;;  %v1593_v47 = vadd.f32 %v3102_v44, %v3667_v46  ;;  %v2105_v48 = vadd.f32 %v3230_v45, %v3667_v46 }
 0x162   : > { %v1584_v49 = vpop.f32.mrf.mxu0  ;;  %v2096_v50 = vpop.f32.mrf.mxu1 }
 0x163   : > { %2442 = vst.msk [vmem:[%s3672_s29 + $0x1d0] sm:$0xff] %vm2383_vm0, %v1593_v47  ;;  %2570 = vst.msk [vmem:[%s3672_s29 + $0x5d0] sm:$0xff] %vm2383_vm0, %v2105_v48  ;;  %v1585_v51 = vadd.f32 %v3667_v46, %v1584_v49  ;;  %v2097_v52 = vadd.f32 %v3667_v46, %v2096_v50 }
 0x164   : > { %v3103_v53 = vpop.f32.mrf.mxu0  ;;  %v3231_v54 = vpop.f32.mrf.mxu1 }
 0x165   : > { %2440 = vst.msk [vmem:[%s3672_s29 + $0x1c0] sm:$0xff] %vm2383_vm0, %v1585_v51  ;;  %2568 = vst.msk [vmem:[%s3672_s29 + $0x5c0] sm:$0xff] %vm2383_vm0, %v2097_v52  ;;  %v1596_v55 = vadd.f32 %v3103_v53, %v3667_v46  ;;  %v2108_v56 = vadd.f32 %v3231_v54, %v3667_v46 }
 0x166   : > { %v1587_v57 = vpop.f32.mrf.mxu0  ;;  %v2099_v58 = vpop.f32.mrf.mxu1 }
 0x167   : > { %2443 = vst.msk [vmem:[%s3672_s29 + $0x1d8] sm:$0xff] %vm2383_vm0, %v1596_v55  ;;  %2571 = vst.msk [vmem:[%s3672_s29 + $0x5d8] sm:$0xff] %vm2383_vm0, %v2108_v56  ;;  %v1588_v59 = vadd.f32 %v3667_v46, %v1587_v57  ;;  %v2100_v60 = vadd.f32 %v3667_v46, %v2099_v58 }
 0x168   : > { %v3106_v61 = vpop.f32.mrf.mxu0  ;;  %v3234_v62 = vpop.f32.mrf.mxu1 }
 0x169   : > { %2441 = vst.msk [vmem:[%s3672_s29 + $0x1c8] sm:$0xff] %vm2383_vm0, %v1588_v59  ;;  %2569 = vst.msk [vmem:[%s3672_s29 + $0x5c8] sm:$0xff] %vm2383_vm0, %v2100_v60  ;;  %v1609_v63 = vadd.f32 %v3106_v61, %v3667_v46  ;;  %v2121_v0 = vadd.f32 %v3234_v62, %v3667_v46  ;;  %v4154_v61 = vld [vmem:[%s4484_s2] ss:$0 sm:$0xff] }
 0x16a   : > { %v1600_v1 = vpop.f32.mrf.mxu0  ;;  %v2112_v2 = vpop.f32.mrf.mxu1 }
 0x16b   : > { %2446 = vst.msk [vmem:[%s3672_s29 + $0x1f0] sm:$0xff] %vm2383_vm0, %v1609_v63  ;;  %2574 = vst.msk [vmem:[%s3672_s29 + $0x5f0] sm:$0xff] %vm2383_vm0, %v2121_v0  ;;  %v1601_v3 = vadd.f32 %v3667_v46, %v1600_v1  ;;  %v2113_v4 = vadd.f32 %v3667_v46, %v2112_v2 }
 0x16c   : > { %v3107_v5 = vpop.f32.mrf.mxu0  ;;  %v3235_v6 = vpop.f32.mrf.mxu1 }
 0x16d   : > { %2444 = vst.msk [vmem:[%s3672_s29 + $0x1e0] sm:$0xff] %vm2383_vm0, %v1601_v3  ;;  %2572 = vst.msk [vmem:[%s3672_s29 + $0x5e0] sm:$0xff] %vm2383_vm0, %v2113_v4  ;;  %v1612_v7 = vadd.f32 %v3107_v5, %v3667_v46  ;;  %v2124_v8 = vadd.f32 %v3235_v6, %v3667_v46 }
 0x16e   : > { %v1603_v9 = vpop.f32.mrf.mxu0  ;;  %v2115_v10 = vpop.f32.mrf.mxu1 }
 0x16f   : > { %2447 = vst.msk [vmem:[%s3672_s29 + $0x1f8] sm:$0xff] %vm2383_vm0, %v1612_v7  ;;  %2575 = vst.msk [vmem:[%s3672_s29 + $0x5f8] sm:$0xff] %vm2383_vm0, %v2124_v8  ;;  %v1604_v11 = vadd.f32 %v3667_v46, %v1603_v9  ;;  %v2116_v12 = vadd.f32 %v3667_v46, %v2115_v10 }
 0x170   : > { %v3110_v13 = vpop.f32.mrf.mxu0  ;;  %v3238_v14 = vpop.f32.mrf.mxu1 }
 0x171   : > { %2445 = vst.msk [vmem:[%s3672_s29 + $0x1e8] sm:$0xff] %vm2383_vm0, %v1604_v11  ;;  %2573 = vst.msk [vmem:[%s3672_s29 + $0x5e8] sm:$0xff] %vm2383_vm0, %v2116_v12  ;;  %v1625_v15 = vadd.f32 %v3110_v13, %v3667_v46  ;;  %v2137_v16 = vadd.f32 %v3238_v14, %v3667_v46 }
 0x172   : > { %v1616_v17 = vpop.f32.mrf.mxu0  ;;  %v2128_v18 = vpop.f32.mrf.mxu1 }
 0x173   : > { %2450 = vst.msk [vmem:[%s3672_s29 + $0x210] sm:$0xff] %vm2383_vm0, %v1625_v15  ;;  %2578 = vst.msk [vmem:[%s3672_s29 + $0x610] sm:$0xff] %vm2383_vm0, %v2137_v16  ;;  %v1617_v19 = vadd.f32 %v3667_v46, %v1616_v17  ;;  %v2129_v20 = vadd.f32 %v3667_v46, %v2128_v18 }
 0x174   : > { %v3111_v21 = vpop.f32.mrf.mxu0  ;;  %v3239_v22 = vpop.f32.mrf.mxu1 }
 0x175   : > { %2448 = vst.msk [vmem:[%s3672_s29 + $0x200] sm:$0xff] %vm2383_vm0, %v1617_v19  ;;  %2576 = vst.msk [vmem:[%s3672_s29 + $0x600] sm:$0xff] %vm2383_vm0, %v2129_v20  ;;  %v1628_v23 = vadd.f32 %v3111_v21, %v3667_v46  ;;  %v2140_v24 = vadd.f32 %v3239_v22, %v3667_v46 }
 0x176   : > { %v1619_v25 = vpop.f32.mrf.mxu0  ;;  %v2131_v26 = vpop.f32.mrf.mxu1 }
 0x177   : > { %2451 = vst.msk [vmem:[%s3672_s29 + $0x218] sm:$0xff] %vm2383_vm0, %v1628_v23  ;;  %2579 = vst.msk [vmem:[%s3672_s29 + $0x618] sm:$0xff] %vm2383_vm0, %v2140_v24  ;;  %v1620_v27 = vadd.f32 %v3667_v46, %v1619_v25  ;;  %v2132_v28 = vadd.f32 %v3667_v46, %v2131_v26 }
 0x178   : > { %v3114_v29 = vpop.f32.mrf.mxu0  ;;  %v3242_v30 = vpop.f32.mrf.mxu1 }
 0x179   : > { %2449 = vst.msk [vmem:[%s3672_s29 + $0x208] sm:$0xff] %vm2383_vm0, %v1620_v27  ;;  %2577 = vst.msk [vmem:[%s3672_s29 + $0x608] sm:$0xff] %vm2383_vm0, %v2132_v28  ;;  %v1641_v31 = vadd.f32 %v3114_v29, %v3667_v46  ;;  %v2153_v32 = vadd.f32 %v3242_v30, %v3667_v46 }
 0x17a   : > { %v1632_v33 = vpop.f32.mrf.mxu0  ;;  %v2144_v34 = vpop.f32.mrf.mxu1 }
 0x17b   : > { %2454 = vst.msk [vmem:[%s3672_s29 + $0x230] sm:$0xff] %vm2383_vm0, %v1641_v31  ;;  %2582 = vst.msk [vmem:[%s3672_s29 + $0x630] sm:$0xff] %vm2383_vm0, %v2153_v32  ;;  %v1633_v35 = vadd.f32 %v3667_v46, %v1632_v33  ;;  %v2145_v36 = vadd.f32 %v3667_v46, %v2144_v34 }
 0x17c   : > { %v3115_v37 = vpop.f32.mrf.mxu0  ;;  %v3243_v38 = vpop.f32.mrf.mxu1 }
 0x17d   : > { %2452 = vst.msk [vmem:[%s3672_s29 + $0x220] sm:$0xff] %vm2383_vm0, %v1633_v35  ;;  %2580 = vst.msk [vmem:[%s3672_s29 + $0x620] sm:$0xff] %vm2383_vm0, %v2145_v36  ;;  %v1644_v39 = vadd.f32 %v3115_v37, %v3667_v46  ;;  %v2156_v40 = vadd.f32 %v3243_v38, %v3667_v46 }
 0x17e   : > { %v1635_v41 = vpop.f32.mrf.mxu0  ;;  %v2147_v42 = vpop.f32.mrf.mxu1 }
 0x17f   : > { %2455 = vst.msk [vmem:[%s3672_s29 + $0x238] sm:$0xff] %vm2383_vm0, %v1644_v39  ;;  %2583 = vst.msk [vmem:[%s3672_s29 + $0x638] sm:$0xff] %vm2383_vm0, %v2156_v40  ;;  %v1636_v43 = vadd.f32 %v3667_v46, %v1635_v41  ;;  %v2148_v44 = vadd.f32 %v3667_v46, %v2147_v42 }
 0x180   : > { %v3118_v45 = vpop.f32.mrf.mxu0  ;;  %v3246_v47 = vpop.f32.mrf.mxu1 }
 0x181   : > { %2453 = vst.msk [vmem:[%s3672_s29 + $0x228] sm:$0xff] %vm2383_vm0, %v1636_v43  ;;  %2581 = vst.msk [vmem:[%s3672_s29 + $0x628] sm:$0xff] %vm2383_vm0, %v2148_v44  ;;  %v1657_v48 = vadd.f32 %v3118_v45, %v3667_v46  ;;  %v2169_v49 = vadd.f32 %v3246_v47, %v3667_v46 }
 0x182   : > { %v1648_v50 = vpop.f32.mrf.mxu0  ;;  %v2160_v51 = vpop.f32.mrf.mxu1 }
 0x183   : > { %2458 = vst.msk [vmem:[%s3672_s29 + $0x250] sm:$0xff] %vm2383_vm0, %v1657_v48  ;;  %2586 = vst.msk [vmem:[%s3672_s29 + $0x650] sm:$0xff] %vm2383_vm0, %v2169_v49  ;;  %v1649_v52 = vadd.f32 %v3667_v46, %v1648_v50  ;;  %v2161_v53 = vadd.f32 %v3667_v46, %v2160_v51 }
 0x184   : > { %v3119_v54 = vpop.f32.mrf.mxu0  ;;  %v3247_v55 = vpop.f32.mrf.mxu1 }
 0x185   : > { %2456 = vst.msk [vmem:[%s3672_s29 + $0x240] sm:$0xff] %vm2383_vm0, %v1649_v52  ;;  %2584 = vst.msk [vmem:[%s3672_s29 + $0x640] sm:$0xff] %vm2383_vm0, %v2161_v53  ;;  %v1660_v56 = vadd.f32 %v3119_v54, %v3667_v46  ;;  %v2172_v57 = vadd.f32 %v3247_v55, %v3667_v46 }
 0x186   : > { %v1651_v58 = vpop.f32.mrf.mxu0  ;;  %v2163_v59 = vpop.f32.mrf.mxu1 }
 0x187   : > { %2459 = vst.msk [vmem:[%s3672_s29 + $0x258] sm:$0xff] %vm2383_vm0, %v1660_v56  ;;  %2587 = vst.msk [vmem:[%s3672_s29 + $0x658] sm:$0xff] %vm2383_vm0, %v2172_v57  ;;  %v1652_v60 = vadd.f32 %v3667_v46, %v1651_v58  ;;  %v2164_v62 = vadd.f32 %v4154_v61, %v2163_v59 }
 0x188   : > { %v3122_v63 = vpop.f32.mrf.mxu0  ;;  %v3250_v0 = vpop.f32.mrf.mxu1 }
 0x189   : > { %2457 = vst.msk [vmem:[%s3672_s29 + $0x248] sm:$0xff] %vm2383_vm0, %v1652_v60  ;;  %2585 = vst.msk [vmem:[%s3672_s29 + $0x648] sm:$0xff] %vm2383_vm0, %v2164_v62  ;;  %v1673_v1 = vadd.f32 %v4154_v61, %v3122_v63  ;;  %v2185_v46 = vadd.f32 %v4154_v61, %v3250_v0 }
 0x18a   : > { %v1664_v2 = vpop.f32.mrf.mxu0  ;;  %v2176_v3 = vpop.f32.mrf.mxu1 }
 0x18b   : > { %2462 = vst.msk [vmem:[%s3672_s29 + $0x270] sm:$0xff] %vm2383_vm0, %v1673_v1  ;;  %2590 = vst.msk [vmem:[%s3672_s29 + $0x670] sm:$0xff] %vm2383_vm0, %v2185_v46  ;;  %v1665_v4 = vadd.f32 %v4154_v61, %v1664_v2  ;;  %v2177_v5 = vadd.f32 %v4154_v61, %v2176_v3 }
 0x18c   : > { %v3123_v6 = vpop.f32.mrf.mxu0  ;;  %v3251_v7 = vpop.f32.mrf.mxu1 }
 0x18d   : > { %2460 = vst.msk [vmem:[%s3672_s29 + $0x260] sm:$0xff] %vm2383_vm0, %v1665_v4  ;;  %2588 = vst.msk [vmem:[%s3672_s29 + $0x660] sm:$0xff] %vm2383_vm0, %v2177_v5  ;;  %v1676_v8 = vadd.f32 %v4154_v61, %v3123_v6  ;;  %v2188_v9 = vadd.f32 %v4154_v61, %v3251_v7 }
 0x18e   : > { %v1667_v10 = vpop.f32.mrf.mxu0  ;;  %v2179_v11 = vpop.f32.mrf.mxu1 }
 0x18f   : > { %2463 = vst.msk [vmem:[%s3672_s29 + $0x278] sm:$0xff] %vm2383_vm0, %v1676_v8  ;;  %2591 = vst.msk [vmem:[%s3672_s29 + $0x678] sm:$0xff] %vm2383_vm0, %v2188_v9  ;;  %v1668_v12 = vadd.f32 %v4154_v61, %v1667_v10  ;;  %v2180_v13 = vadd.f32 %v4154_v61, %v2179_v11 }
 0x190   : > { %v3126_v14 = vpop.f32.mrf.mxu0  ;;  %v3254_v15 = vpop.f32.mrf.mxu1 }
 0x191   : > { %2461 = vst.msk [vmem:[%s3672_s29 + $0x268] sm:$0xff] %vm2383_vm0, %v1668_v12  ;;  %2589 = vst.msk [vmem:[%s3672_s29 + $0x668] sm:$0xff] %vm2383_vm0, %v2180_v13  ;;  %v1689_v16 = vadd.f32 %v4154_v61, %v3126_v14  ;;  %v2201_v17 = vadd.f32 %v4154_v61, %v3254_v15 }
 0x192   : > { %v1680_v18 = vpop.f32.mrf.mxu0  ;;  %v2192_v19 = vpop.f32.mrf.mxu1 }
 0x193   : > { %2466 = vst.msk [vmem:[%s3672_s29 + $0x290] sm:$0xff] %vm2383_vm0, %v1689_v16  ;;  %2594 = vst.msk [vmem:[%s3672_s29 + $0x690] sm:$0xff] %vm2383_vm0, %v2201_v17  ;;  %v1681_v20 = vadd.f32 %v4154_v61, %v1680_v18  ;;  %v2193_v21 = vadd.f32 %v4154_v61, %v2192_v19 }
 0x194   : > { %v3127_v22 = vpop.f32.mrf.mxu0  ;;  %v3255_v23 = vpop.f32.mrf.mxu1 }
 0x195   : > { %2464 = vst.msk [vmem:[%s3672_s29 + $0x280] sm:$0xff] %vm2383_vm0, %v1681_v20  ;;  %2592 = vst.msk [vmem:[%s3672_s29 + $0x680] sm:$0xff] %vm2383_vm0, %v2193_v21  ;;  %v1692_v24 = vadd.f32 %v4154_v61, %v3127_v22  ;;  %v2204_v25 = vadd.f32 %v4154_v61, %v3255_v23 }
 0x196   : > { %v1683_v26 = vpop.f32.mrf.mxu0  ;;  %v2195_v27 = vpop.f32.mrf.mxu1 }
 0x197   : > { %2467 = vst.msk [vmem:[%s3672_s29 + $0x298] sm:$0xff] %vm2383_vm0, %v1692_v24  ;;  %2595 = vst.msk [vmem:[%s3672_s29 + $0x698] sm:$0xff] %vm2383_vm0, %v2204_v25  ;;  %v1684_v28 = vadd.f32 %v4154_v61, %v1683_v26  ;;  %v2196_v29 = vadd.f32 %v4154_v61, %v2195_v27 }
 0x198   : > { %v3130_v30 = vpop.f32.mrf.mxu0  ;;  %v3258_v31 = vpop.f32.mrf.mxu1 }
 0x199   : > { %2465 = vst.msk [vmem:[%s3672_s29 + $0x288] sm:$0xff] %vm2383_vm0, %v1684_v28  ;;  %2593 = vst.msk [vmem:[%s3672_s29 + $0x688] sm:$0xff] %vm2383_vm0, %v2196_v29  ;;  %v1705_v32 = vadd.f32 %v4154_v61, %v3130_v30  ;;  %v2217_v33 = vadd.f32 %v4154_v61, %v3258_v31 }
 0x19a   : > { %v1696_v34 = vpop.f32.mrf.mxu0  ;;  %v2208_v35 = vpop.f32.mrf.mxu1 }
 0x19b   : > { %2470 = vst.msk [vmem:[%s3672_s29 + $0x2b0] sm:$0xff] %vm2383_vm0, %v1705_v32  ;;  %2598 = vst.msk [vmem:[%s3672_s29 + $0x6b0] sm:$0xff] %vm2383_vm0, %v2217_v33  ;;  %v1697_v36 = vadd.f32 %v4154_v61, %v1696_v34  ;;  %v2209_v37 = vadd.f32 %v4154_v61, %v2208_v35 }
 0x19c   : > { %v3131_v38 = vpop.f32.mrf.mxu0  ;;  %v3259_v39 = vpop.f32.mrf.mxu1 }
 0x19d   : > { %2468 = vst.msk [vmem:[%s3672_s29 + $0x2a0] sm:$0xff] %vm2383_vm0, %v1697_v36  ;;  %2596 = vst.msk [vmem:[%s3672_s29 + $0x6a0] sm:$0xff] %vm2383_vm0, %v2209_v37  ;;  %v1708_v40 = vadd.f32 %v4154_v61, %v3131_v38  ;;  %v2220_v41 = vadd.f32 %v4154_v61, %v3259_v39 }
 0x19e   : > { %v1699_v42 = vpop.f32.mrf.mxu0  ;;  %v2211_v43 = vpop.f32.mrf.mxu1 }
 0x19f   : > { %2471 = vst.msk [vmem:[%s3672_s29 + $0x2b8] sm:$0xff] %vm2383_vm0, %v1708_v40  ;;  %2599 = vst.msk [vmem:[%s3672_s29 + $0x6b8] sm:$0xff] %vm2383_vm0, %v2220_v41  ;;  %v1700_v44 = vadd.f32 %v4154_v61, %v1699_v42  ;;  %v2212_v45 = vadd.f32 %v4154_v61, %v2211_v43 }
 0x1a0   : > { %v3134_v47 = vpop.f32.mrf.mxu0  ;;  %v3262_v48 = vpop.f32.mrf.mxu1 }
 0x1a1   : > { %2469 = vst.msk [vmem:[%s3672_s29 + $0x2a8] sm:$0xff] %vm2383_vm0, %v1700_v44  ;;  %2597 = vst.msk [vmem:[%s3672_s29 + $0x6a8] sm:$0xff] %vm2383_vm0, %v2212_v45  ;;  %v1721_v49 = vadd.f32 %v4154_v61, %v3134_v47  ;;  %v2233_v50 = vadd.f32 %v4154_v61, %v3262_v48 }
 0x1a2   : > { %v1712_v51 = vpop.f32.mrf.mxu0  ;;  %v2224_v52 = vpop.f32.mrf.mxu1 }
 0x1a3   : > { %2474 = vst.msk [vmem:[%s3672_s29 + $0x2d0] sm:$0xff] %vm2383_vm0, %v1721_v49  ;;  %2602 = vst.msk [vmem:[%s3672_s29 + $0x6d0] sm:$0xff] %vm2383_vm0, %v2233_v50  ;;  %v1713_v53 = vadd.f32 %v4154_v61, %v1712_v51  ;;  %v2225_v54 = vadd.f32 %v4154_v61, %v2224_v52 }
 0x1a4   : > { %v3135_v55 = vpop.f32.mrf.mxu0  ;;  %v3263_v56 = vpop.f32.mrf.mxu1 }
 0x1a5   : > { %2472 = vst.msk [vmem:[%s3672_s29 + $0x2c0] sm:$0xff] %vm2383_vm0, %v1713_v53  ;;  %2600 = vst.msk [vmem:[%s3672_s29 + $0x6c0] sm:$0xff] %vm2383_vm0, %v2225_v54  ;;  %v1724_v57 = vadd.f32 %v4154_v61, %v3135_v55  ;;  %v2236_v58 = vadd.f32 %v4154_v61, %v3263_v56 }
 0x1a6   : > { %v1715_v59 = vpop.f32.mrf.mxu0  ;;  %v2227_v60 = vpop.f32.mrf.mxu1 }
 0x1a7   : > { %2475 = vst.msk [vmem:[%s3672_s29 + $0x2d8] sm:$0xff] %vm2383_vm0, %v1724_v57  ;;  %2603 = vst.msk [vmem:[%s3672_s29 + $0x6d8] sm:$0xff] %vm2383_vm0, %v2236_v58  ;;  %v1716_v62 = vadd.f32 %v4154_v61, %v1715_v59  ;;  %v2228_v63 = vadd.f32 %v4154_v61, %v2227_v60 }
 0x1a8   : > { %v3138_v0 = vpop.f32.mrf.mxu0  ;;  %v3266_v1 = vpop.f32.mrf.mxu1 }
 0x1a9   : > { %2473 = vst.msk [vmem:[%s3672_s29 + $0x2c8] sm:$0xff] %vm2383_vm0, %v1716_v62  ;;  %2601 = vst.msk [vmem:[%s3672_s29 + $0x6c8] sm:$0xff] %vm2383_vm0, %v2228_v63  ;;  %v1737_v46 = vadd.f32 %v4154_v61, %v3138_v0  ;;  %v2249_v2 = vadd.f32 %v4154_v61, %v3266_v1 }
 0x1aa   : > { %v1728_v3 = vpop.f32.mrf.mxu0  ;;  %v2240_v4 = vpop.f32.mrf.mxu1 }
 0x1ab   : > { %2478 = vst.msk [vmem:[%s3672_s29 + $0x2f0] sm:$0xff] %vm2383_vm0, %v1737_v46  ;;  %2606 = vst.msk [vmem:[%s3672_s29 + $0x6f0] sm:$0xff] %vm2383_vm0, %v2249_v2  ;;  %v1729_v5 = vadd.f32 %v4154_v61, %v1728_v3  ;;  %v2241_v6 = vadd.f32 %v4154_v61, %v2240_v4 }
 0x1ac   : > { %v3139_v7 = vpop.f32.mrf.mxu0  ;;  %v3267_v8 = vpop.f32.mrf.mxu1 }
 0x1ad   : > { %2476 = vst.msk [vmem:[%s3672_s29 + $0x2e0] sm:$0xff] %vm2383_vm0, %v1729_v5  ;;  %2604 = vst.msk [vmem:[%s3672_s29 + $0x6e0] sm:$0xff] %vm2383_vm0, %v2241_v6  ;;  %v1740_v9 = vadd.f32 %v4154_v61, %v3139_v7  ;;  %v2252_v10 = vadd.f32 %v4154_v61, %v3267_v8 }
 0x1ae   : > { %v1731_v11 = vpop.f32.mrf.mxu0  ;;  %v2243_v12 = vpop.f32.mrf.mxu1 }
 0x1af   : > { %2479 = vst.msk [vmem:[%s3672_s29 + $0x2f8] sm:$0xff] %vm2383_vm0, %v1740_v9  ;;  %2607 = vst.msk [vmem:[%s3672_s29 + $0x6f8] sm:$0xff] %vm2383_vm0, %v2252_v10  ;;  %v1732_v13 = vadd.f32 %v4154_v61, %v1731_v11  ;;  %v2244_v14 = vadd.f32 %v4154_v61, %v2243_v12 }
 0x1b0   : > { %v3142_v15 = vpop.f32.mrf.mxu0  ;;  %v3270_v16 = vpop.f32.mrf.mxu1 }
 0x1b1   : > { %2477 = vst.msk [vmem:[%s3672_s29 + $0x2e8] sm:$0xff] %vm2383_vm0, %v1732_v13  ;;  %2605 = vst.msk [vmem:[%s3672_s29 + $0x6e8] sm:$0xff] %vm2383_vm0, %v2244_v14  ;;  %v1753_v17 = vadd.f32 %v4154_v61, %v3142_v15  ;;  %v2265_v18 = vadd.f32 %v4154_v61, %v3270_v16 }
 0x1b2   : > { %v1744_v19 = vpop.f32.mrf.mxu0  ;;  %v2256_v20 = vpop.f32.mrf.mxu1 }
 0x1b3   : > { %2482 = vst.msk [vmem:[%s3672_s29 + $0x310] sm:$0xff] %vm2383_vm0, %v1753_v17  ;;  %2610 = vst.msk [vmem:[%s3672_s29 + $0x710] sm:$0xff] %vm2383_vm0, %v2265_v18  ;;  %v1745_v21 = vadd.f32 %v4154_v61, %v1744_v19  ;;  %v2257_v22 = vadd.f32 %v4154_v61, %v2256_v20 }
 0x1b4   : > { %v3143_v23 = vpop.f32.mrf.mxu0  ;;  %v3271_v24 = vpop.f32.mrf.mxu1 }
 0x1b5   : > { %2480 = vst.msk [vmem:[%s3672_s29 + $0x300] sm:$0xff] %vm2383_vm0, %v1745_v21  ;;  %2608 = vst.msk [vmem:[%s3672_s29 + $0x700] sm:$0xff] %vm2383_vm0, %v2257_v22  ;;  %v1756_v25 = vadd.f32 %v4154_v61, %v3143_v23  ;;  %v2268_v26 = vadd.f32 %v4154_v61, %v3271_v24 }
 0x1b6   : > { %v1747_v27 = vpop.f32.mrf.mxu0  ;;  %v2259_v28 = vpop.f32.mrf.mxu1 }
 0x1b7   : > { %2483 = vst.msk [vmem:[%s3672_s29 + $0x318] sm:$0xff] %vm2383_vm0, %v1756_v25  ;;  %2611 = vst.msk [vmem:[%s3672_s29 + $0x718] sm:$0xff] %vm2383_vm0, %v2268_v26  ;;  %v1748_v29 = vadd.f32 %v4154_v61, %v1747_v27  ;;  %v2260_v30 = vadd.f32 %v4154_v61, %v2259_v28 }
 0x1b8   : > { %v3146_v31 = vpop.f32.mrf.mxu0  ;;  %v3274_v32 = vpop.f32.mrf.mxu1 }
 0x1b9   : > { %2481 = vst.msk [vmem:[%s3672_s29 + $0x308] sm:$0xff] %vm2383_vm0, %v1748_v29  ;;  %2609 = vst.msk [vmem:[%s3672_s29 + $0x708] sm:$0xff] %vm2383_vm0, %v2260_v30  ;;  %v1769_v33 = vadd.f32 %v4154_v61, %v3146_v31  ;;  %v2281_v34 = vadd.f32 %v4154_v61, %v3274_v32 }
 0x1ba   : > { %v1760_v35 = vpop.f32.mrf.mxu0  ;;  %v2272_v36 = vpop.f32.mrf.mxu1 }
 0x1bb   : > { %2486 = vst.msk [vmem:[%s3672_s29 + $0x330] sm:$0xff] %vm2383_vm0, %v1769_v33  ;;  %2614 = vst.msk [vmem:[%s3672_s29 + $0x730] sm:$0xff] %vm2383_vm0, %v2281_v34  ;;  %v1761_v37 = vadd.f32 %v4154_v61, %v1760_v35  ;;  %v2273_v38 = vadd.f32 %v4154_v61, %v2272_v36 }
 0x1bc   : > { %v3147_v39 = vpop.f32.mrf.mxu0  ;;  %v3275_v40 = vpop.f32.mrf.mxu1 }
 0x1bd   : > { %2484 = vst.msk [vmem:[%s3672_s29 + $0x320] sm:$0xff] %vm2383_vm0, %v1761_v37  ;;  %2612 = vst.msk [vmem:[%s3672_s29 + $0x720] sm:$0xff] %vm2383_vm0, %v2273_v38  ;;  %v1772_v41 = vadd.f32 %v4154_v61, %v3147_v39  ;;  %v2284_v42 = vadd.f32 %v4154_v61, %v3275_v40 }
 0x1be   : > { %v1763_v43 = vpop.f32.mrf.mxu0  ;;  %v2275_v44 = vpop.f32.mrf.mxu1 }
 0x1bf   : > { %2487 = vst.msk [vmem:[%s3672_s29 + $0x338] sm:$0xff] %vm2383_vm0, %v1772_v41  ;;  %2615 = vst.msk [vmem:[%s3672_s29 + $0x738] sm:$0xff] %vm2383_vm0, %v2284_v42  ;;  %v1764_v45 = vadd.f32 %v4154_v61, %v1763_v43  ;;  %v2276_v47 = vadd.f32 %v4154_v61, %v2275_v44 }
 0x1c0   : > { %v3150_v48 = vpop.f32.mrf.mxu0  ;;  %v3278_v49 = vpop.f32.mrf.mxu1 }
 0x1c1   : > { %2485 = vst.msk [vmem:[%s3672_s29 + $0x328] sm:$0xff] %vm2383_vm0, %v1764_v45  ;;  %2613 = vst.msk [vmem:[%s3672_s29 + $0x728] sm:$0xff] %vm2383_vm0, %v2276_v47  ;;  %v1785_v50 = vadd.f32 %v4154_v61, %v3150_v48  ;;  %v2297_v51 = vadd.f32 %v4154_v61, %v3278_v49 }
 0x1c2   : > { %v1776_v52 = vpop.f32.mrf.mxu0  ;;  %v2288_v53 = vpop.f32.mrf.mxu1 }
 0x1c3   : > { %2490 = vst.msk [vmem:[%s3672_s29 + $0x350] sm:$0xff] %vm2383_vm0, %v1785_v50  ;;  %2618 = vst.msk [vmem:[%s3672_s29 + $0x750] sm:$0xff] %vm2383_vm0, %v2297_v51  ;;  %v1777_v54 = vadd.f32 %v4154_v61, %v1776_v52  ;;  %v2289_v55 = vadd.f32 %v4154_v61, %v2288_v53 }
 0x1c4   : > { %v3151_v56 = vpop.f32.mrf.mxu0  ;;  %v3279_v57 = vpop.f32.mrf.mxu1 }
 0x1c5   : > { %2488 = vst.msk [vmem:[%s3672_s29 + $0x340] sm:$0xff] %vm2383_vm0, %v1777_v54  ;;  %2616 = vst.msk [vmem:[%s3672_s29 + $0x740] sm:$0xff] %vm2383_vm0, %v2289_v55  ;;  %v1788_v58 = vadd.f32 %v4154_v61, %v3151_v56  ;;  %v2300_v59 = vadd.f32 %v4154_v61, %v3279_v57 }
 0x1c6   : > { %v1779_v60 = vpop.f32.mrf.mxu0  ;;  %v2291_v62 = vpop.f32.mrf.mxu1 }
 0x1c7   : > { %2491 = vst.msk [vmem:[%s3672_s29 + $0x358] sm:$0xff] %vm2383_vm0, %v1788_v58  ;;  %2619 = vst.msk [vmem:[%s3672_s29 + $0x758] sm:$0xff] %vm2383_vm0, %v2300_v59  ;;  %v1780_v63 = vadd.f32 %v4154_v61, %v1779_v60  ;;  %v2292_v0 = vadd.f32 %v4154_v61, %v2291_v62 }
 0x1c8   : > { %v3154_v1 = vpop.f32.mrf.mxu0  ;;  %v3282_v46 = vpop.f32.mrf.mxu1 }
 0x1c9   : > { %2489 = vst.msk [vmem:[%s3672_s29 + $0x348] sm:$0xff] %vm2383_vm0, %v1780_v63  ;;  %2617 = vst.msk [vmem:[%s3672_s29 + $0x748] sm:$0xff] %vm2383_vm0, %v2292_v0  ;;  %v1801_v2 = vadd.f32 %v4154_v61, %v3154_v1  ;;  %v2313_v3 = vadd.f32 %v4154_v61, %v3282_v46 }
 0x1ca   : > { %v1792_v4 = vpop.f32.mrf.mxu0  ;;  %v2304_v5 = vpop.f32.mrf.mxu1 }
 0x1cb   : > { %2494 = vst.msk [vmem:[%s3672_s29 + $0x370] sm:$0xff] %vm2383_vm0, %v1801_v2  ;;  %2622 = vst.msk [vmem:[%s3672_s29 + $0x770] sm:$0xff] %vm2383_vm0, %v2313_v3  ;;  %v1793_v6 = vadd.f32 %v4154_v61, %v1792_v4  ;;  %v2305_v7 = vadd.f32 %v4154_v61, %v2304_v5 }
 0x1cc   : > { %v3155_v8 = vpop.f32.mrf.mxu0  ;;  %v3283_v9 = vpop.f32.mrf.mxu1 }
 0x1cd   : > { %2492 = vst.msk [vmem:[%s3672_s29 + $0x360] sm:$0xff] %vm2383_vm0, %v1793_v6  ;;  %2620 = vst.msk [vmem:[%s3672_s29 + $0x760] sm:$0xff] %vm2383_vm0, %v2305_v7  ;;  %v1804_v10 = vadd.f32 %v4154_v61, %v3155_v8  ;;  %v2316_v11 = vadd.f32 %v4154_v61, %v3283_v9 }
 0x1ce   : > { %v1795_v12 = vpop.f32.mrf.mxu0  ;;  %v2307_v13 = vpop.f32.mrf.mxu1 }
 0x1cf   : > { %2495 = vst.msk [vmem:[%s3672_s29 + $0x378] sm:$0xff] %vm2383_vm0, %v1804_v10  ;;  %2623 = vst.msk [vmem:[%s3672_s29 + $0x778] sm:$0xff] %vm2383_vm0, %v2316_v11  ;;  %v1796_v14 = vadd.f32 %v4154_v61, %v1795_v12  ;;  %v2308_v15 = vadd.f32 %v4154_v61, %v2307_v13 }
 0x1d0   : > { %v3158_v16 = vpop.f32.mrf.mxu0  ;;  %v3286_v17 = vpop.f32.mrf.mxu1 }
 0x1d1   : > { %2493 = vst.msk [vmem:[%s3672_s29 + $0x368] sm:$0xff] %vm2383_vm0, %v1796_v14  ;;  %2621 = vst.msk [vmem:[%s3672_s29 + $0x768] sm:$0xff] %vm2383_vm0, %v2308_v15  ;;  %v1817_v18 = vadd.f32 %v4154_v61, %v3158_v16  ;;  %v2329_v19 = vadd.f32 %v4154_v61, %v3286_v17 }
 0x1d2   : > { %v1808_v20 = vpop.f32.mrf.mxu0  ;;  %v2320_v21 = vpop.f32.mrf.mxu1 }
 0x1d3   : > { %2498 = vst.msk [vmem:[%s3672_s29 + $0x390] sm:$0xff] %vm2383_vm0, %v1817_v18  ;;  %2626 = vst.msk [vmem:[%s3672_s29 + $0x790] sm:$0xff] %vm2383_vm0, %v2329_v19  ;;  %v1809_v22 = vadd.f32 %v4154_v61, %v1808_v20  ;;  %v2321_v23 = vadd.f32 %v4154_v61, %v2320_v21 }
 0x1d4   : > { %v3159_v24 = vpop.f32.mrf.mxu0  ;;  %v3287_v25 = vpop.f32.mrf.mxu1 }
 0x1d5   : > { %2496 = vst.msk [vmem:[%s3672_s29 + $0x380] sm:$0xff] %vm2383_vm0, %v1809_v22  ;;  %2624 = vst.msk [vmem:[%s3672_s29 + $0x780] sm:$0xff] %vm2383_vm0, %v2321_v23  ;;  %v1820_v26 = vadd.f32 %v4154_v61, %v3159_v24  ;;  %v2332_v27 = vadd.f32 %v4154_v61, %v3287_v25 }
 0x1d6   : > { %v1811_v28 = vpop.f32.mrf.mxu0  ;;  %v2323_v29 = vpop.f32.mrf.mxu1 }
 0x1d7   : > { %2499 = vst.msk [vmem:[%s3672_s29 + $0x398] sm:$0xff] %vm2383_vm0, %v1820_v26  ;;  %2627 = vst.msk [vmem:[%s3672_s29 + $0x798] sm:$0xff] %vm2383_vm0, %v2332_v27  ;;  %v1812_v30 = vadd.f32 %v4154_v61, %v1811_v28  ;;  %v2324_v31 = vadd.f32 %v4154_v61, %v2323_v29 }
 0x1d8   : > { %v3162_v32 = vpop.f32.mrf.mxu0  ;;  %v3290_v33 = vpop.f32.mrf.mxu1 }
 0x1d9   : > { %2497 = vst.msk [vmem:[%s3672_s29 + $0x388] sm:$0xff] %vm2383_vm0, %v1812_v30  ;;  %2625 = vst.msk [vmem:[%s3672_s29 + $0x788] sm:$0xff] %vm2383_vm0, %v2324_v31  ;;  %v1833_v34 = vadd.f32 %v4154_v61, %v3162_v32  ;;  %v2345_v35 = vadd.f32 %v4154_v61, %v3290_v33 }
 0x1da   : > { %v1824_v36 = vpop.f32.mrf.mxu0  ;;  %v2336_v37 = vpop.f32.mrf.mxu1 }
 0x1db   : > { %2502 = vst.msk [vmem:[%s3672_s29 + $0x3b0] sm:$0xff] %vm2383_vm0, %v1833_v34  ;;  %2630 = vst.msk [vmem:[%s3672_s29 + $0x7b0] sm:$0xff] %vm2383_vm0, %v2345_v35  ;;  %v1825_v38 = vadd.f32 %v4154_v61, %v1824_v36  ;;  %v2337_v39 = vadd.f32 %v4154_v61, %v2336_v37 }
 0x1dc   : > { %v3163_v40 = vpop.f32.mrf.mxu0  ;;  %v3291_v41 = vpop.f32.mrf.mxu1 }
 0x1dd   : > { %2500 = vst.msk [vmem:[%s3672_s29 + $0x3a0] sm:$0xff] %vm2383_vm0, %v1825_v38  ;;  %2628 = vst.msk [vmem:[%s3672_s29 + $0x7a0] sm:$0xff] %vm2383_vm0, %v2337_v39  ;;  %v1836_v42 = vadd.f32 %v4154_v61, %v3163_v40  ;;  %v2348_v43 = vadd.f32 %v4154_v61, %v3291_v41 }
 0x1de   : > { %v1827_v44 = vpop.f32.mrf.mxu0  ;;  %v2339_v45 = vpop.f32.mrf.mxu1 }
 0x1df   : > { %2503 = vst.msk [vmem:[%s3672_s29 + $0x3b8] sm:$0xff] %vm2383_vm0, %v1836_v42  ;;  %2631 = vst.msk [vmem:[%s3672_s29 + $0x7b8] sm:$0xff] %vm2383_vm0, %v2348_v43  ;;  %v1828_v47 = vadd.f32 %v4154_v61, %v1827_v44  ;;  %v2340_v48 = vadd.f32 %v4154_v61, %v2339_v45 }
 0x1e0   : > { %v3166_v49 = vpop.f32.mrf.mxu0  ;;  %v3294_v50 = vpop.f32.mrf.mxu1 }
 0x1e1   : > { %2501 = vst.msk [vmem:[%s3672_s29 + $0x3a8] sm:$0xff] %vm2383_vm0, %v1828_v47  ;;  %2629 = vst.msk [vmem:[%s3672_s29 + $0x7a8] sm:$0xff] %vm2383_vm0, %v2340_v48  ;;  %v1849_v51 = vadd.f32 %v4154_v61, %v3166_v49  ;;  %v2361_v52 = vadd.f32 %v4154_v61, %v3294_v50 }
 0x1e2   : > { %v1840_v53 = vpop.f32.mrf.mxu0  ;;  %v2352_v54 = vpop.f32.mrf.mxu1 }
 0x1e3   : > { %2506 = vst.msk [vmem:[%s3672_s29 + $0x3d0] sm:$0xff] %vm2383_vm0, %v1849_v51  ;;  %2634 = vst.msk [vmem:[%s3672_s29 + $0x7d0] sm:$0xff] %vm2383_vm0, %v2361_v52  ;;  %v1841_v55 = vadd.f32 %v4154_v61, %v1840_v53  ;;  %v2353_v56 = vadd.f32 %v4154_v61, %v2352_v54 }
 0x1e4   : > { %v3167_v57 = vpop.f32.mrf.mxu0  ;;  %v3295_v58 = vpop.f32.mrf.mxu1 }
 0x1e5   : > { %2504 = vst.msk [vmem:[%s3672_s29 + $0x3c0] sm:$0xff] %vm2383_vm0, %v1841_v55  ;;  %2632 = vst.msk [vmem:[%s3672_s29 + $0x7c0] sm:$0xff] %vm2383_vm0, %v2353_v56  ;;  %v1852_v59 = vadd.f32 %v4154_v61, %v3167_v57  ;;  %v2364_v60 = vadd.f32 %v4154_v61, %v3295_v58 }
 0x1e6   : > { %v1843_v62 = vpop.f32.mrf.mxu0  ;;  %v2355_v63 = vpop.f32.mrf.mxu1 }
 0x1e7   : > { %2507 = vst.msk [vmem:[%s3672_s29 + $0x3d8] sm:$0xff] %vm2383_vm0, %v1852_v59  ;;  %2635 = vst.msk [vmem:[%s3672_s29 + $0x7d8] sm:$0xff] %vm2383_vm0, %v2364_v60  ;;  %v1844_v0 = vadd.f32 %v4154_v61, %v1843_v62  ;;  %v2356_v1 = vadd.f32 %v4154_v61, %v2355_v63 }
 0x1e8   : > { %v3170_v46 = vpop.f32.mrf.mxu0  ;;  %v3298_v2 = vpop.f32.mrf.mxu1 }
 0x1e9   : > { %2505 = vst.msk [vmem:[%s3672_s29 + $0x3c8] sm:$0xff] %vm2383_vm0, %v1844_v0  ;;  %2633 = vst.msk [vmem:[%s3672_s29 + $0x7c8] sm:$0xff] %vm2383_vm0, %v2356_v1  ;;  %v1865_v3 = vadd.f32 %v4154_v61, %v3170_v46  ;;  %v2377_v4 = vadd.f32 %v4154_v61, %v3298_v2 }
 0x1ea   : > { %v1856_v5 = vpop.f32.mrf.mxu0  ;;  %v2368_v6 = vpop.f32.mrf.mxu1 }
 0x1eb   : > { %2510 = vst.msk [vmem:[%s3672_s29 + $0x3f0] sm:$0xff] %vm2383_vm0, %v1865_v3  ;;  %2638 = vst.msk [vmem:[%s3672_s29 + $0x7f0] sm:$0xff] %vm2383_vm0, %v2377_v4  ;;  %v1857_v7 = vadd.f32 %v4154_v61, %v1856_v5  ;;  %v2369_v8 = vadd.f32 %v4154_v61, %v2368_v6 }
 0x1ec   : > { %v3171_v9 = vpop.f32.mrf.mxu0  ;;  %v3299_v10 = vpop.f32.mrf.mxu1 }
 0x1ed   : > { %2508 = vst.msk [vmem:[%s3672_s29 + $0x3e0] sm:$0xff] %vm2383_vm0, %v1857_v7  ;;  %2636 = vst.msk [vmem:[%s3672_s29 + $0x7e0] sm:$0xff] %vm2383_vm0, %v2369_v8  ;;  %v1868_v11 = vadd.f32 %v4154_v61, %v3171_v9  ;;  %v2380_v12 = vadd.f32 %v4154_v61, %v3299_v10 }
 0x1ee   : > { %v1859_v13 = vpop.f32.mrf.mxu0  ;;  %v2371_v14 = vpop.f32.mrf.mxu1 }
 0x1ef   : > { %2511 = vst.msk [vmem:[%s3672_s29 + $0x3f8] sm:$0xff] %vm2383_vm0, %v1868_v11  ;;  %2639 = vst.msk [vmem:[%s3672_s29 + $0x7f8] sm:$0xff] %vm2383_vm0, %v2380_v12  ;;  %v1860_v15 = vadd.f32 %v4154_v61, %v1859_v13  ;;  %v2372_v16 = vadd.f32 %v4154_v61, %v2371_v14 }
 0x1f1   : > { %2509 = vst.msk [vmem:[%s3672_s29 + $0x3e8] sm:$0xff] %vm2383_vm0, %v1860_v15  ;;  %2637 = vst.msk [vmem:[%s3672_s29 + $0x7e8] sm:$0xff] %vm2383_vm0, %v2372_v16 }
 0x1f2 PF: > { %s13_s14 = sadd.s32 1, %s3499_s14   ;;  %s4486_s12 = smov %s3495_s13 }
 0x1f3   : > { %p10_p5 = scmp.ge.s32.totalorder %s13_s14, 6   ;;  %s4487_s13 = smov %s4489_s15 }
 0x1f5   :  { %12 = sbr.rel (!%p10_p5) target bundleno = 2 (0x2), region = 65 }

</bundles_post_ra>
